<compile_context>
chip_gen: v5e
topology: v5e:2x2
jax: 0.10.0
libtpu: 0.0.40
codegen_flags: <defaults>
</compile_context>

<pallas_src>
import functools
import math

import jax
import jax.numpy as jnp
import numpy as np
from jax.experimental import pallas as pl
from jax.experimental.pallas import tpu as pltpu


def _compute_vmem_limit():
    """Generation-aware scoped-VMEM budget: ~96 MiB on 128-MiB parts (v5e/v6e),
    ~48 MiB on 64-MiB parts (v7x); conservative fallback if the query fails."""
    try:
        phys = int(pltpu.get_tpu_info().vmem_capacity_bytes)
    except Exception:
        phys = 64 << 20
    return int(max(32 << 20, min(96 << 20, phys - (16 << 20))))


_VMEM_LIMIT = _compute_vmem_limit()


def _pick_tile(dim, prefs):
    for t in prefs:
        if dim % t == 0:
            return t
    return dim


# ----------------------------- fused QKV + RoPE kernel -------------------------

def _qkv_rope_kernel(x_ref, w_ref, b_ref, cos_ref, sin_ref,
                     q_ref, k_ref, v_ref, acc_ref,
                     *, n_heads, n_kv_heads, head_dim):
    """acc += x_tile @ [wq|wk|wv]; on the last K step add bias, apply RoPE and
    write q / k / v directly in attention-ready layouts (no plain-JAX glue)."""
    kstep = pl.program_id(2)

    @pl.when(kstep == 0)
    def _init():
        acc_ref[...] = jnp.zeros_like(acc_ref)

    acc_ref[...] += jnp.dot(x_ref[0], w_ref[...],
                            preferred_element_type=jnp.float32)

    @pl.when(kstep == pl.num_programs(2) - 1)
    def _finalize():
        hd = head_dim
        n_rep = n_heads // n_kv_heads
        nq = n_heads * hd
        nkv = n_kv_heads * hd

        y = acc_ref[...] + b_ref[...]          # (tq, nq + 2*nkv), f32
        tq = y.shape[0]
        cos = cos_ref[...]                     # (tq, hd) = [cos | cos]
        sin = sin_ref[...]                     # (tq, hd) = [-sin | sin]

        def rope(z):
            # Head features are already de-interleaved to [even | odd] by the
            # precomputed weight permutation, so RoPE is one XLU half-rotate
            # plus two VPU multiplies -- no lane-select concatenates.
            return z * cos + pltpu.roll(z, shift=hd // 2, axis=1) * sin

        for g in range(n_kv_heads):
            for r in range(n_rep):
                hidx = g * n_rep + r
                q_ref[0, 0, g, r * tq:(r + 1) * tq, :] = (
                    rope(y[:, hidx * hd:(hidx + 1) * hd]).astype(q_ref.dtype))
            k_ref[0, g] = rope(
                y[:, nq + g * hd: nq + (g + 1) * hd]).astype(k_ref.dtype)
            v_ref[0, g] = y[:, nq + nkv + g * hd:
                            nq + nkv + (g + 1) * hd].astype(v_ref.dtype)


def qkv_rope_pallas(x, wqkv, bqkv, cos_full, sin_signed, n_heads, n_kv_heads,
                    *, seq_tile, out_dtype=jnp.bfloat16):
    """x: (B,S,D); wqkv: (D, nq+2*nkv) bf16; bqkv: (1, nq+2*nkv) f32;
    cos_full/sin_signed: (S, hd) f32.
    Returns q: (B, S//seq_tile, n_kv_heads, n_rep*seq_tile, hd) -- the query
    heads of each kv group stacked on the sublane axis per sequence tile
    (flash-kernel ready) -- and k / v: (B, n_kv_heads, S, hd)."""
    B, S, D = x.shape
    ntot = wqkv.shape[1]
    hd = ntot // (n_heads + 2 * n_kv_heads)
    assert hd * (n_heads + 2 * n_kv_heads) == ntot and hd % 2 == 0
    n_rep = n_heads // n_kv_heads

    tq = seq_tile
    assert S % tq == 0
    tk = _pick_tile(D, (512, 256, 128))

    # Keep the resident f32 accumulator + double-buffered weight strip within
    # the scoped-VMEM budget (matters for dim>=4096 configs on v7x's 64 MiB).
    def _est(tk_):
        return (tq * ntot * 4            # f32 accumulator
                + 2 * tk_ * ntot * 2     # double-buffered weight strip (bf16)
                + 2 * tq * tk_ * 2       # double-buffered x tile (bf16)
                + 2 * 2 * tq * ntot * 2  # double-buffered q/k/v output blocks
                + 2 * 2 * tq * hd * 4)   # cos/sin blocks

    while tk > 128 and D % (tk // 2) == 0 and _est(tk) > (_VMEM_LIMIT * 3) // 4:
        tk //= 2

    n_qtiles = S // tq
    grid = (B, n_qtiles, D // tk)

    kernel = functools.partial(_qkv_rope_kernel, n_heads=n_heads,
                               n_kv_heads=n_kv_heads, head_dim=hd)
    return pl.pallas_call(
        kernel,
        out_shape=(
            jax.ShapeDtypeStruct((B, n_qtiles, n_kv_heads, n_rep * tq, hd),
                                 out_dtype),
            jax.ShapeDtypeStruct((B, n_kv_heads, S, hd), out_dtype),
            jax.ShapeDtypeStruct((B, n_kv_heads, S, hd), out_dtype),
        ),
        grid=grid,
        in_specs=[
            pl.BlockSpec((1, tq, tk), lambda b, q, k: (b, q, k)),
            pl.BlockSpec((tk, ntot), lambda b, q, k: (k, 0)),
            pl.BlockSpec((1, ntot), lambda b, q, k: (0, 0)),
            pl.BlockSpec((tq, hd), lambda b, q, k: (q, 0)),
            pl.BlockSpec((tq, hd), lambda b, q, k: (q, 0)),
        ],
        out_specs=(
            pl.BlockSpec((1, 1, n_kv_heads, n_rep * tq, hd),
                         lambda b, q, k: (b, q, 0, 0, 0)),
            pl.BlockSpec((1, n_kv_heads, tq, hd), lambda b, q, k: (b, 0, q, 0)),
            pl.BlockSpec((1, n_kv_heads, tq, hd), lambda b, q, k: (b, 0, q, 0)),
        ),
        scratch_shapes=[pltpu.VMEM((tq, ntot), jnp.float32)],
        compiler_params=pltpu.CompilerParams(
            dimension_semantics=("parallel", "parallel", "arbitrary"),
            vmem_limit_bytes=_VMEM_LIMIT,
        ),
    )(x, wqkv, bqkv, cos_full, sin_signed)


# ----------------------------- flash GQA causal attention ----------------------

@functools.lru_cache(maxsize=None)
def _causal_tile_schedule(n_tiles):
    """Flattened (qi, ki) pairs covering only the live causal kv tiles:
    for each q tile qi, ki = 0..qi (kv innermost, diagonal tile last)."""
    qi = np.repeat(np.arange(n_tiles), np.arange(n_tiles) + 1)
    ki = np.concatenate([np.arange(q + 1) for q in range(n_tiles)])
    return (jnp.asarray(qi, dtype=jnp.int32), jnp.asarray(ki, dtype=jnp.int32))


def _flash_gqa_kernel(qi_sched_ref, ki_sched_ref, q_ref, k_ref, v_ref, o_ref,
                      m_scr, l_scr, acc_scr, *, n_rep, tile):
    """One live causal tile: a single (n_rep*tile, hd) x (hd, tile) QK^T for all
    query heads of the kv group, a vectorized online-softmax update, and (on the
    diagonal tile, which is the last live tile per q tile) the masked update
    plus the normalization / per-head store epilogue."""
    t = pl.program_id(2)
    qi = qi_sched_ref[t]
    ki = ki_sched_ref[t]

    @pl.when(ki == 0)
    def _init():
        m_scr[...] = jnp.full_like(m_scr, -1e30)
        l_scr[...] = jnp.zeros_like(l_scr)
        acc_scr[...] = jnp.zeros_like(acc_scr)

    q = q_ref[0, 0, 0]                        # (n_rep*tile, hd) bf16, pre-scaled
    k = k_ref[0, 0]                           # (tile, hd) bf16
    v = v_ref[0, 0]                           # (tile, hd) bf16
    rows, hd = q.shape

    def update(apply_mask):
        s = jax.lax.dot_general(q, k, (((1,), (1,)), ((), ())),
                                preferred_element_type=jnp.float32)  # (rows, tile)
        if apply_mask:
            row = jax.lax.broadcasted_iota(jnp.int32, (rows, tile), 0)
            col = jax.lax.broadcasted_iota(jnp.int32, (rows, tile), 1)
            qpos = qi * tile + (row & (tile - 1))   # tile is a power of two
            kpos = ki * tile + col
            s = jnp.where(qpos >= kpos, s, jnp.float32(-1e30))
        m_prev = m_scr[...]
        m_new = jnp.maximum(m_prev, jnp.max(s, axis=-1, keepdims=True))
        alpha = jnp.exp(m_prev - m_new)
        p = jnp.exp(s - m_new)
        l_scr[...] = alpha * l_scr[...] + jnp.sum(p, axis=-1, keepdims=True)
        acc_scr[...] = alpha * acc_scr[...] + jnp.dot(
            p.astype(v.dtype), v, preferred_element_type=jnp.float32)
        m_scr[...] = m_new

    @pl.when(ki < qi)
    def _interior_tile():            # strictly below the diagonal: no mask
        update(apply_mask=False)

    @pl.when(ki == qi)
    def _diagonal_tile():            # last live kv tile: mask + epilogue
        update(apply_mask=True)
        out = acc_scr[...] * pl.reciprocal(l_scr[...], approx=True)
        for r in range(n_rep):       # 128-lane-aligned per-head stores, no concat
            o_ref[0, :, r * hd:(r + 1) * hd] = (
                out[r * tile:(r + 1) * tile, :].astype(o_ref.dtype))


def flash_gqa_attention_pallas(q, k, v, n_rep, *, out_dtype=jnp.bfloat16):
    """q: (B, S//tile, n_kv_heads, n_rep*tile, hd) pre-scaled + RoPE'd;
    k/v: (B, n_kv_heads, S, hd). Returns (B, S, n_heads*hd), original head order."""
    B, n_qtiles, kvh, rows, hd = q.shape
    tile = rows // n_rep
    S = n_qtiles * tile
    nq = kvh * n_rep * hd
    assert k.shape == (B, kvh, S, hd) and v.shape == (B, kvh, S, hd)
    assert tile & (tile - 1) == 0, "sequence tile must be a power of two"

    qi_sched, ki_sched = _causal_tile_schedule(n_qtiles)
    n_live = int(qi_sched.shape[0])

    kernel = functools.partial(_flash_gqa_kernel, n_rep=n_rep, tile=tile)
    grid_spec = pltpu.PrefetchScalarGridSpec(
        num_scalar_prefetch=2,
        grid=(B, kvh, n_live),
        in_specs=[
            pl.BlockSpec((1, 1, 1, rows, hd),
                         lambda b, g, t, qi, ki: (b, qi[t], g, 0, 0)),
            pl.BlockSpec((1, 1, tile, hd),
                         lambda b, g, t, qi, ki: (b, g, ki[t], 0)),
            pl.BlockSpec((1, 1, tile, hd),
                         lambda b, g, t, qi, ki: (b, g, ki[t], 0)),
        ],
        out_specs=pl.BlockSpec((1, tile, n_rep * hd),
                               lambda b, g, t, qi, ki: (b, qi[t], g)),
        scratch_shapes=[
            pltpu.VMEM((rows, 1), jnp.float32),    # running max
            pltpu.VMEM((rows, 1), jnp.float32),    # running denominator
            pltpu.VMEM((rows, hd), jnp.float32),   # output accumulator
        ],
    )
    return pl.pallas_call(
        kernel,
        out_shape=jax.ShapeDtypeStruct((B, S, nq), out_dtype),
        grid_spec=grid_spec,
        compiler_params=pltpu.CompilerParams(
            dimension_semantics=("parallel", "parallel", "arbitrary"),
            vmem_limit_bytes=_VMEM_LIMIT,
        ),
    )(qi_sched, ki_sched, q, k, v)


# ----------------------------- tiled linear (O projection) ---------------------

def _linear_kernel(x_ref, w_ref, b_ref, o_ref, acc_ref):
    kstep = pl.program_id(2)

    @pl.when(kstep == 0)
    def _init():
        acc_ref[...] = jnp.zeros_like(acc_ref)

    acc_ref[...] += jnp.dot(x_ref[...], w_ref[...],
                            preferred_element_type=jnp.float32)

    @pl.when(kstep == pl.num_programs(2) - 1)
    def _finalize():
        o_ref[...] = (acc_ref[...] + b_ref[...]).astype(o_ref.dtype)


def linear_pallas(x2d, w, b2d, *, out_dtype=jnp.float32):
    """y = x2d @ w + b (w is (in, out), b2d is (1, out)); tiled, pipelined."""
    M, K = x2d.shape
    N = w.shape[1]
    tm = _pick_tile(M, (512, 256, 128))
    tn = _pick_tile(N, (512, 256, 128))
    tk = _pick_tile(K, (1024, 512, 256, 128))
    grid = (M // tm, N // tn, K // tk)

    return pl.pallas_call(
        _linear_kernel,
        out_shape=jax.ShapeDtypeStruct((M, N), out_dtype),
        grid=grid,
        in_specs=[
            pl.BlockSpec((tm, tk), lambda i, j, k: (i, k)),
            pl.BlockSpec((tk, tn), lambda i, j, k: (k, j)),
            pl.BlockSpec((1, tn), lambda i, j, k: (0, j)),
        ],
        out_specs=pl.BlockSpec((tm, tn), lambda i, j, k: (i, j)),
        scratch_shapes=[pltpu.VMEM((tm, tn), jnp.float32)],
        compiler_params=pltpu.CompilerParams(
            dimension_semantics=("parallel", "parallel", "arbitrary"),
            vmem_limit_bytes=_VMEM_LIMIT,
        ),
    )(x2d, w, b2d)


# ----------------------------- one-time parameter preparation -------------------

def make_freqs(seqlen, head_dim, theta=10000.0):
    freqs = 1.0 / (theta ** (jnp.arange(0, head_dim, 2, dtype=jnp.float32) / head_dim))
    t = jnp.arange(seqlen, dtype=jnp.float32)
    ang = jnp.outer(t, freqs)                    # (S, hd/2)
    return jnp.cos(ang), jnp.sin(ang)


def _deinterleave_perm(heads, hd):
    # within each head: [0,2,4,...,hd-2, 1,3,5,...,hd-1]
    base = np.concatenate([np.arange(0, hd, 2), np.arange(1, hd, 2)])
    return (np.arange(heads)[:, None] * hd + base[None, :]).reshape(-1)


def prepare_attention_params(params, n_heads, n_kv_heads, max_seq_len, rope_theta,
                             *, compute_dtype=jnp.bfloat16):
    """One-time (weight-load-time) parameter rewrite.  Folds (a) the
    1/sqrt(head_dim) attention scale and (b) the RoPE even/odd de-interleave
    into wq/wk/bq/bk (exact rewrites: RoPE is a rotation and q.k scores are
    invariant to a per-head feature permutation applied to both q and k),
    concatenates the fused QKV weight, transposes wo, and precomputes the
    full-head-width cos / signed-sin RoPE tables."""
    wq, bq, wk, bk, wv, bv, wo, bo = params
    D = wq.shape[1]
    hd = D // n_heads
    scale = 1.0 / math.sqrt(hd)
    perm_q = _deinterleave_perm(n_heads, hd)
    perm_k = _deinterleave_perm(n_kv_heads, hd)
    wq_p = (wq * scale)[perm_q, :]
    bq_p = (bq * scale)[perm_q]
    wk_p = wk[perm_k, :]
    bk_p = bk[perm_k]

    wqkv = jnp.concatenate([wq_p.T, wk_p.T, wv.T], axis=1).astype(compute_dtype)
    bqkv = jnp.concatenate([bq_p, bk_p, bv]).reshape(1, -1).astype(jnp.float32)

    cos, sin = make_freqs(max_seq_len, hd, rope_theta)          # (S, hd/2)
    cos_full = jnp.concatenate([cos, cos], axis=-1)             # (S, hd)
    sin_signed = jnp.concatenate([-sin, sin], axis=-1)          # (S, hd)

    return dict(
        wqkv=wqkv,
        bqkv=bqkv,
        wo_t=wo.T.astype(compute_dtype),
        bo=bo.reshape(1, -1).astype(jnp.float32),
        cos=cos_full,
        sin=sin_signed,
    )


# ----------------------------- forward (per-call hot path) ----------------------

def attention_forward(x, prep, n_heads, n_kv_heads, *, compute_dtype=jnp.bfloat16):
    """Attention.forward: mask='causal', start_pos=0, no kv cache."""
    B, S, D = x.shape
    hd = D // n_heads
    assert n_heads % n_kv_heads == 0
    n_rep = n_heads // n_kv_heads
    nq = n_heads * hd
    assert hd % 128 == 0, "head_dim must be a multiple of the 128-lane width"
    # TODO(synk): sequences not padded to a multiple of 128 need a ragged-tail path.
    assert S % 128 == 0
    seq_tile = 256 if S % 256 == 0 else 128   # 256 fills the 256x256 MXU on v6e/v7x

    q, k, v = qkv_rope_pallas(
        x.astype(compute_dtype), prep["wqkv"], prep["bqkv"],
        prep["cos"][:S], prep["sin"][:S],
        n_heads, n_kv_heads, seq_tile=seq_tile, out_dtype=compute_dtype)

    attn = flash_gqa_attention_pallas(q, k, v, n_rep, out_dtype=compute_dtype)
    attn2d = attn.reshape(B * S, nq)          # original head order -> no transpose

    out = linear_pallas(attn2d, prep["wo_t"], prep["bo"], out_dtype=jnp.float32)
    return out.reshape(B, S, D)


# ----------------------------- pure-JAX f32 reference --------------------------

def apply_rotary_emb(x, cos, sin):
    # x: (B, S, H, hd); interleaved (real, imag) pairs along last dim (llama).
    B, S, H, hd = x.shape
    xr = x.reshape(B, S, H, hd // 2, 2)
    x0, x1 = xr[..., 0], xr[..., 1]
    c = cos[None, :, None, :]
    s = sin[None, :, None, :]
    o0 = x0 * c - x1 * s
    o1 = x0 * s + x1 * c
    return jnp.stack([o0, o1], axis=-1).reshape(B, S, H, hd)


def reference_forward(x, params, cos, sin, n_heads, n_kv_heads):
    wq, bq, wk, bk, wv, bv, wo, bo = params
    B, S, D = x.shape
    head_dim = D // n_heads
    n_rep = n_heads // n_kv_heads

    xq = (x @ wq.T + bq).reshape(B, S, n_heads, head_dim)
    xk = (x @ wk.T + bk).reshape(B, S, n_kv_heads, head_dim)
    xv = (x @ wv.T + bv).reshape(B, S, n_kv_heads, head_dim)
    xq = apply_rotary_emb(xq, cos, sin)
    xk = apply_rotary_emb(xk, cos, sin)

    keys = jnp.repeat(xk, n_rep, axis=2)
    values = jnp.repeat(xv, n_rep, axis=2)
    q = jnp.transpose(xq, (0, 2, 1, 3))
    k = jnp.transpose(keys, (0, 2, 1, 3))
    v = jnp.transpose(values, (0, 2, 1, 3))

    scale = 1.0 / math.sqrt(head_dim)
    s = jnp.einsum("bhqd,bhkd->bhqk", q, k) * scale
    qi = jnp.arange(S)[:, None]
    ki = jnp.arange(S)[None, :]
    s = jnp.where(qi >= ki, s, -jnp.inf)
    p = jax.nn.softmax(s, axis=-1)
    o = jnp.einsum("bhqk,bhkd->bhqd", p, v)
    o = jnp.transpose(o, (0, 2, 1, 3)).reshape(B, S, n_heads * head_dim)
    return o @ wo.T + bo


# ----------------------------- main ---------------------------------------------

if __name__ == "__main__":
    # Small but TPU-tile-friendly ModelArgs-consistent config.
    B, S = 2, 256
    dim = 512
    n_heads = 4
    n_kv_heads = 2
    head_dim = dim // n_heads        # 128
    rope_theta = 10000.0

    key = jax.random.PRNGKey(0)
    ks = jax.random.split(key, 9)

    def kaiming_uniform(k, out_f, in_f):
        # kaiming_uniform_(a=sqrt(5)) -> bound = 1/sqrt(fan_in)
        bound = 1.0 / math.sqrt(in_f)
        return jax.random.uniform(k, (out_f, in_f), jnp.float32, -bound, bound)

    def bias_init(k, out_f, in_f):
        bound = 1.0 / math.sqrt(in_f)
        return jax.random.uniform(k, (out_f,), jnp.float32, -bound, bound)

    wq = kaiming_uniform(ks[0], n_heads * head_dim, dim)
    bq = bias_init(ks[1], n_heads * head_dim, dim)
    wk = kaiming_uniform(ks[2], n_kv_heads * head_dim, dim)
    bk = bias_init(ks[3], n_kv_heads * head_dim, dim)
    wv = kaiming_uniform(ks[4], n_kv_heads * head_dim, dim)
    bv = bias_init(ks[5], n_kv_heads * head_dim, dim)
    wo = kaiming_uniform(ks[6], dim, n_heads * head_dim)
    bo = bias_init(ks[7], dim, n_heads * head_dim)
    params = (wq, bq, wk, bk, wv, bv, wo, bo)

    x = jax.random.normal(ks[8], (B, S, dim), jnp.float32)

    # One-time parameter rewrite (hoisted out of the per-call hot path).
    prep = prepare_attention_params(params, n_heads, n_kv_heads,
                                    max_seq_len=S, rope_theta=rope_theta)
    prep = jax.tree_util.tree_map(jax.block_until_ready, prep)

    out = attention_forward(x, prep, n_heads, n_kv_heads)
    out = jax.block_until_ready(out)

    cos, sin = make_freqs(S, head_dim, rope_theta)
    ref = reference_forward(x, params, cos, sin, n_heads, n_kv_heads)

    # bf16 MXU inputs with f32 accumulation -> loosened tolerance vs f32 reference.
    np.testing.assert_allclose(np.asarray(out), np.asarray(ref),
                               rtol=2e-2, atol=2e-2)
    print("KERNEL_OK")
</pallas_src>

<mosaic_0001>
module attributes {stable_mosaic.version = 11 : i64} {
  func.func @_qkv_rope_kernel(%arg0: i32, %arg1: i32, %arg2: i32, %arg3: memref<1x256x512xbf16, #tpu.memory_space<vmem>>, %arg4: memref<512x1024xbf16, #tpu.memory_space<vmem>>, %arg5: memref<1x1024xf32, #tpu.memory_space<vmem>>, %arg6: memref<256x128xf32, #tpu.memory_space<vmem>>, %arg7: memref<256x128xf32, #tpu.memory_space<vmem>>, %arg8: memref<1x1x2x512x128xbf16, #tpu.memory_space<vmem>>, %arg9: memref<1x2x256x128xbf16, #tpu.memory_space<vmem>>, %arg10: memref<1x2x256x128xbf16, #tpu.memory_space<vmem>>, %arg11: memref<256x1024xf32, #tpu.memory_space<vmem>>) attributes {dimension_semantics = [#tpu.dimension_semantics<parallel>, #tpu.dimension_semantics<parallel>, #tpu.dimension_semantics<arbitrary>], iteration_bounds = array<i64: 2, 1, 1>, scalar_prefetch = 0 : i64, scratch_operands = 1 : i64, tpu.core_type = #tpu.core_type<tc>, window_params = [{transform_indices = @transform_0, window_bounds = array<i64: 1, 256, 512>}, {transform_indices = @transform_1, window_bounds = array<i64: 512, 1024>}, {pipeline_mode = #tpu.pipeline_mode<synchronous>, transform_indices = @transform_2, window_bounds = array<i64: 1, 1024>}, {transform_indices = @transform_3, window_bounds = array<i64: 256, 128>}, {transform_indices = @transform_4, window_bounds = array<i64: 256, 128>}, {transform_indices = @transform_5, window_bounds = array<i64: 1, 1, 2, 512, 128>}, {transform_indices = @transform_6, window_bounds = array<i64: 1, 2, 256, 128>}, {transform_indices = @transform_7, window_bounds = array<i64: 1, 2, 256, 128>}]} {
    %c0_i32 = arith.constant 0 : i32
    %0 = arith.cmpi eq, %arg2, %c0_i32 : i32
    %1 = arith.extui %0 : i1 to i32
    %c0_i32_0 = arith.constant 0 : i32
    %2 = arith.cmpi ne, %1, %c0_i32_0 : i32
    scf.if %2 {
      %cst_11 = arith.constant 0.000000e+00 : f32
      %13 = vector.broadcast %cst_11 : f32 to vector<256x1024xf32>
      %c0_12 = arith.constant 0 : index
      %c0_13 = arith.constant 0 : index
      %14 = vector.load %arg11[%c0_12, %c0_13] : memref<256x1024xf32, #tpu.memory_space<vmem>>, vector<256x1024xf32>
      tpu.vector_store %arg11[%c0_12, %c0_13], %13 {strides = array<i32>} : memref<256x1024xf32, #tpu.memory_space<vmem>>, vector<256x1024xf32>,
    } else {
    }
    %c0 = arith.constant 0 : index
    %c0_1 = arith.constant 0 : index
    %3 = vector.load %arg11[%c0, %c0_1] : memref<256x1024xf32, #tpu.memory_space<vmem>>, vector<256x1024xf32>
    %c0_2 = arith.constant 0 : index
    %c0_3 = arith.constant 0 : index
    %c0_4 = arith.constant 0 : index
    %4 = vector.load %arg3[%c0_2, %c0_3, %c0_4] : memref<1x256x512xbf16, #tpu.memory_space<vmem>>, vector<1x256x512xbf16>
    %5 = vector.shape_cast %4 : vector<1x256x512xbf16> to vector<256x512xbf16>
    %c0_5 = arith.constant 0 : index
    %c0_6 = arith.constant 0 : index
    %6 = vector.load %arg4[%c0_5, %c0_6] : memref<512x1024xbf16, #tpu.memory_space<vmem>>, vector<512x1024xbf16>
    %cst = arith.constant dense<0.000000e+00> : vector<256x1024xf32>
    %7 = tpu.matmul %5, %6, %cst {dimension_numbers = #tpu.dot_dimension_numbers<[1], [0], [0], [1], [0, 0, 1, 1], [], []>} : vector<256x512xbf16>, vector<512x1024xbf16>, vector<256x1024xf32> -> vector<256x1024xf32>
    %8 = arith.addf %3, %7 : vector<256x1024xf32>
    %c0_7 = arith.constant 0 : index
    %c0_8 = arith.constant 0 : index
    %9 = vector.load %arg11[%c0_7, %c0_8] : memref<256x1024xf32, #tpu.memory_space<vmem>>, vector<256x1024xf32>
    tpu.vector_store %arg11[%c0_7, %c0_8], %8 {strides = array<i32>} : memref<256x1024xf32, #tpu.memory_space<vmem>>, vector<256x1024xf32>,
    %c0_i32_9 = arith.constant 0 : i32
    %10 = arith.cmpi eq, %arg2, %c0_i32_9 : i32
    %11 = arith.extui %10 : i1 to i32
    %c0_i32_10 = arith.constant 0 : i32
    %12 = arith.cmpi ne, %11, %c0_i32_10 : i32
    scf.if %12 {
      %c0_11 = arith.constant 0 : index
      %c0_12 = arith.constant 0 : index
      %13 = vector.load %arg11[%c0_11, %c0_12] : memref<256x1024xf32, #tpu.memory_space<vmem>>, vector<256x1024xf32>
      %c0_13 = arith.constant 0 : index
      %c0_14 = arith.constant 0 : index
      %14 = vector.load %arg5[%c0_13, %c0_14] : memref<1x1024xf32, #tpu.memory_space<vmem>>, vector<1x1024xf32>
      %15 = vector.broadcast %14 : vector<1x1024xf32> to vector<256x1024xf32>
      %16 = arith.addf %13, %15 : vector<256x1024xf32>
      %c0_15 = arith.constant 0 : index
      %c0_16 = arith.constant 0 : index
      %17 = vector.load %arg6[%c0_15, %c0_16] : memref<256x128xf32, #tpu.memory_space<vmem>>, vector<256x128xf32>
      %c0_17 = arith.constant 0 : index
      %c0_18 = arith.constant 0 : index
      %18 = vector.load %arg7[%c0_17, %c0_18] : memref<256x128xf32, #tpu.memory_space<vmem>>, vector<256x128xf32>
      %19 = vector.extract_strided_slice %16 {offsets = [0, 0], sizes = [256, 128], strides = [1, 1]} : vector<256x1024xf32> to vector<256x128xf32>
      %20 = arith.mulf %19, %17 : vector<256x128xf32>
      %c64_i32 = arith.constant 64 : i32
      %21 = tpu.dynamic_rotate %19 by %c64_i32 dim 1 : vector<256x128xf32>, i32 -> vector<256x128xf32>
      %22 = arith.mulf %21, %18 : vector<256x128xf32>
      %23 = arith.addf %20, %22 : vector<256x128xf32>
      %24 = arith.truncf %23 : vector<256x128xf32> to vector<256x128xbf16>
      %c0_19 = arith.constant 0 : index
      %c0_20 = arith.constant 0 : index
      %c0_21 = arith.constant 0 : index
      %c0_22 = arith.constant 0 : index
      %c0_23 = arith.constant 0 : index
      %25 = vector.load %arg8[%c0_19, %c0_20, %c0_21, %c0_22, %c0_23] : memref<1x1x2x512x128xbf16, #tpu.memory_space<vmem>>, vector<1x1x1x256x128xbf16>
      %26 = vector.shape_cast %25 : vector<1x1x1x256x128xbf16> to vector<256x128xbf16>
      %27 = vector.shape_cast %24 : vector<256x128xbf16> to vector<1x1x1x256x128xbf16>
      tpu.vector_store %arg8[%c0_19, %c0_20, %c0_21, %c0_22, %c0_23], %27 {strides = array<i32>} : memref<1x1x2x512x128xbf16, #tpu.memory_space<vmem>>, vector<1x1x1x256x128xbf16>,
      %28 = vector.extract_strided_slice %16 {offsets = [0, 128], sizes = [256, 128], strides = [1, 1]} : vector<256x1024xf32> to vector<256x128xf32>
      %29 = arith.mulf %28, %17 : vector<256x128xf32>
      %c64_i32_24 = arith.constant 64 : i32
      %30 = tpu.dynamic_rotate %28 by %c64_i32_24 dim 1 : vector<256x128xf32>, i32 -> vector<256x128xf32>
      %31 = arith.mulf %30, %18 : vector<256x128xf32>
      %32 = arith.addf %29, %31 : vector<256x128xf32>
      %33 = arith.truncf %32 : vector<256x128xf32> to vector<256x128xbf16>
      %c0_25 = arith.constant 0 : index
      %c0_26 = arith.constant 0 : index
      %c0_27 = arith.constant 0 : index
      %c256 = arith.constant 256 : index
      %c0_28 = arith.constant 0 : index
      %34 = vector.load %arg8[%c0_25, %c0_26, %c0_27, %c256, %c0_28] : memref<1x1x2x512x128xbf16, #tpu.memory_space<vmem>>, vector<1x1x1x256x128xbf16>
      %35 = vector.shape_cast %34 : vector<1x1x1x256x128xbf16> to vector<256x128xbf16>
      %36 = vector.shape_cast %33 : vector<256x128xbf16> to vector<1x1x1x256x128xbf16>
      tpu.vector_store %arg8[%c0_25, %c0_26, %c0_27, %c256, %c0_28], %36 {strides = array<i32>} : memref<1x1x2x512x128xbf16, #tpu.memory_space<vmem>>, vector<1x1x1x256x128xbf16>,
      %37 = vector.extract_strided_slice %16 {offsets = [0, 512], sizes = [256, 128], strides = [1, 1]} : vector<256x1024xf32> to vector<256x128xf32>
      %38 = arith.mulf %37, %17 : vector<256x128xf32>
      %c64_i32_29 = arith.constant 64 : i32
      %39 = tpu.dynamic_rotate %37 by %c64_i32_29 dim 1 : vector<256x128xf32>, i32 -> vector<256x128xf32>
      %40 = arith.mulf %39, %18 : vector<256x128xf32>
      %41 = arith.addf %38, %40 : vector<256x128xf32>
      %42 = arith.truncf %41 : vector<256x128xf32> to vector<256x128xbf16>
      %c0_30 = arith.constant 0 : index
      %c0_31 = arith.constant 0 : index
      %c0_32 = arith.constant 0 : index
      %c0_33 = arith.constant 0 : index
      %43 = vector.load %arg9[%c0_30, %c0_31, %c0_32, %c0_33] : memref<1x2x256x128xbf16, #tpu.memory_space<vmem>>, vector<1x1x256x128xbf16>
      %44 = vector.shape_cast %43 : vector<1x1x256x128xbf16> to vector<256x128xbf16>
      %45 = vector.shape_cast %42 : vector<256x128xbf16> to vector<1x1x256x128xbf16>
      tpu.vector_store %arg9[%c0_30, %c0_31, %c0_32, %c0_33], %45 {strides = array<i32>} : memref<1x2x256x128xbf16, #tpu.memory_space<vmem>>, vector<1x1x256x128xbf16>,
      %46 = vector.extract_strided_slice %16 {offsets = [0, 768], sizes = [256, 128], strides = [1, 1]} : vector<256x1024xf32> to vector<256x128xf32>
      %47 = arith.truncf %46 : vector<256x128xf32> to vector<256x128xbf16>
      %c0_34 = arith.constant 0 : index
      %c0_35 = arith.constant 0 : index
      %c0_36 = arith.constant 0 : index
      %c0_37 = arith.constant 0 : index
      %48 = vector.load %arg10[%c0_34, %c0_35, %c0_36, %c0_37] : memref<1x2x256x128xbf16, #tpu.memory_space<vmem>>, vector<1x1x256x128xbf16>
      %49 = vector.shape_cast %48 : vector<1x1x256x128xbf16> to vector<256x128xbf16>
      %50 = vector.shape_cast %47 : vector<256x128xbf16> to vector<1x1x256x128xbf16>
      tpu.vector_store %arg10[%c0_34, %c0_35, %c0_36, %c0_37], %50 {strides = array<i32>} : memref<1x2x256x128xbf16, #tpu.memory_space<vmem>>, vector<1x1x256x128xbf16>,
      %51 = vector.extract_strided_slice %16 {offsets = [0, 256], sizes = [256, 128], strides = [1, 1]} : vector<256x1024xf32> to vector<256x128xf32>
      %52 = arith.mulf %51, %17 : vector<256x128xf32>
      %c64_i32_38 = arith.constant 64 : i32
      %53 = tpu.dynamic_rotate %51 by %c64_i32_38 dim 1 : vector<256x128xf32>, i32 -> vector<256x128xf32>
      %54 = arith.mulf %53, %18 : vector<256x128xf32>
      %55 = arith.addf %52, %54 : vector<256x128xf32>
      %56 = arith.truncf %55 : vector<256x128xf32> to vector<256x128xbf16>
      %c0_39 = arith.constant 0 : index
      %c0_40 = arith.constant 0 : index
      %c1 = arith.constant 1 : index
      %c0_41 = arith.constant 0 : index
      %c0_42 = arith.constant 0 : index
      %57 = vector.load %arg8[%c0_39, %c0_40, %c1, %c0_41, %c0_42] : memref<1x1x2x512x128xbf16, #tpu.memory_space<vmem>>, vector<1x1x1x256x128xbf16>
      %58 = vector.shape_cast %57 : vector<1x1x1x256x128xbf16> to vector<256x128xbf16>
      %59 = vector.shape_cast %56 : vector<256x128xbf16> to vector<1x1x1x256x128xbf16>
      tpu.vector_store %arg8[%c0_39, %c0_40, %c1, %c0_41, %c0_42], %59 {strides = array<i32>} : memref<1x1x2x512x128xbf16, #tpu.memory_space<vmem>>, vector<1x1x1x256x128xbf16>,
      %60 = vector.extract_strided_slice %16 {offsets = [0, 384], sizes = [256, 128], strides = [1, 1]} : vector<256x1024xf32> to vector<256x128xf32>
      %61 = arith.mulf %60, %17 : vector<256x128xf32>
      %c64_i32_43 = arith.constant 64 : i32
      %62 = tpu.dynamic_rotate %60 by %c64_i32_43 dim 1 : vector<256x128xf32>, i32 -> vector<256x128xf32>
      %63 = arith.mulf %62, %18 : vector<256x128xf32>
      %64 = arith.addf %61, %63 : vector<256x128xf32>
      %65 = arith.truncf %64 : vector<256x128xf32> to vector<256x128xbf16>
      %c0_44 = arith.constant 0 : index
      %c0_45 = arith.constant 0 : index
      %c1_46 = arith.constant 1 : index
      %c256_47 = arith.constant 256 : index
      %c0_48 = arith.constant 0 : index
      %66 = vector.load %arg8[%c0_44, %c0_45, %c1_46, %c256_47, %c0_48] : memref<1x1x2x512x128xbf16, #tpu.memory_space<vmem>>, vector<1x1x1x256x128xbf16>
      %67 = vector.shape_cast %66 : vector<1x1x1x256x128xbf16> to vector<256x128xbf16>
      %68 = vector.shape_cast %65 : vector<256x128xbf16> to vector<1x1x1x256x128xbf16>
      tpu.vector_store %arg8[%c0_44, %c0_45, %c1_46, %c256_47, %c0_48], %68 {strides = array<i32>} : memref<1x1x2x512x128xbf16, #tpu.memory_space<vmem>>, vector<1x1x1x256x128xbf16>,
      %69 = vector.extract_strided_slice %16 {offsets = [0, 640], sizes = [256, 128], strides = [1, 1]} : vector<256x1024xf32> to vector<256x128xf32>
      %70 = arith.mulf %69, %17 : vector<256x128xf32>
      %c64_i32_49 = arith.constant 64 : i32
      %71 = tpu.dynamic_rotate %69 by %c64_i32_49 dim 1 : vector<256x128xf32>, i32 -> vector<256x128xf32>
      %72 = arith.mulf %71, %18 : vector<256x128xf32>
      %73 = arith.addf %70, %72 : vector<256x128xf32>
      %74 = arith.truncf %73 : vector<256x128xf32> to vector<256x128xbf16>
      %c0_50 = arith.constant 0 : index
      %c1_51 = arith.constant 1 : index
      %c0_52 = arith.constant 0 : index
      %c0_53 = arith.constant 0 : index
      %75 = vector.load %arg9[%c0_50, %c1_51, %c0_52, %c0_53] : memref<1x2x256x128xbf16, #tpu.memory_space<vmem>>, vector<1x1x256x128xbf16>
      %76 = vector.shape_cast %75 : vector<1x1x256x128xbf16> to vector<256x128xbf16>
      %77 = vector.shape_cast %74 : vector<256x128xbf16> to vector<1x1x256x128xbf16>
      tpu.vector_store %arg9[%c0_50, %c1_51, %c0_52, %c0_53], %77 {strides = array<i32>} : memref<1x2x256x128xbf16, #tpu.memory_space<vmem>>, vector<1x1x256x128xbf16>,
      %78 = vector.extract_strided_slice %16 {offsets = [0, 896], sizes = [256, 128], strides = [1, 1]} : vector<256x1024xf32> to vector<256x128xf32>
      %79 = arith.truncf %78 : vector<256x128xf32> to vector<256x128xbf16>
      %c0_54 = arith.constant 0 : index
      %c1_55 = arith.constant 1 : index
      %c0_56 = arith.constant 0 : index
      %c0_57 = arith.constant 0 : index
      %80 = vector.load %arg10[%c0_54, %c1_55, %c0_56, %c0_57] : memref<1x2x256x128xbf16, #tpu.memory_space<vmem>>, vector<1x1x256x128xbf16>
      %81 = vector.shape_cast %80 : vector<1x1x256x128xbf16> to vector<256x128xbf16>
      %82 = vector.shape_cast %79 : vector<256x128xbf16> to vector<1x1x256x128xbf16>
      tpu.vector_store %arg10[%c0_54, %c1_55, %c0_56, %c0_57], %82 {strides = array<i32>} : memref<1x2x256x128xbf16, #tpu.memory_space<vmem>>, vector<1x1x256x128xbf16>,
    } else {
    }
    return
  }
  func.func @transform_0(%arg0: i32, %arg1: i32, %arg2: i32) -> (i32, i32, i32) {
    %c0_i32 = arith.constant 0 : i32
    return %arg0, %arg1, %arg2 : i32, i32, i32
  }
  func.func @transform_1(%arg0: i32, %arg1: i32, %arg2: i32) -> (i32, i32) {
    %c0_i32 = arith.constant 0 : i32
    %c0_i32_0 = arith.constant 0 : i32
    return %arg2, %c0_i32 : i32, i32
  }
  func.func @transform_2(%arg0: i32, %arg1: i32, %arg2: i32) -> (i32, i32) {
    %c0_i32 = arith.constant 0 : i32
    %c0_i32_0 = arith.constant 0 : i32
    %c0_i32_1 = arith.constant 0 : i32
    return %c0_i32, %c0_i32_0 : i32, i32
  }
  func.func @transform_3(%arg0: i32, %arg1: i32, %arg2: i32) -> (i32, i32) {
    %c0_i32 = arith.constant 0 : i32
    %c0_i32_0 = arith.constant 0 : i32
    return %arg1, %c0_i32 : i32, i32
  }
  func.func @transform_4(%arg0: i32, %arg1: i32, %arg2: i32) -> (i32, i32) {
    %c0_i32 = arith.constant 0 : i32
    %c0_i32_0 = arith.constant 0 : i32
    return %arg1, %c0_i32 : i32, i32
  }
  func.func @transform_5(%arg0: i32, %arg1: i32, %arg2: i32) -> (i32, i32, i32, i32, i32) {
    %c0_i32 = arith.constant 0 : i32
    %c0_i32_0 = arith.constant 0 : i32
    %c0_i32_1 = arith.constant 0 : i32
    %c0_i32_2 = arith.constant 0 : i32
    return %arg0, %arg1, %c0_i32, %c0_i32_0, %c0_i32_1 : i32, i32, i32, i32, i32
  }
  func.func @transform_6(%arg0: i32, %arg1: i32, %arg2: i32) -> (i32, i32, i32, i32) {
    %c0_i32 = arith.constant 0 : i32
    %c0_i32_0 = arith.constant 0 : i32
    %c0_i32_1 = arith.constant 0 : i32
    return %arg0, %c0_i32, %arg1, %c0_i32_0 : i32, i32, i32, i32
  }
  func.func @transform_7(%arg0: i32, %arg1: i32, %arg2: i32) -> (i32, i32, i32, i32) {
    %c0_i32 = arith.constant 0 : i32
    %c0_i32_0 = arith.constant 0 : i32
    %c0_i32_1 = arith.constant 0 : i32
    return %arg0, %c0_i32, %arg1, %c0_i32_0 : i32, i32, i32, i32
  }
}

</mosaic_0001>

<bundles_post_ra>
// kernel: tpu_custom_call.1
= control target key start
LH: loop header
LB: loop body
LE: loop exit
PB: predicated region body
PF: predicated region fallthrough
CT: control target
= control target key end

     0   :  { %s14288_s0 = inlined_call_operand.hbm [shape: bf16[2,256,512], index: 0, kind: input, shape index: {}]   ;;  %s14289_s1 = inlined_call_operand.hbm [shape: bf16[512,1024], index: 1, kind: input, shape index: {}]   ;;  %s14290_s2 = inlined_call_operand.hbm [shape: f32[1,1024], index: 2, kind: input, shape index: {}]   ;;  %s14291_s3 = inlined_call_operand.hbm [shape: f32[256,128], index: 3, kind: input, shape index: {}]   ;;  %s14292_s4 = inlined_call_operand.hbm [shape: f32[256,128], index: 4, kind: input, shape index: {}]   ;;  %s14293_s5 = inlined_call_operand.hbm [shape: bf16[2,1,2,512,128], index: 5, kind: output, shape index: {0}]   ;;  %s14294_s6 = inlined_call_operand.hbm [shape: bf16[2,2,256,128], index: 6, kind: output, shape index: {1}]   ;;  %s14295_s7 = inlined_call_operand.hbm [shape: bf16[2,2,256,128], index: 7, kind: output, shape index: {2}]  }
   0x1   :  { %14417 = sst [smem:[#allocation76_spill]] %s14289_s1 }
   0x2   :  { %14418 = sst [smem:[#allocation77_spill]] %s14290_s2 }
   0x3   :  { %14419 = sst [smem:[#allocation78_spill]] %s14291_s3 }
   0x4   :  { %14420 = sst [smem:[#allocation79_spill]] %s14292_s4 }
   0x5   :  { %13 = vsyncpa [#allocation4], 0 }
   0x6   :  { %15 = vsyncpa [#allocation4 + $0x1], 0 }
   0x7   :  { %16 = vsyncpa [#allocation7], 0 }
   0x8   :  { %17 = vsyncpa [#allocation10], 0 }
   0x9   :  { %18 = vsyncpa [#allocation5], 0 }
   0xa   :  { %20 = vsyncpa [#allocation5 + $0x1], 0 }
   0xb   :  { %21 = vsyncpa [#allocation14], 0 }
   0xc   :  { %23 = vsyncpa [#allocation14 + $0x1], 0  ;;  %s11915_s24 = smov 0   ;;  %s11917_s25 = smov 0  }
   0xd   :  { %s11919_s26 = smov 0   ;;  %s11921_s27 = smov 0  }
   0xe   :  { %s11923_s28 = smov 0   ;;  %s11925_s29 = smov 0  }
   0xf LB: > { %s11946_s30 = sadd.s32 4294967295, %s11861_s29   ;;  %s14296_s8 = sadd.s32 4294967294, %s11861_s29   ;;  %s11861_s29 = sphi %s11925_s29, %s29_s29   ;;  %s11857_s28 = sphi %s11923_s28, %s14754_s28   ;;  %s11853_s27 = sphi %s11921_s27, %s14753_s27   ;;  %s11849_s26 = sphi %s11919_s26, %s14752_s26   ;;  %s11845_s25 = sphi %s11917_s25, %s14751_s25   ;;  %s11841_s24 = sphi %s11915_s24, %s14750_s24  }
  0x10   : > { %p72_p0 = scmp.ne.s32.totalorder %s11845_s25, %s11841_s24  ;;  %p73_p1 = scmp.eq.s32.totalorder %s11946_s30, 0 }
  0x11   : > { %p197_p2 = scmp.eq.s32.totalorder %s11946_s30, 1  ;;  %p203_p3 = scmp.eq.s32.totalorder %s14296_s8, 1 }
  0x12   : > { %p11957_p4 = por %p73_p1, %p72_p0  ;;  %p8588_p5 = scmp.ge.s32.totalorder %s11861_s29, 1 }
  0x13   : > { %p11962_p6 = por %p203_p3, %p72_p0  ;;  %p266_p7 = scmp.lt.s32.totalorder %s11861_s29, 3 }
  0x14   : > { %s14423_s1 = sld [smem:[#allocation76_spill]]  ;;  %s11863_s15 = smov [#allocation6]  }
  0x15   : > { %p11970_p8 = pnand %p8588_p5, %p266_p7  ;;  %s283_s16 = sshll.u32 %s11863_s15, 4  ;;  %s284_s16 = int_to_ptr.vmem [resolvable:$true] %s283_s16 }
  0x16   : > { %p8593_p11 = scmp.ge.s32.totalorder %s11861_s29, 2  ;;  %s14426_s3 = sld [smem:[#allocation78_spill]] }
  0x17   : > { %p11138_p9 = pneg %p11970_p8  ;;  %s11864_s21 = smov 512  }
  0x18   : > { %s11865_s22 = smov 32   ;;  %s11866_s23 = smov [#allocation9]  }
  0x19   : > { %p11978_p10 = pnand %p11138_p9, %p73_p1  ;;  %s312_s11 = sshll.u32 %s11866_s23, 4  ;;  %s313_s11 = int_to_ptr.vmem [resolvable:$true] %s312_s11 }
  0x1a   : > { %s281_s13 = sshll.u32 %s14423_s1, 4  ;;  %s11867_s12 = smov 128   ;;  %s282_s13 = int_to_ptr.hbm [resolvable:$true] %s281_s13 }
  0x1b   : > { %11141 = dma.hbm_to_vmem [thread:$0]  (!%p11978_p10), %s282_s13, 32768, %s284_s16, [#allocation7], %s11864_s21, %s11864_s21, %s11865_s22  }
  0x1c   : > { %s310_s20 = sshll.u32 %s14426_s3, 4  ;;  %s11868_s15 = smov 8   ;;  %s311_s20 = int_to_ptr.hbm [resolvable:$true] %s310_s20 }
  0x1d   : > { %11147 = dma.hbm_to_vmem [thread:$0]  (!%p11978_p10), %s311_s20, 4096, %s313_s11, [#allocation10], %s11867_s12, %s11867_s12, %s11868_s15  }
  0x1e   : > { %s14427_s2 = sld [smem:[#allocation77_spill]]  ;;  %s11869_s13 = smov [#allocation8]  }
  0x1f   : > { %s298_s16 = sshll.u32 %s11869_s13, 4  ;;  %s14428_s4 = sld [smem:[#allocation79_spill]]  ;;  %s299_s16 = int_to_ptr.vmem [resolvable:$true] %s298_s16 }
  0x20   : > { %s11870_s1 = smov [#allocation11]   ;;  %s48_s20 = sadd.s32 1, %s11857_s28 }
  0x21   : > { %s329_s8 = sshll.u32 %s11870_s1, 4  ;;  %s59_s23 = sadd.s32 1, %s11849_s26  ;;  %s330_s8 = int_to_ptr.vmem [resolvable:$true] %s329_s8 }
  0x22   : > { %p50_p12 = scmp.ge.s32.totalorder %s48_s20, 2  ;;  %p66_p13 = scmp.ne.s32.totalorder %s11849_s26, %s11845_s25 }
  0x23   : > { %p67_p0 = scmp.eq.s32.totalorder %s11861_s29, 0  ;;  %p11169_p3 = scmp.lt.s32.totalorder %s11861_s29, 2 }
  0x24   : > { %s296_s18 = sshll.u32 %s14427_s2, 4  ;;  %s14756_s20 = smov (%p50_p12, %s48_s20), 0  ;;  %s297_s18 = int_to_ptr.hbm [resolvable:$true] %s296_s18 }
  0x25   : > { %s327_s22 = sshll.u32 %s14428_s4, 4  ;;  %14429 = sst [smem:[#allocation21_spill]] %s14756_s20  ;;  %s328_s22 = int_to_ptr.hbm [resolvable:$true] %s327_s22 }
  0x26   : > { %11144 = dma.hbm_to_vmem [thread:$0]  (!%p11978_p10), %s297_s18, 128, %s299_s16, [#allocation7]  }
  0x27   : > { %11150 = dma.hbm_to_vmem [thread:$0]  (!%p11978_p10), %s328_s22, 4096, %s330_s8, [#allocation10], %s11867_s12, %s11867_s12, %s11868_s15  }
  0x28   : > { %p12008_p5 = por %p67_p0, %p66_p13  ;;  %p12014_p7 = por %p197_p2, %p66_p13 }
  0x29   : > { %s52_s12 = ssub.s32 %s11857_s28, %s14756_s20  ;;  %s343_s15 = sand.u32 1, %s11849_s26  }
  0x2a   : > { %p57_p9 = scmp.eq.s32.totalorder %s52_s12, 0  ;;  %s8594_s18 = sshll.u32 %s343_s15, 9 }
  0x2b   : > { %s10025_s13 = sshll.u32 %s11857_s28, 9  ;;  %s347_s8 = scalar_lea.vmem [#allocation3], %s8594_s18 }
  0x2c   : > { %s12023_s16 = scalar_select %p57_p9, %s11849_s26, %s59_s23  }
  0x2d   : > { %s357_s22 = scalar_lea.hbm %s14288_s0, %s10025_s13  ;;  %s360_s2 = sshll.u32 %s347_s8, 4  ;;  %s361_s2 = int_to_ptr.vmem [resolvable:$true] %s360_s2 }
  0x2e   : > { %s358_s1 = sshll.u32 %s357_s22, 4  ;;  %p11152_p2 = pnand %p11169_p3, %p12008_p5  ;;  %s359_s1 = int_to_ptr.hbm [resolvable:$true] %s358_s1 }
  0x2f   : > { %s344_s3 = scalar_lea.sflag [#allocation4], %s343_s15  ;;  %s11871_s4 = smov 256  }
  0x30   : > { %s11872_s20 = smov 16   ;;  %372 = sbr.rel (%p11970_p8) target bundleno = 2315 (0x90b), region = 40 }
  0x31   : > { %11154 = dma.hbm_to_vmem [thread:$0]  (!%p11152_p2), %s359_s1, 8192, %s361_s2, %s344_s3, %s11871_s4, %s11871_s4, %s11872_s20  }
  0x35   : > { %s12035_s23 = sand.u32 1, %s11845_s25  }
  0x36   : > { %s8598_s12 = sshll.u32 %s12035_s23, 9  ;;  %s375_s18 = scalar_lea.sflag [#allocation4], %s12035_s23 }
  0x37   : > { %s12041_s11 = scalar_lea.vmem [#allocation3], %s8598_s12 }
  0x38   : > { %11820 = dma.done.wait (%p11957_p4), %s375_s18, 8192  }
  0x39   : > { %11822 = vsyncadd (%p11957_p4), %s375_s18, 4294959104 }
  0x3a   : > { %11824 = dma.done.wait (%p73_p1), [#allocation7], 32896  }
  0x3b   : > { %11826 = vsyncadd (%p73_p1), [#allocation7], 4294934400 }
  0x3c   : > { %11828 = dma.done.wait (%p73_p1), [#allocation10], 8192  }
  0x3d   : > { %11830 = vsyncadd (%p73_p1), [#allocation10], 4294959104  ;;  %v9088_v0 = vld [vmem:[#allocation6 + $0x1c0] sm:$0xf]  ;;  %s11873_s2 = smov 64   ;;  %s12470_s3 = scalar_lea.vmem [#allocation12], %s8598_s12 }
  0x3e   : > { %v10150_v1 = vld [vmem:[#allocation6 + $0x1dc] sm:$0xf0]  ;;  %s8604_s4 = sshll.u32 %s12035_s23, 8  ;;  %s10347_s20 = sshll.u32 %s11853_s27, 8 }
  0x3f   : > { %v9344_v2 = vld [vmem:[#allocation6 + $0x3c0] sm:$0xf]  ;;  %v9089_v3 = vor.u32 %v10150_v1, %v9088_v0  ;;  %s13566_s9 = scalar_lea.vmem [#allocation13], %s8604_s4  ;;  %s13995_s14 = scalar_lea.vmem [#allocation15], %s8604_s4 }
  0x40   : > { %v10214_v4 = vld [vmem:[#allocation6 + $0x3dc] sm:$0xf0]  ;;  %s8358_s19 = scalar_lea.hbm %s14294_s6, %s10347_s20  ;;  %s8320_s21 = sand.u32 1, %s11946_s30  }
  0x41   : > { %v9600_v5 = vld [vmem:[#allocation6 + $0x5c0] sm:$0xf]  ;;  %v9345_v7 = vor.u32 %v10214_v4, %v9344_v2  ;;  %2883 = vmatpush.bf16.msra.mxu0 %v9089_v3  ;;  %s8359_s22 = sshll.u32 %s13566_s9, 4  ;;  %s8361_s1 = sshll.u32 %s8358_s19, 4  ;;  %s8360_s22 = int_to_ptr.vmem [resolvable:$true] %s8359_s22  ;;  %s8362_s1 = int_to_ptr.hbm [resolvable:$true] %s8361_s1 }
  0x42   : > { %v10278_v6 = vld [vmem:[#allocation6 + $0x5dc] sm:$0xf0]  ;;  %s10346_s8 = sshll.u32 %s11853_s27, 9  ;;  %s14185_s12 = scalar_lea.sflag [#allocation14], %s8320_s21 }
  0x43   : > { %v9601_v8 = vor.u32 %v10278_v6, %v9600_v5  ;;  %v9856_v9 = vld [vmem:[#allocation6 + $0x7c0] sm:$0xf]  ;;  %2972 = vmatpush.bf16.msra.mxu1 %v9345_v7  ;;  %s11725_s18 = sshra.s32 %s8362_s1, 4  ;;  %s11726_s18 = int_to_ptr.hbm [resolvable:$true] %s11725_s18 }
  0x44   : > { %v10342_v10 = vld [vmem:[#allocation6 + $0x7dc] sm:$0xf0]  ;;  %p11732_p10 = scmp.lt.s32.totalorder %s11726_s18, %s14294_s6 }
  0x45   : > { %v9056_v11 = vld [vmem:[#allocation6 + $0x180] sm:$0xf]  ;;  %v9857_v12 = vor.u32 %v10342_v10, %v9856_v9  ;;  %3061 = vmatpush.bf16.msra.mxu2 %v9601_v8 }
  0x46   : > { %v10142_v13 = vld [vmem:[#allocation6 + $0x19c] sm:$0xf0] }
  0x47   : > { %v9312_v14 = vld [vmem:[#allocation6 + $0x380] sm:$0xf]  ;;  %v9057_v16 = vor.u32 %v10142_v13, %v9056_v11  ;;  %3150 = vmatpush.bf16.msra.mxu3 %v9857_v12 }
  0x48   : > { %v10206_v15 = vld [vmem:[#allocation6 + $0x39c] sm:$0xf0] }
  0x49   : > { %v9313_v17 = vor.u32 %v10206_v15, %v9312_v14  ;;  %v9568_v18 = vld [vmem:[#allocation6 + $0x580] sm:$0xf]  ;;  %2884 = vmatpush.bf16.msra.mxu0 %v9057_v16 }
  0x4a   : > { %v10270_v19 = vld [vmem:[#allocation6 + $0x59c] sm:$0xf0] }
  0x4b   : > { %v9824_v20 = vld [vmem:[#allocation6 + $0x780] sm:$0xf]  ;;  %v9569_v21 = vor.u32 %v10270_v19, %v9568_v18  ;;  %2973 = vmatpush.bf16.msra.mxu1 %v9313_v17 }
  0x4c   : > { %v10334_v22 = vld [vmem:[#allocation6 + $0x79c] sm:$0xf0] }
  0x4d   : > { %v9024_v23 = vld [vmem:[#allocation6 + $0x140] sm:$0xf]  ;;  %v9825_v25 = vor.u32 %v10334_v22, %v9824_v20  ;;  %3062 = vmatpush.bf16.msra.mxu2 %v9569_v21 }
  0x4e   : > { %v10134_v24 = vld [vmem:[#allocation6 + $0x15c] sm:$0xf0] }
  0x4f   : > { %v9280_v26 = vld [vmem:[#allocation6 + $0x340] sm:$0xf]  ;;  %v9025_v29 = vor.u32 %v10134_v24, %v9024_v23  ;;  %3151 = vmatpush.bf16.msra.mxu3 %v9825_v25 }
  0x50   : > { %v10198_v27 = vld [vmem:[#allocation6 + $0x35c] sm:$0xf0] }
  0x51   : > { %v9536_v28 = vld [vmem:[#allocation6 + $0x540] sm:$0xf]  ;;  %v9281_v33 = vor.u32 %v10198_v27, %v9280_v26  ;;  %2885 = vmatpush.bf16.msra.mxu0 %v9025_v29  ;;  %v10028_v29 = vld [vmem:[%s12041_s11 + $0xc] sm:$0xf0] }
  0x52   : > { %v10262_v30 = vld [vmem:[#allocation6 + $0x55c] sm:$0xf0] }
  0x53   : > { %v9792_v31 = vld [vmem:[#allocation6 + $0x740] sm:$0xf]  ;;  %v9537_v34 = vor.u32 %v10262_v30, %v9536_v28  ;;  %2974 = vmatpush.bf16.msra.mxu1 %v9281_v33  ;;  %v10026_v30 = vld [vmem:[%s12041_s11 + $0x4] sm:$0xf] }
  0x54   : > { %v10326_v32 = vld [vmem:[#allocation6 + $0x75c] sm:$0xf0] }
  0x55   : > { %v8992_v35 = vld [vmem:[#allocation6 + $0x100] sm:$0xf]  ;;  %v9793_v38 = vor.u32 %v10326_v32, %v9792_v31  ;;  %3063 = vmatpush.bf16.msra.mxu2 %v9537_v34  ;;  %v10274_v31 = vld [vmem:[#allocation6 + $0x5c4] sm:$0xf]  ;;  %v8610_v34 = vld [vmem:[%s12041_s11 + $0x10] sm:$0xf0] }
  0x56   : > { %v10126_v36 = vld [vmem:[#allocation6 + $0x11c] sm:$0xf0]  ;;  %v9602_v32 = vld [vmem:[#allocation6 + $0x5e0] sm:$0xf0] }
  0x57   : > { %v9248_v37 = vld [vmem:[#allocation6 + $0x300] sm:$0xf]  ;;  %v8993_v44 = vor.u32 %v10126_v36, %v8992_v35  ;;  %3152 = vmatpush.bf16.msra.mxu3 %v9793_v38  ;;  %v10338_v35 = vld [vmem:[#allocation6 + $0x7c4] sm:$0xf] }
  0x58   : > { %v10190_v39 = vld [vmem:[#allocation6 + $0x31c] sm:$0xf0]  ;;  %v9858_v36 = vld [vmem:[#allocation6 + $0x7e0] sm:$0xf0] }
  0x59   : > { %v9504_v40 = vld [vmem:[#allocation6 + $0x500] sm:$0xf]  ;;  %v9249_v45 = vor.u32 %v10190_v39, %v9248_v37  ;;  %2886 = vmatpush.bf16.msra.mxu0 %v8993_v44  ;;  %v8616_v39 = vld [vmem:[%s12041_s11 + $0x8] sm:$0xf]  ;;  %v9605_v44 = vor.u32 %v10274_v31, %v9602_v32  ;;  %v9794_v32 = vld [vmem:[#allocation6 + $0x760] sm:$0xf0] }
  0x5a   : > { %v10254_v41 = vld [vmem:[#allocation6 + $0x51c] sm:$0xf0] }
  0x5b   : > { %v9760_v42 = vld [vmem:[#allocation6 + $0x700] sm:$0xf]  ;;  %v9505_v46 = vor.u32 %v10254_v41, %v9504_v40  ;;  %2975 = vmatpush.bf16.msra.mxu1 %v9249_v45  ;;  %v10029_v40 = vld [vmem:[%s12041_s11 + $0x14] sm:$0xf0]  ;;  %v10027_v41 = vld [vmem:[%s12041_s11 + $0xc] sm:$0xf] }
  0x5c   : > { %v10318_v43 = vld [vmem:[#allocation6 + $0x71c] sm:$0xf0]  ;;  %v10146_v45 = vld [vmem:[#allocation6 + $0x1c4] sm:$0xf] }
  0x5d   : > { %v8960_v47 = vld [vmem:[#allocation6 + $0xc0] sm:$0xf]  ;;  %v9761_v50 = vor.u32 %v10318_v43, %v9760_v42  ;;  %3064 = vmatpush.bf16.msra.mxu2 %v9505_v46  ;;  %v8618_v43 = vld [vmem:[%s12041_s11 + $0x18] sm:$0xf0]  ;;  %v9090_v46 = vld [vmem:[#allocation6 + $0x1e0] sm:$0xf0] }
  0x5e   : > { %v10118_v48 = vld [vmem:[#allocation6 + $0xdc] sm:$0xf0] }
  0x5f   : > { %v9216_v49 = vld [vmem:[#allocation6 + $0x2c0] sm:$0xf]  ;;  %v8961_v56 = vor.u32 %v10118_v48, %v8960_v47  ;;  %3153 = vmatpush.bf16.msra.mxu3 %v9761_v50  ;;  %v9861_v48 = vor.u32 %v10338_v35, %v9858_v36  ;;  %v9346_v50 = vld [vmem:[#allocation6 + $0x3e0] sm:$0xf0] }
  0x60   : > { %v10182_v51 = vld [vmem:[#allocation6 + $0x2dc] sm:$0xf0] }
  0x61   : > { %v9472_v52 = vld [vmem:[#allocation6 + $0x4c0] sm:$0xf]  ;;  %v9217_v57 = vor.u32 %v10182_v51, %v9216_v49  ;;  %2887 = vmatpush.bf16.msra.mxu0 %v8961_v56  ;;  %v10210_v49 = vld [vmem:[#allocation6 + $0x3c4] sm:$0xf]  ;;  %v12065_v51 = vor.u32 %v10026_v30, %v8610_v34 }
  0x62   : > { %v10246_v53 = vld [vmem:[#allocation6 + $0x4dc] sm:$0xf0]  ;;  %v10266_v56 = vld [vmem:[#allocation6 + $0x584] sm:$0xf] }
  0x63   : > { %v9728_v54 = vld [vmem:[#allocation6 + $0x6c0] sm:$0xf]  ;;  %v9473_v58 = vor.u32 %v10246_v53, %v9472_v52  ;;  %2976 = vmatpush.bf16.msra.mxu1 %v9217_v57  ;;  %14433 = vst [vmem:[#allocation23_spill] sm:$0xff] %v12065_v51  ;;  %v12067_v52 = vor.u32 %v10029_v40, %v8616_v39  ;;  %v12069_v53 = vor.u32 %v10027_v41, %v8618_v43  ;;  %v9570_v57 = vld [vmem:[#allocation6 + $0x5a0] sm:$0xf0] }
  0x64   : > { %v10310_v55 = vld [vmem:[#allocation6 + $0x6dc] sm:$0xf0]  ;;  %v10322_v30 = vld [vmem:[#allocation6 + $0x744] sm:$0xf]  ;;  %v10040_v41 = vld [vmem:[%s12041_s11 + $0x6c] sm:$0xf0] }
  0x65   : > { %v8928_v59 = vld [vmem:[#allocation6 + $0x80] sm:$0xf]  ;;  %v9729_v62 = vor.u32 %v10310_v55, %v9728_v54  ;;  %3065 = vmatpush.bf16.msra.mxu2 %v9473_v58  ;;  %14434 = vst [vmem:[#allocation24_spill] sm:$0xff] %v12067_v52  ;;  %v9093_v54 = vor.u32 %v10146_v45, %v9090_v46  ;;  %v9349_v55 = vor.u32 %v10210_v49, %v9346_v50  ;;  %v10330_v58 = vld [vmem:[#allocation6 + $0x784] sm:$0xf] }
  0x66   : > { %v10110_v60 = vld [vmem:[#allocation6 + $0x9c] sm:$0xf0]  ;;  %14435 = vst [vmem:[#allocation25_spill] sm:$0xff] %v12069_v53  ;;  %v9026_v34 = vld [vmem:[#allocation6 + $0x160] sm:$0xf0]  ;;  %v9797_v35 = vor.u32 %v10322_v30, %v9794_v32 }
  0x67   : > { %v9184_v61 = vld [vmem:[#allocation6 + $0x280] sm:$0xf]  ;;  %v8929_v4 = vor.u32 %v10110_v60, %v8928_v59  ;;  %3154 = vmatpush.bf16.msra.mxu3 %v9729_v62  ;;  %v9573_v59 = vor.u32 %v10266_v56, %v9570_v57  ;;  %v9826_v60 = vld [vmem:[#allocation6 + $0x7a0] sm:$0xf0]  ;;  %v8658_v43 = vld [vmem:[%s12041_s11 + $0x70] sm:$0xf0] }
  0x68   : > { %v10174_v63 = vld [vmem:[#allocation6 + $0x29c] sm:$0xf0]  ;;  %v9058_v62 = vld [vmem:[#allocation6 + $0x1a0] sm:$0xf0]  ;;  %v10041_v45 = vld [vmem:[%s12041_s11 + $0x74] sm:$0xf0] }
  0x69   : > { %v9440_v0 = vld [vmem:[#allocation6 + $0x480] sm:$0xf]  ;;  %v9185_v5 = vor.u32 %v10174_v63, %v9184_v61  ;;  %2888 = vmatpush.bf16.msra.mxu0 %v8929_v4  ;;  %v10138_v61 = vld [vmem:[#allocation6 + $0x184] sm:$0xf]  ;;  %v9829_v63 = vor.u32 %v10330_v58, %v9826_v60  ;;  %v10039_v46 = vld [vmem:[%s12041_s11 + $0x6c] sm:$0xf] }
  0x6a   : > { %v10238_v1 = vld [vmem:[#allocation6 + $0x49c] sm:$0xf0]  ;;  %v10044_v57 = vld [vmem:[%s12041_s11 + $0x8c] sm:$0xf0]  ;;  %v10042_v58 = vld [vmem:[%s12041_s11 + $0x84] sm:$0xf] }
  0x6b   : > { %v9696_v2 = vld [vmem:[#allocation6 + $0x680] sm:$0xf]  ;;  %v9441_v6 = vor.u32 %v10238_v1, %v9440_v0  ;;  %2977 = vmatpush.bf16.msra.mxu1 %v9185_v5  ;;  %v9061_v0 = vor.u32 %v10138_v61, %v9058_v62  ;;  %v10202_v1 = vld [vmem:[#allocation6 + $0x384] sm:$0xf]  ;;  %v10032_v5 = vld [vmem:[%s12041_s11 + $0x2c] sm:$0xf0] }
  0x6c   : > { %v10302_v3 = vld [vmem:[#allocation6 + $0x69c] sm:$0xf0]  ;;  %v8680_v60 = vld [vmem:[%s12041_s11 + $0x88] sm:$0xf]  ;;  %v10045_v61 = vld [vmem:[%s12041_s11 + $0x94] sm:$0xf0] }
  0x6d   : > { %v8896_v7 = vld [vmem:[#allocation6 + $0x40] sm:$0xf]  ;;  %v9697_v10 = vor.u32 %v10302_v3, %v9696_v2  ;;  %3066 = vmatpush.bf16.msra.mxu2 %v9441_v6  ;;  %v9314_v2 = vld [vmem:[#allocation6 + $0x3a0] sm:$0xf0]  ;;  %v10043_v62 = vld [vmem:[%s12041_s11 + $0x8c] sm:$0xf] }
  0x6e   : > { %v10102_v8 = vld [vmem:[#allocation6 + $0x5c] sm:$0xf0]  ;;  %v9317_v3 = vor.u32 %v10202_v1, %v9314_v2  ;;  %v10030_v6 = vld [vmem:[%s12041_s11 + $0x24] sm:$0xf]  ;;  %v12147_v2 = vor.u32 %v10045_v61, %v8680_v60  ;;  %v10047_v30 = vld [vmem:[%s12041_s11 + $0xac] sm:$0xf] }
  0x6f   : > { %v9152_v9 = vld [vmem:[#allocation6 + $0x240] sm:$0xf]  ;;  %v8897_v17 = vor.u32 %v10102_v8, %v8896_v7  ;;  %3155 = vmatpush.bf16.msra.mxu3 %v9697_v10  ;;  %v8626_v7 = vld [vmem:[%s12041_s11 + $0x30] sm:$0xf0]  ;;  %v8632_v8 = vld [vmem:[%s12041_s11 + $0x28] sm:$0xf] }
  0x70   : > { %v10166_v11 = vld [vmem:[#allocation6 + $0x25c] sm:$0xf0]  ;;  %v10031_v10 = vld [vmem:[%s12041_s11 + $0x2c] sm:$0xf]  ;;  %14443 = vst [vmem:[#allocation33_spill] sm:$0xff] %v12147_v2 }
  0x71   : > { %v9408_v12 = vld [vmem:[#allocation6 + $0x440] sm:$0xf]  ;;  %v9153_v21 = vor.u32 %v10166_v11, %v9152_v9  ;;  %2889 = vmatpush.bf16.msra.mxu0 %v8897_v17  ;;  %v10033_v9 = vld [vmem:[%s12041_s11 + $0x34] sm:$0xf0]  ;;  %v8634_v11 = vld [vmem:[%s12041_s11 + $0x38] sm:$0xf0] }
  0x72   : > { %v10230_v13 = vld [vmem:[#allocation6 + $0x45c] sm:$0xf0]  ;;  %v10036_v17 = vld [vmem:[%s12041_s11 + $0x4c] sm:$0xf0]  ;;  %v9730_v60 = vld [vmem:[#allocation6 + $0x6e0] sm:$0xf0] }
  0x73   : > { %v9664_v14 = vld [vmem:[#allocation6 + $0x640] sm:$0xf]  ;;  %v9409_v22 = vor.u32 %v10230_v13, %v9408_v12  ;;  %2978 = vmatpush.bf16.msra.mxu1 %v9153_v21  ;;  %v12085_v13 = vor.u32 %v10030_v6, %v8626_v7  ;;  %v10037_v21 = vld [vmem:[%s12041_s11 + $0x54] sm:$0xf0]  ;;  %v10314_v6 = vld [vmem:[#allocation6 + $0x704] sm:$0xf] }
  0x74   : > { %v10294_v15 = vld [vmem:[#allocation6 + $0x65c] sm:$0xf0] }
  0x75   : > { %v8864_v16 = vld [vmem:[#allocation6] sm:$0xf]  ;;  %v9665_v26 = vor.u32 %v10294_v15, %v9664_v14  ;;  %3067 = vmatpush.bf16.msra.mxu2 %v9409_v22  ;;  %14436 = vst [vmem:[#allocation26_spill] sm:$0xff] %v12085_v13  ;;  %v12087_v14 = vor.u32 %v10033_v9, %v8632_v8  ;;  %v12089_v15 = vor.u32 %v10031_v10, %v8634_v11  ;;  %v10035_v22 = vld [vmem:[%s12041_s11 + $0x4c] sm:$0xf] }
  0x76   : > { %v10094_v18 = vld [vmem:[#allocation6 + $0x1c] sm:$0xf0]  ;;  %v9762_v8 = vld [vmem:[#allocation6 + $0x720] sm:$0xf0] }
  0x77   : > { %v9120_v19 = vld [vmem:[#allocation6 + $0x200] sm:$0xf]  ;;  %v8865_v33 = vor.u32 %v10094_v18, %v8864_v16  ;;  %3156 = vmatpush.bf16.msra.mxu3 %v9665_v26  ;;  %14437 = vst [vmem:[#allocation27_spill] sm:$0xff] %v12087_v14  ;;  %v10034_v18 = vld [vmem:[%s12041_s11 + $0x44] sm:$0xf]  ;;  %v9765_v11 = vor.u32 %v10314_v6, %v9762_v8 }
  0x78   : > { %v10158_v20 = vld [vmem:[#allocation6 + $0x21c] sm:$0xf0]  ;;  %14438 = vst [vmem:[#allocation28_spill] sm:$0xff] %v12089_v15  ;;  %v10122_v9 = vld [vmem:[#allocation6 + $0x104] sm:$0xf] }
  0x79   : > { %v9376_v23 = vld [vmem:[#allocation6 + $0x400] sm:$0xf]  ;;  %v9121_v37 = vor.u32 %v10158_v20, %v9120_v19  ;;  %2890 = vmatpush.bf16.msra.mxu0 %v8865_v33  ;;  %v8642_v19 = vld [vmem:[%s12041_s11 + $0x50] sm:$0xf0]  ;;  %v8648_v20 = vld [vmem:[%s12041_s11 + $0x48] sm:$0xf] }
  0x7a   : > { %v10222_v24 = vld [vmem:[#allocation6 + $0x41c] sm:$0xf0]  ;;  %v12107_v26 = vor.u32 %v10037_v21, %v8648_v20  ;;  %v10130_v33 = vld [vmem:[#allocation6 + $0x144] sm:$0xf]  ;;  %v10048_v21 = vld [vmem:[%s12041_s11 + $0xac] sm:$0xf0] }
  0x7b   : > { %v9632_v25 = vld [vmem:[#allocation6 + $0x600] sm:$0xf]  ;;  %v9377_v38 = vor.u32 %v10222_v24, %v9376_v23  ;;  %2979 = vmatpush.bf16.msra.mxu1 %v9121_v37  ;;  %v8650_v23 = vld [vmem:[%s12041_s11 + $0x58] sm:$0xf0]  ;;  %v9029_v36 = vor.u32 %v10130_v33, %v9026_v34  ;;  %v10194_v37 = vld [vmem:[#allocation6 + $0x344] sm:$0xf] }
  0x7c   : > { %v10286_v27 = vld [vmem:[#allocation6 + $0x61c] sm:$0xf0]  ;;  %14441 = vst [vmem:[#allocation31_spill] sm:$0xff] %v12107_v26  ;;  %v8994_v10 = vld [vmem:[#allocation6 + $0x120] sm:$0xf0] }
  0x7d   : > { %v8608_v28 = vld [vmem:[%s12041_s11] sm:$0xf]  ;;  %v9633_v42 = vor.u32 %v10286_v27, %v9632_v25  ;;  %3068 = vmatpush.bf16.msra.mxu2 %v9377_v38  ;;  %3239 = vmatpush.bf16.msrb.mxu0 %v9093_v54  ;;  %v12105_v25 = vor.u32 %v10034_v18, %v8642_v19  ;;  %v12109_v27 = vor.u32 %v10035_v22, %v8650_v23  ;;  %v9282_v38 = vld [vmem:[#allocation6 + $0x360] sm:$0xf0]  ;;  %v8690_v23 = vld [vmem:[%s12041_s11 + $0xb0] sm:$0xf0] }
  0x7e   : > { %v12063_v47 = vor.u32 %v10028_v29, %v8608_v28  ;;  %2980 = vmatmul.bf16.vlgmr.msra.gmra.mxu1 %v12065_v51  ;;  %v8624_v4 = vld [vmem:[%s12041_s11 + $0x20] sm:$0xf]  ;;  %v10258_v28 = vld [vmem:[#allocation6 + $0x544] sm:$0xf]  ;;  %v9285_v39 = vor.u32 %v10194_v37, %v9282_v38  ;;  %v10052_v37 = vld [vmem:[%s12041_s11 + $0xcc] sm:$0xf0] }
  0x7f   : > { %3157 = vmatpush.bf16.msra.mxu3 %v9633_v42  ;;  %3328 = vmatpush.bf16.msrb.mxu1 %v9349_v55  ;;  %v12083_v12 = vor.u32 %v10032_v5, %v8624_v4  ;;  %v8640_v16 = vld [vmem:[%s12041_s11 + $0x40] sm:$0xf]  ;;  %14440 = vst [vmem:[#allocation30_spill] sm:$0xff] %v12105_v25  ;;  %v9538_v29 = vld [vmem:[#allocation6 + $0x560] sm:$0xf0] }
  0x80   : > { %14432 = vst [vmem:[#allocation22_spill] sm:$0xff] %v12063_v47  ;;  %2891 = vmatmul.bf16.vlgmr.msra.gmra.mxu0 %v12063_v47  ;;  %3069 = vmatmul.bf16.vlgmr.msra.gmra.mxu2 %v12067_v52  ;;  %v12103_v24 = vor.u32 %v10036_v17, %v8640_v16  ;;  %v9541_v31 = vor.u32 %v10258_v28, %v9538_v29  ;;  %v8656_v40 = vld [vmem:[%s12041_s11 + $0x60] sm:$0xf]  ;;  %v10038_v42 = vld [vmem:[%s12041_s11 + $0x64] sm:$0xf] }
  0x81   : > { %3417 = vmatpush.bf16.msrb.mxu2 %v9605_v44  ;;  %3240 = vmatpush.bf16.msrb.mxu0 %v9061_v0  ;;  %14442 = vst [vmem:[#allocation32_spill] sm:$0xff] %v12109_v27  ;;  %v8664_v44 = vld [vmem:[%s12041_s11 + $0x68] sm:$0xf]  ;;  %v12123_v49 = vor.u32 %v10040_v41, %v8656_v40  ;;  %v12125_v50 = vor.u32 %v10038_v42, %v8658_v43  ;;  %v8672_v56 = vld [vmem:[%s12041_s11 + $0x80] sm:$0xf] }
  0x82   : > { %3158 = vmatmul.bf16.vlgmr.msra.gmra.mxu3 %v12069_v53  ;;  %14439 = vst [vmem:[#allocation29_spill] sm:$0xff] %v12103_v24  ;;  %v12127_v54 = vor.u32 %v10041_v45, %v8664_v44  ;;  %v12143_v0 = vor.u32 %v10044_v57, %v8672_v56  ;;  %v10250_v4 = vld [vmem:[#allocation6 + $0x504] sm:$0xf]  ;;  %v8997_v16 = vor.u32 %v10122_v9, %v8994_v10  ;;  %v8688_v20 = vld [vmem:[%s12041_s11 + $0xa0] sm:$0xf] }
  0x83   : > { %3506 = vmatpush.bf16.msrb.mxu3 %v9861_v48  ;;  %3329 = vmatpush.bf16.msrb.mxu1 %v9317_v3  ;;  %v8666_v48 = vld [vmem:[%s12041_s11 + $0x78] sm:$0xf0]  ;;  %v9506_v5 = vld [vmem:[#allocation6 + $0x520] sm:$0xf0]  ;;  %v8696_v28 = vld [vmem:[%s12041_s11 + $0xa8] sm:$0xf]  ;;  %v12163_v32 = vor.u32 %v10048_v21, %v8688_v20 }
  0x84   : > { %v12129_v55 = vor.u32 %v10039_v46, %v8666_v48  ;;  %v9509_v7 = vor.u32 %v10250_v4, %v9506_v5  ;;  %v10186_v17 = vld [vmem:[#allocation6 + $0x304] sm:$0xf]  ;;  %v10049_v29 = vld [vmem:[%s12041_s11 + $0xb4] sm:$0xf0]  ;;  %v8712_v40 = vld [vmem:[%s12041_s11 + $0xc8] sm:$0xf] }
  0x85   : > { %3418 = vmatpush.bf16.msrb.mxu2 %v9573_v59  ;;  %3241 = vmatpush.bf16.msrb.mxu0 %v9029_v36  ;;  %v8674_v59 = vld [vmem:[%s12041_s11 + $0x90] sm:$0xf0]  ;;  %v9250_v18 = vld [vmem:[#allocation6 + $0x320] sm:$0xf0]  ;;  %v12167_v34 = vor.u32 %v10049_v29, %v8696_v28  ;;  %v8704_v36 = vld [vmem:[%s12041_s11 + $0xc0] sm:$0xf] }
  0x86   : > { %v12145_v1 = vor.u32 %v10042_v58, %v8674_v59  ;;  %v9253_v19 = vor.u32 %v10186_v17, %v9250_v18  ;;  %v10046_v22 = vld [vmem:[%s12041_s11 + $0xa4] sm:$0xf]  ;;  %v10053_v41 = vld [vmem:[%s12041_s11 + $0xd4] sm:$0xf0]  ;;  %v10051_v42 = vld [vmem:[%s12041_s11 + $0xcc] sm:$0xf]  ;;  %v12183_v44 = vor.u32 %v10052_v37, %v8704_v36 }
  0x87   : > { %3507 = vmatpush.bf16.msrb.mxu3 %v9829_v63  ;;  %3330 = vmatpush.bf16.msrb.mxu1 %v9285_v39  ;;  %v8682_v63 = vld [vmem:[%s12041_s11 + $0x98] sm:$0xf0]  ;;  %v12165_v33 = vor.u32 %v10046_v22, %v8690_v23  ;;  %v10050_v38 = vld [vmem:[%s12041_s11 + $0xc4] sm:$0xf]  ;;  %v8706_v39 = vld [vmem:[%s12041_s11 + $0xd0] sm:$0xf0]  ;;  %v12187_v46 = vor.u32 %v10053_v41, %v8712_v40 }
  0x88   : > { %v12149_v3 = vor.u32 %v10043_v62, %v8682_v63  ;;  %v8714_v43 = vld [vmem:[%s12041_s11 + $0xd8] sm:$0xf0]  ;;  %14445 = vst [vmem:[#allocation35_spill] sm:$0xff] %v12183_v44  ;;  %v12185_v45 = vor.u32 %v10050_v38, %v8706_v39  ;;  %v10242_v56 = vld [vmem:[#allocation6 + $0x4c4] sm:$0xf] }
  0x89   : > { %3419 = vmatpush.bf16.msrb.mxu2 %v9541_v31  ;;  %3242 = vmatpush.bf16.msrb.mxu0 %v8997_v16  ;;  %v8698_v31 = vld [vmem:[%s12041_s11 + $0xb8] sm:$0xf0]  ;;  %14447 = vst [vmem:[#allocation37_spill] sm:$0xff] %v12187_v46  ;;  %v12189_v48 = vor.u32 %v10051_v42, %v8714_v43  ;;  %v9474_v57 = vld [vmem:[#allocation6 + $0x4e0] sm:$0xf0] }
  0x8a   : > { %14444 = vst [vmem:[#allocation34_spill] sm:$0xff] %v12149_v3  ;;  %v10306_v58 = vld [vmem:[#allocation6 + $0x6c4] sm:$0xf]  ;;  %v9477_v59 = vor.u32 %v10242_v56, %v9474_v57  ;;  %v10056_v8 = vld [vmem:[%s12041_s11 + $0xec] sm:$0xf0] }
  0x8b   : > { %3508 = vmatpush.bf16.msrb.mxu3 %v9797_v35  ;;  %3331 = vmatpush.bf16.msrb.mxu1 %v9253_v19  ;;  %v12169_v35 = vor.u32 %v10047_v30, %v8698_v31  ;;  %14446 = vst [vmem:[#allocation36_spill] sm:$0xff] %v12185_v45  ;;  %v9733_v61 = vor.u32 %v10306_v58, %v9730_v60  ;;  %v10114_v62 = vld [vmem:[#allocation6 + $0xc4] sm:$0xf]  ;;  %v8728_v16 = vld [vmem:[%s12041_s11 + $0xe8] sm:$0xf] }
  0x8c   : > { %14448 = vst [vmem:[#allocation38_spill] sm:$0xff] %v12189_v48  ;;  %v8962_v63 = vld [vmem:[#allocation6 + $0xe0] sm:$0xf0]  ;;  %v10057_v17 = vld [vmem:[%s12041_s11 + $0xf4] sm:$0xf0] }
  0x8d   : > { %3420 = vmatpush.bf16.msrb.mxu2 %v9509_v7  ;;  %v10178_v4 = vld [vmem:[#allocation6 + $0x2c4] sm:$0xf]  ;;  %v8965_v5 = vor.u32 %v10114_v62, %v8962_v63  ;;  %v8720_v7 = vld [vmem:[%s12041_s11 + $0xe0] sm:$0xf]  ;;  %v10055_v18 = vld [vmem:[%s12041_s11 + $0xec] sm:$0xf]  ;;  %v12207_v22 = vor.u32 %v10057_v17, %v8728_v16 }
  0x8e   : > { %2985 = vmatmul.bf16.gmra.mxu1 %v12085_v13  ;;  %v9218_v6 = vld [vmem:[#allocation6 + $0x2e0] sm:$0xf0]  ;;  %v8730_v19 = vld [vmem:[%s12041_s11 + $0xf8] sm:$0xf0]  ;;  %v12203_v20 = vor.u32 %v10056_v8, %v8720_v7  ;;  %v8736_v28 = vld [vmem:[%s12041_s11 + $0x100] sm:$0xf] }
  0x8f   : > { %3509 = vmatpush.bf16.msrb.mxu3 %v9765_v11  ;;  %v10054_v9 = vld [vmem:[%s12041_s11 + $0xe4] sm:$0xf]  ;;  %v9221_v10 = vor.u32 %v10178_v4, %v9218_v6  ;;  %v8722_v11 = vld [vmem:[%s12041_s11 + $0xf0] sm:$0xf0]  ;;  %3243 = vmatpush.bf16.msrb.mxu0 %v8965_v5  ;;  %14451 = vst [vmem:[#allocation41_spill] sm:$0xff] %v12207_v22  ;;  %v12209_v23 = vor.u32 %v10055_v18, %v8730_v19 }
  0x90   : > { %2896 = vmatmul.bf16.gmra.mxu0 %v12083_v12  ;;  %3074 = vmatmul.bf16.gmra.mxu2 %v12087_v14  ;;  %14449 = vst [vmem:[#allocation39_spill] sm:$0xff] %v12203_v20  ;;  %v12205_v21 = vor.u32 %v10054_v9, %v8722_v11  ;;  %v10060_v29 = vld [vmem:[%s12041_s11 + $0x10c] sm:$0xf0]  ;;  %v10058_v30 = vld [vmem:[%s12041_s11 + $0x104] sm:$0xf] }
  0x91   : > { %3421 = vmatpush.bf16.msrb.mxu2 %v9477_v59  ;;  %3332 = vmatpush.bf16.msrb.mxu1 %v9221_v10  ;;  %14452 = vst [vmem:[#allocation42_spill] sm:$0xff] %v12209_v23  ;;  %v8738_v31 = vld [vmem:[%s12041_s11 + $0x110] sm:$0xf0]  ;;  %v8744_v36 = vld [vmem:[%s12041_s11 + $0x108] sm:$0xf]  ;;  %v12223_v40 = vor.u32 %v10060_v29, %v8736_v28  ;;  %v6502_v59 = vld [vmem:[#allocation8] sm:$0xff] }
  0x92   : > { %3163 = vmatmul.bf16.gmra.mxu3 %v12089_v15  ;;  %14450 = vst [vmem:[#allocation40_spill] sm:$0xff] %v12205_v21  ;;  %v10061_v37 = vld [vmem:[%s12041_s11 + $0x114] sm:$0xf0]  ;;  %v10059_v38 = vld [vmem:[%s12041_s11 + $0x10c] sm:$0xf]  ;;  %v12225_v42 = vor.u32 %v10058_v30, %v8738_v31  ;;  %v12235_v10 = vperm.slane %v6502_v59, 0 }
  0x93   : > { %3510 = vmatpush.bf16.msrb.mxu3 %v9733_v61  ;;  %v8746_v39 = vld [vmem:[%s12041_s11 + $0x118] sm:$0xf0]  ;;  %14453 = vst [vmem:[#allocation43_spill] sm:$0xff] %v12223_v40  ;;  %v12227_v43 = vor.u32 %v10061_v37, %v8744_v36  ;;  %v10234_v60 = vld [vmem:[#allocation6 + $0x484] sm:$0xf] }
  0x94   : > { %14454 = vst [vmem:[#allocation44_spill] sm:$0xff] %v12225_v42  ;;  %v12229_v57 = vor.u32 %v10059_v38, %v8746_v39  ;;  %v9442_v61 = vld [vmem:[#allocation6 + $0x4a0] sm:$0xf0]  ;;  %v8752_v31 = vld [vmem:[%s12041_s11 + $0x120] sm:$0xf] }
  0x95   : > { %14455 = vst [vmem:[#allocation45_spill] sm:$0xff] %v12227_v43  ;;  %v10298_v62 = vld [vmem:[#allocation6 + $0x684] sm:$0xf]  ;;  %v9445_v63 = vor.u32 %v10234_v60, %v9442_v61  ;;  %v10064_v36 = vld [vmem:[%s12041_s11 + $0x12c] sm:$0xf0] }
  0x96   : > { %14456 = vst [vmem:[#allocation46_spill] sm:$0xff] %v12229_v57  ;;  %v9698_v4 = vld [vmem:[#allocation6 + $0x6a0] sm:$0xf0]  ;;  %v8754_v39 = vld [vmem:[%s12041_s11 + $0x130] sm:$0xf0] }
  0x97   : > { %v9701_v6 = vor.u32 %v10298_v62, %v9698_v4  ;;  %3422 = vmatpush.bf16.msrb.mxu2 %v9445_v63  ;;  %v10106_v17 = vld [vmem:[#allocation6 + $0x84] sm:$0xf]  ;;  %v10063_v59 = vld [vmem:[%s12041_s11 + $0x12c] sm:$0xf]  ;;  %v8762_v60 = vld [vmem:[%s12041_s11 + $0x138] sm:$0xf0]  ;;  %v12250_v62 = vor.u32 %v10064_v36, %v8752_v31 }
  0x98   : > { %v8930_v18 = vld [vmem:[#allocation6 + $0xa0] sm:$0xf0] }
  0x99   : > { %3511 = vmatpush.bf16.msrb.mxu3 %v9701_v6  ;;  %v10170_v19 = vld [vmem:[#allocation6 + $0x284] sm:$0xf]  ;;  %v8933_v28 = vor.u32 %v10106_v17, %v8930_v18  ;;  %14457 = vst [vmem:[#allocation47_spill] sm:$0xff] %v12250_v62 }
  0x9a   : > { %v9186_v29 = vld [vmem:[#allocation6 + $0x2a0] sm:$0xf0] }
  0x9b   : > { %v10062_v37 = vld [vmem:[%s12041_s11 + $0x124] sm:$0xf]  ;;  %v9189_v38 = vor.u32 %v10170_v19, %v9186_v29  ;;  %3244 = vmatpush.bf16.msrb.mxu0 %v8933_v28 }
  0x9c   : > { %v12252_v6 = vor.u32 %v10062_v37, %v8754_v39  ;;  %v10068_v39 = vld [vmem:[%s12041_s11 + $0x14c] sm:$0xf0] }
  0x9d   : > { %3333 = vmatpush.bf16.msrb.mxu1 %v9189_v38  ;;  %v8768_v38 = vld [vmem:[%s12041_s11 + $0x140] sm:$0xf] }
  0x9e   : > { %2990 = vmatmul.bf16.gmra.mxu1 %v12105_v25  ;;  %14458 = vst [vmem:[#allocation48_spill] sm:$0xff] %v12252_v6 }
  0xa0   : > { %2901 = vmatmul.bf16.gmra.mxu0 %v12103_v24  ;;  %3079 = vmatmul.bf16.gmra.mxu2 %v12107_v26 }
  0xa2   : > { %3168 = vmatmul.bf16.gmra.mxu3 %v12109_v27 }
  0xae   : > { %2995 = vmatmul.bf16.gmra.mxu1 %v12125_v50 }
  0xb0   : > { %2906 = vmatmul.bf16.gmra.mxu0 %v12123_v49  ;;  %3084 = vmatmul.bf16.gmra.mxu2 %v12127_v54 }
  0xb2   : > { %3173 = vmatmul.bf16.gmra.mxu3 %v12129_v55 }
  0xbe   : > { %3000 = vmatmul.bf16.gmra.mxu1 %v12145_v1 }
  0xc0   : > { %2911 = vmatmul.bf16.gmra.mxu0 %v12143_v0  ;;  %3089 = vmatmul.bf16.gmra.mxu2 %v12147_v2 }
  0xc2   : > { %3178 = vmatmul.bf16.gmra.mxu3 %v12149_v3 }
  0xce   : > { %3005 = vmatmul.bf16.gmra.mxu1 %v12165_v33 }
  0xd0   : > { %2916 = vmatmul.bf16.gmra.mxu0 %v12163_v32  ;;  %3094 = vmatmul.bf16.gmra.mxu2 %v12167_v34 }
  0xd2   : > { %3183 = vmatmul.bf16.gmra.mxu3 %v12169_v35 }
  0xde   : > { %3010 = vmatmul.bf16.gmra.mxu1 %v12185_v45 }
  0xe0   : > { %2921 = vmatmul.bf16.gmra.mxu0 %v12183_v44  ;;  %3099 = vmatmul.bf16.gmra.mxu2 %v12187_v46 }
  0xe2   : > { %3188 = vmatmul.bf16.gmra.mxu3 %v12189_v48 }
  0xee   : > { %3015 = vmatmul.bf16.gmra.mxu1 %v12205_v21 }
  0xf0   : > { %2926 = vmatmul.bf16.gmra.mxu0 %v12203_v20  ;;  %3104 = vmatmul.bf16.gmra.mxu2 %v12207_v22 }
  0xf2   : > { %3193 = vmatmul.bf16.gmra.mxu3 %v12209_v23 }
  0xfb   : > { %v2981_v56 = vpop.f32.mrf.mxu1 }
  0xfd   : > { %v2892_v41 = vpop.f32.mrf.mxu0 }
  0xfe   : > { %v2982_v58 = vadd.f32 %v2981_v56, %v2892_v41  ;;  %3020 = vmatmul.bf16.gmra.mxu1 %v12225_v42  ;;  %v8760_v41 = vld [vmem:[%s12041_s11 + $0x128] sm:$0xf]  ;;  %v10065_v56 = vld [vmem:[%s12041_s11 + $0x134] sm:$0xf0] }
 0x100   : > { %2931 = vmatmul.bf16.gmra.mxu0 %v12223_v40  ;;  %3109 = vmatmul.bf16.gmra.mxu2 %v12227_v43 }
 0x102   : > { %3198 = vmatmul.bf16.gmra.mxu3 %v12229_v57 }
 0x103   : > { %v3070_v5 = vpop.f32.mrf.mxu2  ;;  %v2983_v11 = vpop.f32.mrf.mxu1 }
 0x104   : > { %v3071_v7 = vadd.f32 %v3070_v5, %v2982_v58 }
 0x105   : > { %v3159_v8 = vpop.f32.mrf.mxu3  ;;  %v2894_v9 = vpop.f32.mrf.mxu0 }
 0x106   : > { %v3160_v16 = vadd.f32 %v3159_v8, %v3071_v7  ;;  %v2984_v58 = vadd.f32 %v2983_v11, %v2894_v9  ;;  %v12254_v7 = vor.u32 %v10065_v56, %v8760_v41  ;;  %v10066_v41 = vld [vmem:[%s12041_s11 + $0x144] sm:$0xf]  ;;  %v8770_v56 = vld [vmem:[%s12041_s11 + $0x150] sm:$0xf0] }
 0x108   : > { %v12238_v30 = vadd.f32 %v12235_v10, %v3160_v16  ;;  %14459 = vst [vmem:[#allocation49_spill] sm:$0xff] %v12254_v7  ;;  %v12256_v16 = vor.u32 %v10063_v59, %v8762_v60  ;;  %v10069_v59 = vld [vmem:[%s12041_s11 + $0x154] sm:$0xf0] }
 0x10a   : > { %6872 = vrot.lane.b32.xlu0 %v12238_v30, %s11873_s2  ;;  %14460 = vst [vmem:[#allocation50_spill] sm:$0xff] %v12256_v16 }
 0x10b   : > { %v3072_v61 = vpop.f32.mrf.mxu2  ;;  %v2986_v8 = vpop.f32.mrf.mxu1 }
 0x10c   : > { %v3073_v63 = vadd.f32 %v3072_v61, %v2984_v58  ;;  %v8776_v58 = vld [vmem:[%s12041_s11 + $0x148] sm:$0xf]  ;;  %v10067_v61 = vld [vmem:[%s12041_s11 + $0x14c] sm:$0xf] }
 0x10d   : > { %v3161_v4 = vpop.f32.mrf.mxu3  ;;  %v2897_v5 = vpop.f32.mrf.mxu0 }
 0x10e   : > { %v3162_v9 = vadd.f32 %v3161_v4, %v3073_v63  ;;  %v2987_v17 = vadd.f32 %v2986_v8, %v2897_v5  ;;  %3025 = vmatmul.bf16.gmra.mxu1 %v12252_v6  ;;  %v8778_v63 = vld [vmem:[%s12041_s11 + $0x158] sm:$0xf0]  ;;  %v12280_v5 = vor.u32 %v10068_v39, %v8768_v38  ;;  %v10226_v38 = vld [vmem:[#allocation6 + $0x444] sm:$0xf] }
 0x10f   : > { %v9410_v39 = vld [vmem:[#allocation6 + $0x460] sm:$0xf0] }
 0x110   : > { %2936 = vmatmul.bf16.gmra.mxu0 %v12250_v62  ;;  %v12260_v11 = vadd.f32 %v12235_v10, %v3162_v9  ;;  %3114 = vmatmul.bf16.gmra.mxu2 %v12254_v7  ;;  %14461 = vst [vmem:[#allocation51_spill] sm:$0xff] %v12280_v5 }
 0x112   : > { %3203 = vmatmul.bf16.gmra.mxu3 %v12256_v16  ;;  %6874 = vrot.lane.b32.xlu0 %v12260_v11, %s11873_s2 }
 0x113   : > { %v3075_v18 = vpop.f32.mrf.mxu2  ;;  %v2988_v31 = vpop.f32.mrf.mxu1 }
 0x114   : > { %v3076_v19 = vadd.f32 %v3075_v18, %v2987_v17  ;;  %v12282_v18 = vor.u32 %v10066_v41, %v8770_v56  ;;  %v10290_v41 = vld [vmem:[#allocation6 + $0x644] sm:$0xf]  ;;  %v9413_v56 = vor.u32 %v10226_v38, %v9410_v39  ;;  %v8786_v39 = vld [vmem:[%s12041_s11 + $0x170] sm:$0xf0] }
 0x115   : > { %v3164_v28 = vpop.f32.mrf.mxu3  ;;  %v2899_v29 = vpop.f32.mrf.mxu0  ;;  %v10070_v38 = vld [vmem:[%s12041_s11 + $0x164] sm:$0xf] }
 0x116   : > { %v3165_v36 = vadd.f32 %v3164_v28, %v3076_v19  ;;  %v2989_v60 = vadd.f32 %v2988_v31, %v2899_v29  ;;  %14462 = vst [vmem:[#allocation52_spill] sm:$0xff] %v12282_v18  ;;  %v12284_v19 = vor.u32 %v10069_v59, %v8776_v58  ;;  %3423 = vmatpush.bf16.msrb.mxu2 %v9413_v56  ;;  %v8898_v56 = vld [vmem:[#allocation6 + $0x60] sm:$0xf0] }
 0x117   : > { %v12312_v62 = vor.u32 %v10070_v38, %v8786_v39  ;;  %v10076_v38 = vld [vmem:[%s12041_s11 + $0x18c] sm:$0xf0]  ;;  %v10074_v39 = vld [vmem:[%s12041_s11 + $0x184] sm:$0xf] }
 0x118   : > { %v12268_v37 = vadd.f32 %v12235_v10, %v3165_v36  ;;  %14463 = vst [vmem:[#allocation53_spill] sm:$0xff] %v12284_v19  ;;  %v12286_v36 = vor.u32 %v10067_v61, %v8778_v63 }
 0x119   : > { %14466 = vst [vmem:[#allocation56_spill] sm:$0xff] %v12312_v62 }
 0x11a   : > { %6876 = vrot.lane.b32.xlu1 %v12268_v37, %s11873_s2  ;;  %14464 = vst [vmem:[#allocation54_spill] sm:$0xff] %v12286_v36 }
 0x11b   : > { %v3077_v4 = vpop.f32.mrf.mxu2  ;;  %v2991_v28 = vpop.f32.mrf.mxu1 }
 0x11c   : > { %v3078_v8 = vadd.f32 %v3077_v4, %v2989_v60 }
 0x11d   : > { %v3166_v9 = vpop.f32.mrf.mxu3  ;;  %v2902_v17 = vpop.f32.mrf.mxu0 }
 0x11e   : > { %v3167_v16 = vadd.f32 %v3166_v9, %v3078_v8  ;;  %v2992_v31 = vadd.f32 %v2991_v28, %v2902_v17  ;;  %3030 = vmatmul.bf16.gmra.mxu1 %v12282_v18  ;;  %v8784_v9 = vld [vmem:[%s12041_s11 + $0x160] sm:$0xf]  ;;  %v10072_v17 = vld [vmem:[%s12041_s11 + $0x16c] sm:$0xf0]  ;;  %v10071_v18 = vld [vmem:[%s12041_s11 + $0x16c] sm:$0xf] }
 0x120   : > { %2941 = vmatmul.bf16.gmra.mxu0 %v12280_v5  ;;  %v12290_v29 = vadd.f32 %v12235_v10, %v3167_v16  ;;  %3119 = vmatmul.bf16.gmra.mxu2 %v12284_v19  ;;  %v9666_v16 = vld [vmem:[#allocation6 + $0x660] sm:$0xf0]  ;;  %v10073_v19 = vld [vmem:[%s12041_s11 + $0x174] sm:$0xf0]  ;;  %v8794_v5 = vld [vmem:[%s12041_s11 + $0x178] sm:$0xf0] }
 0x121   : > { %v9669_v59 = vor.u32 %v10290_v41, %v9666_v16  ;;  %v10162_v16 = vld [vmem:[#allocation6 + $0x244] sm:$0xf] }
 0x122   : > { %3208 = vmatmul.bf16.gmra.mxu3 %v12286_v36  ;;  %6878 = vrot.lane.b32.xlu1 %v12290_v29, %s11873_s2  ;;  %v8792_v36 = vld [vmem:[%s12041_s11 + $0x168] sm:$0xf] }
 0x123   : > { %v3080_v58 = vpop.f32.mrf.mxu2  ;;  %v2993_v4 = vpop.f32.mrf.mxu1  ;;  %3512 = vmatpush.bf16.msrb.mxu3 %v9669_v59  ;;  %v12310_v59 = vor.u32 %v10072_v17, %v8784_v9  ;;  %v12314_v57 = vor.u32 %v10073_v19, %v8792_v36  ;;  %v8800_v36 = vld [vmem:[%s12041_s11 + $0x180] sm:$0xf] }
 0x124   : > { %v3081_v60 = vadd.f32 %v3080_v58, %v2992_v31  ;;  %v10098_v31 = vld [vmem:[#allocation6 + $0x44] sm:$0xf] }
 0x125   : > { %v3169_v61 = vpop.f32.mrf.mxu3  ;;  %v2904_v63 = vpop.f32.mrf.mxu0  ;;  %14465 = vst [vmem:[#allocation55_spill] sm:$0xff] %v12310_v59 }
 0x126   : > { %v3170_v8 = vadd.f32 %v3169_v61, %v3081_v60  ;;  %v2994_v41 = vadd.f32 %v2993_v4, %v2904_v63  ;;  %v8901_v60 = vor.u32 %v10098_v31, %v8898_v56  ;;  %v9154_v61 = vld [vmem:[#allocation6 + $0x260] sm:$0xf0]  ;;  %14467 = vst [vmem:[#allocation57_spill] sm:$0xff] %v12314_v57  ;;  %v12316_v4 = vor.u32 %v10071_v18, %v8794_v5  ;;  %v8808_v31 = vld [vmem:[%s12041_s11 + $0x188] sm:$0xf] }
 0x127   : > { %v9157_v43 = vor.u32 %v10162_v16, %v9154_v61  ;;  %v10077_v56 = vld [vmem:[%s12041_s11 + $0x194] sm:$0xf0] }
 0x128   : > { %v12300_v28 = vadd.f32 %v12235_v10, %v3170_v8  ;;  %14468 = vst [vmem:[#allocation58_spill] sm:$0xff] %v12316_v4  ;;  %3245 = vmatpush.bf16.msrb.mxu0 %v8901_v60  ;;  %v8810_v60 = vld [vmem:[%s12041_s11 + $0x198] sm:$0xf0] }
 0x129   : > { %3334 = vmatpush.bf16.msrb.mxu1 %v9157_v43 }
 0x12a   : > { %6880 = vrot.lane.b32.xlu2 %v12300_v28, %s11873_s2 }
 0x12b   : > { %v3082_v58 = vpop.f32.mrf.mxu2  ;;  %v2996_v63 = vpop.f32.mrf.mxu1 }
 0x12c   : > { %v3083_v8 = vadd.f32 %v3082_v58, %v2994_v41  ;;  %v8802_v41 = vld [vmem:[%s12041_s11 + $0x190] sm:$0xf0]  ;;  %v10075_v58 = vld [vmem:[%s12041_s11 + $0x18c] sm:$0xf] }
 0x12d   : > { %v3171_v7 = vpop.f32.mrf.mxu3  ;;  %v2907_v6 = vpop.f32.mrf.mxu0 }
 0x12e   : > { %v3172_v42 = vadd.f32 %v3171_v7, %v3083_v8  ;;  %v2997_v17 = vadd.f32 %v2996_v63, %v2907_v6  ;;  %3035 = vmatmul.bf16.gmra.mxu1 %v12312_v62  ;;  %v12340_v8 = vor.u32 %v10076_v38, %v8800_v36  ;;  %v10218_v36 = vld [vmem:[#allocation6 + $0x404] sm:$0xf] }
 0x12f   : > { %v9378_v38 = vld [vmem:[#allocation6 + $0x420] sm:$0xf0] }
 0x130   : > { %2946 = vmatmul.bf16.gmra.mxu0 %v12310_v59  ;;  %v12320_v9 = vadd.f32 %v12235_v10, %v3172_v42  ;;  %3124 = vmatmul.bf16.gmra.mxu2 %v12314_v57  ;;  %14469 = vst [vmem:[#allocation59_spill] sm:$0xff] %v12340_v8 }
 0x132   : > { %3213 = vmatmul.bf16.gmra.mxu3 %v12316_v4  ;;  %6882 = vrot.lane.b32.xlu2 %v12320_v9, %s11873_s2  ;;  %v12346_v4 = vor.u32 %v10075_v58, %v8810_v60 }
 0x133   : > { %v3085_v43 = vpop.f32.mrf.mxu2  ;;  %v2998_v18 = vpop.f32.mrf.mxu1 }
 0x134   : > { %v3086_v7 = vadd.f32 %v3085_v43, %v2997_v17  ;;  %14472 = vst [vmem:[#allocation62_spill] sm:$0xff] %v12346_v4 }
 0x135   : > { %v3174_v5 = vpop.f32.mrf.mxu3  ;;  %v2909_v42 = vpop.f32.mrf.mxu0 }
 0x136   : > { %v3175_v19 = vadd.f32 %v3174_v5, %v3086_v7  ;;  %v2999_v16 = vadd.f32 %v2998_v18, %v2909_v42  ;;  %v12342_v7 = vor.u32 %v10074_v39, %v8802_v41  ;;  %v12344_v5 = vor.u32 %v10077_v56, %v8808_v31  ;;  %v10282_v39 = vld [vmem:[#allocation6 + $0x604] sm:$0xf] }
 0x137   : > { %v9381_v41 = vor.u32 %v10218_v36, %v9378_v38  ;;  %v10078_v36 = vld [vmem:[%s12041_s11 + $0x1a4] sm:$0xf]  ;;  %v8818_v38 = vld [vmem:[%s12041_s11 + $0x1b0] sm:$0xf0] }
 0x138   : > { %v12328_v6 = vadd.f32 %v12235_v10, %v3175_v19  ;;  %14470 = vst [vmem:[#allocation60_spill] sm:$0xff] %v12342_v7  ;;  %v12372_v40 = vor.u32 %v10078_v36, %v8818_v38  ;;  %v10084_v36 = vld [vmem:[%s12041_s11 + $0x1cc] sm:$0xf0]  ;;  %v10082_v38 = vld [vmem:[%s12041_s11 + $0x1c4] sm:$0xf] }
 0x139   : > { %14471 = vst [vmem:[#allocation61_spill] sm:$0xff] %v12344_v5  ;;  %3424 = vmatpush.bf16.msrb.mxu2 %v9381_v41  ;;  %v8866_v41 = vld [vmem:[#allocation6 + $0x20] sm:$0xf0] }
 0x13a   : > { %6884 = vrot.lane.b32.xlu0 %v12328_v6, %s11873_s2  ;;  %14474 = vst [vmem:[#allocation64_spill] sm:$0xff] %v12372_v40 }
 0x13b   : > { %v3087_v61 = vpop.f32.mrf.mxu2  ;;  %v3001_v19 = vpop.f32.mrf.mxu1 }
 0x13c   : > { %v3088_v63 = vadd.f32 %v3087_v61, %v2999_v16 }
 0x13d   : > { %v3176_v17 = vpop.f32.mrf.mxu3  ;;  %v2912_v43 = vpop.f32.mrf.mxu0 }
 0x13e   : > { %v3177_v57 = vadd.f32 %v3176_v17, %v3088_v63  ;;  %v3002_v18 = vadd.f32 %v3001_v19, %v2912_v43  ;;  %3040 = vmatmul.bf16.gmra.mxu1 %v12342_v7  ;;  %v8816_v17 = vld [vmem:[%s12041_s11 + $0x1a0] sm:$0xf]  ;;  %v10080_v43 = vld [vmem:[%s12041_s11 + $0x1ac] sm:$0xf0]  ;;  %v10079_v7 = vld [vmem:[%s12041_s11 + $0x1ac] sm:$0xf] }
 0x140   : > { %2951 = vmatmul.bf16.gmra.mxu0 %v12340_v8  ;;  %v12350_v42 = vadd.f32 %v12235_v10, %v3177_v57  ;;  %3129 = vmatmul.bf16.gmra.mxu2 %v12344_v5  ;;  %v9634_v57 = vld [vmem:[#allocation6 + $0x620] sm:$0xf0]  ;;  %v10081_v5 = vld [vmem:[%s12041_s11 + $0x1b4] sm:$0xf0]  ;;  %v8826_v8 = vld [vmem:[%s12041_s11 + $0x1b8] sm:$0xf0] }
 0x141   : > { %v9637_v56 = vor.u32 %v10282_v39, %v9634_v57  ;;  %v10154_v57 = vld [vmem:[#allocation6 + $0x204] sm:$0xf] }
 0x142   : > { %3218 = vmatmul.bf16.gmra.mxu3 %v12346_v4  ;;  %6886 = vrot.lane.b32.xlu1 %v12350_v42, %s11873_s2  ;;  %v8824_v4 = vld [vmem:[%s12041_s11 + $0x1a8] sm:$0xf] }
 0x143   : > { %v3090_v31 = vpop.f32.mrf.mxu2  ;;  %v3003_v61 = vpop.f32.mrf.mxu1  ;;  %3513 = vmatpush.bf16.msrb.mxu3 %v9637_v56  ;;  %v12370_v56 = vor.u32 %v10080_v43, %v8816_v17  ;;  %v12374_v23 = vor.u32 %v10081_v5, %v8824_v4  ;;  %v8832_v5 = vld [vmem:[%s12041_s11 + $0x1c0] sm:$0xf] }
 0x144   : > { %v3091_v16 = vadd.f32 %v3090_v31, %v3002_v18  ;;  %v10090_v18 = vld [vmem:[#allocation6 + $0x4] sm:$0xf] }
 0x145   : > { %v3179_v58 = vpop.f32.mrf.mxu3  ;;  %v2914_v60 = vpop.f32.mrf.mxu0  ;;  %14473 = vst [vmem:[#allocation63_spill] sm:$0xff] %v12370_v56 }
 0x146   : > { %v3180_v63 = vadd.f32 %v3179_v58, %v3091_v16  ;;  %v3004_v39 = vadd.f32 %v3003_v61, %v2914_v60  ;;  %v8869_v16 = vor.u32 %v10090_v18, %v8866_v41  ;;  %v9122_v58 = vld [vmem:[#allocation6 + $0x220] sm:$0xf0]  ;;  %14475 = vst [vmem:[#allocation65_spill] sm:$0xff] %v12374_v23  ;;  %v12376_v61 = vor.u32 %v10079_v7, %v8826_v8  ;;  %v8840_v18 = vld [vmem:[%s12041_s11 + $0x1c8] sm:$0xf] }
 0x147   : > { %v9125_v22 = vor.u32 %v10154_v57, %v9122_v58  ;;  %v10085_v41 = vld [vmem:[%s12041_s11 + $0x1d4] sm:$0xf0] }
 0x148   : > { %v12360_v19 = vadd.f32 %v12235_v10, %v3180_v63  ;;  %14476 = vst [vmem:[#allocation66_spill] sm:$0xff] %v12376_v61  ;;  %3246 = vmatpush.bf16.msrb.mxu0 %v8869_v16  ;;  %v8842_v16 = vld [vmem:[%s12041_s11 + $0x1d8] sm:$0xf0] }
 0x149   : > { %3335 = vmatpush.bf16.msrb.mxu1 %v9125_v22 }
 0x14a   : > { %6888 = vrot.lane.b32.xlu2 %v12360_v19, %s11873_s2 }
 0x14b   : > { %v3092_v31 = vpop.f32.mrf.mxu2  ;;  %v3006_v60 = vpop.f32.mrf.mxu1 }
 0x14c   : > { %v3093_v63 = vadd.f32 %v3092_v31, %v3004_v39  ;;  %v8834_v39 = vld [vmem:[%s12041_s11 + $0x1d0] sm:$0xf0]  ;;  %v10083_v31 = vld [vmem:[%s12041_s11 + $0x1cc] sm:$0xf] }
 0x14d   : > { %v3181_v62 = vpop.f32.mrf.mxu3  ;;  %v2917_v59 = vpop.f32.mrf.mxu0 }
 0x14e   : > { %v3182_v21 = vadd.f32 %v3181_v62, %v3093_v63  ;;  %v3007_v43 = vadd.f32 %v3006_v60, %v2917_v59  ;;  %3045 = vmatmul.bf16.gmra.mxu1 %v12372_v40  ;;  %v12400_v63 = vor.u32 %v10084_v36, %v8832_v5  ;;  %v9608_v5 = vld [vmem:[#allocation6 + $0x5c8] sm:$0xf] }
 0x14f   : > { %v10279_v36 = vld [vmem:[#allocation6 + $0x5e4] sm:$0xf0] }
 0x150   : > { %2956 = vmatmul.bf16.gmra.mxu0 %v12370_v56  ;;  %v12380_v17 = vadd.f32 %v12235_v10, %v3182_v21  ;;  %3134 = vmatmul.bf16.gmra.mxu2 %v12374_v23  ;;  %14477 = vst [vmem:[#allocation67_spill] sm:$0xff] %v12400_v63 }
 0x152   : > { %3223 = vmatmul.bf16.gmra.mxu3 %v12376_v61  ;;  %6890 = vrot.lane.b32.xlu0 %v12380_v17, %s11873_s2  ;;  %v12406_v61 = vor.u32 %v10083_v31, %v8842_v16 }
 0x153   : > { %v3095_v22 = vpop.f32.mrf.mxu2  ;;  %v3008_v8 = vpop.f32.mrf.mxu1 }
 0x154   : > { %v3096_v62 = vadd.f32 %v3095_v22, %v3007_v43  ;;  %14480 = vst [vmem:[#allocation70_spill] sm:$0xff] %v12406_v61 }
 0x155   : > { %v3184_v4 = vpop.f32.mrf.mxu3  ;;  %v2919_v21 = vpop.f32.mrf.mxu0 }
 0x156   : > { %v3185_v7 = vadd.f32 %v3184_v4, %v3096_v62  ;;  %v3009_v57 = vadd.f32 %v3008_v8, %v2919_v21  ;;  %v12402_v62 = vor.u32 %v10082_v38, %v8834_v39  ;;  %v12404_v4 = vor.u32 %v10085_v41, %v8840_v18  ;;  %v9864_v38 = vld [vmem:[#allocation6 + $0x7c8] sm:$0xf] }
 0x157   : > { %v9609_v39 = vor.u32 %v10279_v36, %v9608_v5  ;;  %v10086_v5 = vld [vmem:[%s12041_s11 + $0x1e4] sm:$0xf]  ;;  %v8850_v36 = vld [vmem:[%s12041_s11 + $0x1f0] sm:$0xf0] }
 0x158   : > { %v12388_v59 = vadd.f32 %v12235_v10, %v3185_v7  ;;  %14478 = vst [vmem:[#allocation68_spill] sm:$0xff] %v12402_v62  ;;  %v12432_v20 = vor.u32 %v10086_v5, %v8850_v36 }
 0x159   : > { %14479 = vst [vmem:[#allocation69_spill] sm:$0xff] %v12404_v4  ;;  %3773 = vmatpush.bf16.msra.mxu2 %v9609_v39  ;;  %v10151_v39 = vld [vmem:[#allocation6 + $0x1e4] sm:$0xf0] }
 0x15a   : > { %6892 = vrot.lane.b32.xlu1 %v12388_v59, %s11873_s2  ;;  %14483 = vst [vmem:[#allocation73_spill] sm:$0xff] %v12432_v20 }
 0x15b   : > { %v3097_v58 = vpop.f32.mrf.mxu2  ;;  %v3011_v7 = vpop.f32.mrf.mxu1 }
 0x15c   : > { %v3098_v60 = vadd.f32 %v3097_v58, %v3009_v57 }
 0x15d   : > { %v3186_v43 = vpop.f32.mrf.mxu3  ;;  %v2922_v22 = vpop.f32.mrf.mxu0 }
 0x15e   : > { %v3187_v23 = vadd.f32 %v3186_v43, %v3098_v60  ;;  %v3012_v8 = vadd.f32 %v3011_v7, %v2922_v22  ;;  %3050 = vmatmul.bf16.gmra.mxu1 %v12402_v62  ;;  %v8848_v43 = vld [vmem:[%s12041_s11 + $0x1e0] sm:$0xf]  ;;  %v10088_v22 = vld [vmem:[%s12041_s11 + $0x1ec] sm:$0xf0]  ;;  %v10087_v62 = vld [vmem:[%s12041_s11 + $0x1ec] sm:$0xf] }
 0x160   : > { %2961 = vmatmul.bf16.gmra.mxu0 %v12400_v63  ;;  %v12410_v21 = vadd.f32 %v12235_v10, %v3187_v23  ;;  %3139 = vmatmul.bf16.gmra.mxu2 %v12404_v4  ;;  %v10343_v23 = vld [vmem:[#allocation6 + $0x7e4] sm:$0xf0]  ;;  %v10089_v4 = vld [vmem:[%s12041_s11 + $0x1f4] sm:$0xf0]  ;;  %v8858_v63 = vld [vmem:[%s12041_s11 + $0x1f8] sm:$0xf0] }
 0x161   : > { %v9865_v41 = vor.u32 %v10343_v23, %v9864_v38  ;;  %v9352_v23 = vld [vmem:[#allocation6 + $0x3c8] sm:$0xf] }
 0x162   : > { %3228 = vmatmul.bf16.gmra.mxu3 %v12406_v61  ;;  %6894 = vrot.lane.b32.xlu2 %v12410_v21, %s11873_s2  ;;  %v8856_v61 = vld [vmem:[%s12041_s11 + $0x1e8] sm:$0xf]  ;;  %s11727_s11 = scalar_lea.hbm %s11726_s18, 256 }
 0x163   : > { %v3100_v18 = vpop.f32.mrf.mxu2  ;;  %v3013_v58 = vpop.f32.mrf.mxu1  ;;  %3862 = vmatpush.bf16.msra.mxu3 %v9865_v41  ;;  %v12430_v41 = vor.u32 %v10088_v22, %v8848_v43  ;;  %v12434_v48 = vor.u32 %v10089_v4, %v8856_v61  ;;  %p11728_p1 = scmp.ne.s32.totalorder %s11726_s18, %s11727_s11 }
 0x164   : > { %v3101_v57 = vadd.f32 %v3100_v18, %v3012_v8  ;;  %v9096_v8 = vld [vmem:[#allocation6 + $0x1c8] sm:$0xf] }
 0x165   : > { %v3189_v31 = vpop.f32.mrf.mxu3  ;;  %v2924_v16 = vpop.f32.mrf.mxu0  ;;  %14482 = vst [vmem:[#allocation72_spill] sm:$0xff] %v12430_v41  ;;  %p11729_p4 = pnand %p11728_p1, %p12014_p7 }
 0x166   : > { %v3190_v60 = vadd.f32 %v3189_v31, %v3101_v57  ;;  %v3014_v38 = vadd.f32 %v3013_v58, %v2924_v16  ;;  %v9097_v57 = vor.u32 %v10151_v39, %v9096_v8  ;;  %v10215_v31 = vld [vmem:[#allocation6 + $0x3e4] sm:$0xf0]  ;;  %14484 = vst [vmem:[#allocation74_spill] sm:$0xff] %v12434_v48  ;;  %v12436_v58 = vor.u32 %v10087_v62, %v8858_v63 }
 0x167   : > { %v9353_v46 = vor.u32 %v10215_v31, %v9352_v23  ;;  %v6808_v31 = vld [vmem:[#allocation11] sm:$0xff]  ;;  %p11730_p8 = pneg %p11729_p4 }
 0x168   : > { %v12420_v7 = vadd.f32 %v12235_v10, %v3190_v60  ;;  %14485 = vst [vmem:[#allocation75_spill] sm:$0xff] %v12436_v58  ;;  %3595 = vmatpush.bf16.msra.mxu0 %v9097_v57 }
 0x169   : > { %3684 = vmatpush.bf16.msra.mxu1 %v9353_v46 }
 0x16a   : > { %14481 = vst [vmem:[#allocation71_spill] sm:$0xff] %v12420_v7  ;;  %6896 = vrot.lane.b32.xlu0 %v12420_v7, %s11873_s2 }
 0x16b   : > { %v3102_v18 = vpop.f32.mrf.mxu2  ;;  %v3016_v16 = vpop.f32.mrf.mxu1 }
 0x16c   : > { %v3103_v60 = vadd.f32 %v3102_v18, %v3014_v38 }
 0x16d   : > { %v3191_v40 = vpop.f32.mrf.mxu3  ;;  %v2927_v56 = vpop.f32.mrf.mxu0 }
 0x16e   : > { %v3192_v7 = vadd.f32 %v3191_v40, %v3103_v60  ;;  %v3017_v22 = vadd.f32 %v3016_v16, %v2927_v56  ;;  %3055 = vmatmul.bf16.gmra.mxu1 %v12432_v20  ;;  %v9576_v16 = vld [vmem:[#allocation6 + $0x588] sm:$0xf] }
 0x170   : > { %2966 = vmatmul.bf16.gmra.mxu0 %v12430_v41  ;;  %v12440_v43 = vadd.f32 %v12235_v10, %v3192_v7  ;;  %3144 = vmatmul.bf16.gmra.mxu2 %v12434_v48 }
 0x172   : > { %3233 = vmatmul.bf16.gmra.mxu3 %v12436_v58  ;;  %6898 = vrot.lane.b32.xlu1 %v12440_v43, %s11873_s2 }
 0x173   : > { %v3105_v61 = vpop.f32.mrf.mxu2  ;;  %v3018_v46 = vpop.f32.mrf.mxu1 }
 0x174   : > { %v3106_v63 = vadd.f32 %v3105_v61, %v3017_v22  ;;  %v10271_v22 = vld [vmem:[#allocation6 + $0x5a4] sm:$0xf0] }
 0x175   : > { %v3194_v62 = vpop.f32.mrf.mxu3  ;;  %v2929_v40 = vpop.f32.mrf.mxu0  ;;  %v9832_v61 = vld [vmem:[#allocation6 + $0x788] sm:$0xf] }
 0x176   : > { %v3195_v4 = vadd.f32 %v3194_v62, %v3106_v63  ;;  %v3019_v7 = vadd.f32 %v3018_v46, %v2929_v40  ;;  %v9577_v63 = vor.u32 %v10271_v22, %v9576_v16  ;;  %v10335_v62 = vld [vmem:[#allocation6 + $0x7a4] sm:$0xf0] }
 0x177   : > { %v6776_v40 = vld [vmem:[#allocation9] sm:$0xff] }
 0x178   : > { %v12448_v5 = vadd.f32 %v12235_v10, %v3195_v4  ;;  %v6777_v4 = vld [vmem:[#allocation9 + $0x8] sm:$0xff]  ;;  %3774 = vmatpush.bf16.msra.mxu2 %v9577_v63 }
 0x179   : > { %v6813_v63 = vld [vmem:[#allocation11 + $0x28] sm:$0xff] }
 0x17a   : > { %6900 = vrot.lane.b32.xlu2 %v12448_v5, %s11873_s2 }
 0x17b   : > { %v3107_v56 = vpop.f32.mrf.mxu2  ;;  %v3021_v23 = vpop.f32.mrf.mxu1 }
 0x17c   : > { %v3108_v36 = vadd.f32 %v3107_v56, %v3019_v7  ;;  %v6873_v8 = vpop.permute.xlu0 %6872  ;;  %v6809_v7 = vld [vmem:[#allocation11 + $0x8] sm:$0xff]  ;;  %v9833_v56 = vor.u32 %v10335_v62, %v9832_v61 }
 0x17d   : > { %v3196_v38 = vpop.f32.mrf.mxu3  ;;  %v2932_v39 = vpop.f32.mrf.mxu0  ;;  %v6781_v61 = vld [vmem:[#allocation9 + $0x28] sm:$0xff] }
 0x17e   : > { %v3197_v18 = vadd.f32 %v3196_v38, %v3108_v36  ;;  %v3022_v60 = vadd.f32 %v3021_v23, %v2932_v39  ;;  %3336 = vmatmul.bf16.vlgmr.msrb.gmra.mxu1 %v12065_v51  ;;  %v6936_v36 = vmul.f32 %v6873_v8, %v6808_v31  ;;  %3863 = vmatpush.bf16.msra.mxu3 %v9833_v56  ;;  %v6812_v8 = vld [vmem:[#allocation11 + $0x20] sm:$0xff] }
 0x17f   : > { %v10207_v56 = vld [vmem:[#allocation6 + $0x3a4] sm:$0xf0] }
 0x180   : > { %3247 = vmatmul.bf16.vlgmr.msrb.gmra.mxu0 %v12063_v47  ;;  %v12454_v57 = vadd.f32 %v12235_v10, %v3197_v18  ;;  %3425 = vmatmul.bf16.vlgmr.msrb.gmra.mxu2 %v12067_v52  ;;  %v6840_v52 = vmul.f32 %v6776_v40, %v12238_v30  ;;  %v6841_v47 = vmul.f32 %v6777_v4, %v12260_v11  ;;  %v9064_v30 = vld [vmem:[#allocation6 + $0x188] sm:$0xf] }
 0x181   : > { %v10143_v40 = vld [vmem:[#allocation6 + $0x1a4] sm:$0xf0] }
 0x182   : > { %3514 = vmatmul.bf16.vlgmr.msrb.gmra.mxu3 %v12069_v53  ;;  %6902 = vrot.lane.b32.xlu0 %v12454_v57, %s11873_s2  ;;  %v6968_v58 = vadd.f32 %v6936_v36, %v6840_v52  ;;  %v9320_v11 = vld [vmem:[#allocation6 + $0x388] sm:$0xf]  ;;  %v9065_v52 = vor.u32 %v10143_v40, %v9064_v30  ;;  %v6811_v30 = vld [vmem:[#allocation11 + $0x18] sm:$0xff] }
 0x183   : > { %v3110_v46 = vpop.f32.mrf.mxu2  ;;  %v3023_v22 = vpop.f32.mrf.mxu1 }
 0x184   : > { %v3111_v38 = vadd.f32 %v3110_v46, %v3022_v60  ;;  %v6881_v23 = vpop.permute.xlu2 %6880  ;;  %v6875_v18 = vpop.permute.xlu0 %6874  ;;  %v6780_v60 = vld [vmem:[#allocation9 + $0x20] sm:$0xff]  ;;  %3596 = vmatpush.bf16.msra.mxu0 %v9065_v52 }
 0x185   : > { %v3199_v39 = vpop.f32.mrf.mxu3  ;;  %v2934_v53 = vpop.f32.mrf.mxu0  ;;  %v6937_v16 = vmul.f32 %v6875_v18, %v6809_v7  ;;  %v6940_v4 = vmul.f32 %v6881_v23, %v6812_v8 }
 0x186   : > { %v3200_v51 = vadd.f32 %v3199_v39, %v3111_v38  ;;  %v3024_v46 = vadd.f32 %v3023_v22, %v2934_v53  ;;  %v6844_v53 = vmul.f32 %v6780_v60, %v12300_v28  ;;  %v6845_v38 = vmul.f32 %v6781_v61, %v12320_v9  ;;  %v6810_v9 = vld [vmem:[#allocation11 + $0x10] sm:$0xff] }
 0x187   : > { %v6969_v31 = vadd.f32 %v6937_v16, %v6841_v47  ;;  %v6778_v60 = vld [vmem:[#allocation9 + $0x10] sm:$0xff] }
 0x188   : > { %v12464_v48 = vadd.f32 %v12235_v10, %v3200_v51  ;;  %v6972_v8 = vadd.f32 %v6940_v4, %v6844_v53 }
 0x189   : > { %v10352_v62 = vpack.c.bf16 %v6969_v31, %v6968_v58  ;;  %v9321_v58 = vor.u32 %v10207_v56, %v9320_v11  ;;  %v6842_v56 = vmul.f32 %v6778_v60, %v12268_v37  ;;  %v10263_v60 = vld [vmem:[#allocation6 + $0x564] sm:$0xf0] }
 0x18a   : > { %6904 = vrot.lane.b32.xlu1 %v12464_v48, %s11873_s2 }
 0x18b   : > { %v3112_v7 = vpop.f32.mrf.mxu2  ;;  %10353 = vst [vmem:[%s12470_s3] sm:$0xff] %v10352_v62   ;;  %v3026_v22 = vpop.f32.mrf.mxu1  ;;  %3685 = vmatpush.bf16.msra.mxu1 %v9321_v58 }
 0x18c   : > { %v3113_v47 = vadd.f32 %v3112_v7, %v3024_v46  ;;  %v6883_v36 = vpop.permute.xlu2 %6882  ;;  %v6877_v18 = vpop.permute.xlu1 %6876 }
 0x18d   : > { %v3201_v51 = vpop.f32.mrf.mxu3  ;;  %v6941_v39 = vmul.f32 %v6883_v36, %v6813_v63  ;;  %v2937_v16 = vpop.f32.mrf.mxu0  ;;  %v6779_v63 = vld [vmem:[#allocation9 + $0x18] sm:$0xff]  ;;  %v6938_v40 = vmul.f32 %v6877_v18, %v6810_v9  ;;  %v9544_v9 = vld [vmem:[#allocation6 + $0x548] sm:$0xf] }
 0x18e   : > { %v3202_v23 = vadd.f32 %v3201_v51, %v3113_v47  ;;  %v3027_v46 = vadd.f32 %v3026_v22, %v2937_v16  ;;  %3341 = vmatmul.bf16.gmra.mxu1 %v12085_v13  ;;  %v6843_v51 = vmul.f32 %v6779_v63, %v12290_v29  ;;  %v9545_v63 = vor.u32 %v10263_v60, %v9544_v9  ;;  %v6814_v60 = vld [vmem:[#allocation11 + $0x30] sm:$0xff] }
 0x18f   : > { %v6973_v31 = vadd.f32 %v6941_v39, %v6845_v38  ;;  %v6970_v53 = vadd.f32 %v6938_v40, %v6842_v56 }
 0x190   : > { %3252 = vmatmul.bf16.gmra.mxu0 %v12083_v12  ;;  %v12477_v62 = vadd.f32 %v12235_v10, %v3202_v23  ;;  %3430 = vmatmul.bf16.gmra.mxu2 %v12087_v14 }
 0x191   : > { %v10362_v28 = vpack.c.bf16 %v6973_v31, %v6972_v8  ;;  %3775 = vmatpush.bf16.msra.mxu2 %v9545_v63 }
 0x192   : > { %3519 = vmatmul.bf16.gmra.mxu3 %v12089_v15  ;;  %6906 = vrot.lane.b32.xlu2 %v12477_v62, %s11873_s2 }
 0x193   : > { %10990 = vst [vmem:[%s12470_s3 + $0x10] sm:$0xff] %v10362_v28   ;;  %v3115_v61 = vpop.f32.mrf.mxu2  ;;  %v3028_v58 = vpop.f32.mrf.mxu1 }
 0x194   : > { %v3116_v11 = vadd.f32 %v3115_v61, %v3027_v46  ;;  %v6879_v7 = vpop.permute.xlu1 %6878  ;;  %v9800_v61 = vld [vmem:[#allocation6 + $0x748] sm:$0xf] }
 0x195   : > { %v3204_v4 = vpop.f32.mrf.mxu3  ;;  %v2939_v52 = vpop.f32.mrf.mxu0  ;;  %v6939_v36 = vmul.f32 %v6879_v7, %v6811_v30  ;;  %v10327_v30 = vld [vmem:[#allocation6 + $0x764] sm:$0xf0] }
 0x196   : > { %v3205_v47 = vadd.f32 %v3204_v4, %v3116_v11  ;;  %v3029_v23 = vadd.f32 %v3028_v58, %v2939_v52  ;;  %v9801_v11 = vor.u32 %v10327_v30, %v9800_v61  ;;  %v9032_v58 = vld [vmem:[#allocation6 + $0x148] sm:$0xf]  ;;  %v6782_v30 = vld [vmem:[#allocation9 + $0x30] sm:$0xff] }
 0x197   : > { %v6971_v39 = vadd.f32 %v6939_v36, %v6843_v51 }
 0x198   : > { %v12488_v38 = vadd.f32 %v12235_v10, %v3205_v47  ;;  %3864 = vmatpush.bf16.msra.mxu3 %v9801_v11  ;;  %v6815_v11 = vld [vmem:[#allocation11 + $0x38] sm:$0xff] }
 0x199   : > { %v10357_v16 = vpack.c.bf16 %v6971_v39, %v6970_v53  ;;  %v10135_v53 = vld [vmem:[#allocation6 + $0x164] sm:$0xf0] }
 0x19a   : > { %6908 = vrot.lane.b32.xlu0 %v12488_v38, %s11873_s2  ;;  %v9288_v39 = vld [vmem:[#allocation6 + $0x348] sm:$0xf] }
 0x19b   : > { %v3117_v18 = vpop.f32.mrf.mxu2  ;;  %10989 = vst [vmem:[%s12470_s3 + $0x8] sm:$0xff] %v10357_v16   ;;  %v3031_v46 = vpop.f32.mrf.mxu1 }
 0x19c   : > { %v3118_v22 = vadd.f32 %v3117_v18, %v3029_v23  ;;  %v9033_v23 = vor.u32 %v10135_v53, %v9032_v58  ;;  %v10199_v18 = vld [vmem:[#allocation6 + $0x364] sm:$0xf0] }
 0x19d   : > { %v3206_v8 = vpop.f32.mrf.mxu3  ;;  %v2942_v37 = vpop.f32.mrf.mxu0 }
 0x19e   : > { %v3207_v31 = vadd.f32 %v3206_v8, %v3118_v22  ;;  %v3032_v28 = vadd.f32 %v3031_v46, %v2942_v37  ;;  %3346 = vmatmul.bf16.gmra.mxu1 %v12105_v25  ;;  %v9289_v37 = vor.u32 %v10199_v18, %v9288_v39  ;;  %3597 = vmatpush.bf16.msra.mxu0 %v9033_v23 }
 0x1a0   : > { %3257 = vmatmul.bf16.gmra.mxu0 %v12103_v24  ;;  %v12495_v29 = vadd.f32 %v12235_v10, %v3207_v31  ;;  %3435 = vmatmul.bf16.gmra.mxu2 %v12107_v26 }
 0x1a1   : > { %3686 = vmatpush.bf16.msra.mxu1 %v9289_v37 }
 0x1a2   : > { %3524 = vmatmul.bf16.gmra.mxu3 %v12109_v27  ;;  %6910 = vrot.lane.b32.xlu1 %v12495_v29, %s11873_s2 }
 0x1a3   : > { %v3120_v40 = vpop.f32.mrf.mxu2  ;;  %v3033_v47 = vpop.f32.mrf.mxu1 }
 0x1a4   : > { %v3121_v4 = vadd.f32 %v3120_v40, %v3032_v28  ;;  %v6783_v40 = vld [vmem:[#allocation9 + $0x38] sm:$0xff] }
 0x1a5   : > { %v3209_v7 = vpop.f32.mrf.mxu3  ;;  %v2944_v52 = vpop.f32.mrf.mxu0  ;;  %v6847_v58 = vmul.f32 %v6783_v40, %v12350_v42 }
 0x1a6   : > { %v3210_v56 = vadd.f32 %v3209_v7, %v3121_v4  ;;  %v3034_v36 = vadd.f32 %v3033_v47, %v2944_v52  ;;  %v6889_v40 = vpop.permute.xlu2 %6888 }
 0x1a8   : > { %v12503_v51 = vadd.f32 %v12235_v10, %v3210_v56 }
 0x1aa   : > { %6912 = vrot.lane.b32.xlu2 %v12503_v51, %s11873_s2 }
 0x1ab   : > { %v3122_v16 = vpop.f32.mrf.mxu2  ;;  %v3036_v28 = vpop.f32.mrf.mxu1 }
 0x1ac   : > { %v3123_v22 = vadd.f32 %v3122_v16, %v3034_v36  ;;  %v6885_v61 = vpop.permute.xlu0 %6884  ;;  %v6846_v36 = vmul.f32 %v6782_v30, %v12328_v6  ;;  %v6816_v30 = vld [vmem:[#allocation11 + $0x40] sm:$0xff] }
 0x1ad   : > { %v3211_v8 = vpop.f32.mrf.mxu3  ;;  %v2947_v31 = vpop.f32.mrf.mxu0  ;;  %v6942_v4 = vmul.f32 %v6885_v61, %v6814_v60 }
 0x1ae   : > { %v3212_v46 = vadd.f32 %v3211_v8, %v3123_v22  ;;  %v3037_v63 = vadd.f32 %v3036_v28, %v2947_v31  ;;  %3351 = vmatmul.bf16.gmra.mxu1 %v12125_v50 }
 0x1af   : > { %v6974_v18 = vadd.f32 %v6942_v4, %v6846_v36  ;;  %v6817_v36 = vld [vmem:[#allocation11 + $0x48] sm:$0xff] }
 0x1b0   : > { %3262 = vmatmul.bf16.gmra.mxu0 %v12123_v49  ;;  %v12509_v9 = vadd.f32 %v12235_v10, %v3212_v46  ;;  %3440 = vmatmul.bf16.gmra.mxu2 %v12127_v54 }
 0x1b2   : > { %3529 = vmatmul.bf16.gmra.mxu3 %v12129_v55  ;;  %6914 = vrot.lane.b32.xlu0 %v12509_v9, %s11873_s2 }
 0x1b3   : > { %v3125_v7 = vpop.f32.mrf.mxu2  ;;  %v3038_v23 = vpop.f32.mrf.mxu1 }
 0x1b4   : > { %v3126_v52 = vadd.f32 %v3125_v7, %v3037_v63  ;;  %v6887_v47 = vpop.permute.xlu1 %6886  ;;  %v6784_v63 = vld [vmem:[#allocation9 + $0x40] sm:$0xff] }
 0x1b5   : > { %v3214_v56 = vpop.f32.mrf.mxu3  ;;  %v6943_v53 = vmul.f32 %v6887_v47, %v6815_v11  ;;  %v2949_v39 = vpop.f32.mrf.mxu0  ;;  %v9512_v7 = vld [vmem:[#allocation6 + $0x508] sm:$0xf]  ;;  %v6785_v47 = vld [vmem:[#allocation9 + $0x48] sm:$0xff] }
 0x1b6   : > { %v3215_v16 = vadd.f32 %v3214_v56, %v3126_v52  ;;  %v3039_v31 = vadd.f32 %v3038_v23, %v2949_v39  ;;  %v10255_v52 = vld [vmem:[#allocation6 + $0x524] sm:$0xf0]  ;;  %v6944_v39 = vmul.f32 %v6889_v40, %v6816_v30 }
 0x1b7   : > { %v6975_v22 = vadd.f32 %v6943_v53, %v6847_v58  ;;  %v9768_v56 = vld [vmem:[#allocation6 + $0x708] sm:$0xf]  ;;  %v9513_v58 = vor.u32 %v10255_v52, %v9512_v7  ;;  %v6819_v52 = vld [vmem:[#allocation11 + $0x58] sm:$0xff] }
 0x1b8   : > { %v12519_v8 = vadd.f32 %v12235_v10, %v3215_v16  ;;  %v10319_v53 = vld [vmem:[#allocation6 + $0x724] sm:$0xf0] }
 0x1b9   : > { %v10367_v37 = vpack.c.bf16 %v6975_v22, %v6974_v18  ;;  %v9769_v23 = vor.u32 %v10319_v53, %v9768_v56  ;;  %3776 = vmatpush.bf16.msra.mxu2 %v9513_v58  ;;  %v6787_v56 = vld [vmem:[#allocation9 + $0x58] sm:$0xff]  ;;  %v6818_v53 = vld [vmem:[#allocation11 + $0x50] sm:$0xff] }
 0x1ba   : > { %6916 = vrot.lane.b32.xlu1 %v12519_v8, %s11873_s2 }
 0x1bb   : > { %10991 = vst [vmem:[%s12470_s3 + $0x18] sm:$0xff] %v10367_v37   ;;  %v3127_v46 = vpop.f32.mrf.mxu2  ;;  %v3041_v61 = vpop.f32.mrf.mxu1  ;;  %3865 = vmatpush.bf16.msra.mxu3 %v9769_v23  ;;  %v10191_v23 = vld [vmem:[#allocation6 + $0x324] sm:$0xf0] }
 0x1bc   : > { %v3128_v28 = vadd.f32 %v3127_v46, %v3039_v31  ;;  %v6848_v31 = vmul.f32 %v6784_v63, %v12360_v19  ;;  %v6849_v46 = vmul.f32 %v6785_v47, %v12380_v17  ;;  %v6895_v30 = vpop.permute.xlu2 %6894  ;;  %v9000_v17 = vld [vmem:[#allocation6 + $0x108] sm:$0xf] }
 0x1bd   : > { %v3216_v6 = vpop.f32.mrf.mxu3  ;;  %v2952_v60 = vpop.f32.mrf.mxu0  ;;  %v10127_v63 = vld [vmem:[#allocation6 + $0x124] sm:$0xf0] }
 0x1be   : > { %v3217_v42 = vadd.f32 %v3216_v6, %v3128_v28  ;;  %v3042_v4 = vadd.f32 %v3041_v61, %v2952_v60  ;;  %3356 = vmatmul.bf16.gmra.mxu1 %v12145_v1  ;;  %v6976_v61 = vadd.f32 %v6944_v39, %v6848_v31  ;;  %v9256_v47 = vld [vmem:[#allocation6 + $0x308] sm:$0xf] }
 0x1bf   : > { %v9257_v31 = vor.u32 %v10191_v23, %v9256_v47 }
 0x1c0   : > { %3267 = vmatmul.bf16.gmra.mxu0 %v12143_v0  ;;  %v12526_v11 = vadd.f32 %v12235_v10, %v3217_v42  ;;  %3445 = vmatmul.bf16.gmra.mxu2 %v12147_v2 }
 0x1c1   : > { %3687 = vmatpush.bf16.msra.mxu1 %v9257_v31  ;;  %v6820_v31 = vld [vmem:[#allocation11 + $0x60] sm:$0xff] }
 0x1c2   : > { %3534 = vmatmul.bf16.gmra.mxu3 %v12149_v3  ;;  %6918 = vrot.lane.b32.xlu2 %v12526_v11, %s11873_s2 }
 0x1c3   : > { %v3130_v16 = vpop.f32.mrf.mxu2  ;;  %v3043_v42 = vpop.f32.mrf.mxu1 }
 0x1c4   : > { %v3131_v18 = vadd.f32 %v3130_v16, %v3042_v4  ;;  %v6891_v37 = vpop.permute.xlu0 %6890  ;;  %v6786_v4 = vld [vmem:[#allocation9 + $0x50] sm:$0xff]  ;;  %v9001_v16 = vor.u32 %v10127_v63, %v9000_v17 }
 0x1c5   : > { %v3219_v22 = vpop.f32.mrf.mxu3  ;;  %v6945_v28 = vmul.f32 %v6891_v37, %v6817_v36  ;;  %v2954_v6 = vpop.f32.mrf.mxu0  ;;  %v6947_v36 = vmul.f32 %v6895_v30, %v6819_v52 }
 0x1c6   : > { %v3220_v60 = vadd.f32 %v3219_v22, %v3131_v18  ;;  %v3044_v19 = vadd.f32 %v3043_v42, %v2954_v6  ;;  %3598 = vmatpush.bf16.msra.mxu0 %v9001_v16 }
 0x1c7   : > { %v6977_v7 = vadd.f32 %v6945_v28, %v6849_v46  ;;  %v6850_v46 = vmul.f32 %v6786_v4, %v12388_v59  ;;  %v6851_v28 = vmul.f32 %v6787_v56, %v12410_v21 }
 0x1c8   : > { %v12536_v40 = vadd.f32 %v12235_v10, %v3220_v60 }
 0x1c9   : > { %v10372_v58 = vpack.c.bf16 %v6977_v7, %v6976_v61  ;;  %v6979_v7 = vadd.f32 %v6947_v36, %v6851_v28 }
 0x1ca   : > { %6920 = vrot.lane.b32.xlu0 %v12536_v40, %s11873_s2 }
 0x1cb   : > { %10992 = vst [vmem:[%s12470_s3 + $0x20] sm:$0xff] %v10372_v58   ;;  %v3132_v39 = vpop.f32.mrf.mxu2  ;;  %v3046_v61 = vpop.f32.mrf.mxu1 }
 0x1cc   : > { %v3133_v18 = vadd.f32 %v3132_v39, %v3044_v19  ;;  %v6893_v37 = vpop.permute.xlu1 %6892 }
 0x1cd   : > { %v3221_v22 = vpop.f32.mrf.mxu3  ;;  %v6946_v6 = vmul.f32 %v6893_v37, %v6818_v53  ;;  %v2957_v60 = vpop.f32.mrf.mxu0 }
 0x1ce   : > { %v3222_v42 = vadd.f32 %v3221_v22, %v3133_v18  ;;  %v3047_v58 = vadd.f32 %v3046_v61, %v2957_v60  ;;  %3361 = vmatmul.bf16.gmra.mxu1 %v12165_v33  ;;  %v14487_v60 = vld [vmem:[#allocation38_spill] sm:$0xff]  ;;  %v6789_v61 = vld [vmem:[#allocation9 + $0x68] sm:$0xff] }
 0x1cf   : > { %v6978_v52 = vadd.f32 %v6946_v6, %v6850_v46  ;;  %v14486_v6 = vld [vmem:[#allocation37_spill] sm:$0xff] }
 0x1d0   : > { %3272 = vmatmul.bf16.gmra.mxu0 %v12163_v32  ;;  %v12545_v30 = vadd.f32 %v12235_v10, %v3222_v42  ;;  %3450 = vmatmul.bf16.gmra.mxu2 %v12167_v34  ;;  %v6788_v42 = vld [vmem:[#allocation9 + $0x60] sm:$0xff] }
 0x1d1   : > { %v10377_v59 = vpack.c.bf16 %v6979_v7, %v6978_v52  ;;  %v6821_v7 = vld [vmem:[#allocation11 + $0x68] sm:$0xff] }
 0x1d2   : > { %3539 = vmatmul.bf16.gmra.mxu3 %v12169_v35  ;;  %6922 = vrot.lane.b32.xlu1 %v12545_v30, %s11873_s2 }
 0x1d3   : > { %10993 = vst [vmem:[%s12470_s3 + $0x28] sm:$0xff] %v10377_v59   ;;  %v3135_v21 = vpop.f32.mrf.mxu2  ;;  %v3048_v17 = vpop.f32.mrf.mxu1  ;;  %v9480_v59 = vld [vmem:[#allocation6 + $0x4c8] sm:$0xf] }
 0x1d4   : > { %v3136_v4 = vadd.f32 %v3135_v21, %v3047_v58  ;;  %v10247_v21 = vld [vmem:[#allocation6 + $0x4e4] sm:$0xf0] }
 0x1d5   : > { %v3224_v56 = vpop.f32.mrf.mxu3  ;;  %v2959_v53 = vpop.f32.mrf.mxu0 }
 0x1d6   : > { %v3225_v19 = vadd.f32 %v3224_v56, %v3136_v4  ;;  %v3049_v47 = vadd.f32 %v3048_v17, %v2959_v53  ;;  %v9736_v4 = vld [vmem:[#allocation6 + $0x6c8] sm:$0xf]  ;;  %v9481_v17 = vor.u32 %v10247_v21, %v9480_v59 }
 0x1d8   : > { %v12554_v63 = vadd.f32 %v12235_v10, %v3225_v19  ;;  %3777 = vmatpush.bf16.msra.mxu2 %v9481_v17 }
 0x1da   : > { %6924 = vrot.lane.b32.xlu2 %v12554_v63, %s11873_s2 }
 0x1db   : > { %v3137_v36 = vpop.f32.mrf.mxu2  ;;  %v3051_v22 = vpop.f32.mrf.mxu1 }
 0x1dc   : > { %v3138_v39 = vadd.f32 %v3137_v36, %v3049_v47  ;;  %v6897_v46 = vpop.permute.xlu0 %6896  ;;  %v10311_v47 = vld [vmem:[#allocation6 + $0x6e4] sm:$0xf0]  ;;  %v14488_v36 = vld [vmem:[#allocation71_spill] sm:$0xff] }
 0x1dd   : > { %v3226_v16 = vpop.f32.mrf.mxu3  ;;  %v2962_v23 = vpop.f32.mrf.mxu0  ;;  %v6948_v52 = vmul.f32 %v6897_v46, %v6820_v31 }
 0x1de   : > { %v3227_v18 = vadd.f32 %v3226_v16, %v3138_v39  ;;  %v3052_v28 = vadd.f32 %v3051_v22, %v2962_v23  ;;  %3366 = vmatmul.bf16.gmra.mxu1 %v12185_v45  ;;  %v6852_v39 = vmul.f32 %v6788_v42, %v14488_v36  ;;  %v6853_v16 = vmul.f32 %v6789_v61, %v12440_v43  ;;  %v8968_v42 = vld [vmem:[#allocation6 + $0xc8] sm:$0xf]  ;;  %v6901_v36 = vpop.permute.xlu2 %6900 }
 0x1df   : > { %v9737_v22 = vor.u32 %v10311_v47, %v9736_v4  ;;  %v10119_v43 = vld [vmem:[#allocation6 + $0xe4] sm:$0xf0]  ;;  %v14489_v47 = vld [vmem:[#allocation39_spill] sm:$0xff] }
 0x1e0   : > { %3277 = vmatmul.bf16.gmra.mxu0 %v12183_v44  ;;  %v12560_v37 = vadd.f32 %v12235_v10, %v3227_v18  ;;  %3455 = vmatmul.bf16.gmra.mxu2 %v14486_v6  ;;  %v6980_v31 = vadd.f32 %v6948_v52, %v6852_v39  ;;  %v9224_v61 = vld [vmem:[#allocation6 + $0x2c8] sm:$0xf]  ;;  %v8969_v21 = vor.u32 %v10119_v43, %v8968_v42 }
 0x1e1   : > { %3866 = vmatpush.bf16.msra.mxu3 %v9737_v22  ;;  %v10183_v4 = vld [vmem:[#allocation6 + $0x2e4] sm:$0xf0] }
 0x1e2   : > { %3544 = vmatmul.bf16.gmra.mxu3 %v14487_v60  ;;  %6926 = vrot.lane.b32.xlu0 %v12560_v37, %s11873_s2  ;;  %v9225_v52 = vor.u32 %v10183_v4, %v9224_v61  ;;  %v14492_v22 = vld [vmem:[#allocation42_spill] sm:$0xff] }
 0x1e3   : > { %v3140_v58 = vpop.f32.mrf.mxu2  ;;  %v3053_v6 = vpop.f32.mrf.mxu1  ;;  %3599 = vmatpush.bf16.msra.mxu0 %v8969_v21 }
 0x1e4   : > { %v3141_v56 = vadd.f32 %v3140_v58, %v3052_v28  ;;  %v6899_v19 = vpop.permute.xlu1 %6898  ;;  %3688 = vmatpush.bf16.msra.mxu1 %v9225_v52 }
 0x1e5   : > { %v3229_v53 = vpop.f32.mrf.mxu3  ;;  %v6949_v23 = vmul.f32 %v6899_v19, %v6821_v7  ;;  %v2964_v18 = vpop.f32.mrf.mxu0 }
 0x1e6   : > { %v3230_v60 = vadd.f32 %v3229_v53, %v3141_v56  ;;  %v3054_v59 = vadd.f32 %v3053_v6, %v2964_v18  ;;  %v6822_v6 = vld [vmem:[#allocation11 + $0x70] sm:$0xff]  ;;  %v14491_v18 = vld [vmem:[#allocation41_spill] sm:$0xff] }
 0x1e7   : > { %v6981_v46 = vadd.f32 %v6949_v23, %v6853_v16  ;;  %v14490_v23 = vld [vmem:[#allocation40_spill] sm:$0xff] }
 0x1e8   : > { %v12570_v28 = vadd.f32 %v12235_v10, %v3230_v60 }
 0x1e9   : > { %v10382_v58 = vpack.c.bf16 %v6981_v46, %v6980_v31  ;;  %v6790_v31 = vld [vmem:[#allocation9 + $0x70] sm:$0xff]  ;;  %v6791_v46 = vld [vmem:[#allocation9 + $0x78] sm:$0xff] }
 0x1ea   : > { %6928 = vrot.lane.b32.xlu1 %v12570_v28, %s11873_s2  ;;  %v6854_v21 = vmul.f32 %v6790_v31, %v12448_v5  ;;  %v6855_v4 = vmul.f32 %v6791_v46, %v12454_v57  ;;  %v6824_v5 = vld [vmem:[#allocation11 + $0x80] sm:$0xff] }
 0x1eb   : > { %10994 = vst [vmem:[%s12470_s3 + $0x30] sm:$0xff] %v10382_v58   ;;  %v3142_v7 = vpop.f32.mrf.mxu2  ;;  %v3056_v60 = vpop.f32.mrf.mxu1  ;;  %v6823_v58 = vld [vmem:[#allocation11 + $0x78] sm:$0xff] }
 0x1ec   : > { %v3143_v56 = vadd.f32 %v3142_v7, %v3054_v59  ;;  %v6950_v59 = vmul.f32 %v6901_v36, %v6822_v6  ;;  %v6792_v36 = vld [vmem:[#allocation9 + $0x80] sm:$0xff] }
 0x1ed   : > { %v3231_v53 = vpop.f32.mrf.mxu3  ;;  %v2967_v19 = vpop.f32.mrf.mxu0 }
 0x1ee   : > { %v3232_v17 = vadd.f32 %v3231_v53, %v3143_v56  ;;  %v3057_v16 = vadd.f32 %v3056_v60, %v2967_v19  ;;  %3371 = vmatmul.bf16.gmra.mxu1 %v14490_v23 }
 0x1f0   : > { %3282 = vmatmul.bf16.gmra.mxu0 %v14489_v47  ;;  %v12577_v39 = vadd.f32 %v12235_v10, %v3232_v17  ;;  %3460 = vmatmul.bf16.gmra.mxu2 %v14491_v18  ;;  %v6982_v17 = vadd.f32 %v6950_v59, %v6854_v21  ;;  %v6907_v18 = vpop.permute.xlu2 %6906 }
 0x1f2   : > { %3549 = vmatmul.bf16.gmra.mxu3 %v14492_v22  ;;  %6930 = vrot.lane.b32.xlu2 %v12577_v39, %s11873_s2  ;;  %v6825_v22 = vld [vmem:[#allocation11 + $0x88] sm:$0xff] }
 0x1f3   : > { %v3145_v42 = vpop.f32.mrf.mxu2  ;;  %v3058_v19 = vpop.f32.mrf.mxu1  ;;  %v6953_v57 = vmul.f32 %v6907_v18, %v6825_v22 }
 0x1f4   : > { %v3146_v43 = vadd.f32 %v3145_v42, %v3057_v16  ;;  %v6903_v7 = vpop.permute.xlu0 %6902  ;;  %v6793_v16 = vld [vmem:[#allocation9 + $0x88] sm:$0xff] }
 0x1f5   : > { %v3234_v61 = vpop.f32.mrf.mxu3  ;;  %v6951_v56 = vmul.f32 %v6903_v7, %v6823_v58  ;;  %v2969_v53 = vpop.f32.mrf.mxu0 }
 0x1f6   : > { %v3235_v52 = vadd.f32 %v3234_v61, %v3146_v43  ;;  %v3059_v42 = vadd.f32 %v3058_v19, %v2969_v53  ;;  %v6856_v43 = vmul.f32 %v6792_v36, %v12464_v48  ;;  %v6857_v61 = vmul.f32 %v6793_v16, %v12477_v62  ;;  %v14493_v19 = vld [vmem:[#allocation43_spill] sm:$0xff]  ;;  %v9448_v62 = vld [vmem:[#allocation6 + $0x488] sm:$0xf] }
 0x1f7   : > { %v6983_v60 = vadd.f32 %v6951_v56, %v6855_v4  ;;  %v10239_v36 = vld [vmem:[#allocation6 + $0x4a4] sm:$0xf0] }
 0x1f8   : > { %v12587_v23 = vadd.f32 %v12235_v10, %v3235_v52  ;;  %v6985_v53 = vadd.f32 %v6953_v57, %v6857_v61  ;;  %v9704_v16 = vld [vmem:[#allocation6 + $0x688] sm:$0xf] }
 0x1f9   : > { %v10387_v6 = vpack.c.bf16 %v6983_v60, %v6982_v17  ;;  %v14494_v17 = vld [vmem:[#allocation44_spill] sm:$0xff]  ;;  %v14495_v60 = vld [vmem:[#allocation45_spill] sm:$0xff] }
 0x1fa   : > { %6932 = vrot.lane.b32.xlu0 %v12587_v23, %s11873_s2 }
 0x1fb   : > { %10995 = vst [vmem:[%s12470_s3 + $0x38] sm:$0xff] %v10387_v6   ;;  %v3147_v31 = vpop.f32.mrf.mxu2  ;;  %v3337_v56 = vpop.f32.mrf.mxu1  ;;  %v14496_v6 = vld [vmem:[#allocation46_spill] sm:$0xff] }
 0x1fc   : > { %v3148_v46 = vadd.f32 %v3147_v31, %v3059_v42  ;;  %v6905_v59 = vpop.permute.xlu1 %6904  ;;  %v9449_v42 = vor.u32 %v10239_v36, %v9448_v62  ;;  %v10175_v62 = vld [vmem:[#allocation6 + $0x2a4] sm:$0xf0] }
 0x1fd   : > { %v3236_v58 = vpop.f32.mrf.mxu3  ;;  %v6952_v7 = vmul.f32 %v6905_v59, %v6824_v5  ;;  %v3248_v21 = vpop.f32.mrf.mxu0  ;;  %v10303_v5 = vld [vmem:[#allocation6 + $0x6a4] sm:$0xf0] }
 0x1fe   : > { %v3237_v4 = vadd.f32 %v3236_v58, %v3148_v46  ;;  %v3338_v22 = vadd.f32 %v3337_v56, %v3248_v21  ;;  %3376 = vmatmul.bf16.gmra.mxu1 %v14494_v17  ;;  %v11235_v58 = vld [vmem:[#allocation8] sm:$0xff]  ;;  %3778 = vmatpush.bf16.msra.mxu2 %v9449_v42  ;;  %v8936_v56 = vld [vmem:[#allocation6 + $0x88] sm:$0xf] }
 0x1ff   : > { %v6984_v52 = vadd.f32 %v6952_v7, %v6856_v43  ;;  %v12604_v59 = vperm.slane %v11235_v58, 1  ;;  %v6826_v58 = vld [vmem:[#allocation11 + $0x90] sm:$0xff] }
 0x200   : > { %3287 = vmatmul.bf16.gmra.mxu0 %v14493_v19  ;;  %v12596_v18 = vadd.f32 %v12235_v10, %v3237_v4  ;;  %3465 = vmatmul.bf16.gmra.mxu2 %v14495_v60  ;;  %v9705_v10 = vor.u32 %v10303_v5, %v9704_v16 }
 0x201   : > { %v10392_v48 = vpack.c.bf16 %v6985_v53, %v6984_v52  ;;  %v10111_v53 = vld [vmem:[#allocation6 + $0xa4] sm:$0xf0] }
 0x202   : > { %3554 = vmatmul.bf16.gmra.mxu3 %v14496_v6  ;;  %6934 = vrot.lane.b32.xlu1 %v12596_v18, %s11873_s2  ;;  %v9192_v52 = vld [vmem:[#allocation6 + $0x288] sm:$0xf] }
 0x203   : > { %10996 = vst [vmem:[%s12470_s3 + $0x40] sm:$0xff] %v10392_v48   ;;  %v3426_v57 = vpop.f32.mrf.mxu2  ;;  %3867 = vmatpush.bf16.msra.mxu3 %v9705_v10  ;;  %v3339_v7 = vpop.f32.mrf.mxu1  ;;  %v8937_v48 = vor.u32 %v10111_v53, %v8936_v56  ;;  %v9193_v42 = vor.u32 %v10175_v62, %v9192_v52  ;;  %v14499_v56 = vld [vmem:[#allocation49_spill] sm:$0xff]  ;;  %v6794_v53 = vld [vmem:[#allocation9 + $0x90] sm:$0xff] }
 0x204   : > { %v3427_v31 = vadd.f32 %v3426_v57, %v3338_v22  ;;  %v6795_v52 = vld [vmem:[#allocation9 + $0x98] sm:$0xff] }
 0x205   : > { %v3515_v46 = vpop.f32.mrf.mxu3  ;;  %v3250_v43 = vpop.f32.mrf.mxu0  ;;  %3600 = vmatpush.bf16.msra.mxu0 %v8937_v48  ;;  %3689 = vmatpush.bf16.msra.mxu1 %v9193_v42 }
 0x206   : > { %v3516_v61 = vadd.f32 %v3515_v46, %v3427_v31  ;;  %v3340_v4 = vadd.f32 %v3339_v7, %v3250_v43  ;;  %v14497_v31 = vld [vmem:[#allocation47_spill] sm:$0xff]  ;;  %v14498_v7 = vld [vmem:[#allocation48_spill] sm:$0xff] }
 0x208   : > { %v12607_v21 = vadd.f32 %v12604_v59, %v3516_v61 }
 0x20a   : > { %7096 = vrot.lane.b32.xlu2 %v12607_v21, %s11873_s2 }
 0x20b   : > { %v3428_v22 = vpop.f32.mrf.mxu2  ;;  %v3342_v10 = vpop.f32.mrf.mxu1 }
 0x20c   : > { %v3429_v36 = vadd.f32 %v3428_v22, %v3340_v4  ;;  %v6909_v43 = vpop.permute.xlu0 %6908  ;;  %v14500_v4 = vld [vmem:[#allocation50_spill] sm:$0xff]  ;;  %v6827_v22 = vld [vmem:[#allocation11 + $0x98] sm:$0xff] }
 0x20d   : > { %v3517_v16 = vpop.f32.mrf.mxu3  ;;  %v3253_v5 = vpop.f32.mrf.mxu0  ;;  %v6954_v48 = vmul.f32 %v6909_v43, %v6826_v58 }
 0x20e   : > { %v3518_v57 = vadd.f32 %v3517_v16, %v3429_v36  ;;  %v3343_v61 = vadd.f32 %v3342_v10, %v3253_v5  ;;  %3381 = vmatmul.bf16.gmra.mxu1 %v14498_v7  ;;  %v6858_v5 = vmul.f32 %v6794_v53, %v12488_v38 }
 0x210   : > { %3292 = vmatmul.bf16.gmra.mxu0 %v14497_v31  ;;  %v12613_v46 = vadd.f32 %v12604_v59, %v3518_v57  ;;  %3470 = vmatmul.bf16.gmra.mxu2 %v14499_v56  ;;  %v6859_v57 = vmul.f32 %v6795_v52, %v12495_v29  ;;  %v6986_v31 = vadd.f32 %v6954_v48, %v6858_v5  ;;  %v6828_v48 = vld [vmem:[#allocation11 + $0xa0] sm:$0xff]  ;;  %v6797_v5 = vld [vmem:[#allocation9 + $0xa8] sm:$0xff] }
 0x212   : > { %3559 = vmatmul.bf16.gmra.mxu3 %v14500_v4  ;;  %7098 = vrot.lane.b32.xlu0 %v12613_v46, %s11873_s2 }
 0x213   : > { %v3431_v62 = vpop.f32.mrf.mxu2  ;;  %v3344_v4 = vpop.f32.mrf.mxu1 }
 0x214   : > { %v3432_v36 = vadd.f32 %v3431_v62, %v3343_v61  ;;  %v6911_v42 = vpop.permute.xlu1 %6910  ;;  %v6796_v62 = vld [vmem:[#allocation9 + $0xa0] sm:$0xff] }
 0x215   : > { %v3520_v16 = vpop.f32.mrf.mxu3  ;;  %v6955_v10 = vmul.f32 %v6911_v42, %v6827_v22  ;;  %v3255_v56 = vpop.f32.mrf.mxu0  ;;  %v14501_v22 = vld [vmem:[#allocation51_spill] sm:$0xff]  ;;  %v9672_v42 = vld [vmem:[#allocation6 + $0x648] sm:$0xf] }
 0x216   : > { %v3521_v7 = vadd.f32 %v3520_v16, %v3432_v36  ;;  %v3345_v58 = vadd.f32 %v3344_v4, %v3255_v56  ;;  %v6913_v36 = vpop.permute.xlu2 %6912  ;;  %v14503_v56 = vld [vmem:[#allocation53_spill] sm:$0xff]  ;;  %v9416_v4 = vld [vmem:[#allocation6 + $0x448] sm:$0xf] }
 0x217   : > { %v6987_v6 = vadd.f32 %v6955_v10, %v6859_v57  ;;  %v10231_v16 = vld [vmem:[#allocation6 + $0x464] sm:$0xf0]  ;;  %v6829_v57 = vld [vmem:[#allocation11 + $0xa8] sm:$0xff] }
 0x218   : > { %v12623_v60 = vadd.f32 %v12604_v59, %v3521_v7  ;;  %v9417_v10 = vor.u32 %v10231_v16, %v9416_v4  ;;  %v6831_v16 = vld [vmem:[#allocation11 + $0xb8] sm:$0xff] }
 0x219   : > { %v10397_v17 = vpack.c.bf16 %v6987_v6, %v6986_v31  ;;  %v14502_v31 = vld [vmem:[#allocation52_spill] sm:$0xff] }
 0x21a   : > { %7100 = vrot.lane.b32.xlu1 %v12623_v60, %s11873_s2  ;;  %3779 = vmatpush.bf16.msra.mxu2 %v9417_v10 }
 0x21b   : > { %10997 = vst [vmem:[%s12470_s3 + $0x48] sm:$0xff] %v10397_v17   ;;  %v3433_v43 = vpop.f32.mrf.mxu2  ;;  %v3347_v52 = vpop.f32.mrf.mxu1  ;;  %v14504_v17 = vld [vmem:[#allocation54_spill] sm:$0xff] }
 0x21c   : > { %v3434_v61 = vadd.f32 %v3433_v43, %v3345_v58  ;;  %v10295_v58 = vld [vmem:[#allocation6 + $0x664] sm:$0xf0]  ;;  %v6956_v43 = vmul.f32 %v6913_v36, %v6828_v48 }
 0x21d   : > { %v3522_v38 = vpop.f32.mrf.mxu3  ;;  %v3258_v53 = vpop.f32.mrf.mxu0 }
 0x21e   : > { %v3523_v29 = vadd.f32 %v3522_v38, %v3434_v61  ;;  %v3348_v6 = vadd.f32 %v3347_v52, %v3258_v53  ;;  %3386 = vmatmul.bf16.gmra.mxu1 %v14502_v31  ;;  %v9673_v38 = vor.u32 %v10295_v58, %v9672_v42  ;;  %v6919_v48 = vpop.permute.xlu2 %6918  ;;  %v6799_v42 = vld [vmem:[#allocation9 + $0xb8] sm:$0xff]  ;;  %v6830_v58 = vld [vmem:[#allocation11 + $0xb0] sm:$0xff] }
 0x220   : > { %3297 = vmatmul.bf16.gmra.mxu0 %v14501_v22  ;;  %v12630_v7 = vadd.f32 %v12604_v59, %v3523_v29  ;;  %3475 = vmatmul.bf16.gmra.mxu2 %v14503_v56  ;;  %v6860_v56 = vmul.f32 %v6796_v62, %v12503_v51  ;;  %v10103_v62 = vld [vmem:[#allocation6 + $0x64] sm:$0xf0] }
 0x221   : > { %3868 = vmatpush.bf16.msra.mxu3 %v9673_v38 }
 0x222   : > { %3564 = vmatmul.bf16.gmra.mxu3 %v14504_v17  ;;  %7102 = vrot.lane.b32.xlu2 %v12630_v7, %s11873_s2  ;;  %v6861_v17 = vmul.f32 %v6797_v5, %v12509_v9  ;;  %v6988_v45 = vadd.f32 %v6956_v43, %v6860_v56  ;;  %v8904_v9 = vld [vmem:[#allocation6 + $0x48] sm:$0xf] }
 0x223   : > { %v3436_v61 = vpop.f32.mrf.mxu2  ;;  %v3349_v47 = vpop.f32.mrf.mxu1  ;;  %v9160_v5 = vld [vmem:[#allocation6 + $0x248] sm:$0xf] }
 0x224   : > { %v3437_v53 = vadd.f32 %v3436_v61, %v3348_v6  ;;  %v6915_v52 = vpop.permute.xlu0 %6914  ;;  %v6798_v6 = vld [vmem:[#allocation9 + $0xb0] sm:$0xff] }
 0x225   : > { %v3525_v29 = vpop.f32.mrf.mxu3  ;;  %v6957_v31 = vmul.f32 %v6915_v52, %v6829_v57  ;;  %v3260_v22 = vpop.f32.mrf.mxu0  ;;  %v6959_v57 = vmul.f32 %v6919_v48, %v6831_v16  ;;  %v14505_v48 = vld [vmem:[#allocation55_spill] sm:$0xff] }
 0x226   : > { %v3526_v19 = vadd.f32 %v3525_v29, %v3437_v53  ;;  %v3350_v51 = vadd.f32 %v3349_v47, %v3260_v22  ;;  %v6862_v53 = vmul.f32 %v6798_v6, %v12519_v8  ;;  %v14507_v8 = vld [vmem:[#allocation57_spill] sm:$0xff]  ;;  %v14508_v6 = vld [vmem:[#allocation58_spill] sm:$0xff] }
 0x227   : > { %v6989_v4 = vadd.f32 %v6957_v31, %v6861_v17  ;;  %v8905_v31 = vor.u32 %v10103_v62, %v8904_v9  ;;  %v10167_v17 = vld [vmem:[#allocation6 + $0x264] sm:$0xf0]  ;;  %v14506_v9 = vld [vmem:[#allocation56_spill] sm:$0xff] }
 0x228   : > { %v12640_v36 = vadd.f32 %v12604_v59, %v3526_v19  ;;  %v9161_v38 = vor.u32 %v10167_v17, %v9160_v5 }
 0x229   : > { %v10402_v10 = vpack.c.bf16 %v6989_v4, %v6988_v45  ;;  %v6863_v45 = vmul.f32 %v6799_v42, %v12526_v11  ;;  %3601 = vmatpush.bf16.msra.mxu0 %v8905_v31 }
 0x22a   : > { %7104 = vrot.lane.b32.xlu0 %v12640_v36, %s11873_s2  ;;  %3690 = vmatpush.bf16.msra.mxu1 %v9161_v38 }
 0x22b   : > { %10998 = vst [vmem:[%s12470_s3 + $0x50] sm:$0xff] %v10402_v10   ;;  %v3438_v56 = vpop.f32.mrf.mxu2  ;;  %v3352_v52 = vpop.f32.mrf.mxu1  ;;  %v6991_v4 = vadd.f32 %v6959_v57, %v6863_v45 }
 0x22c   : > { %v3439_v43 = vadd.f32 %v3438_v56, %v3350_v51  ;;  %v6917_v19 = vpop.permute.xlu1 %6916 }
 0x22d   : > { %v3527_v61 = vpop.f32.mrf.mxu3  ;;  %v6958_v47 = vmul.f32 %v6917_v19, %v6830_v58  ;;  %v3263_v22 = vpop.f32.mrf.mxu0 }
 0x22e   : > { %v3528_v29 = vadd.f32 %v3527_v61, %v3439_v43  ;;  %v3353_v51 = vadd.f32 %v3352_v52, %v3263_v22  ;;  %3391 = vmatmul.bf16.gmra.mxu1 %v14506_v9 }
 0x22f   : > { %v6990_v16 = vadd.f32 %v6958_v47, %v6862_v53  ;;  %v14509_v47 = vld [vmem:[#allocation59_spill] sm:$0xff] }
 0x230   : > { %3302 = vmatmul.bf16.gmra.mxu0 %v14505_v48  ;;  %v12649_v10 = vadd.f32 %v12604_v59, %v3528_v29  ;;  %3480 = vmatmul.bf16.gmra.mxu2 %v14507_v8  ;;  %v6832_v29 = vld [vmem:[#allocation11 + $0xc0] sm:$0xff] }
 0x231   : > { %v10407_v11 = vpack.c.bf16 %v6991_v4, %v6990_v16  ;;  %v14510_v16 = vld [vmem:[#allocation60_spill] sm:$0xff] }
 0x232   : > { %3569 = vmatmul.bf16.gmra.mxu3 %v14508_v6  ;;  %7106 = vrot.lane.b32.xlu1 %v12649_v10, %s11873_s2 }
 0x233   : > { %10999 = vst [vmem:[%s12470_s3 + $0x58] sm:$0xff] %v10407_v11   ;;  %v3441_v42 = vpop.f32.mrf.mxu2  ;;  %v3354_v56 = vpop.f32.mrf.mxu1  ;;  %v14512_v11 = vld [vmem:[#allocation62_spill] sm:$0xff] }
 0x234   : > { %v3442_v58 = vadd.f32 %v3441_v42, %v3353_v51  ;;  %v14511_v51 = vld [vmem:[#allocation61_spill] sm:$0xff]  ;;  %v6800_v42 = vld [vmem:[#allocation9 + $0xc0] sm:$0xff] }
 0x235   : > { %v3530_v62 = vpop.f32.mrf.mxu3  ;;  %v3265_v5 = vpop.f32.mrf.mxu0 }
 0x236   : > { %v3531_v57 = vadd.f32 %v3530_v62, %v3442_v58  ;;  %v3355_v17 = vadd.f32 %v3354_v56, %v3265_v5  ;;  %v6801_v58 = vld [vmem:[#allocation9 + $0xc8] sm:$0xff]  ;;  %v9384_v56 = vld [vmem:[#allocation6 + $0x408] sm:$0xf] }
 0x237   : > { %v6833_v62 = vld [vmem:[#allocation11 + $0xc8] sm:$0xff] }
 0x238   : > { %v12658_v31 = vadd.f32 %v12604_v59, %v3531_v57 }
 0x23a   : > { %7108 = vrot.lane.b32.xlu2 %v12658_v31, %s11873_s2 }
 0x23b   : > { %v3443_v43 = vpop.f32.mrf.mxu2  ;;  %v3357_v45 = vpop.f32.mrf.mxu1 }
 0x23c   : > { %v3444_v61 = vadd.f32 %v3443_v43, %v3355_v17  ;;  %v6921_v52 = vpop.permute.xlu0 %6920  ;;  %v10223_v17 = vld [vmem:[#allocation6 + $0x424] sm:$0xf0] }
 0x23d   : > { %v3532_v19 = vpop.f32.mrf.mxu3  ;;  %v3268_v38 = vpop.f32.mrf.mxu0  ;;  %v6960_v5 = vmul.f32 %v6921_v52, %v6832_v29  ;;  %v9640_v43 = vld [vmem:[#allocation6 + $0x608] sm:$0xf] }
 0x23e   : > { %v3533_v53 = vadd.f32 %v3532_v19, %v3444_v61  ;;  %v3358_v4 = vadd.f32 %v3357_v45, %v3268_v38  ;;  %3396 = vmatmul.bf16.gmra.mxu1 %v14510_v16  ;;  %v10287_v45 = vld [vmem:[#allocation6 + $0x624] sm:$0xf0] }
 0x23f   : > { %v9641_v6 = vor.u32 %v10287_v45, %v9640_v43  ;;  %v14516_v45 = vld [vmem:[#allocation66_spill] sm:$0xff] }
 0x240   : > { %3307 = vmatmul.bf16.gmra.mxu0 %v14509_v47  ;;  %v12664_v22 = vadd.f32 %v12604_v59, %v3533_v53  ;;  %3485 = vmatmul.bf16.gmra.mxu2 %v14511_v51  ;;  %v9385_v53 = vor.u32 %v10223_v17, %v9384_v56  ;;  %v6864_v51 = vmul.f32 %v6800_v42, %v12536_v40  ;;  %v8872_v40 = vld [vmem:[#allocation6 + $0x8] sm:$0xf] }
 0x241   : > { %3869 = vmatpush.bf16.msra.mxu3 %v9641_v6  ;;  %v9128_v42 = vld [vmem:[#allocation6 + $0x208] sm:$0xf] }
 0x242   : > { %3574 = vmatmul.bf16.gmra.mxu3 %v14512_v11  ;;  %7110 = vrot.lane.b32.xlu0 %v12664_v22, %s11873_s2  ;;  %v6865_v11 = vmul.f32 %v6801_v58, %v12545_v30  ;;  %v6992_v29 = vadd.f32 %v6960_v5, %v6864_v51  ;;  %v10095_v30 = vld [vmem:[#allocation6 + $0x24] sm:$0xf0] }
 0x243   : > { %v3446_v57 = vpop.f32.mrf.mxu2  ;;  %v3359_v9 = vpop.f32.mrf.mxu1  ;;  %3780 = vmatpush.bf16.msra.mxu2 %v9385_v53  ;;  %v10159_v17 = vld [vmem:[#allocation6 + $0x224] sm:$0xf0]  ;;  %v14515_v53 = vld [vmem:[#allocation65_spill] sm:$0xff] }
 0x244   : > { %v3447_v61 = vadd.f32 %v3446_v57, %v3358_v4  ;;  %v6923_v38 = vpop.permute.xlu1 %6922  ;;  %v9129_v51 = vor.u32 %v10159_v17, %v9128_v42 }
 0x245   : > { %v3535_v19 = vpop.f32.mrf.mxu3  ;;  %v6961_v16 = vmul.f32 %v6923_v38, %v6833_v62  ;;  %v3270_v47 = vpop.f32.mrf.mxu0  ;;  %v8873_v62 = vor.u32 %v10095_v30, %v8872_v40  ;;  %v14514_v38 = vld [vmem:[#allocation64_spill] sm:$0xff] }
 0x246   : > { %v3536_v8 = vadd.f32 %v3535_v19, %v3447_v61  ;;  %v3360_v56 = vadd.f32 %v3359_v9, %v3270_v47  ;;  %3691 = vmatpush.bf16.msra.mxu1 %v9129_v51  ;;  %v6834_v9 = vld [vmem:[#allocation11 + $0xd0] sm:$0xff]  ;;  %v6925_v47 = vpop.permute.xlu2 %6924 }
 0x247   : > { %v6993_v52 = vadd.f32 %v6961_v16, %v6865_v11  ;;  %3602 = vmatpush.bf16.msra.mxu0 %v8873_v62  ;;  %v14513_v11 = vld [vmem:[#allocation63_spill] sm:$0xff] }
 0x248   : > { %v12674_v4 = vadd.f32 %v12604_v59, %v3536_v8 }
 0x249   : > { %v10412_v57 = vpack.c.bf16 %v6993_v52, %v6992_v29  ;;  %v6802_v29 = vld [vmem:[#allocation9 + $0xd0] sm:$0xff]  ;;  %v6803_v52 = vld [vmem:[#allocation9 + $0xd8] sm:$0xff] }
 0x24a   : > { %7112 = vrot.lane.b32.xlu1 %v12674_v4, %s11873_s2  ;;  %v6866_v62 = vmul.f32 %v6802_v29, %v12554_v63  ;;  %v6867_v17 = vmul.f32 %v6803_v52, %v12560_v37  ;;  %v6836_v63 = vld [vmem:[#allocation11 + $0xe0] sm:$0xff] }
 0x24b   : > { %11000 = vst [vmem:[%s12470_s3 + $0x60] sm:$0xff] %v10412_v57   ;;  %v3448_v58 = vpop.f32.mrf.mxu2  ;;  %v3362_v8 = vpop.f32.mrf.mxu1  ;;  %v6835_v57 = vld [vmem:[#allocation11 + $0xd8] sm:$0xff] }
 0x24c   : > { %v3449_v43 = vadd.f32 %v3448_v58, %v3360_v56  ;;  %v6962_v56 = vmul.f32 %v6925_v47, %v6834_v9  ;;  %v6804_v47 = vld [vmem:[#allocation9 + $0xe0] sm:$0xff] }
 0x24d   : > { %v3537_v61 = vpop.f32.mrf.mxu3  ;;  %v3273_v16 = vpop.f32.mrf.mxu0 }
 0x24e   : > { %v3538_v6 = vadd.f32 %v3537_v61, %v3449_v43  ;;  %v3363_v19 = vadd.f32 %v3362_v8, %v3273_v16  ;;  %3401 = vmatmul.bf16.gmra.mxu1 %v14514_v38 }
 0x250   : > { %3312 = vmatmul.bf16.gmra.mxu0 %v14513_v11  ;;  %v12681_v5 = vadd.f32 %v12604_v59, %v3538_v6  ;;  %3490 = vmatmul.bf16.gmra.mxu2 %v14515_v53  ;;  %v6994_v6 = vadd.f32 %v6962_v56, %v6866_v62  ;;  %v6931_v53 = vpop.permute.xlu2 %6930 }
 0x252   : > { %3579 = vmatmul.bf16.gmra.mxu3 %v14516_v45  ;;  %7114 = vrot.lane.b32.xlu2 %v12681_v5, %s11873_s2  ;;  %v6837_v45 = vld [vmem:[#allocation11 + $0xe8] sm:$0xff] }
 0x253   : > { %v3451_v40 = vpop.f32.mrf.mxu2  ;;  %v3364_v16 = vpop.f32.mrf.mxu1  ;;  %v6965_v37 = vmul.f32 %v6931_v53, %v6837_v45 }
 0x254   : > { %v3452_v30 = vadd.f32 %v3451_v40, %v3363_v19  ;;  %v6927_v58 = vpop.permute.xlu0 %6926  ;;  %v6805_v19 = vld [vmem:[#allocation9 + $0xe8] sm:$0xff] }
 0x255   : > { %v3540_v42 = vpop.f32.mrf.mxu3  ;;  %v6963_v43 = vmul.f32 %v6927_v58, %v6835_v57  ;;  %v3275_v61 = vpop.f32.mrf.mxu0 }
 0x256   : > { %v3541_v51 = vadd.f32 %v3540_v42, %v3452_v30  ;;  %v3365_v40 = vadd.f32 %v3364_v16, %v3275_v61  ;;  %v6868_v30 = vmul.f32 %v6804_v47, %v12570_v28  ;;  %v6869_v42 = vmul.f32 %v6805_v19, %v12577_v39  ;;  %v14517_v16 = vld [vmem:[#allocation67_spill] sm:$0xff]  ;;  %v10275_v39 = vld [vmem:[#allocation6 + $0x5cc] sm:$0xf] }
 0x257   : > { %v6995_v8 = vadd.f32 %v6963_v43, %v6867_v17  ;;  %v9610_v47 = vld [vmem:[#allocation6 + $0x5e8] sm:$0xf0] }
 0x258   : > { %v12691_v38 = vadd.f32 %v12604_v59, %v3541_v51  ;;  %v6997_v61 = vadd.f32 %v6965_v37, %v6869_v42  ;;  %v10339_v19 = vld [vmem:[#allocation6 + $0x7cc] sm:$0xf] }
 0x259   : > { %v10417_v9 = vpack.c.bf16 %v6995_v8, %v6994_v6  ;;  %v14518_v6 = vld [vmem:[#allocation68_spill] sm:$0xff]  ;;  %v14519_v8 = vld [vmem:[#allocation69_spill] sm:$0xff] }
 0x25a   : > { %7116 = vrot.lane.b32.xlu0 %v12691_v38, %s11873_s2 }
 0x25b   : > { %11001 = vst [vmem:[%s12470_s3 + $0x68] sm:$0xff] %v10417_v9   ;;  %v3453_v29 = vpop.f32.mrf.mxu2  ;;  %v3367_v43 = vpop.f32.mrf.mxu1  ;;  %v14520_v9 = vld [vmem:[#allocation70_spill] sm:$0xff] }
 0x25c   : > { %v3454_v52 = vadd.f32 %v3453_v29, %v3365_v40  ;;  %v6929_v56 = vpop.permute.xlu1 %6928  ;;  %v9613_v40 = vor.u32 %v10275_v39, %v9610_v47 }
 0x25d   : > { %v3542_v57 = vpop.f32.mrf.mxu3  ;;  %v6964_v58 = vmul.f32 %v6929_v56, %v6836_v63  ;;  %v3278_v62 = vpop.f32.mrf.mxu0  ;;  %v9866_v63 = vld [vmem:[#allocation6 + $0x7e8] sm:$0xf0] }
 0x25e   : > { %v3543_v17 = vadd.f32 %v3542_v57, %v3454_v52  ;;  %v3368_v45 = vadd.f32 %v3367_v43, %v3278_v62  ;;  %3406 = vmatmul.bf16.gmra.mxu1 %v14518_v6  ;;  %v9869_v29 = vor.u32 %v10339_v19, %v9866_v63  ;;  %4129 = vmatpush.bf16.msrb.mxu2 %v9613_v40  ;;  %v10147_v62 = vld [vmem:[#allocation6 + $0x1cc] sm:$0xf] }
 0x25f   : > { %v6996_v51 = vadd.f32 %v6964_v58, %v6868_v30  ;;  %v10211_v43 = vld [vmem:[#allocation6 + $0x3cc] sm:$0xf] }
 0x260   : > { %3317 = vmatmul.bf16.gmra.mxu0 %v14517_v16  ;;  %v12700_v53 = vadd.f32 %v12604_v59, %v3543_v17  ;;  %3495 = vmatmul.bf16.gmra.mxu2 %v14519_v8  ;;  %v9098_v17 = vld [vmem:[#allocation6 + $0x1e8] sm:$0xf0] }
 0x261   : > { %v10422_v28 = vpack.c.bf16 %v6997_v61, %v6996_v51  ;;  %4218 = vmatpush.bf16.msrb.mxu3 %v9869_v29  ;;  %v9101_v61 = vor.u32 %v10147_v62, %v9098_v17  ;;  %v9354_v51 = vld [vmem:[#allocation6 + $0x3e8] sm:$0xf0]  ;;  %v6806_v62 = vld [vmem:[#allocation9 + $0xf0] sm:$0xff]  ;;  %v6807_v17 = vld [vmem:[#allocation9 + $0xf8] sm:$0xff] }
 0x262   : > { %3584 = vmatmul.bf16.gmra.mxu3 %v14520_v9  ;;  %7118 = vrot.lane.b32.xlu1 %v12700_v53, %s11873_s2  ;;  %v9322_v8 = vld [vmem:[#allocation6 + $0x3a8] sm:$0xf0] }
 0x263   : > { %11002 = vst [vmem:[%s12470_s3 + $0x70] sm:$0xff] %v10422_v28   ;;  %v3456_v37 = vpop.f32.mrf.mxu2  ;;  %v3369_v42 = vpop.f32.mrf.mxu1  ;;  %v9357_v28 = vor.u32 %v10211_v43, %v9354_v51  ;;  %3951 = vmatpush.bf16.msrb.mxu0 %v9101_v61  ;;  %v6839_v43 = vld [vmem:[#allocation11 + $0xf8] sm:$0xff] }
 0x264   : > { %v3457_v52 = vadd.f32 %v3456_v37, %v3368_v45 }
 0x265   : > { %v3545_v57 = vpop.f32.mrf.mxu3  ;;  %v3280_v56 = vpop.f32.mrf.mxu0  ;;  %4040 = vmatpush.bf16.msrb.mxu1 %v9357_v28 }
 0x266   : > { %v3546_v30 = vadd.f32 %v3545_v57, %v3457_v52  ;;  %v3370_v39 = vadd.f32 %v3369_v42, %v3280_v56  ;;  %v6838_v52 = vld [vmem:[#allocation11 + $0xf0] sm:$0xff]  ;;  %v14522_v42 = vld [vmem:[#allocation75_spill] sm:$0xff] }
 0x268   : > { %v12709_v58 = vadd.f32 %v12604_v59, %v3546_v30  ;;  %v14521_v30 = vld [vmem:[#allocation74_spill] sm:$0xff] }
 0x26a   : > { %7120 = vrot.lane.b32.xlu2 %v12709_v58, %s11873_s2 }
 0x26b   : > { %v3458_v45 = vpop.f32.mrf.mxu2  ;;  %v3372_v37 = vpop.f32.mrf.mxu1 }
 0x26c   : > { %v3459_v47 = vadd.f32 %v3458_v45, %v3370_v39  ;;  %v6933_v57 = vpop.permute.xlu0 %6932 }
 0x26d   : > { %v3547_v19 = vpop.f32.mrf.mxu3  ;;  %v3283_v40 = vpop.f32.mrf.mxu0  ;;  %v6966_v61 = vmul.f32 %v6933_v57, %v6838_v52 }
 0x26e   : > { %v3548_v63 = vadd.f32 %v3547_v19, %v3459_v47  ;;  %v3373_v56 = vadd.f32 %v3372_v37, %v3283_v40  ;;  %3411 = vmatmul.bf16.gmra.mxu1 %v12432_v20  ;;  %v6870_v47 = vmul.f32 %v6806_v62, %v12587_v23  ;;  %v6871_v19 = vmul.f32 %v6807_v17, %v12596_v18 }
 0x270   : > { %3322 = vmatmul.bf16.gmra.mxu0 %v12430_v41  ;;  %v12715_v29 = vadd.f32 %v12604_v59, %v3548_v63  ;;  %3500 = vmatmul.bf16.gmra.mxu2 %v14521_v30  ;;  %v6998_v30 = vadd.f32 %v6966_v61, %v6870_v47 }
 0x272   : > { %3589 = vmatmul.bf16.gmra.mxu3 %v14522_v42  ;;  %7122 = vrot.lane.b32.xlu0 %v12715_v29, %s11873_s2 }
 0x273   : > { %v3461_v51 = vpop.f32.mrf.mxu2  ;;  %v3374_v42 = vpop.f32.mrf.mxu1 }
 0x274   : > { %v3462_v39 = vadd.f32 %v3461_v51, %v3373_v56  ;;  %v6935_v45 = vpop.permute.xlu1 %6934  ;;  %v7097_v51 = vpop.permute.xlu2 %7096 }
 0x275   : > { %v3550_v28 = vpop.f32.mrf.mxu3  ;;  %v6967_v40 = vmul.f32 %v6935_v45, %v6839_v43  ;;  %v3285_v63 = vpop.f32.mrf.mxu0  ;;  %v14523_v43 = vld [vmem:[#allocation22_spill] sm:$0xff] }
 0x276   : > { %v3551_v37 = vadd.f32 %v3550_v28, %v3462_v39  ;;  %v3375_v52 = vadd.f32 %v3374_v42, %v3285_v63  ;;  %v14524_v28 = vld [vmem:[#allocation23_spill] sm:$0xff]  ;;  %v9578_v42 = vld [vmem:[#allocation6 + $0x5a8] sm:$0xf0] }
 0x277   : > { %v6999_v20 = vadd.f32 %v6967_v40, %v6871_v19  ;;  %v10331_v45 = vld [vmem:[#allocation6 + $0x78c] sm:$0xf] }
 0x278   : > { %v12725_v41 = vadd.f32 %v12604_v59, %v3551_v37  ;;  %v9834_v19 = vld [vmem:[#allocation6 + $0x7a8] sm:$0xf0] }
 0x279   : > { %v10427_v9 = vpack.c.bf16 %v6999_v20, %v6998_v30  ;;  %v14525_v20 = vld [vmem:[#allocation24_spill] sm:$0xff]  ;;  %v14526_v30 = vld [vmem:[#allocation25_spill] sm:$0xff]  ;;  %v11236_v40 = vld [vmem:[#allocation11] sm:$0xff] }
 0x27a   : > { %7124 = vrot.lane.b32.xlu1 %v12725_v41, %s11873_s2  ;;  %v7160_v63 = vmul.f32 %v11236_v40, %v7097_v51 }
 0x27b   : > { %11003 = vst [vmem:[%s12470_s3 + $0x78] sm:$0xff] %v10427_v9   ;;  %v3463_v57 = vpop.f32.mrf.mxu2  ;;  %v3377_v17 = vpop.f32.mrf.mxu1  ;;  %v10267_v9 = vld [vmem:[#allocation6 + $0x58c] sm:$0xf] }
 0x27c   : > { %v3464_v56 = vadd.f32 %v3463_v57, %v3375_v52  ;;  %v9581_v47 = vor.u32 %v10267_v9, %v9578_v42  ;;  %v9837_v52 = vor.u32 %v10331_v45, %v9834_v19  ;;  %v7103_v45 = vpop.permute.xlu2 %7102  ;;  %v9066_v19 = vld [vmem:[#allocation6 + $0x1a8] sm:$0xf0] }
 0x27d   : > { %v3552_v23 = vpop.f32.mrf.mxu3  ;;  %v3288_v62 = vpop.f32.mrf.mxu0 }
 0x27e   : > { %v3553_v18 = vadd.f32 %v3552_v23, %v3464_v56  ;;  %v3378_v39 = vadd.f32 %v3377_v17, %v3288_v62  ;;  %3692 = vmatmul.bf16.vlgmr.msra.gmra.mxu1 %v14524_v28  ;;  %4130 = vmatpush.bf16.msrb.mxu2 %v9581_v47  ;;  %v11237_v62 = vld [vmem:[#allocation9] sm:$0xff]  ;;  %v11238_v17 = vld [vmem:[#allocation9 + $0x8] sm:$0xff] }
 0x27f   : > { %4219 = vmatpush.bf16.msrb.mxu3 %v9837_v52  ;;  %v10139_v47 = vld [vmem:[#allocation6 + $0x18c] sm:$0xf]  ;;  %v11240_v52 = vld [vmem:[#allocation11 + $0x18] sm:$0xff] }
 0x280   : > { %3603 = vmatmul.bf16.vlgmr.msra.gmra.mxu0 %v14523_v43  ;;  %v12732_v61 = vadd.f32 %v12604_v59, %v3553_v18  ;;  %3781 = vmatmul.bf16.vlgmr.msra.gmra.mxu2 %v14525_v20  ;;  %v7064_v18 = vmul.f32 %v11237_v62, %v12607_v21  ;;  %v11239_v20 = vld [vmem:[#allocation11 + $0x8] sm:$0xff]  ;;  %v9069_v62 = vor.u32 %v10139_v47, %v9066_v19 }
 0x282   : > { %3870 = vmatmul.bf16.vlgmr.msra.gmra.mxu3 %v14526_v30  ;;  %7126 = vrot.lane.b32.xlu2 %v12732_v61, %s11873_s2  ;;  %v7065_v30 = vmul.f32 %v11238_v17, %v12613_v46  ;;  %v7192_v51 = vadd.f32 %v7160_v63, %v7064_v18  ;;  %v11242_v17 = vld [vmem:[#allocation9 + $0x18] sm:$0xff] }
 0x283   : > { %v3466_v37 = vpop.f32.mrf.mxu2  ;;  %v3379_v42 = vpop.f32.mrf.mxu1  ;;  %3952 = vmatpush.bf16.msrb.mxu0 %v9069_v62 }
 0x284   : > { %v3467_v57 = vadd.f32 %v3466_v37, %v3378_v39  ;;  %v7099_v23 = vpop.permute.xlu0 %7098  ;;  %v10203_v37 = vld [vmem:[#allocation6 + $0x38c] sm:$0xf] }
 0x285   : > { %v3555_v56 = vpop.f32.mrf.mxu3  ;;  %v7161_v28 = vmul.f32 %v11239_v20, %v7099_v23  ;;  %v3290_v43 = vpop.f32.mrf.mxu0  ;;  %v9325_v20 = vor.u32 %v10203_v37, %v9322_v8  ;;  %v11241_v23 = vld [vmem:[#allocation9 + $0x10] sm:$0xff] }
 0x286   : > { %v3556_v9 = vadd.f32 %v3555_v56, %v3467_v57  ;;  %v3380_v46 = vadd.f32 %v3379_v42, %v3290_v43  ;;  %v7163_v57 = vmul.f32 %v11240_v52, %v7103_v45  ;;  %v7066_v18 = vmul.f32 %v11241_v23, %v12623_v60  ;;  %v11243_v43 = vld [vmem:[#allocation11 + $0x10] sm:$0xff] }
 0x287   : > { %v7193_v40 = vadd.f32 %v7161_v28, %v7065_v30  ;;  %4041 = vmatpush.bf16.msrb.mxu1 %v9325_v20 }
 0x288   : > { %v12742_v39 = vadd.f32 %v12604_v59, %v3556_v9  ;;  %v7067_v9 = vmul.f32 %v11242_v17, %v12630_v7 }
 0x289   : > { %v10432_v21 = vpack.c.bf16 %v7193_v40, %v7192_v51 }
 0x28a   : > { %7128 = vrot.lane.b32.xlu0 %v12742_v39, %s11873_s2  ;;  %v7195_v45 = vadd.f32 %v7163_v57, %v7067_v9 }
 0x28b   : > { %11004 = vst [vmem:[%s12470_s3 + $0x80] sm:$0xff] %v10432_v21   ;;  %v3468_v63 = vpop.f32.mrf.mxu2  ;;  %v3382_v40 = vpop.f32.mrf.mxu1 }
 0x28c   : > { %v3469_v28 = vadd.f32 %v3468_v63, %v3380_v46  ;;  %v7101_v56 = vpop.permute.xlu1 %7100 }
 0x28d   : > { %v3557_v30 = vpop.f32.mrf.mxu3  ;;  %v7162_v42 = vmul.f32 %v11243_v43, %v7101_v56  ;;  %v3293_v51 = vpop.f32.mrf.mxu0 }
 0x28e   : > { %v3558_v8 = vadd.f32 %v3557_v30, %v3469_v28  ;;  %v3383_v37 = vadd.f32 %v3382_v40, %v3293_v51  ;;  %3697 = vmatmul.bf16.gmra.mxu1 %v12085_v13  ;;  %v11244_v51 = vld [vmem:[#allocation11 + $0x20] sm:$0xff] }
 0x28f   : > { %v7194_v47 = vadd.f32 %v7162_v42, %v7066_v18 }
 0x290   : > { %3608 = vmatmul.bf16.gmra.mxu0 %v12083_v12  ;;  %v12751_v19 = vadd.f32 %v12604_v59, %v3558_v8  ;;  %3786 = vmatmul.bf16.gmra.mxu2 %v12087_v14 }
 0x291   : > { %v10437_v60 = vpack.c.bf16 %v7195_v45, %v7194_v47  ;;  %v10259_v45 = vld [vmem:[#allocation6 + $0x54c] sm:$0xf] }
 0x292   : > { %3875 = vmatmul.bf16.gmra.mxu3 %v12089_v15  ;;  %7130 = vrot.lane.b32.xlu1 %v12751_v19, %s11873_s2  ;;  %v9546_v47 = vld [vmem:[#allocation6 + $0x568] sm:$0xf0] }
 0x293   : > { %11005 = vst [vmem:[%s12470_s3 + $0x88] sm:$0xff] %v10437_v60   ;;  %v3471_v7 = vpop.f32.mrf.mxu2  ;;  %v3384_v52 = vpop.f32.mrf.mxu1 }
 0x294   : > { %v3472_v21 = vadd.f32 %v3471_v7, %v3383_v37  ;;  %v10323_v37 = vld [vmem:[#allocation6 + $0x74c] sm:$0xf] }
 0x295   : > { %v3560_v62 = vpop.f32.mrf.mxu3  ;;  %v3295_v46 = vpop.f32.mrf.mxu0 }
 0x296   : > { %v3561_v20 = vadd.f32 %v3560_v62, %v3472_v21  ;;  %v3385_v63 = vadd.f32 %v3384_v52, %v3295_v46  ;;  %v9549_v62 = vor.u32 %v10259_v45, %v9546_v47  ;;  %v9802_v46 = vld [vmem:[#allocation6 + $0x768] sm:$0xf0] }
 0x297   : > { %v10131_v45 = vld [vmem:[#allocation6 + $0x14c] sm:$0xf] }
 0x298   : > { %v12760_v57 = vadd.f32 %v12604_v59, %v3561_v20  ;;  %v11245_v20 = vld [vmem:[#allocation9 + $0x20] sm:$0xff]  ;;  %4131 = vmatpush.bf16.msrb.mxu2 %v9549_v62 }
 0x299   : > { %v7068_v52 = vmul.f32 %v11245_v20, %v12640_v36  ;;  %v9034_v47 = vld [vmem:[#allocation6 + $0x168] sm:$0xf0] }
 0x29a   : > { %7132 = vrot.lane.b32.xlu2 %v12760_v57, %s11873_s2  ;;  %v10195_v36 = vld [vmem:[#allocation6 + $0x34c] sm:$0xf] }
 0x29b   : > { %v3473_v28 = vpop.f32.mrf.mxu2  ;;  %v3387_v17 = vpop.f32.mrf.mxu1 }
 0x29c   : > { %v3474_v30 = vadd.f32 %v3473_v28, %v3385_v63  ;;  %v7105_v43 = vpop.permute.xlu0 %7104  ;;  %v11246_v63 = vld [vmem:[#allocation9 + $0x28] sm:$0xff] }
 0x29d   : > { %v3562_v56 = vpop.f32.mrf.mxu3  ;;  %v3298_v23 = vpop.f32.mrf.mxu0  ;;  %v7164_v8 = vmul.f32 %v11244_v51, %v7105_v43  ;;  %v7069_v28 = vmul.f32 %v11246_v63, %v12649_v10  ;;  %v9290_v10 = vld [vmem:[#allocation6 + $0x368] sm:$0xf0] }
 0x29e   : > { %v3563_v18 = vadd.f32 %v3562_v56, %v3474_v30  ;;  %v3388_v42 = vadd.f32 %v3387_v17, %v3298_v23  ;;  %3702 = vmatmul.bf16.gmra.mxu1 %v12105_v25  ;;  %v11247_v30 = vld [vmem:[#allocation11 + $0x28] sm:$0xff] }
 0x29f   : > { %v7196_v51 = vadd.f32 %v7164_v8, %v7068_v52  ;;  %v7109_v52 = vpop.permute.xlu2 %7108 }
 0x2a0   : > { %3613 = vmatmul.bf16.gmra.mxu0 %v12103_v24  ;;  %v12766_v9 = vadd.f32 %v12604_v59, %v3563_v18  ;;  %3791 = vmatmul.bf16.gmra.mxu2 %v12107_v26  ;;  %v9805_v18 = vor.u32 %v10323_v37, %v9802_v46  ;;  %v9293_v37 = vor.u32 %v10195_v36, %v9290_v10  ;;  %v11251_v36 = vld [vmem:[#allocation11 + $0x38] sm:$0xff] }
 0x2a2   : > { %3880 = vmatmul.bf16.gmra.mxu3 %v12109_v27  ;;  %7134 = vrot.lane.b32.xlu0 %v12766_v9, %s11873_s2  ;;  %v9037_v27 = vor.u32 %v10131_v45, %v9034_v47  ;;  %v11250_v45 = vld [vmem:[#allocation9 + $0x38] sm:$0xff] }
 0x2a3   : > { %v3476_v40 = vpop.f32.mrf.mxu2  ;;  %v3389_v43 = vpop.f32.mrf.mxu1  ;;  %4220 = vmatpush.bf16.msrb.mxu3 %v9805_v18  ;;  %4042 = vmatpush.bf16.msrb.mxu1 %v9293_v37  ;;  %v7071_v47 = vmul.f32 %v11250_v45, %v12664_v22 }
 0x2a4   : > { %v3477_v60 = vadd.f32 %v3476_v40, %v3388_v42  ;;  %v7107_v21 = vpop.permute.xlu1 %7106  ;;  %3953 = vmatpush.bf16.msrb.mxu0 %v9037_v27  ;;  %v11248_v27 = vld [vmem:[#allocation11 + $0x30] sm:$0xff] }
 0x2a5   : > { %v3565_v7 = vpop.f32.mrf.mxu3  ;;  %v7165_v56 = vmul.f32 %v11247_v30, %v7107_v21  ;;  %v3300_v23 = vpop.f32.mrf.mxu0 }
 0x2a6   : > { %v3566_v17 = vadd.f32 %v3565_v7, %v3477_v60  ;;  %v3390_v63 = vadd.f32 %v3389_v43, %v3300_v23 }
 0x2a7   : > { %v7197_v42 = vadd.f32 %v7165_v56, %v7069_v28  ;;  %v7166_v56 = vmul.f32 %v11248_v27, %v7109_v52 }
 0x2a8   : > { %v12776_v40 = vadd.f32 %v12604_v59, %v3566_v17 }
 0x2a9   : > { %v10442_v20 = vpack.c.bf16 %v7197_v42, %v7196_v51  ;;  %v11249_v51 = vld [vmem:[#allocation9 + $0x30] sm:$0xff] }
 0x2aa   : > { %7136 = vrot.lane.b32.xlu1 %v12776_v40, %s11873_s2  ;;  %v7070_v42 = vmul.f32 %v11249_v51, %v12658_v31  ;;  %v11252_v31 = vld [vmem:[#allocation11 + $0x48] sm:$0xff]  ;;  %v11255_v51 = vld [vmem:[#allocation11 + $0x40] sm:$0xff] }
 0x2ab   : > { %11006 = vst [vmem:[%s12470_s3 + $0x90] sm:$0xff] %v10442_v20   ;;  %v3478_v60 = vpop.f32.mrf.mxu2  ;;  %v3392_v46 = vpop.f32.mrf.mxu1 }
 0x2ac   : > { %v3479_v8 = vadd.f32 %v3478_v60, %v3390_v63  ;;  %v7198_v60 = vadd.f32 %v7166_v56, %v7070_v42 }
 0x2ad   : > { %v3567_v7 = vpop.f32.mrf.mxu3  ;;  %v3303_v21 = vpop.f32.mrf.mxu0 }
 0x2ae   : > { %v3568_v62 = vadd.f32 %v3567_v7, %v3479_v8  ;;  %v3393_v30 = vadd.f32 %v3392_v46, %v3303_v21  ;;  %3707 = vmatmul.bf16.gmra.mxu1 %v12125_v50  ;;  %v7115_v7 = vpop.permute.xlu2 %7114 }
 0x2af   : > { %v7169_v52 = vmul.f32 %v11252_v31, %v7115_v7 }
 0x2b0   : > { %3618 = vmatmul.bf16.gmra.mxu0 %v12123_v49  ;;  %v12783_v28 = vadd.f32 %v12604_v59, %v3568_v62  ;;  %3796 = vmatmul.bf16.gmra.mxu2 %v12127_v54 }
 0x2b2   : > { %3885 = vmatmul.bf16.gmra.mxu3 %v12129_v55  ;;  %7138 = vrot.lane.b32.xlu2 %v12783_v28, %s11873_s2 }
 0x2b3   : > { %v3481_v23 = vpop.f32.mrf.mxu2  ;;  %v3394_v37 = vpop.f32.mrf.mxu1 }
 0x2b4   : > { %v3482_v18 = vadd.f32 %v3481_v23, %v3393_v30  ;;  %v7111_v43 = vpop.permute.xlu0 %7110 }
 0x2b5   : > { %v3570_v17 = vpop.f32.mrf.mxu3  ;;  %v7167_v20 = vmul.f32 %v11251_v36, %v7111_v43  ;;  %v3305_v10 = vpop.f32.mrf.mxu0 }
 0x2b6   : > { %v3571_v63 = vadd.f32 %v3570_v17, %v3482_v18  ;;  %v3395_v46 = vadd.f32 %v3394_v37, %v3305_v10  ;;  %v11253_v18 = vld [vmem:[#allocation9 + $0x40] sm:$0xff]  ;;  %v11254_v17 = vld [vmem:[#allocation9 + $0x48] sm:$0xff] }
 0x2b7   : > { %v7199_v8 = vadd.f32 %v7167_v20, %v7071_v47  ;;  %v7072_v56 = vmul.f32 %v11253_v18, %v12674_v4  ;;  %v7073_v43 = vmul.f32 %v11254_v17, %v12681_v5  ;;  %v10251_v5 = vld [vmem:[#allocation6 + $0x50c] sm:$0xf] }
 0x2b8   : > { %v12793_v21 = vadd.f32 %v12604_v59, %v3571_v63  ;;  %v9002_v17 = vld [vmem:[#allocation6 + $0x128] sm:$0xf0] }
 0x2b9   : > { %v10447_v62 = vpack.c.bf16 %v7199_v8, %v7198_v60  ;;  %v7201_v20 = vadd.f32 %v7169_v52, %v7073_v43  ;;  %v9514_v60 = vld [vmem:[#allocation6 + $0x528] sm:$0xf0] }
 0x2ba   : > { %7140 = vrot.lane.b32.xlu0 %v12793_v21, %s11873_s2  ;;  %v10315_v8 = vld [vmem:[#allocation6 + $0x70c] sm:$0xf]  ;;  %v9517_v7 = vor.u32 %v10251_v5, %v9514_v60 }
 0x2bb   : > { %11007 = vst [vmem:[%s12470_s3 + $0x98] sm:$0xff] %v10447_v62   ;;  %v3483_v22 = vpop.f32.mrf.mxu2  ;;  %v3397_v36 = vpop.f32.mrf.mxu1  ;;  %v9770_v62 = vld [vmem:[#allocation6 + $0x728] sm:$0xf0] }
 0x2bc   : > { %v3484_v30 = vadd.f32 %v3483_v22, %v3395_v46  ;;  %v7113_v23 = vpop.permute.xlu1 %7112  ;;  %v9773_v31 = vor.u32 %v10315_v8, %v9770_v62  ;;  %4132 = vmatpush.bf16.msrb.mxu2 %v9517_v7  ;;  %v10187_v43 = vld [vmem:[#allocation6 + $0x30c] sm:$0xf]  ;;  %v11256_v62 = vld [vmem:[#allocation11 + $0x50] sm:$0xff] }
 0x2bd   : > { %v3572_v27 = vpop.f32.mrf.mxu3  ;;  %v7168_v42 = vmul.f32 %v11255_v51, %v7113_v23  ;;  %v3308_v45 = vpop.f32.mrf.mxu0 }
 0x2be   : > { %v3573_v47 = vadd.f32 %v3572_v27, %v3484_v30  ;;  %v3398_v37 = vadd.f32 %v3397_v36, %v3308_v45  ;;  %3712 = vmatmul.bf16.gmra.mxu1 %v12145_v1  ;;  %4221 = vmatpush.bf16.msrb.mxu3 %v9773_v31 }
 0x2bf   : > { %v7200_v10 = vadd.f32 %v7168_v42, %v7072_v56  ;;  %v10123_v56 = vld [vmem:[#allocation6 + $0x10c] sm:$0xf] }
 0x2c0   : > { %3623 = vmatmul.bf16.gmra.mxu0 %v12143_v0  ;;  %v12802_v63 = vadd.f32 %v12604_v59, %v3573_v47  ;;  %3801 = vmatmul.bf16.gmra.mxu2 %v12147_v2  ;;  %v9005_v51 = vor.u32 %v10123_v56, %v9002_v17  ;;  %v9258_v42 = vld [vmem:[#allocation6 + $0x328] sm:$0xf0]  ;;  %v11258_v56 = vld [vmem:[#allocation9 + $0x58] sm:$0xff] }
 0x2c1   : > { %v10452_v4 = vpack.c.bf16 %v7201_v20, %v7200_v10  ;;  %v9261_v47 = vor.u32 %v10187_v43, %v9258_v42  ;;  %v7075_v17 = vmul.f32 %v11258_v56, %v12700_v53  ;;  %v11259_v43 = vld [vmem:[#allocation11 + $0x58] sm:$0xff]  ;;  %v9482_v56 = vld [vmem:[#allocation6 + $0x4e8] sm:$0xf0] }
 0x2c2   : > { %3890 = vmatmul.bf16.gmra.mxu3 %v12149_v3  ;;  %7142 = vrot.lane.b32.xlu1 %v12802_v63, %s11873_s2 }
 0x2c3   : > { %11008 = vst [vmem:[%s12470_s3 + $0xa0] sm:$0xff] %v10452_v4   ;;  %v3486_v46 = vpop.f32.mrf.mxu2  ;;  %v3399_v23 = vpop.f32.mrf.mxu1  ;;  %3954 = vmatpush.bf16.msrb.mxu0 %v9005_v51  ;;  %4043 = vmatpush.bf16.msrb.mxu1 %v9261_v47 }
 0x2c4   : > { %v3487_v52 = vadd.f32 %v3486_v46, %v3398_v37 }
 0x2c5   : > { %v3575_v22 = vpop.f32.mrf.mxu3  ;;  %v3310_v30 = vpop.f32.mrf.mxu0 }
 0x2c6   : > { %v3576_v27 = vadd.f32 %v3575_v22, %v3487_v52  ;;  %v3400_v45 = vadd.f32 %v3399_v23, %v3310_v30 }
 0x2c8   : > { %v12811_v18 = vadd.f32 %v12604_v59, %v3576_v27  ;;  %v11257_v27 = vld [vmem:[#allocation9 + $0x50] sm:$0xff] }
 0x2c9   : > { %v7074_v23 = vmul.f32 %v11257_v27, %v12691_v38  ;;  %v14529_v27 = vld [vmem:[#allocation38_spill] sm:$0xff] }
 0x2ca   : > { %7144 = vrot.lane.b32.xlu2 %v12811_v18, %s11873_s2 }
 0x2cb   : > { %v3488_v36 = vpop.f32.mrf.mxu2  ;;  %v3402_v5 = vpop.f32.mrf.mxu1 }
 0x2cc   : > { %v3489_v20 = vadd.f32 %v3488_v36, %v3400_v45  ;;  %v7117_v8 = vpop.permute.xlu0 %7116 }
 0x2cd   : > { %v3577_v10 = vpop.f32.mrf.mxu3  ;;  %v3313_v37 = vpop.f32.mrf.mxu0  ;;  %v7170_v46 = vmul.f32 %v11256_v62, %v7117_v8 }
 0x2ce   : > { %v3578_v4 = vadd.f32 %v3577_v10, %v3489_v20  ;;  %v3403_v7 = vadd.f32 %v3402_v5, %v3313_v37  ;;  %3717 = vmatmul.bf16.gmra.mxu1 %v12165_v33 }
 0x2cf   : > { %v7202_v36 = vadd.f32 %v7170_v46, %v7074_v23  ;;  %v10243_v23 = vld [vmem:[#allocation6 + $0x4cc] sm:$0xf] }
 0x2d0   : > { %3628 = vmatmul.bf16.gmra.mxu0 %v12163_v32  ;;  %v12817_v60 = vadd.f32 %v12604_v59, %v3578_v4  ;;  %3806 = vmatmul.bf16.gmra.mxu2 %v12167_v34 }
 0x2d2   : > { %3895 = vmatmul.bf16.gmra.mxu3 %v12169_v35  ;;  %7146 = vrot.lane.b32.xlu0 %v12817_v60, %s11873_s2 }
 0x2d3   : > { %v3491_v31 = vpop.f32.mrf.mxu2  ;;  %v3404_v47 = vpop.f32.mrf.mxu1 }
 0x2d4   : > { %v3492_v52 = vadd.f32 %v3491_v31, %v3403_v7  ;;  %v7119_v30 = vpop.permute.xlu1 %7118  ;;  %v7121_v31 = vpop.permute.xlu2 %7120 }
 0x2d5   : > { %v3580_v22 = vpop.f32.mrf.mxu3  ;;  %v7171_v51 = vmul.f32 %v11259_v43, %v7119_v30  ;;  %v3315_v42 = vpop.f32.mrf.mxu0  ;;  %v14528_v30 = vld [vmem:[#allocation37_spill] sm:$0xff]  ;;  %v9485_v43 = vor.u32 %v10243_v23, %v9482_v56 }
 0x2d6   : > { %v3581_v45 = vadd.f32 %v3580_v22, %v3492_v52  ;;  %v3405_v4 = vadd.f32 %v3404_v47, %v3315_v42  ;;  %v14527_v22 = vld [vmem:[#allocation36_spill] sm:$0xff]  ;;  %v11260_v42 = vld [vmem:[#allocation11 + $0x60] sm:$0xff] }
 0x2d7   : > { %v7203_v20 = vadd.f32 %v7171_v51, %v7075_v17  ;;  %v10307_v17 = vld [vmem:[#allocation6 + $0x6cc] sm:$0xf]  ;;  %4133 = vmatpush.bf16.msrb.mxu2 %v9485_v43 }
 0x2d8   : > { %v12827_v10 = vadd.f32 %v12604_v59, %v3581_v45  ;;  %v9738_v51 = vld [vmem:[#allocation6 + $0x6e8] sm:$0xf0]  ;;  %v7172_v45 = vmul.f32 %v11260_v42, %v7121_v31 }
 0x2d9   : > { %v10457_v37 = vpack.c.bf16 %v7203_v20, %v7202_v36  ;;  %v9741_v36 = vor.u32 %v10307_v17, %v9738_v51  ;;  %v10115_v43 = vld [vmem:[#allocation6 + $0xcc] sm:$0xf] }
 0x2da   : > { %7148 = vrot.lane.b32.xlu1 %v12827_v10, %s11873_s2  ;;  %v8970_v51 = vld [vmem:[#allocation6 + $0xe8] sm:$0xf0] }
 0x2db   : > { %11009 = vst [vmem:[%s12470_s3 + $0xa8] sm:$0xff] %v10457_v37   ;;  %v3493_v38 = vpop.f32.mrf.mxu2  ;;  %v3407_v62 = vpop.f32.mrf.mxu1  ;;  %4222 = vmatpush.bf16.msrb.mxu3 %v9741_v36 }
 0x2dc   : > { %v3494_v5 = vadd.f32 %v3493_v38, %v3405_v4  ;;  %v11261_v38 = vld [vmem:[#allocation9 + $0x60] sm:$0xff]  ;;  %v7127_v17 = vpop.permute.xlu2 %7126 }
 0x2dd   : > { %v3582_v8 = vpop.f32.mrf.mxu3  ;;  %v3318_v53 = vpop.f32.mrf.mxu0 }
 0x2de   : > { %v3583_v7 = vadd.f32 %v3582_v8, %v3494_v5  ;;  %v3408_v52 = vadd.f32 %v3407_v62, %v3318_v53  ;;  %3722 = vmatmul.bf16.gmra.mxu1 %v14527_v22  ;;  %v7076_v5 = vmul.f32 %v11261_v38, %v12709_v58  ;;  %v11262_v8 = vld [vmem:[#allocation9 + $0x68] sm:$0xff]  ;;  %v8973_v38 = vor.u32 %v10115_v43, %v8970_v51 }
 0x2df   : > { %v7077_v53 = vmul.f32 %v11262_v8, %v12715_v29  ;;  %v14530_v51 = vld [vmem:[#allocation39_spill] sm:$0xff] }
 0x2e0   : > { %3633 = vmatmul.bf16.gmra.mxu0 %v12183_v44  ;;  %v12834_v46 = vadd.f32 %v12604_v59, %v3583_v7  ;;  %3811 = vmatmul.bf16.gmra.mxu2 %v14528_v30  ;;  %v11263_v7 = vld [vmem:[#allocation11 + $0x68] sm:$0xff]  ;;  %v7204_v31 = vadd.f32 %v7172_v45, %v7076_v5  ;;  %v9226_v30 = vld [vmem:[#allocation6 + $0x2e8] sm:$0xf0] }
 0x2e1   : > { %3955 = vmatpush.bf16.msrb.mxu0 %v8973_v38  ;;  %v14531_v38 = vld [vmem:[#allocation40_spill] sm:$0xff] }
 0x2e2   : > { %3900 = vmatmul.bf16.gmra.mxu3 %v14529_v27  ;;  %7150 = vrot.lane.b32.xlu2 %v12834_v46, %s11873_s2 }
 0x2e3   : > { %v3496_v47 = vpop.f32.mrf.mxu2  ;;  %v3409_v56 = vpop.f32.mrf.mxu1 }
 0x2e4   : > { %v3497_v20 = vadd.f32 %v3496_v47, %v3408_v52  ;;  %v7123_v4 = vpop.permute.xlu0 %7122  ;;  %v10179_v47 = vld [vmem:[#allocation6 + $0x2cc] sm:$0xf] }
 0x2e5   : > { %v3585_v37 = vpop.f32.mrf.mxu3  ;;  %v7173_v62 = vmul.f32 %v11263_v7, %v7123_v4  ;;  %v3320_v27 = vpop.f32.mrf.mxu0  ;;  %v9229_v36 = vor.u32 %v10179_v47, %v9226_v30 }
 0x2e6   : > { %v3586_v23 = vadd.f32 %v3585_v37, %v3497_v20  ;;  %v3410_v29 = vadd.f32 %v3409_v56, %v3320_v27  ;;  %v11264_v20 = vld [vmem:[#allocation11 + $0x78] sm:$0xff]  ;;  %v11267_v27 = vld [vmem:[#allocation11 + $0x70] sm:$0xff] }
 0x2e7   : > { %v7205_v42 = vadd.f32 %v7173_v62, %v7077_v53  ;;  %v7175_v37 = vmul.f32 %v11264_v20, %v7127_v17  ;;  %4044 = vmatpush.bf16.msrb.mxu1 %v9229_v36  ;;  %v11265_v53 = vld [vmem:[#allocation9 + $0x78] sm:$0xff]  ;;  %v11266_v62 = vld [vmem:[#allocation9 + $0x70] sm:$0xff] }
 0x2e8   : > { %v12844_v52 = vadd.f32 %v12604_v59, %v3586_v23  ;;  %v7079_v7 = vmul.f32 %v11265_v53, %v12732_v61  ;;  %v7078_v23 = vmul.f32 %v11266_v62, %v12725_v41  ;;  %v14532_v61 = vld [vmem:[#allocation41_spill] sm:$0xff]  ;;  %v14533_v41 = vld [vmem:[#allocation42_spill] sm:$0xff] }
 0x2e9   : > { %v10462_v58 = vpack.c.bf16 %v7205_v42, %v7204_v31 }
 0x2ea   : > { %7152 = vrot.lane.b32.xlu0 %v12844_v52, %s11873_s2  ;;  %v7207_v17 = vadd.f32 %v7175_v37, %v7079_v7 }
 0x2eb   : > { %11010 = vst [vmem:[%s12470_s3 + $0xb0] sm:$0xff] %v10462_v58   ;;  %v3498_v45 = vpop.f32.mrf.mxu2  ;;  %v3412_v42 = vpop.f32.mrf.mxu1 }
 0x2ec   : > { %v3499_v4 = vadd.f32 %v3498_v45, %v3410_v29  ;;  %v7125_v8 = vpop.permute.xlu1 %7124 }
 0x2ed   : > { %v3587_v5 = vpop.f32.mrf.mxu3  ;;  %v7174_v56 = vmul.f32 %v11267_v27, %v7125_v8  ;;  %v3323_v31 = vpop.f32.mrf.mxu0 }
 0x2ee   : > { %v3588_v30 = vadd.f32 %v3587_v5, %v3499_v4  ;;  %v3413_v58 = vadd.f32 %v3412_v42, %v3323_v31  ;;  %3727 = vmatmul.bf16.gmra.mxu1 %v14531_v38 }
 0x2ef   : > { %v7206_v43 = vadd.f32 %v7174_v56, %v7078_v23 }
 0x2f0   : > { %3638 = vmatmul.bf16.gmra.mxu0 %v14530_v51  ;;  %v12853_v47 = vadd.f32 %v12604_v59, %v3588_v30  ;;  %3816 = vmatmul.bf16.gmra.mxu2 %v14532_v61  ;;  %v14534_v30 = vld [vmem:[#allocation43_spill] sm:$0xff]  ;;  %v8938_v51 = vld [vmem:[#allocation6 + $0xa8] sm:$0xf0] }
 0x2f1   : > { %v10467_v29 = vpack.c.bf16 %v7207_v17, %v7206_v43 }
 0x2f2   : > { %3905 = vmatmul.bf16.gmra.mxu3 %v14533_v41  ;;  %7154 = vrot.lane.b32.xlu1 %v12853_v47, %s11873_s2  ;;  %v11272_v41 = vld [vmem:[#allocation11 + $0x88] sm:$0xff] }
 0x2f3   : > { %11011 = vst [vmem:[%s12470_s3 + $0xb8] sm:$0xff] %v10467_v29   ;;  %v3501_v36 = vpop.f32.mrf.mxu2  ;;  %v3414_v5 = vpop.f32.mrf.mxu1  ;;  %v14536_v29 = vld [vmem:[#allocation45_spill] sm:$0xff] }
 0x2f4   : > { %v3502_v20 = vadd.f32 %v3501_v36, %v3413_v58  ;;  %v14535_v58 = vld [vmem:[#allocation44_spill] sm:$0xff]  ;;  %v14537_v36 = vld [vmem:[#allocation46_spill] sm:$0xff] }
 0x2f5   : > { %v3590_v37 = vpop.f32.mrf.mxu3  ;;  %v3325_v45 = vpop.f32.mrf.mxu0 }
 0x2f6   : > { %v3591_v4 = vadd.f32 %v3590_v37, %v3502_v20  ;;  %v3415_v53 = vadd.f32 %v3414_v5, %v3325_v45  ;;  %v11268_v20 = vld [vmem:[#allocation11 + $0x80] sm:$0xff] }
 0x2f7   : > { %v9450_v5 = vld [vmem:[#allocation6 + $0x4a8] sm:$0xf0] }
 0x2f8   : > { %v12862_v8 = vadd.f32 %v12604_v59, %v3591_v4  ;;  %v10235_v4 = vld [vmem:[#allocation6 + $0x48c] sm:$0xf] }
 0x2fa   : > { %7156 = vrot.lane.b32.xlu2 %v12862_v8, %s11873_s2 }
 0x2fb   : > { %v3503_v7 = vpop.f32.mrf.mxu2  ;;  %v3693_v31 = vpop.f32.mrf.mxu1 }
 0x2fc   : > { %v3504_v62 = vadd.f32 %v3503_v7, %v3415_v53  ;;  %v7129_v17 = vpop.permute.xlu0 %7128  ;;  %v10299_v53 = vld [vmem:[#allocation6 + $0x68c] sm:$0xf] }
 0x2fd   : > { %v3592_v23 = vpop.f32.mrf.mxu3  ;;  %v3604_v27 = vpop.f32.mrf.mxu0  ;;  %v7176_v37 = vmul.f32 %v11268_v20, %v7129_v17 }
 0x2fe   : > { %v3593_v56 = vadd.f32 %v3592_v23, %v3504_v62  ;;  %v3694_v43 = vadd.f32 %v3693_v31, %v3604_v27  ;;  %3732 = vmatmul.bf16.gmra.mxu1 %v14535_v58  ;;  %v11269_v62 = vld [vmem:[#allocation8] sm:$0xff]  ;;  %v9706_v31 = vld [vmem:[#allocation6 + $0x6a8] sm:$0xf0]  ;;  %v11271_v58 = vld [vmem:[#allocation9 + $0x88] sm:$0xff] }
 0x2ff   : > { %v12875_v23 = vperm.slane %v11269_v62, 2  ;;  %v9709_v61 = vor.u32 %v10299_v53, %v9706_v31  ;;  %v14540_v31 = vld [vmem:[#allocation49_spill] sm:$0xff] }
 0x300   : > { %3643 = vmatmul.bf16.gmra.mxu0 %v14534_v30  ;;  %v12868_v42 = vadd.f32 %v12604_v59, %v3593_v56  ;;  %3821 = vmatmul.bf16.gmra.mxu2 %v14536_v29  ;;  %v9453_v56 = vor.u32 %v10235_v4, %v9450_v5  ;;  %v11270_v29 = vld [vmem:[#allocation9 + $0x80] sm:$0xff]  ;;  %v7081_v30 = vmul.f32 %v11271_v58, %v12751_v19 }
 0x301   : > { %4223 = vmatpush.bf16.msrb.mxu3 %v9709_v61  ;;  %v10107_v5 = vld [vmem:[#allocation6 + $0x8c] sm:$0xf] }
 0x302   : > { %3910 = vmatmul.bf16.gmra.mxu3 %v14537_v36  ;;  %7158 = vrot.lane.b32.xlu0 %v12868_v42, %s11873_s2  ;;  %v7080_v36 = vmul.f32 %v11270_v29, %v12742_v39  ;;  %v10171_v39 = vld [vmem:[#allocation6 + $0x28c] sm:$0xf]  ;;  %v8941_v22 = vor.u32 %v10107_v5, %v8938_v51 }
 0x303   : > { %v3782_v45 = vpop.f32.mrf.mxu2  ;;  %4134 = vmatpush.bf16.msrb.mxu2 %v9453_v56  ;;  %v9194_v19 = vld [vmem:[#allocation6 + $0x2a8] sm:$0xf0]  ;;  %v14539_v56 = vld [vmem:[#allocation48_spill] sm:$0xff] }
 0x304   : > { %v3783_v7 = vadd.f32 %v3782_v45, %v3694_v43  ;;  %v7131_v27 = vpop.permute.xlu1 %7130  ;;  %v3695_v43 = vpop.f32.mrf.mxu1  ;;  %v7208_v45 = vadd.f32 %v7176_v37, %v7080_v36  ;;  %3956 = vmatpush.bf16.msrb.mxu0 %v8941_v22  ;;  %v11273_v22 = vld [vmem:[#allocation11 + $0x90] sm:$0xff] }
 0x305   : > { %v3871_v59 = vpop.f32.mrf.mxu3  ;;  %v7177_v17 = vmul.f32 %v11272_v41, %v7131_v27  ;;  %v3606_v20 = vpop.f32.mrf.mxu0  ;;  %v9197_v41 = vor.u32 %v10171_v39, %v9194_v19  ;;  %v11274_v39 = vld [vmem:[#allocation9 + $0x90] sm:$0xff]  ;;  %v11275_v19 = vld [vmem:[#allocation9 + $0x98] sm:$0xff] }
 0x306   : > { %v3872_v38 = vadd.f32 %v3871_v59, %v3783_v7  ;;  %v3696_v58 = vadd.f32 %v3695_v43, %v3606_v20  ;;  %v14538_v7 = vld [vmem:[#allocation47_spill] sm:$0xff]  ;;  %v7133_v59 = vpop.permute.xlu2 %7132 }
 0x307   : > { %v7209_v62 = vadd.f32 %v7177_v17, %v7081_v30  ;;  %4045 = vmatpush.bf16.msrb.mxu1 %v9197_v41  ;;  %v14541_v17 = vld [vmem:[#allocation50_spill] sm:$0xff]  ;;  %v7178_v20 = vmul.f32 %v11273_v22, %v7133_v59  ;;  %v11276_v41 = vld [vmem:[#allocation11 + $0x98] sm:$0xff] }
 0x308   : > { %v12880_v4 = vadd.f32 %v12875_v23, %v3872_v38 }
 0x309   : > { %v10472_v29 = vpack.c.bf16 %v7209_v62, %v7208_v45 }
 0x30a   : > { %7608 = vrot.lane.b32.xlu0 %v12880_v4, %s11873_s2 }
 0x30b   : > { %11012 = vst [vmem:[%s12470_s3 + $0xc0] sm:$0xff] %v10472_v29   ;;  %v3784_v53 = vpop.f32.mrf.mxu2  ;;  %v7082_v29 = vmul.f32 %v11274_v39, %v12760_v57  ;;  %v11277_v57 = vld [vmem:[#allocation11 + $0xa8] sm:$0xff] }
 0x30c   : > { %v3785_v36 = vadd.f32 %v3784_v53, %v3696_v58  ;;  %v3698_v37 = vpop.f32.mrf.mxu1  ;;  %v7083_v58 = vmul.f32 %v11275_v19, %v12766_v9 }
 0x30d   : > { %v3873_v30 = vpop.f32.mrf.mxu3  ;;  %v3609_v61 = vpop.f32.mrf.mxu0 }
 0x30e   : > { %v3874_v38 = vadd.f32 %v3873_v30, %v3785_v36  ;;  %v3699_v27 = vadd.f32 %v3698_v37, %v3609_v61  ;;  %3737 = vmatmul.bf16.gmra.mxu1 %v14539_v56 }
 0x310   : > { %3648 = vmatmul.bf16.gmra.mxu0 %v14538_v7  ;;  %v12887_v51 = vadd.f32 %v12875_v23, %v3874_v38  ;;  %3826 = vmatmul.bf16.gmra.mxu2 %v14540_v31  ;;  %v7210_v38 = vadd.f32 %v7178_v20, %v7082_v29  ;;  %v9130_v31 = vld [vmem:[#allocation6 + $0x228] sm:$0xf0] }
 0x312   : > { %3915 = vmatmul.bf16.gmra.mxu3 %v14541_v17  ;;  %7610 = vrot.lane.b32.xlu1 %v12887_v51, %s11873_s2  ;;  %v7139_v17 = vpop.permute.xlu2 %7138 }
 0x313   : > { %v3787_v43 = vpop.f32.mrf.mxu2 }
 0x314   : > { %v3788_v45 = vadd.f32 %v3787_v43, %v3699_v27  ;;  %v7135_v5 = vpop.permute.xlu0 %7134  ;;  %v3700_v61 = vpop.f32.mrf.mxu1  ;;  %v7181_v43 = vmul.f32 %v11277_v57, %v7139_v17  ;;  %v14542_v17 = vld [vmem:[#allocation51_spill] sm:$0xff] }
 0x315   : > { %v3876_v62 = vpop.f32.mrf.mxu3  ;;  %v7179_v53 = vmul.f32 %v11276_v41, %v7135_v5  ;;  %v3611_v36 = vpop.f32.mrf.mxu0 }
 0x316   : > { %v3877_v30 = vadd.f32 %v3876_v62, %v3788_v45  ;;  %v3701_v22 = vadd.f32 %v3700_v61, %v3611_v36  ;;  %v11278_v45 = vld [vmem:[#allocation9 + $0xa8] sm:$0xff]  ;;  %v11279_v62 = vld [vmem:[#allocation9 + $0xa0] sm:$0xff] }
 0x317   : > { %v7211_v37 = vadd.f32 %v7179_v53, %v7083_v58  ;;  %v7085_v20 = vmul.f32 %v11278_v45, %v12783_v28  ;;  %v7084_v29 = vmul.f32 %v11279_v62, %v12776_v40  ;;  %v11280_v58 = vld [vmem:[#allocation11 + $0xa0] sm:$0xff]  ;;  %v14544_v28 = vld [vmem:[#allocation53_spill] sm:$0xff] }
 0x318   : > { %v12897_v59 = vadd.f32 %v12875_v23, %v3877_v30  ;;  %v14545_v40 = vld [vmem:[#allocation54_spill] sm:$0xff] }
 0x319   : > { %v10477_v27 = vpack.c.bf16 %v7211_v37, %v7210_v38  ;;  %v7213_v61 = vadd.f32 %v7181_v43, %v7085_v20 }
 0x31a   : > { %7612 = vrot.lane.b32.xlu2 %v12897_v59, %s11873_s2 }
 0x31b   : > { %11013 = vst [vmem:[%s12470_s3 + $0xc8] sm:$0xff] %v10477_v27   ;;  %v3789_v9 = vpop.f32.mrf.mxu2 }
 0x31c   : > { %v3790_v39 = vadd.f32 %v3789_v9, %v3701_v22  ;;  %v7137_v19 = vpop.permute.xlu1 %7136  ;;  %v3703_v30 = vpop.f32.mrf.mxu1  ;;  %v14543_v22 = vld [vmem:[#allocation52_spill] sm:$0xff]  ;;  %v10227_v9 = vld [vmem:[#allocation6 + $0x44c] sm:$0xf] }
 0x31d   : > { %v3878_v5 = vpop.f32.mrf.mxu3  ;;  %v7180_v41 = vmul.f32 %v11280_v58, %v7137_v19  ;;  %v3614_v53 = vpop.f32.mrf.mxu0  ;;  %v9418_v19 = vld [vmem:[#allocation6 + $0x468] sm:$0xf0] }
 0x31e   : > { %v3879_v36 = vadd.f32 %v3878_v5, %v3790_v39  ;;  %v3704_v27 = vadd.f32 %v3703_v30, %v3614_v53  ;;  %3742 = vmatmul.bf16.gmra.mxu1 %v14543_v22  ;;  %v10291_v39 = vld [vmem:[#allocation6 + $0x64c] sm:$0xf]  ;;  %v9421_v43 = vor.u32 %v10227_v9, %v9418_v19 }
 0x31f   : > { %v7212_v38 = vadd.f32 %v7180_v41, %v7084_v29  ;;  %v9674_v5 = vld [vmem:[#allocation6 + $0x668] sm:$0xf0] }
 0x320   : > { %3653 = vmatmul.bf16.gmra.mxu0 %v14542_v17  ;;  %v12906_v37 = vadd.f32 %v12875_v23, %v3879_v36  ;;  %3831 = vmatmul.bf16.gmra.mxu2 %v14544_v28  ;;  %v9677_v20 = vor.u32 %v10291_v39, %v9674_v5  ;;  %v10099_v30 = vld [vmem:[#allocation6 + $0x4c] sm:$0xf] }
 0x321   : > { %v10482_v57 = vpack.c.bf16 %v7213_v61, %v7212_v38  ;;  %4135 = vmatpush.bf16.msrb.mxu2 %v9421_v43  ;;  %v8906_v61 = vld [vmem:[#allocation6 + $0x68] sm:$0xf0] }
 0x322   : > { %3920 = vmatmul.bf16.gmra.mxu3 %v14545_v40  ;;  %7614 = vrot.lane.b32.xlu0 %v12906_v37, %s11873_s2  ;;  %v10163_v38 = vld [vmem:[#allocation6 + $0x24c] sm:$0xf]  ;;  %v8909_v40 = vor.u32 %v10099_v30, %v8906_v61 }
 0x323   : > { %11014 = vst [vmem:[%s12470_s3 + $0xd0] sm:$0xff] %v10482_v57   ;;  %v3792_v45 = vpop.f32.mrf.mxu2  ;;  %4224 = vmatpush.bf16.msrb.mxu3 %v9677_v20  ;;  %v9162_v28 = vld [vmem:[#allocation6 + $0x268] sm:$0xf0] }
 0x324   : > { %v3793_v62 = vadd.f32 %v3792_v45, %v3704_v27  ;;  %v3705_v53 = vpop.f32.mrf.mxu1  ;;  %v9165_v57 = vor.u32 %v10163_v38, %v9162_v28  ;;  %3957 = vmatpush.bf16.msrb.mxu0 %v8909_v40  ;;  %v14548_v28 = vld [vmem:[#allocation58_spill] sm:$0xff]  ;;  %v11281_v40 = vld [vmem:[#allocation11 + $0xb0] sm:$0xff] }
 0x325   : > { %v3881_v29 = vpop.f32.mrf.mxu3  ;;  %v3616_v58 = vpop.f32.mrf.mxu0 }
 0x326   : > { %v3882_v41 = vadd.f32 %v3881_v29, %v3793_v62  ;;  %v3706_v9 = vadd.f32 %v3705_v53, %v3616_v58  ;;  %4046 = vmatpush.bf16.msrb.mxu1 %v9165_v57  ;;  %v14546_v58 = vld [vmem:[#allocation56_spill] sm:$0xff] }
 0x327   : > { %v11282_v57 = vld [vmem:[#allocation9 + $0xb0] sm:$0xff] }
 0x328   : > { %v12915_v36 = vadd.f32 %v12875_v23, %v3882_v41  ;;  %v14547_v41 = vld [vmem:[#allocation57_spill] sm:$0xff] }
 0x32a   : > { %7616 = vrot.lane.b32.xlu1 %v12915_v36, %s11873_s2 }
 0x32b   : > { %v3794_v27 = vpop.f32.mrf.mxu2 }
 0x32c   : > { %v3795_v19 = vadd.f32 %v3794_v27, %v3706_v9  ;;  %v3708_v45 = vpop.f32.mrf.mxu1  ;;  %v7141_v62 = vpop.permute.xlu0 %7140  ;;  %v7086_v27 = vmul.f32 %v11282_v57, %v12793_v21 }
 0x32d   : > { %v3883_v39 = vpop.f32.mrf.mxu3  ;;  %v3619_v43 = vpop.f32.mrf.mxu0  ;;  %v7182_v53 = vmul.f32 %v11281_v40, %v7141_v62 }
 0x32e   : > { %v3884_v5 = vadd.f32 %v3883_v39, %v3795_v19  ;;  %v3709_v29 = vadd.f32 %v3708_v45, %v3619_v43  ;;  %3747 = vmatmul.bf16.gmra.mxu1 %v14546_v58  ;;  %v11283_v19 = vld [vmem:[#allocation9 + $0xb8] sm:$0xff] }
 0x32f   : > { %v7087_v39 = vmul.f32 %v11283_v19, %v12802_v63  ;;  %v11284_v43 = vld [vmem:[#allocation11 + $0xb8] sm:$0xff]  ;;  %v7214_v58 = vadd.f32 %v7182_v53, %v7086_v27  ;;  %v9386_v27 = vld [vmem:[#allocation6 + $0x428] sm:$0xf0] }
 0x330   : > { %3658 = vmatmul.bf16.gmra.mxu0 %v14505_v48  ;;  %v12921_v20 = vadd.f32 %v12875_v23, %v3884_v5  ;;  %3836 = vmatmul.bf16.gmra.mxu2 %v14547_v41 }
 0x332   : > { %3925 = vmatmul.bf16.gmra.mxu3 %v14548_v28  ;;  %7618 = vrot.lane.b32.xlu2 %v12921_v20, %s11873_s2 }
 0x333   : > { %v3797_v30 = vpop.f32.mrf.mxu2 }
 0x334   : > { %v3798_v61 = vadd.f32 %v3797_v30, %v3709_v29  ;;  %v7143_v9 = vpop.permute.xlu1 %7142  ;;  %v3710_v41 = vpop.f32.mrf.mxu1 }
 0x335   : > { %v3886_v38 = vpop.f32.mrf.mxu3  ;;  %v7183_v5 = vmul.f32 %v11284_v43, %v7143_v9  ;;  %v3621_v45 = vpop.f32.mrf.mxu0  ;;  %v14549_v43 = vld [vmem:[#allocation59_spill] sm:$0xff] }
 0x336   : > { %v3887_v28 = vadd.f32 %v3886_v38, %v3798_v61  ;;  %v3711_v40 = vadd.f32 %v3710_v41, %v3621_v45  ;;  %v7145_v61 = vpop.permute.xlu2 %7144  ;;  %v14550_v38 = vld [vmem:[#allocation60_spill] sm:$0xff]  ;;  %v10219_v41 = vld [vmem:[#allocation6 + $0x40c] sm:$0xf] }
 0x337   : > { %v7215_v48 = vadd.f32 %v7183_v5, %v7087_v39  ;;  %v10283_v39 = vld [vmem:[#allocation6 + $0x60c] sm:$0xf]  ;;  %v9389_v5 = vor.u32 %v10219_v41, %v9386_v27 }
 0x338   : > { %v12931_v62 = vadd.f32 %v12875_v23, %v3887_v28  ;;  %v9642_v45 = vld [vmem:[#allocation6 + $0x628] sm:$0xf0] }
 0x339   : > { %v10487_v29 = vpack.c.bf16 %v7215_v48, %v7214_v58  ;;  %v14551_v48 = vld [vmem:[#allocation61_spill] sm:$0xff]  ;;  %v14552_v58 = vld [vmem:[#allocation62_spill] sm:$0xff]  ;;  %4136 = vmatpush.bf16.msrb.mxu2 %v9389_v5 }
 0x33a   : > { %7620 = vrot.lane.b32.xlu0 %v12931_v62, %s11873_s2  ;;  %v10091_v5 = vld [vmem:[#allocation6 + $0xc] sm:$0xf] }
 0x33b   : > { %11015 = vst [vmem:[%s12470_s3 + $0xd8] sm:$0xff] %v10487_v29   ;;  %v3799_v21 = vpop.f32.mrf.mxu2  ;;  %v11285_v29 = vld [vmem:[#allocation11 + $0xc0] sm:$0xff] }
 0x33c   : > { %v3800_v30 = vadd.f32 %v3799_v21, %v3711_v40  ;;  %v3713_v9 = vpop.f32.mrf.mxu1  ;;  %v7184_v40 = vmul.f32 %v11285_v29, %v7145_v61 }
 0x33d   : > { %v3888_v57 = vpop.f32.mrf.mxu3  ;;  %v3624_v63 = vpop.f32.mrf.mxu0 }
 0x33e   : > { %v3889_v19 = vadd.f32 %v3888_v57, %v3800_v30  ;;  %v3714_v28 = vadd.f32 %v3713_v9, %v3624_v63  ;;  %3752 = vmatmul.bf16.gmra.mxu1 %v14550_v38  ;;  %v9645_v30 = vor.u32 %v10283_v39, %v9642_v45  ;;  %v11286_v9 = vld [vmem:[#allocation9 + $0xc0] sm:$0xff]  ;;  %v7151_v39 = vpop.permute.xlu2 %7150 }
 0x33f   : > { %v8874_v45 = vld [vmem:[#allocation6 + $0x28] sm:$0xf0] }
 0x340   : > { %3663 = vmatmul.bf16.gmra.mxu0 %v14549_v43  ;;  %v12938_v53 = vadd.f32 %v12875_v23, %v3889_v19  ;;  %3841 = vmatmul.bf16.gmra.mxu2 %v14551_v48  ;;  %v7088_v48 = vmul.f32 %v11286_v9, %v12811_v18  ;;  %v11288_v43 = vld [vmem:[#allocation11 + $0xc8] sm:$0xff]  ;;  %v8877_v9 = vor.u32 %v10091_v5, %v8874_v45 }
 0x341   : > { %4225 = vmatpush.bf16.msrb.mxu3 %v9645_v30 }
 0x342   : > { %3930 = vmatmul.bf16.gmra.mxu3 %v14552_v58  ;;  %7622 = vrot.lane.b32.xlu1 %v12938_v53, %s11873_s2  ;;  %v11287_v58 = vld [vmem:[#allocation9 + $0xc8] sm:$0xff]  ;;  %v7216_v61 = vadd.f32 %v7184_v40, %v7088_v48 }
 0x343   : > { %v3802_v21 = vpop.f32.mrf.mxu2  ;;  %v7089_v38 = vmul.f32 %v11287_v58, %v12817_v60  ;;  %v11289_v58 = vld [vmem:[#allocation11 + $0xd8] sm:$0xff]  ;;  %3958 = vmatpush.bf16.msrb.mxu0 %v8877_v9 }
 0x344   : > { %v3803_v57 = vadd.f32 %v3802_v21, %v3714_v28  ;;  %v7147_v19 = vpop.permute.xlu0 %7146  ;;  %v3715_v27 = vpop.f32.mrf.mxu1  ;;  %v10155_v21 = vld [vmem:[#allocation6 + $0x20c] sm:$0xf]  ;;  %v7187_v30 = vmul.f32 %v11289_v58, %v7151_v39 }
 0x345   : > { %v3891_v63 = vpop.f32.mrf.mxu3  ;;  %v7185_v22 = vmul.f32 %v11288_v43, %v7147_v19  ;;  %v3626_v17 = vpop.f32.mrf.mxu0  ;;  %v9133_v43 = vor.u32 %v10155_v21, %v9130_v31  ;;  %v11291_v19 = vld [vmem:[#allocation9 + $0xd0] sm:$0xff] }
 0x346   : > { %v3892_v41 = vadd.f32 %v3891_v63, %v3803_v57  ;;  %v3716_v60 = vadd.f32 %v3715_v27, %v3626_v17  ;;  %v11290_v57 = vld [vmem:[#allocation9 + $0xd8] sm:$0xff]  ;;  %v11292_v17 = vld [vmem:[#allocation11 + $0xd0] sm:$0xff] }
 0x347   : > { %v7217_v29 = vadd.f32 %v7185_v22, %v7089_v38  ;;  %4047 = vmatpush.bf16.msrb.mxu1 %v9133_v43  ;;  %v7091_v63 = vmul.f32 %v11290_v57, %v12834_v46  ;;  %v14554_v46 = vld [vmem:[#allocation65_spill] sm:$0xff] }
 0x348   : > { %v12948_v28 = vadd.f32 %v12875_v23, %v3892_v41  ;;  %v7090_v41 = vmul.f32 %v11291_v19, %v12827_v10  ;;  %v14555_v10 = vld [vmem:[#allocation66_spill] sm:$0xff] }
 0x349   : > { %v10492_v18 = vpack.c.bf16 %v7217_v29, %v7216_v61  ;;  %v7219_v39 = vadd.f32 %v7187_v30, %v7091_v63 }
 0x34a   : > { %7624 = vrot.lane.b32.xlu2 %v12948_v28, %s11873_s2 }
 0x34b   : > { %11016 = vst [vmem:[%s12470_s3 + $0xe0] sm:$0xff] %v10492_v18   ;;  %v3804_v48 = vpop.f32.mrf.mxu2  ;;  %v14553_v18 = vld [vmem:[#allocation64_spill] sm:$0xff] }
 0x34c   : > { %v3805_v22 = vadd.f32 %v3804_v48, %v3716_v60  ;;  %v7149_v40 = vpop.permute.xlu1 %7148  ;;  %v3718_v29 = vpop.f32.mrf.mxu1 }
 0x34d   : > { %v3893_v38 = vpop.f32.mrf.mxu3  ;;  %v7186_v27 = vmul.f32 %v11292_v17, %v7149_v40  ;;  %v3629_v61 = vpop.f32.mrf.mxu0 }
 0x34e   : > { %v3894_v31 = vadd.f32 %v3893_v38, %v3805_v22  ;;  %v3719_v21 = vadd.f32 %v3718_v29, %v3629_v61  ;;  %3757 = vmatmul.bf16.gmra.mxu1 %v14553_v18 }
 0x34f   : > { %v7218_v5 = vadd.f32 %v7186_v27, %v7090_v41 }
 0x350   : > { %3668 = vmatmul.bf16.gmra.mxu0 %v14513_v11  ;;  %v12957_v45 = vadd.f32 %v12875_v23, %v3894_v31  ;;  %3846 = vmatmul.bf16.gmra.mxu2 %v14554_v46 }
 0x351   : > { %v10497_v9 = vpack.c.bf16 %v7219_v39, %v7218_v5  ;;  %v14556_v39 = vld [vmem:[#allocation69_spill] sm:$0xff]  ;;  %v14557_v5 = vld [vmem:[#allocation70_spill] sm:$0xff] }
 0x352   : > { %3935 = vmatmul.bf16.gmra.mxu3 %v14555_v10  ;;  %7626 = vrot.lane.b32.xlu0 %v12957_v45, %s11873_s2 }
 0x353   : > { %11017 = vst [vmem:[%s12470_s3 + $0xe8] sm:$0xff] %v10497_v9   ;;  %v3807_v60 = vpop.f32.mrf.mxu2  ;;  %v10280_v9 = vld [vmem:[#allocation6 + $0x5ec] sm:$0xf0] }
 0x354   : > { %v3808_v43 = vadd.f32 %v3807_v60, %v3719_v21  ;;  %v3720_v22 = vpop.f32.mrf.mxu1  ;;  %v9616_v21 = vld [vmem:[#allocation6 + $0x5d0] sm:$0xf] }
 0x355   : > { %v3896_v58 = vpop.f32.mrf.mxu3  ;;  %v3631_v30 = vpop.f32.mrf.mxu0  ;;  %v9872_v60 = vld [vmem:[#allocation6 + $0x7d0] sm:$0xf] }
 0x356   : > { %v3897_v48 = vadd.f32 %v3896_v58, %v3808_v43  ;;  %v3721_v40 = vadd.f32 %v3720_v22, %v3631_v30  ;;  %v9617_v43 = vor.u32 %v10280_v9, %v9616_v21  ;;  %v10344_v58 = vld [vmem:[#allocation6 + $0x7ec] sm:$0xf0]  ;;  %v11293_v30 = vld [vmem:[#allocation11 + $0xe0] sm:$0xff] }
 0x358   : > { %v12966_v38 = vadd.f32 %v12875_v23, %v3897_v48  ;;  %4485 = vmatpush.bf16.msra.mxu2 %v9617_v43  ;;  %v10152_v43 = vld [vmem:[#allocation6 + $0x1ec] sm:$0xf0] }
 0x35a   : > { %7628 = vrot.lane.b32.xlu1 %v12966_v38, %s11873_s2 }
 0x35b   : > { %v3809_v57 = vpop.f32.mrf.mxu2 }
 0x35c   : > { %v3810_v63 = vadd.f32 %v3809_v57, %v3721_v40  ;;  %v3723_v27 = vpop.f32.mrf.mxu1  ;;  %v7153_v31 = vpop.permute.xlu0 %7152  ;;  %v9873_v40 = vor.u32 %v10344_v58, %v9872_v60  ;;  %v9104_v60 = vld [vmem:[#allocation6 + $0x1d0] sm:$0xf] }
 0x35d   : > { %v3898_v19 = vpop.f32.mrf.mxu3  ;;  %v3634_v41 = vpop.f32.mrf.mxu0  ;;  %v7188_v48 = vmul.f32 %v11293_v30, %v7153_v31  ;;  %v9360_v58 = vld [vmem:[#allocation6 + $0x3d0] sm:$0xf] }
 0x35e   : > { %v3899_v17 = vadd.f32 %v3898_v19, %v3810_v63  ;;  %v3724_v29 = vadd.f32 %v3723_v27, %v3634_v41  ;;  %3762 = vmatmul.bf16.gmra.mxu1 %v14518_v6  ;;  %v11294_v41 = vld [vmem:[#allocation9 + $0xe0] sm:$0xff]  ;;  %v11295_v27 = vld [vmem:[#allocation9 + $0xe8] sm:$0xff]  ;;  %4574 = vmatpush.bf16.msra.mxu3 %v9873_v40 }
 0x360   : > { %3673 = vmatmul.bf16.gmra.mxu0 %v14517_v16  ;;  %v12972_v61 = vadd.f32 %v12875_v23, %v3899_v17  ;;  %3851 = vmatmul.bf16.gmra.mxu2 %v14556_v39  ;;  %v7092_v17 = vmul.f32 %v11294_v41, %v12844_v52  ;;  %v11296_v39 = vld [vmem:[#allocation11 + $0xe8] sm:$0xff]  ;;  %v9105_v52 = vor.u32 %v10152_v43, %v9104_v60 }
 0x361   : > { %v10216_v41 = vld [vmem:[#allocation6 + $0x3ec] sm:$0xf0] }
 0x362   : > { %3940 = vmatmul.bf16.gmra.mxu3 %v14557_v5  ;;  %7630 = vrot.lane.b32.xlu2 %v12972_v61, %s11873_s2  ;;  %v7093_v5 = vmul.f32 %v11295_v27, %v12853_v47  ;;  %v7220_v31 = vadd.f32 %v7188_v48, %v7092_v17  ;;  %v9361_v47 = vor.u32 %v10216_v41, %v9360_v58  ;;  %v14560_v27 = vld [vmem:[#allocation74_spill] sm:$0xff] }
 0x363   : > { %v3812_v22 = vpop.f32.mrf.mxu2  ;;  %4307 = vmatpush.bf16.msra.mxu0 %v9105_v52  ;;  %v11298_v52 = vld [vmem:[#allocation9 + $0xf0] sm:$0xff] }
 0x364   : > { %v3813_v57 = vadd.f32 %v3812_v22, %v3724_v29  ;;  %v7155_v19 = vpop.permute.xlu1 %7154  ;;  %v3725_v9 = vpop.f32.mrf.mxu1  ;;  %4396 = vmatpush.bf16.msra.mxu1 %v9361_v47  ;;  %v7094_v41 = vmul.f32 %v11298_v52, %v12862_v8 }
 0x365   : > { %v3901_v63 = vpop.f32.mrf.mxu3  ;;  %v7189_v6 = vmul.f32 %v11296_v39, %v7155_v19  ;;  %v3636_v16 = vpop.f32.mrf.mxu0 }
 0x366   : > { %v3902_v21 = vadd.f32 %v3901_v63, %v3813_v57  ;;  %v3726_v10 = vadd.f32 %v3725_v9, %v3636_v16  ;;  %v14558_v63 = vld [vmem:[#allocation72_spill] sm:$0xff]  ;;  %v14559_v16 = vld [vmem:[#allocation73_spill] sm:$0xff]  ;;  %v14561_v9 = vld [vmem:[#allocation75_spill] sm:$0xff] }
 0x367   : > { %v7221_v30 = vadd.f32 %v7189_v6, %v7093_v5 }
 0x368   : > { %v12982_v29 = vadd.f32 %v12875_v23, %v3902_v21  ;;  %v7157_v21 = vpop.permute.xlu2 %7156 }
 0x369   : > { %v10502_v22 = vpack.c.bf16 %v7221_v30, %v7220_v31  ;;  %v11297_v31 = vld [vmem:[#allocation11 + $0xf0] sm:$0xff] }
 0x36a   : > { %7632 = vrot.lane.b32.xlu0 %v12982_v29, %s11873_s2  ;;  %v7190_v30 = vmul.f32 %v11297_v31, %v7157_v21 }
 0x36b   : > { %11018 = vst [vmem:[%s12470_s3 + $0xf0] sm:$0xff] %v10502_v22   ;;  %v3814_v39 = vpop.f32.mrf.mxu2 }
 0x36c   : > { %v3815_v40 = vadd.f32 %v3814_v39, %v3726_v10  ;;  %v3728_v57 = vpop.f32.mrf.mxu1  ;;  %v11299_v39 = vld [vmem:[#allocation9 + $0xf8] sm:$0xff] }
 0x36d   : > { %v3903_v48 = vpop.f32.mrf.mxu3  ;;  %v3639_v6 = vpop.f32.mrf.mxu0 }
 0x36e   : > { %v3904_v5 = vadd.f32 %v3903_v48, %v3815_v40  ;;  %v3729_v17 = vadd.f32 %v3728_v57, %v3639_v6  ;;  %3767 = vmatmul.bf16.gmra.mxu1 %v14559_v16  ;;  %v7095_v40 = vmul.f32 %v11299_v39, %v12868_v42  ;;  %v11300_v48 = vld [vmem:[#allocation11 + $0xf8] sm:$0xff]  ;;  %v7222_v57 = vadd.f32 %v7190_v30, %v7094_v41  ;;  %v14562_v39 = vld [vmem:[#allocation22_spill] sm:$0xff] }
 0x370   : > { %3678 = vmatmul.bf16.gmra.mxu0 %v14558_v63  ;;  %v12989_v19 = vadd.f32 %v12875_v23, %v3904_v5  ;;  %3856 = vmatmul.bf16.gmra.mxu2 %v14560_v27 }
 0x372   : > { %3945 = vmatmul.bf16.gmra.mxu3 %v14561_v9  ;;  %7634 = vrot.lane.b32.xlu1 %v12989_v19, %s11873_s2 }
 0x373   : > { %v3817_v10 = vpop.f32.mrf.mxu2 }
 0x374   : > { %v3818_v60 = vadd.f32 %v3817_v10, %v3729_v17  ;;  %v7159_v58 = vpop.permute.xlu0 %7158  ;;  %v3730_v5 = vpop.f32.mrf.mxu1 }
 0x375   : > { %v3906_v43 = vpop.f32.mrf.mxu3  ;;  %v3641_v22 = vpop.f32.mrf.mxu0  ;;  %v7191_v6 = vmul.f32 %v11300_v48, %v7159_v58  ;;  %v11301_v48 = vld [vmem:[#allocation11] sm:$0xff] }
 0x376   : > { %v3907_v47 = vadd.f32 %v3906_v43, %v3818_v60  ;;  %v3731_v10 = vadd.f32 %v3730_v5, %v3641_v22  ;;  %v14564_v22 = vld [vmem:[#allocation24_spill] sm:$0xff] }
 0x377   : > { %v7223_v21 = vadd.f32 %v7191_v6, %v7095_v40  ;;  %v14565_v40 = vld [vmem:[#allocation25_spill] sm:$0xff] }
 0x378   : > { %v12999_v9 = vadd.f32 %v12875_v23, %v3907_v47  ;;  %v14563_v47 = vld [vmem:[#allocation23_spill] sm:$0xff] }
 0x379   : > { %v10507_v17 = vpack.c.bf16 %v7223_v21, %v7222_v57  ;;  %v9584_v57 = vld [vmem:[#allocation6 + $0x590] sm:$0xf] }
 0x37a   : > { %7636 = vrot.lane.b32.xlu2 %v12999_v9, %s11873_s2  ;;  %v10272_v21 = vld [vmem:[#allocation6 + $0x5ac] sm:$0xf0] }
 0x37b   : > { %v3819_v31 = vpop.f32.mrf.mxu2  ;;  %11019 = vst [vmem:[%s12470_s3 + $0xf8] sm:$0xff] %v10507_v17   ;;  %v9840_v17 = vld [vmem:[#allocation6 + $0x790] sm:$0xf] }
 0x37c   : > { %v3820_v8 = vadd.f32 %v3819_v31, %v3731_v10  ;;  %v3733_v42 = vpop.f32.mrf.mxu1  ;;  %v7609_v58 = vpop.permute.xlu0 %7608 }
 0x37d   : > { %v3908_v60 = vpop.f32.mrf.mxu3  ;;  %v3644_v43 = vpop.f32.mrf.mxu0  ;;  %v7672_v6 = vmul.f32 %v11301_v48, %v7609_v58 }
 0x37e   : > { %v3909_v52 = vadd.f32 %v3908_v60, %v3820_v8  ;;  %v3734_v41 = vadd.f32 %v3733_v42, %v3644_v43  ;;  %4048 = vmatmul.bf16.vlgmr.msrb.gmra.mxu1 %v14563_v47  ;;  %v9585_v60 = vor.u32 %v10272_v21, %v9584_v57  ;;  %v10336_v43 = vld [vmem:[#allocation6 + $0x7ac] sm:$0xf0] }
 0x37f   : > { %v11304_v47 = vld [vmem:[#allocation11 + $0x8] sm:$0xff]  ;;  %v9841_v16 = vor.u32 %v10336_v43, %v9840_v17 }
 0x380   : > { %3959 = vmatmul.bf16.vlgmr.msrb.gmra.mxu0 %v14562_v39  ;;  %v13006_v30 = vadd.f32 %v12875_v23, %v3909_v52  ;;  %4137 = vmatmul.bf16.vlgmr.msrb.gmra.mxu2 %v14564_v22  ;;  %v11302_v52 = vld [vmem:[#allocation9] sm:$0xff]  ;;  %v11303_v22 = vld [vmem:[#allocation9 + $0x8] sm:$0xff] }
 0x381   : > { %v7576_v42 = vmul.f32 %v11302_v52, %v12880_v4  ;;  %4486 = vmatpush.bf16.msra.mxu2 %v9585_v60  ;;  %4575 = vmatpush.bf16.msra.mxu3 %v9841_v16  ;;  %v9072_v57 = vld [vmem:[#allocation6 + $0x190] sm:$0xf] }
 0x382   : > { %4226 = vmatmul.bf16.vlgmr.msrb.gmra.mxu3 %v14565_v40  ;;  %7638 = vrot.lane.b32.xlu0 %v13006_v30, %s11873_s2  ;;  %v7577_v40 = vmul.f32 %v11303_v22, %v12887_v51  ;;  %v10144_v21 = vld [vmem:[#allocation6 + $0x1ac] sm:$0xf0] }
 0x383   : > { %v3822_v5 = vpop.f32.mrf.mxu2  ;;  %v7704_v63 = vadd.f32 %v7672_v6, %v7576_v42  ;;  %v9328_v4 = vld [vmem:[#allocation6 + $0x390] sm:$0xf]  ;;  %v9073_v46 = vor.u32 %v10144_v21, %v9072_v57  ;;  %v11307_v57 = vld [vmem:[#allocation9 + $0x18] sm:$0xff] }
 0x384   : > { %v3823_v10 = vadd.f32 %v3822_v5, %v3734_v41  ;;  %v7611_v8 = vpop.permute.xlu1 %7610  ;;  %v3735_v48 = vpop.f32.mrf.mxu1  ;;  %v10208_v51 = vld [vmem:[#allocation6 + $0x3ac] sm:$0xf0]  ;;  %v7579_v21 = vmul.f32 %v11307_v57, %v12906_v37 }
 0x385   : > { %v3911_v31 = vpop.f32.mrf.mxu3  ;;  %v7673_v39 = vmul.f32 %v11304_v47, %v7611_v8  ;;  %v3646_v27 = vpop.f32.mrf.mxu0  ;;  %v9329_v47 = vor.u32 %v10208_v51, %v9328_v4  ;;  %4308 = vmatpush.bf16.msra.mxu0 %v9073_v46  ;;  %v11305_v46 = vld [vmem:[#allocation11 + $0x10] sm:$0xff]  ;;  %v11308_v4 = vld [vmem:[#allocation11 + $0x18] sm:$0xff] }
 0x386   : > { %v3912_v58 = vadd.f32 %v3911_v31, %v3823_v10  ;;  %v3736_v22 = vadd.f32 %v3735_v48, %v3646_v27  ;;  %v7613_v31 = vpop.permute.xlu2 %7612  ;;  %v11306_v48 = vld [vmem:[#allocation9 + $0x10] sm:$0xff] }
 0x387   : > { %v7705_v41 = vadd.f32 %v7673_v39, %v7577_v40  ;;  %4397 = vmatpush.bf16.msra.mxu1 %v9329_v47  ;;  %v7674_v8 = vmul.f32 %v11305_v46, %v7613_v31 }
 0x388   : > { %v13016_v5 = vadd.f32 %v12875_v23, %v3912_v58 }
 0x389   : > { %v10672_v52 = vpack.c.bf16 %v7705_v41, %v7704_v63  ;;  %v7578_v41 = vmul.f32 %v11306_v48, %v12897_v59  ;;  %v11309_v59 = vld [vmem:[#allocation11 + $0x28] sm:$0xff]  ;;  %v11312_v48 = vld [vmem:[#allocation11 + $0x20] sm:$0xff] }
 0x38a   : > { %7640 = vrot.lane.b32.xlu1 %v13016_v5, %s11873_s2 }
 0x38b   : > { %11050 = vst [vmem:[%s12470_s3 + $0x100] sm:$0xff] %v10672_v52   ;;  %v3824_v17 = vpop.f32.mrf.mxu2 }
 0x38c   : > { %v3825_v6 = vadd.f32 %v3824_v17, %v3736_v22  ;;  %v3738_v10 = vpop.f32.mrf.mxu1  ;;  %v7706_v17 = vadd.f32 %v7674_v8, %v7578_v41 }
 0x38d   : > { %v3913_v39 = vpop.f32.mrf.mxu3  ;;  %v3649_v16 = vpop.f32.mrf.mxu0 }
 0x38e   : > { %v3914_v40 = vadd.f32 %v3913_v39, %v3825_v6  ;;  %v3739_v27 = vadd.f32 %v3738_v10, %v3649_v16  ;;  %4053 = vmatmul.bf16.gmra.mxu1 %v12085_v13  ;;  %v7619_v39 = vpop.permute.xlu2 %7618 }
 0x38f   : > { %v7677_v31 = vmul.f32 %v11309_v59, %v7619_v39  ;;  %v9808_v39 = vld [vmem:[#allocation6 + $0x750] sm:$0xf] }
 0x390   : > { %3964 = vmatmul.bf16.gmra.mxu0 %v12083_v12  ;;  %v13023_v63 = vadd.f32 %v12875_v23, %v3914_v40  ;;  %4142 = vmatmul.bf16.gmra.mxu2 %v12087_v14 }
 0x392   : > { %4231 = vmatmul.bf16.gmra.mxu3 %v12089_v15  ;;  %7642 = vrot.lane.b32.xlu2 %v13023_v63, %s11873_s2 }
 0x393   : > { %v3827_v60 = vpop.f32.mrf.mxu2 }
 0x394   : > { %v3828_v43 = vadd.f32 %v3827_v60, %v3739_v27  ;;  %v7615_v58 = vpop.permute.xlu0 %7614  ;;  %v3740_v47 = vpop.f32.mrf.mxu1 }
 0x395   : > { %v3916_v42 = vpop.f32.mrf.mxu3  ;;  %v7675_v52 = vmul.f32 %v11308_v4, %v7615_v58  ;;  %v3651_v51 = vpop.f32.mrf.mxu0 }
 0x396   : > { %v3917_v22 = vadd.f32 %v3916_v42, %v3828_v43  ;;  %v3741_v10 = vadd.f32 %v3740_v47, %v3651_v51  ;;  %v11310_v43 = vld [vmem:[#allocation9 + $0x28] sm:$0xff]  ;;  %v11311_v42 = vld [vmem:[#allocation9 + $0x20] sm:$0xff] }
 0x397   : > { %v7707_v6 = vadd.f32 %v7675_v52, %v7579_v21  ;;  %v7581_v8 = vmul.f32 %v11310_v43, %v12921_v20  ;;  %v7580_v58 = vmul.f32 %v11311_v42, %v12915_v36  ;;  %v14566_v36 = vld [vmem:[#allocation32_spill] sm:$0xff]  ;;  %v9040_v42 = vld [vmem:[#allocation6 + $0x150] sm:$0xf] }
 0x398   : > { %v13033_v16 = vadd.f32 %v12875_v23, %v3917_v22 }
 0x399   : > { %v10677_v40 = vpack.c.bf16 %v7707_v6, %v7706_v17  ;;  %v7709_v52 = vadd.f32 %v7677_v31, %v7581_v8  ;;  %v9552_v17 = vld [vmem:[#allocation6 + $0x550] sm:$0xf] }
 0x39a   : > { %7644 = vrot.lane.b32.xlu0 %v13033_v16, %s11873_s2  ;;  %v10264_v6 = vld [vmem:[#allocation6 + $0x56c] sm:$0xf0] }
 0x39b   : > { %11051 = vst [vmem:[%s12470_s3 + $0x108] sm:$0xff] %v10677_v40   ;;  %v3829_v37 = vpop.f32.mrf.mxu2  ;;  %v9553_v40 = vor.u32 %v10264_v6, %v9552_v17 }
 0x39c   : > { %v3830_v27 = vadd.f32 %v3829_v37, %v3741_v10  ;;  %v7617_v60 = vpop.permute.xlu1 %7616  ;;  %v3743_v4 = vpop.f32.mrf.mxu1  ;;  %v10328_v10 = vld [vmem:[#allocation6 + $0x76c] sm:$0xf0] }
 0x39d   : > { %v3918_v46 = vpop.f32.mrf.mxu3  ;;  %v7676_v41 = vmul.f32 %v11312_v48, %v7617_v60  ;;  %v3654_v57 = vpop.f32.mrf.mxu0  ;;  %v9809_v31 = vor.u32 %v10328_v10, %v9808_v39  ;;  %4487 = vmatpush.bf16.msra.mxu2 %v9553_v40  ;;  %v9296_v48 = vld [vmem:[#allocation6 + $0x350] sm:$0xf] }
 0x39e   : > { %v3919_v21 = vadd.f32 %v3918_v46, %v3830_v27  ;;  %v3744_v47 = vadd.f32 %v3743_v4, %v3654_v57  ;;  %4058 = vmatmul.bf16.gmra.mxu1 %v12105_v25  ;;  %v10200_v57 = vld [vmem:[#allocation6 + $0x36c] sm:$0xf0] }
 0x39f   : > { %v7708_v51 = vadd.f32 %v7676_v41, %v7580_v58  ;;  %4576 = vmatpush.bf16.msra.mxu3 %v9809_v31  ;;  %v10136_v58 = vld [vmem:[#allocation6 + $0x16c] sm:$0xf0]  ;;  %v9297_v4 = vor.u32 %v10200_v57, %v9296_v48 }
 0x3a0   : > { %3969 = vmatmul.bf16.gmra.mxu0 %v12103_v24  ;;  %v13042_v22 = vadd.f32 %v12875_v23, %v3919_v21  ;;  %4147 = vmatmul.bf16.gmra.mxu2 %v12107_v26  ;;  %v9041_v41 = vor.u32 %v10136_v58, %v9040_v42  ;;  %v11315_v58 = vld [vmem:[#allocation9 + $0x38] sm:$0xff] }
 0x3a1   : > { %v10682_v20 = vpack.c.bf16 %v7709_v52, %v7708_v51  ;;  %4398 = vmatpush.bf16.msra.mxu1 %v9297_v4  ;;  %v7583_v48 = vmul.f32 %v11315_v58, %v12938_v53 }
 0x3a2   : > { %4236 = vmatmul.bf16.gmra.mxu3 %v14566_v36  ;;  %7646 = vrot.lane.b32.xlu1 %v13042_v22, %s11873_s2 }
 0x3a3   : > { %11052 = vst [vmem:[%s12470_s3 + $0x110] sm:$0xff] %v10682_v20   ;;  %v3832_v59 = vpop.f32.mrf.mxu2  ;;  %4309 = vmatpush.bf16.msra.mxu0 %v9041_v41  ;;  %v11316_v41 = vld [vmem:[#allocation11 + $0x38] sm:$0xff] }
 0x3a4   : > { %v3833_v37 = vadd.f32 %v3832_v59, %v3744_v47  ;;  %v3745_v43 = vpop.f32.mrf.mxu1  ;;  %v11313_v59 = vld [vmem:[#allocation11 + $0x30] sm:$0xff] }
 0x3a5   : > { %v3921_v27 = vpop.f32.mrf.mxu3  ;;  %v3656_v46 = vpop.f32.mrf.mxu0 }
 0x3a6   : > { %v3922_v60 = vadd.f32 %v3921_v27, %v3833_v37  ;;  %v3746_v21 = vadd.f32 %v3745_v43, %v3656_v46  ;;  %v11314_v43 = vld [vmem:[#allocation9 + $0x30] sm:$0xff] }
 0x3a7   : > { %v7582_v42 = vmul.f32 %v11314_v43, %v12931_v62  ;;  %v10256_v43 = vld [vmem:[#allocation6 + $0x52c] sm:$0xf0] }
 0x3a8   : > { %v13051_v8 = vadd.f32 %v12875_v23, %v3922_v60 }
 0x3aa   : > { %7648 = vrot.lane.b32.xlu2 %v13051_v8, %s11873_s2 }
 0x3ab   : > { %v3834_v52 = vpop.f32.mrf.mxu2 }
 0x3ac   : > { %v3835_v51 = vadd.f32 %v3834_v52, %v3746_v21  ;;  %v3748_v6 = vpop.f32.mrf.mxu1  ;;  %v7621_v40 = vpop.permute.xlu0 %7620 }
 0x3ad   : > { %v3923_v47 = vpop.f32.mrf.mxu3  ;;  %v3659_v20 = vpop.f32.mrf.mxu0  ;;  %v7678_v31 = vmul.f32 %v11313_v59, %v7621_v40 }
 0x3ae   : > { %v3924_v17 = vadd.f32 %v3923_v47, %v3835_v51  ;;  %v3749_v10 = vadd.f32 %v3748_v6, %v3659_v20  ;;  %4063 = vmatmul.bf16.gmra.mxu1 %v12125_v50 }
 0x3af   : > { %v7710_v51 = vadd.f32 %v7678_v31, %v7582_v42  ;;  %v9776_v42 = vld [vmem:[#allocation6 + $0x710] sm:$0xf] }
 0x3b0   : > { %3974 = vmatmul.bf16.gmra.mxu0 %v12123_v49  ;;  %v13057_v39 = vadd.f32 %v12875_v23, %v3924_v17  ;;  %4152 = vmatmul.bf16.gmra.mxu2 %v12127_v54 }
 0x3b2   : > { %4241 = vmatmul.bf16.gmra.mxu3 %v12129_v55  ;;  %7650 = vrot.lane.b32.xlu0 %v13057_v39, %s11873_s2 }
 0x3b3   : > { %v3837_v37 = vpop.f32.mrf.mxu2 }
 0x3b4   : > { %v3838_v27 = vadd.f32 %v3837_v37, %v3749_v10  ;;  %v7623_v60 = vpop.permute.xlu1 %7622  ;;  %v3750_v52 = vpop.f32.mrf.mxu1 }
 0x3b5   : > { %v3926_v46 = vpop.f32.mrf.mxu3  ;;  %v7679_v57 = vmul.f32 %v11316_v41, %v7623_v60  ;;  %v3661_v21 = vpop.f32.mrf.mxu0  ;;  %v9520_v60 = vld [vmem:[#allocation6 + $0x510] sm:$0xf]  ;;  %v11317_v41 = vld [vmem:[#allocation11 + $0x40] sm:$0xff] }
 0x3b6   : > { %v3927_v4 = vadd.f32 %v3926_v46, %v3838_v27  ;;  %v3751_v6 = vadd.f32 %v3750_v52, %v3661_v21  ;;  %v7625_v27 = vpop.permute.xlu2 %7624  ;;  %v9521_v58 = vor.u32 %v10256_v43, %v9520_v60 }
 0x3b7   : > { %v7711_v47 = vadd.f32 %v7679_v57, %v7583_v48  ;;  %v10320_v48 = vld [vmem:[#allocation6 + $0x72c] sm:$0xf0]  ;;  %v7680_v57 = vmul.f32 %v11317_v41, %v7625_v27 }
 0x3b8   : > { %v13067_v20 = vadd.f32 %v12875_v23, %v3927_v4  ;;  %v9777_v4 = vor.u32 %v10320_v48, %v9776_v42  ;;  %4488 = vmatpush.bf16.msra.mxu2 %v9521_v58  ;;  %v9008_v58 = vld [vmem:[#allocation6 + $0x110] sm:$0xf] }
 0x3b9   : > { %v10687_v17 = vpack.c.bf16 %v7711_v47, %v7710_v51  ;;  %v10128_v48 = vld [vmem:[#allocation6 + $0x12c] sm:$0xf0] }
 0x3ba   : > { %7652 = vrot.lane.b32.xlu1 %v13067_v20, %s11873_s2  ;;  %4577 = vmatpush.bf16.msra.mxu3 %v9777_v4  ;;  %v9264_v41 = vld [vmem:[#allocation6 + $0x310] sm:$0xf] }
 0x3bb   : > { %11053 = vst [vmem:[%s12470_s3 + $0x118] sm:$0xff] %v10687_v17   ;;  %v3839_v62 = vpop.f32.mrf.mxu2  ;;  %v11318_v17 = vld [vmem:[#allocation9 + $0x40] sm:$0xff] }
 0x3bc   : > { %v3840_v40 = vadd.f32 %v3839_v62, %v3751_v6  ;;  %v3753_v37 = vpop.f32.mrf.mxu1  ;;  %v7584_v6 = vmul.f32 %v11318_v17, %v12948_v28  ;;  %v11319_v62 = vld [vmem:[#allocation9 + $0x48] sm:$0xff] }
 0x3bd   : > { %v3928_v10 = vpop.f32.mrf.mxu3  ;;  %v3664_v53 = vpop.f32.mrf.mxu0  ;;  %v10192_v17 = vld [vmem:[#allocation6 + $0x32c] sm:$0xf0] }
 0x3be   : > { %v3929_v59 = vadd.f32 %v3928_v10, %v3840_v40  ;;  %v3754_v46 = vadd.f32 %v3753_v37, %v3664_v53  ;;  %4068 = vmatmul.bf16.gmra.mxu1 %v12145_v1  ;;  %v7585_v40 = vmul.f32 %v11319_v62, %v12957_v45  ;;  %v11320_v10 = vld [vmem:[#allocation11 + $0x48] sm:$0xff]  ;;  %v7712_v27 = vadd.f32 %v7680_v57, %v7584_v6  ;;  %v7631_v42 = vpop.permute.xlu2 %7630 }
 0x3bf   : > { %v9265_v4 = vor.u32 %v10192_v17, %v9264_v41 }
 0x3c0   : > { %3979 = vmatmul.bf16.gmra.mxu0 %v12143_v0  ;;  %v13074_v31 = vadd.f32 %v12875_v23, %v3929_v59  ;;  %4157 = vmatmul.bf16.gmra.mxu2 %v12147_v2 }
 0x3c1   : > { %4399 = vmatpush.bf16.msra.mxu1 %v9265_v4 }
 0x3c2   : > { %4246 = vmatmul.bf16.gmra.mxu3 %v12149_v3  ;;  %7654 = vrot.lane.b32.xlu2 %v13074_v31, %s11873_s2 }
 0x3c3   : > { %v3842_v21 = vpop.f32.mrf.mxu2 }
 0x3c4   : > { %v3843_v52 = vadd.f32 %v3842_v21, %v3754_v46  ;;  %v7627_v47 = vpop.permute.xlu0 %7626  ;;  %v3755_v60 = vpop.f32.mrf.mxu1  ;;  %v9009_v21 = vor.u32 %v10128_v48, %v9008_v58 }
 0x3c5   : > { %v3931_v51 = vpop.f32.mrf.mxu3  ;;  %v7681_v53 = vmul.f32 %v11320_v10, %v7627_v47  ;;  %v3666_v59 = vpop.f32.mrf.mxu0 }
 0x3c6   : > { %v3932_v37 = vadd.f32 %v3931_v51, %v3843_v52  ;;  %v3756_v45 = vadd.f32 %v3755_v60, %v3666_v59  ;;  %v11321_v52 = vld [vmem:[#allocation11 + $0x58] sm:$0xff]  ;;  %4310 = vmatpush.bf16.msra.mxu0 %v9009_v21  ;;  %v11324_v59 = vld [vmem:[#allocation11 + $0x50] sm:$0xff] }
 0x3c7   : > { %v7713_v43 = vadd.f32 %v7681_v53, %v7585_v40  ;;  %v7683_v51 = vmul.f32 %v11321_v52, %v7631_v42  ;;  %v11322_v40 = vld [vmem:[#allocation9 + $0x58] sm:$0xff]  ;;  %v11323_v53 = vld [vmem:[#allocation9 + $0x50] sm:$0xff] }
 0x3c8   : > { %v13084_v46 = vadd.f32 %v12875_v23, %v3932_v37  ;;  %v7587_v10 = vmul.f32 %v11322_v40, %v12972_v61  ;;  %v7586_v37 = vmul.f32 %v11323_v53, %v12966_v38 }
 0x3c9   : > { %v10692_v28 = vpack.c.bf16 %v7713_v43, %v7712_v27 }
 0x3ca   : > { %7656 = vrot.lane.b32.xlu0 %v13084_v46, %s11873_s2  ;;  %v7715_v42 = vadd.f32 %v7683_v51, %v7587_v10 }
 0x3cb   : > { %11054 = vst [vmem:[%s12470_s3 + $0x120] sm:$0xff] %v10692_v28   ;;  %v3844_v57 = vpop.f32.mrf.mxu2 }
 0x3cc   : > { %v3845_v47 = vadd.f32 %v3844_v57, %v3756_v45  ;;  %v7629_v62 = vpop.permute.xlu1 %7628  ;;  %v3758_v58 = vpop.f32.mrf.mxu1 }
 0x3cd   : > { %v3933_v6 = vpop.f32.mrf.mxu3  ;;  %v7682_v60 = vmul.f32 %v11324_v59, %v7629_v62  ;;  %v3669_v27 = vpop.f32.mrf.mxu0 }
 0x3ce   : > { %v3934_v43 = vadd.f32 %v3933_v6, %v3845_v47  ;;  %v3759_v28 = vadd.f32 %v3758_v58, %v3669_v27  ;;  %4073 = vmatmul.bf16.gmra.mxu1 %v12165_v33  ;;  %v14567_v27 = vld [vmem:[#allocation36_spill] sm:$0xff]  ;;  %v14569_v58 = vld [vmem:[#allocation38_spill] sm:$0xff] }
 0x3cf   : > { %v7714_v48 = vadd.f32 %v7682_v60, %v7586_v37 }
 0x3d0   : > { %3984 = vmatmul.bf16.gmra.mxu0 %v12163_v32  ;;  %v13093_v41 = vadd.f32 %v12875_v23, %v3934_v43  ;;  %4162 = vmatmul.bf16.gmra.mxu2 %v12167_v34  ;;  %v14568_v43 = vld [vmem:[#allocation37_spill] sm:$0xff] }
 0x3d1   : > { %v10697_v61 = vpack.c.bf16 %v7715_v42, %v7714_v48  ;;  %v11325_v42 = vld [vmem:[#allocation11 + $0x60] sm:$0xff] }
 0x3d2   : > { %4251 = vmatmul.bf16.gmra.mxu3 %v12169_v35  ;;  %7658 = vrot.lane.b32.xlu1 %v13093_v41, %s11873_s2 }
 0x3d3   : > { %11055 = vst [vmem:[%s12470_s3 + $0x128] sm:$0xff] %v10697_v61   ;;  %v3847_v38 = vpop.f32.mrf.mxu2  ;;  %v9488_v61 = vld [vmem:[#allocation6 + $0x4d0] sm:$0xf] }
 0x3d4   : > { %v3848_v21 = vadd.f32 %v3847_v38, %v3759_v28  ;;  %v3760_v52 = vpop.f32.mrf.mxu1  ;;  %v10248_v38 = vld [vmem:[#allocation6 + $0x4ec] sm:$0xf0] }
 0x3d5   : > { %v3936_v17 = vpop.f32.mrf.mxu3  ;;  %v3671_v45 = vpop.f32.mrf.mxu0 }
 0x3d6   : > { %v3937_v4 = vadd.f32 %v3936_v17, %v3848_v21  ;;  %v3761_v57 = vadd.f32 %v3760_v52, %v3671_v45  ;;  %v9744_v21 = vld [vmem:[#allocation6 + $0x6d0] sm:$0xf]  ;;  %v9489_v52 = vor.u32 %v10248_v38, %v9488_v61 }
 0x3d7   : > { %v8976_v61 = vld [vmem:[#allocation6 + $0xd0] sm:$0xf] }
 0x3d8   : > { %v13102_v51 = vadd.f32 %v12875_v23, %v3937_v4  ;;  %4489 = vmatpush.bf16.msra.mxu2 %v9489_v52  ;;  %v10120_v38 = vld [vmem:[#allocation6 + $0xec] sm:$0xf0] }
 0x3da   : > { %7660 = vrot.lane.b32.xlu2 %v13102_v51, %s11873_s2 }
 0x3db   : > { %v3849_v47 = vpop.f32.mrf.mxu2 }
 0x3dc   : > { %v3850_v6 = vadd.f32 %v3849_v47, %v3761_v57  ;;  %v3763_v53 = vpop.f32.mrf.mxu1  ;;  %v7633_v59 = vpop.permute.xlu0 %7632  ;;  %v10312_v57 = vld [vmem:[#allocation6 + $0x6ec] sm:$0xf0]  ;;  %v11326_v47 = vld [vmem:[#allocation9 + $0x60] sm:$0xff] }
 0x3dd   : > { %v3938_v62 = vpop.f32.mrf.mxu3  ;;  %v3674_v40 = vpop.f32.mrf.mxu0  ;;  %v7684_v48 = vmul.f32 %v11325_v42, %v7633_v59 }
 0x3de   : > { %v3939_v10 = vadd.f32 %v3938_v62, %v3850_v6  ;;  %v3764_v60 = vadd.f32 %v3763_v53, %v3674_v40  ;;  %4078 = vmatmul.bf16.gmra.mxu1 %v14567_v27  ;;  %v7588_v6 = vmul.f32 %v11326_v47, %v12982_v29  ;;  %v11327_v62 = vld [vmem:[#allocation9 + $0x68] sm:$0xff] }
 0x3df   : > { %v7589_v40 = vmul.f32 %v11327_v62, %v12989_v19  ;;  %v9232_v29 = vld [vmem:[#allocation6 + $0x2d0] sm:$0xf] }
 0x3e0   : > { %3989 = vmatmul.bf16.gmra.mxu0 %v12183_v44  ;;  %v13108_v37 = vadd.f32 %v12875_v23, %v3939_v10  ;;  %4167 = vmatmul.bf16.gmra.mxu2 %v14568_v43  ;;  %v11328_v10 = vld [vmem:[#allocation11 + $0x68] sm:$0xff]  ;;  %v9745_v43 = vor.u32 %v10312_v57, %v9744_v21  ;;  %v7716_v27 = vadd.f32 %v7684_v48, %v7588_v6  ;;  %v7637_v6 = vpop.permute.xlu2 %7636 }
 0x3e1   : > { %v8977_v44 = vor.u32 %v10120_v38, %v8976_v61  ;;  %v10184_v19 = vld [vmem:[#allocation6 + $0x2ec] sm:$0xf0] }
 0x3e2   : > { %4256 = vmatmul.bf16.gmra.mxu3 %v14569_v58  ;;  %7662 = vrot.lane.b32.xlu0 %v13108_v37, %s11873_s2  ;;  %v9233_v21 = vor.u32 %v10184_v19, %v9232_v29  ;;  %v14570_v57 = vld [vmem:[#allocation39_spill] sm:$0xff]  ;;  %v11330_v29 = vld [vmem:[#allocation9 + $0x70] sm:$0xff]  ;;  %v11331_v19 = vld [vmem:[#allocation9 + $0x78] sm:$0xff] }
 0x3e3   : > { %v3852_v28 = vpop.f32.mrf.mxu2  ;;  %4578 = vmatpush.bf16.msra.mxu3 %v9745_v43  ;;  %4311 = vmatpush.bf16.msra.mxu0 %v8977_v44  ;;  %v11329_v44 = vld [vmem:[#allocation11 + $0x70] sm:$0xff] }
 0x3e4   : > { %v3853_v17 = vadd.f32 %v3852_v28, %v3764_v60  ;;  %v7635_v4 = vpop.permute.xlu1 %7634  ;;  %v3765_v42 = vpop.f32.mrf.mxu1  ;;  %4400 = vmatpush.bf16.msra.mxu1 %v9233_v21  ;;  %v11332_v21 = vld [vmem:[#allocation11 + $0x78] sm:$0xff] }
 0x3e5   : > { %v3941_v45 = vpop.f32.mrf.mxu3  ;;  %v7685_v53 = vmul.f32 %v11328_v10, %v7635_v4  ;;  %v3676_v58 = vpop.f32.mrf.mxu0  ;;  %v14572_v10 = vld [vmem:[#allocation41_spill] sm:$0xff] }
 0x3e6   : > { %v3942_v59 = vadd.f32 %v3941_v45, %v3853_v17  ;;  %v3766_v62 = vadd.f32 %v3765_v42, %v3676_v58 }
 0x3e7   : > { %v7717_v60 = vadd.f32 %v7685_v53, %v7589_v40  ;;  %v14571_v40 = vld [vmem:[#allocation40_spill] sm:$0xff]  ;;  %v14573_v53 = vld [vmem:[#allocation42_spill] sm:$0xff] }
 0x3e8   : > { %v13118_v28 = vadd.f32 %v12875_v23, %v3942_v59  ;;  %v7686_v59 = vmul.f32 %v11329_v44, %v7637_v6 }
 0x3e9   : > { %v10702_v47 = vpack.c.bf16 %v7717_v60, %v7716_v27 }
 0x3ea   : > { %7664 = vrot.lane.b32.xlu1 %v13118_v28, %s11873_s2 }
 0x3eb   : > { %11056 = vst [vmem:[%s12470_s3 + $0x130] sm:$0xff] %v10702_v47   ;;  %v3854_v17 = vpop.f32.mrf.mxu2  ;;  %v7590_v47 = vmul.f32 %v11330_v29, %v12999_v9  ;;  %v11333_v9 = vld [vmem:[#allocation11 + $0x88] sm:$0xff] }
 0x3ec   : > { %v3855_v48 = vadd.f32 %v3854_v17, %v3766_v62  ;;  %v3768_v52 = vpop.f32.mrf.mxu1  ;;  %v7591_v62 = vmul.f32 %v11331_v19, %v13006_v30 }
 0x3ed   : > { %v3943_v45 = vpop.f32.mrf.mxu3  ;;  %v3679_v43 = vpop.f32.mrf.mxu0 }
 0x3ee   : > { %v3944_v4 = vadd.f32 %v3943_v45, %v3855_v48  ;;  %v3769_v58 = vadd.f32 %v3768_v52, %v3679_v43  ;;  %4083 = vmatmul.bf16.gmra.mxu1 %v14571_v40 }
 0x3f0   : > { %3994 = vmatmul.bf16.gmra.mxu0 %v14570_v57  ;;  %v13125_v27 = vadd.f32 %v12875_v23, %v3944_v4  ;;  %4172 = vmatmul.bf16.gmra.mxu2 %v14572_v10  ;;  %v7718_v4 = vadd.f32 %v7686_v59, %v7590_v47 }
 0x3f2   : > { %4261 = vmatmul.bf16.gmra.mxu3 %v14573_v53  ;;  %7666 = vrot.lane.b32.xlu2 %v13125_v27, %s11873_s2  ;;  %v7643_v53 = vpop.permute.xlu2 %7642 }
 0x3f3   : > { %v3857_v42 = vpop.f32.mrf.mxu2 }
 0x3f4   : > { %v3858_v60 = vadd.f32 %v3857_v42, %v3769_v58  ;;  %v7639_v38 = vpop.permute.xlu0 %7638  ;;  %v3770_v43 = vpop.f32.mrf.mxu1  ;;  %v7689_v42 = vmul.f32 %v11333_v9, %v7643_v53  ;;  %v14574_v53 = vld [vmem:[#allocation43_spill] sm:$0xff] }
 0x3f5   : > { %v3946_v61 = vpop.f32.mrf.mxu3  ;;  %v7687_v17 = vmul.f32 %v11332_v21, %v7639_v38  ;;  %v3681_v48 = vpop.f32.mrf.mxu0 }
 0x3f6   : > { %v3947_v45 = vadd.f32 %v3946_v61, %v3858_v60  ;;  %v3771_v44 = vadd.f32 %v3770_v43, %v3681_v48  ;;  %v11334_v60 = vld [vmem:[#allocation9 + $0x88] sm:$0xff]  ;;  %v11335_v61 = vld [vmem:[#allocation9 + $0x80] sm:$0xff] }
 0x3f7   : > { %v7719_v52 = vadd.f32 %v7687_v17, %v7591_v62  ;;  %v7593_v59 = vmul.f32 %v11334_v60, %v13023_v63  ;;  %v7592_v47 = vmul.f32 %v11335_v61, %v13016_v5  ;;  %v11336_v62 = vld [vmem:[#allocation11 + $0x80] sm:$0xff]  ;;  %v14576_v63 = vld [vmem:[#allocation45_spill] sm:$0xff] }
 0x3f8   : > { %v13135_v6 = vadd.f32 %v12875_v23, %v3947_v45  ;;  %v14577_v5 = vld [vmem:[#allocation46_spill] sm:$0xff] }
 0x3f9   : > { %v10707_v58 = vpack.c.bf16 %v7719_v52, %v7718_v4  ;;  %v7721_v43 = vadd.f32 %v7689_v42, %v7593_v59 }
 0x3fa   : > { %7668 = vrot.lane.b32.xlu0 %v13135_v6, %s11873_s2 }
 0x3fb   : > { %11057 = vst [vmem:[%s12470_s3 + $0x138] sm:$0xff] %v10707_v58   ;;  %v3859_v30 = vpop.f32.mrf.mxu2 }
 0x3fc   : > { %v3860_v29 = vadd.f32 %v3859_v30, %v3771_v44  ;;  %v7641_v19 = vpop.permute.xlu1 %7640  ;;  %v4049_v45 = vpop.f32.mrf.mxu1  ;;  %v14575_v44 = vld [vmem:[#allocation44_spill] sm:$0xff]  ;;  %v9456_v30 = vld [vmem:[#allocation6 + $0x490] sm:$0xf] }
 0x3fd   : > { %v3948_v38 = vpop.f32.mrf.mxu3  ;;  %v7688_v21 = vmul.f32 %v11336_v62, %v7641_v19  ;;  %v3960_v17 = vpop.f32.mrf.mxu0  ;;  %v10240_v19 = vld [vmem:[#allocation6 + $0x4ac] sm:$0xf0] }
 0x3fe   : > { %v3949_v48 = vadd.f32 %v3948_v38, %v3860_v29  ;;  %v4050_v58 = vadd.f32 %v4049_v45, %v3960_v17  ;;  %4088 = vmatmul.bf16.gmra.mxu1 %v14575_v44  ;;  %v9712_v29 = vld [vmem:[#allocation6 + $0x690] sm:$0xf]  ;;  %v9457_v42 = vor.u32 %v10240_v19, %v9456_v30 }
 0x3ff   : > { %v7720_v4 = vadd.f32 %v7688_v21, %v7592_v47  ;;  %v10304_v38 = vld [vmem:[#allocation6 + $0x6ac] sm:$0xf0]  ;;  %v11337_v47 = vld [vmem:[#allocation8] sm:$0xff] }
 0x400   : > { %3999 = vmatmul.bf16.gmra.mxu0 %v14574_v53  ;;  %v13144_v52 = vadd.f32 %v12875_v23, %v3949_v48  ;;  %4177 = vmatmul.bf16.gmra.mxu2 %v14576_v63  ;;  %v9713_v23 = vor.u32 %v10304_v38, %v9712_v29  ;;  %v13152_v62 = vperm.slane %v11337_v47, 3  ;;  %v9200_v30 = vld [vmem:[#allocation6 + $0x290] sm:$0xf] }
 0x401   : > { %v10712_v9 = vpack.c.bf16 %v7721_v43, %v7720_v4  ;;  %4490 = vmatpush.bf16.msra.mxu2 %v9457_v42  ;;  %v8944_v43 = vld [vmem:[#allocation6 + $0x90] sm:$0xf] }
 0x402   : > { %4266 = vmatmul.bf16.gmra.mxu3 %v14577_v5  ;;  %7670 = vrot.lane.b32.xlu1 %v13144_v52, %s11873_s2  ;;  %v10112_v4 = vld [vmem:[#allocation6 + $0xac] sm:$0xf0] }
 0x403   : > { %11058 = vst [vmem:[%s12470_s3 + $0x140] sm:$0xff] %v10712_v9   ;;  %v4138_v60 = vpop.f32.mrf.mxu2  ;;  %4579 = vmatpush.bf16.msra.mxu3 %v9713_v23  ;;  %v8945_v19 = vor.u32 %v10112_v4, %v8944_v43  ;;  %v10176_v9 = vld [vmem:[#allocation6 + $0x2ac] sm:$0xf0] }
 0x404   : > { %v4139_v59 = vadd.f32 %v4138_v60, %v4050_v58  ;;  %v4051_v48 = vpop.f32.mrf.mxu1  ;;  %v9201_v58 = vor.u32 %v10176_v9, %v9200_v30  ;;  %v10168_v53 = vld [vmem:[#allocation6 + $0x26c] sm:$0xf0] }
 0x405   : > { %v4227_v61 = vpop.f32.mrf.mxu3  ;;  %v3962_v21 = vpop.f32.mrf.mxu0  ;;  %4312 = vmatpush.bf16.msra.mxu0 %v8945_v19 }
 0x406   : > { %v4228_v17 = vadd.f32 %v4227_v61, %v4139_v59  ;;  %v4052_v5 = vadd.f32 %v4051_v48, %v3962_v21  ;;  %4401 = vmatpush.bf16.msra.mxu1 %v9201_v58  ;;  %v14578_v21 = vld [vmem:[#allocation49_spill] sm:$0xff]  ;;  %v14579_v48 = vld [vmem:[#allocation50_spill] sm:$0xff]  ;;  %v11339_v58 = vld [vmem:[#allocation9 + $0x90] sm:$0xff] }
 0x408   : > { %v13155_v45 = vadd.f32 %v13152_v62, %v4228_v17 }
 0x40a   : > { %7833 = vrot.lane.b32.xlu2 %v13155_v45, %s11873_s2 }
 0x40b   : > { %v4140_v29 = vpop.f32.mrf.mxu2 }
 0x40c   : > { %v4141_v42 = vadd.f32 %v4140_v29, %v4052_v5  ;;  %v4054_v59 = vpop.f32.mrf.mxu1  ;;  %v7645_v47 = vpop.permute.xlu0 %7644  ;;  %v11338_v5 = vld [vmem:[#allocation11 + $0x90] sm:$0xff]  ;;  %v7594_v29 = vmul.f32 %v11339_v58, %v13033_v16 }
 0x40d   : > { %v4229_v38 = vpop.f32.mrf.mxu3  ;;  %v3965_v60 = vpop.f32.mrf.mxu0  ;;  %v7690_v43 = vmul.f32 %v11338_v5, %v7645_v47 }
 0x40e   : > { %v4230_v23 = vadd.f32 %v4229_v38, %v4141_v42  ;;  %v4055_v17 = vadd.f32 %v4054_v59, %v3965_v60  ;;  %4093 = vmatmul.bf16.gmra.mxu1 %v14539_v56  ;;  %v11340_v42 = vld [vmem:[#allocation9 + $0x98] sm:$0xff] }
 0x40f   : > { %v7595_v38 = vmul.f32 %v11340_v42, %v13042_v22  ;;  %v11341_v60 = vld [vmem:[#allocation11 + $0x98] sm:$0xff]  ;;  %v7722_v56 = vadd.f32 %v7690_v43, %v7594_v29  ;;  %v10232_v29 = vld [vmem:[#allocation6 + $0x46c] sm:$0xf0] }
 0x410   : > { %4004 = vmatmul.bf16.gmra.mxu0 %v14538_v7  ;;  %v13161_v61 = vadd.f32 %v13152_v62, %v4230_v23  ;;  %4182 = vmatmul.bf16.gmra.mxu2 %v14578_v21 }
 0x412   : > { %4271 = vmatmul.bf16.gmra.mxu3 %v14579_v48  ;;  %7835 = vrot.lane.b32.xlu0 %v13161_v61, %s11873_s2 }
 0x413   : > { %v4143_v4 = vpop.f32.mrf.mxu2 }
 0x414   : > { %v4144_v30 = vadd.f32 %v4143_v4, %v4055_v17  ;;  %v7647_v9 = vpop.permute.xlu1 %7646  ;;  %v4056_v21 = vpop.f32.mrf.mxu1 }
 0x415   : > { %v4232_v19 = vpop.f32.mrf.mxu3  ;;  %v7691_v23 = vmul.f32 %v11341_v60, %v7647_v9  ;;  %v3967_v59 = vpop.f32.mrf.mxu0  ;;  %v14580_v60 = vld [vmem:[#allocation51_spill] sm:$0xff] }
 0x416   : > { %v4233_v48 = vadd.f32 %v4232_v19, %v4144_v30  ;;  %v4057_v5 = vadd.f32 %v4056_v21, %v3967_v59  ;;  %v7649_v30 = vpop.permute.xlu2 %7648  ;;  %v14581_v19 = vld [vmem:[#allocation52_spill] sm:$0xff]  ;;  %v9424_v21 = vld [vmem:[#allocation6 + $0x450] sm:$0xf] }
 0x417   : > { %v7723_v7 = vadd.f32 %v7691_v23, %v7595_v38  ;;  %v9680_v38 = vld [vmem:[#allocation6 + $0x650] sm:$0xf]  ;;  %v9425_v23 = vor.u32 %v10232_v29, %v9424_v21 }
 0x418   : > { %v13171_v47 = vadd.f32 %v13152_v62, %v4233_v48  ;;  %v10296_v59 = vld [vmem:[#allocation6 + $0x66c] sm:$0xf0] }
 0x419   : > { %v10717_v17 = vpack.c.bf16 %v7723_v7, %v7722_v56  ;;  %v14582_v7 = vld [vmem:[#allocation53_spill] sm:$0xff]  ;;  %v14583_v56 = vld [vmem:[#allocation54_spill] sm:$0xff]  ;;  %4491 = vmatpush.bf16.msra.mxu2 %v9425_v23  ;;  %v8912_v23 = vld [vmem:[#allocation6 + $0x50] sm:$0xf] }
 0x41a   : > { %7837 = vrot.lane.b32.xlu1 %v13171_v47, %s11873_s2 }
 0x41b   : > { %11059 = vst [vmem:[%s12470_s3 + $0x148] sm:$0xff] %v10717_v17   ;;  %v4145_v16 = vpop.f32.mrf.mxu2  ;;  %v11342_v17 = vld [vmem:[#allocation11 + $0xa0] sm:$0xff] }
 0x41c   : > { %v4146_v4 = vadd.f32 %v4145_v16, %v4057_v5  ;;  %v4059_v9 = vpop.f32.mrf.mxu1  ;;  %v7692_v5 = vmul.f32 %v11342_v17, %v7649_v30 }
 0x41d   : > { %v4234_v58 = vpop.f32.mrf.mxu3  ;;  %v3970_v22 = vpop.f32.mrf.mxu0 }
 0x41e   : > { %v4235_v42 = vadd.f32 %v4234_v58, %v4146_v4  ;;  %v4060_v48 = vadd.f32 %v4059_v9, %v3970_v22  ;;  %4098 = vmatmul.bf16.gmra.mxu1 %v14581_v19  ;;  %v9681_v4 = vor.u32 %v10296_v59, %v9680_v38  ;;  %v11343_v9 = vld [vmem:[#allocation9 + $0xa0] sm:$0xff]  ;;  %v7655_v38 = vpop.permute.xlu2 %7654  ;;  %v10104_v59 = vld [vmem:[#allocation6 + $0x6c] sm:$0xf0] }
 0x420   : > { %4009 = vmatmul.bf16.gmra.mxu0 %v14580_v60  ;;  %v13178_v43 = vadd.f32 %v13152_v62, %v4235_v42  ;;  %4187 = vmatmul.bf16.gmra.mxu2 %v14582_v7  ;;  %v7596_v7 = vmul.f32 %v11343_v9, %v13051_v8  ;;  %v11345_v60 = vld [vmem:[#allocation11 + $0xa8] sm:$0xff]  ;;  %v8913_v9 = vor.u32 %v10104_v59, %v8912_v23 }
 0x421   : > { %4580 = vmatpush.bf16.msra.mxu3 %v9681_v4  ;;  %v14584_v59 = vld [vmem:[#allocation55_spill] sm:$0xff] }
 0x422   : > { %4276 = vmatmul.bf16.gmra.mxu3 %v14583_v56  ;;  %7839 = vrot.lane.b32.xlu2 %v13178_v43, %s11873_s2  ;;  %v11344_v56 = vld [vmem:[#allocation9 + $0xa8] sm:$0xff]  ;;  %v7724_v30 = vadd.f32 %v7692_v5, %v7596_v7 }
 0x423   : > { %v4148_v16 = vpop.f32.mrf.mxu2  ;;  %v7597_v19 = vmul.f32 %v11344_v56, %v13057_v39  ;;  %v11346_v56 = vld [vmem:[#allocation11 + $0xb8] sm:$0xff]  ;;  %4313 = vmatpush.bf16.msra.mxu0 %v8913_v9  ;;  %v14585_v9 = vld [vmem:[#allocation56_spill] sm:$0xff] }
 0x424   : > { %v4149_v58 = vadd.f32 %v4148_v16, %v4060_v48  ;;  %v7651_v42 = vpop.permute.xlu0 %7650  ;;  %v4061_v29 = vpop.f32.mrf.mxu1  ;;  %v9168_v16 = vld [vmem:[#allocation6 + $0x250] sm:$0xf]  ;;  %v7695_v4 = vmul.f32 %v11346_v56, %v7655_v38 }
 0x425   : > { %v4237_v22 = vpop.f32.mrf.mxu3  ;;  %v7693_v63 = vmul.f32 %v11345_v60, %v7651_v42  ;;  %v3972_v44 = vpop.f32.mrf.mxu0  ;;  %v9169_v60 = vor.u32 %v10168_v53, %v9168_v16  ;;  %v11348_v42 = vld [vmem:[#allocation9 + $0xb0] sm:$0xff] }
 0x426   : > { %v4238_v21 = vadd.f32 %v4237_v22, %v4149_v58  ;;  %v4062_v39 = vadd.f32 %v4061_v29, %v3972_v44  ;;  %v11347_v58 = vld [vmem:[#allocation9 + $0xb8] sm:$0xff]  ;;  %v11349_v44 = vld [vmem:[#allocation11 + $0xb0] sm:$0xff] }
 0x427   : > { %v7725_v17 = vadd.f32 %v7693_v63, %v7597_v19  ;;  %4402 = vmatpush.bf16.msra.mxu1 %v9169_v60  ;;  %v7599_v22 = vmul.f32 %v11347_v58, %v13074_v31  ;;  %v14586_v31 = vld [vmem:[#allocation57_spill] sm:$0xff] }
 0x428   : > { %v13188_v48 = vadd.f32 %v13152_v62, %v4238_v21  ;;  %v7598_v21 = vmul.f32 %v11348_v42, %v13067_v20  ;;  %v14587_v20 = vld [vmem:[#allocation58_spill] sm:$0xff] }
 0x429   : > { %v10722_v8 = vpack.c.bf16 %v7725_v17, %v7724_v30  ;;  %v7727_v38 = vadd.f32 %v7695_v4, %v7599_v22 }
 0x42a   : > { %7841 = vrot.lane.b32.xlu0 %v13188_v48, %s11873_s2 }
 0x42b   : > { %11060 = vst [vmem:[%s12470_s3 + $0x150] sm:$0xff] %v10722_v8   ;;  %v4150_v7 = vpop.f32.mrf.mxu2 }
 0x42c   : > { %v4151_v63 = vadd.f32 %v4150_v7, %v4062_v39  ;;  %v7653_v5 = vpop.permute.xlu1 %7652  ;;  %v4064_v17 = vpop.f32.mrf.mxu1 }
 0x42d   : > { %v4239_v19 = vpop.f32.mrf.mxu3  ;;  %v7694_v29 = vmul.f32 %v11349_v44, %v7653_v5  ;;  %v3975_v30 = vpop.f32.mrf.mxu0 }
 0x42e   : > { %v4240_v53 = vadd.f32 %v4239_v19, %v4151_v63  ;;  %v4065_v8 = vadd.f32 %v4064_v17, %v3975_v30  ;;  %4103 = vmatmul.bf16.gmra.mxu1 %v14585_v9 }
 0x42f   : > { %v7726_v23 = vadd.f32 %v7694_v29, %v7598_v21 }
 0x430   : > { %4014 = vmatmul.bf16.gmra.mxu0 %v14584_v59  ;;  %v13197_v16 = vadd.f32 %v13152_v62, %v4240_v53  ;;  %4192 = vmatmul.bf16.gmra.mxu2 %v14586_v31  ;;  %v14588_v53 = vld [vmem:[#allocation59_spill] sm:$0xff] }
 0x431   : > { %v10727_v39 = vpack.c.bf16 %v7727_v38, %v7726_v23 }
 0x432   : > { %4281 = vmatmul.bf16.gmra.mxu3 %v14587_v20  ;;  %7843 = vrot.lane.b32.xlu1 %v13197_v16, %s11873_s2 }
 0x433   : > { %11061 = vst [vmem:[%s12470_s3 + $0x158] sm:$0xff] %v10727_v39   ;;  %v4153_v60 = vpop.f32.mrf.mxu2  ;;  %v14590_v39 = vld [vmem:[#allocation61_spill] sm:$0xff] }
 0x434   : > { %v4154_v56 = vadd.f32 %v4153_v60, %v4065_v8  ;;  %v4066_v19 = vpop.f32.mrf.mxu1  ;;  %v14589_v8 = vld [vmem:[#allocation60_spill] sm:$0xff]  ;;  %v14591_v60 = vld [vmem:[#allocation62_spill] sm:$0xff] }
 0x435   : > { %v4242_v4 = vpop.f32.mrf.mxu3  ;;  %v3977_v7 = vpop.f32.mrf.mxu0 }
 0x436   : > { %v4243_v63 = vadd.f32 %v4242_v4, %v4154_v56  ;;  %v4067_v58 = vadd.f32 %v4066_v19, %v3977_v7  ;;  %v11350_v56 = vld [vmem:[#allocation11 + $0xc0] sm:$0xff]  ;;  %v10224_v19 = vld [vmem:[#allocation6 + $0x42c] sm:$0xf0] }
 0x438   : > { %v13206_v5 = vadd.f32 %v13152_v62, %v4243_v63  ;;  %v9392_v63 = vld [vmem:[#allocation6 + $0x410] sm:$0xf] }
 0x43a   : > { %7845 = vrot.lane.b32.xlu2 %v13206_v5, %s11873_s2 }
 0x43b   : > { %v4155_v22 = vpop.f32.mrf.mxu2 }
 0x43c   : > { %v4156_v42 = vadd.f32 %v4155_v22, %v4067_v58  ;;  %v4069_v30 = vpop.f32.mrf.mxu1  ;;  %v7657_v38 = vpop.permute.xlu0 %7656  ;;  %v9648_v58 = vld [vmem:[#allocation6 + $0x610] sm:$0xf] }
 0x43d   : > { %v4244_v21 = vpop.f32.mrf.mxu3  ;;  %v3980_v44 = vpop.f32.mrf.mxu0  ;;  %v7696_v4 = vmul.f32 %v11350_v56, %v7657_v38 }
 0x43e   : > { %v4245_v29 = vadd.f32 %v4244_v21, %v4156_v42  ;;  %v4070_v23 = vadd.f32 %v4069_v30, %v3980_v44  ;;  %4108 = vmatmul.bf16.gmra.mxu1 %v14589_v8  ;;  %v10288_v44 = vld [vmem:[#allocation6 + $0x62c] sm:$0xf0]  ;;  %v11351_v30 = vld [vmem:[#allocation9 + $0xc0] sm:$0xff] }
 0x43f   : > { %v7600_v8 = vmul.f32 %v11351_v30, %v13084_v46  ;;  %v9649_v9 = vor.u32 %v10288_v44, %v9648_v58  ;;  %v9136_v46 = vld [vmem:[#allocation6 + $0x210] sm:$0xf] }
 0x440   : > { %4019 = vmatmul.bf16.gmra.mxu0 %v14588_v53  ;;  %v13212_v17 = vadd.f32 %v13152_v62, %v4245_v29  ;;  %4197 = vmatmul.bf16.gmra.mxu2 %v14590_v39  ;;  %v9393_v29 = vor.u32 %v10224_v19, %v9392_v63  ;;  %v11352_v39 = vld [vmem:[#allocation9 + $0xc8] sm:$0xff] }
 0x441   : > { %v11353_v53 = vld [vmem:[#allocation11 + $0xc8] sm:$0xff]  ;;  %v7728_v59 = vadd.f32 %v7696_v4, %v7600_v8  ;;  %4581 = vmatpush.bf16.msra.mxu3 %v9649_v9 }
 0x442   : > { %4286 = vmatmul.bf16.gmra.mxu3 %v14591_v60  ;;  %7847 = vrot.lane.b32.xlu0 %v13212_v17, %s11873_s2  ;;  %v7601_v60 = vmul.f32 %v11352_v39, %v13093_v41  ;;  %v8880_v63 = vld [vmem:[#allocation6 + $0x10] sm:$0xf] }
 0x443   : > { %v4158_v7 = vpop.f32.mrf.mxu2  ;;  %4492 = vmatpush.bf16.msra.mxu2 %v9393_v29  ;;  %v10096_v19 = vld [vmem:[#allocation6 + $0x2c] sm:$0xf0] }
 0x444   : > { %v4159_v22 = vadd.f32 %v4158_v7, %v4070_v23  ;;  %v7659_v21 = vpop.permute.xlu1 %7658  ;;  %v4071_v56 = vpop.f32.mrf.mxu1  ;;  %v8881_v10 = vor.u32 %v10096_v19, %v8880_v63  ;;  %v10160_v41 = vld [vmem:[#allocation6 + $0x22c] sm:$0xf0]  ;;  %v11355_v63 = vld [vmem:[#allocation9 + $0xd0] sm:$0xff] }
 0x445   : > { %v4247_v42 = vpop.f32.mrf.mxu3  ;;  %v7697_v20 = vmul.f32 %v11353_v53, %v7659_v21  ;;  %v3982_v31 = vpop.f32.mrf.mxu0  ;;  %v9137_v53 = vor.u32 %v10160_v41, %v9136_v46  ;;  %v14593_v21 = vld [vmem:[#allocation66_spill] sm:$0xff]  ;;  %v7602_v19 = vmul.f32 %v11355_v63, %v13102_v51  ;;  %v11356_v46 = vld [vmem:[#allocation9 + $0xd8] sm:$0xff]  ;;  %v11358_v51 = vld [vmem:[#allocation11 + $0xe8] sm:$0xff] }
 0x446   : > { %v4248_v38 = vadd.f32 %v4247_v42, %v4159_v22  ;;  %v4072_v39 = vadd.f32 %v4071_v56, %v3982_v31  ;;  %4314 = vmatpush.bf16.msra.mxu0 %v8881_v10  ;;  %v7661_v22 = vpop.permute.xlu2 %7660  ;;  %v14592_v42 = vld [vmem:[#allocation65_spill] sm:$0xff]  ;;  %v11354_v10 = vld [vmem:[#allocation11 + $0xd0] sm:$0xff] }
 0x447   : > { %v7729_v23 = vadd.f32 %v7697_v20, %v7601_v60  ;;  %4403 = vmatpush.bf16.msra.mxu1 %v9137_v53  ;;  %v7698_v29 = vmul.f32 %v11354_v10, %v7661_v22  ;;  %v11357_v41 = vld [vmem:[#allocation11 + $0xd8] sm:$0xff] }
 0x448   : > { %v13222_v7 = vadd.f32 %v13152_v62, %v4248_v38 }
 0x449   : > { %v10732_v30 = vpack.c.bf16 %v7729_v23, %v7728_v59 }
 0x44a   : > { %7849 = vrot.lane.b32.xlu1 %v13222_v7, %s11873_s2 }
 0x44b   : > { %11062 = vst [vmem:[%s12470_s3 + $0x160] sm:$0xff] %v10732_v30   ;;  %v4160_v58 = vpop.f32.mrf.mxu2  ;;  %v7603_v30 = vmul.f32 %v11356_v46, %v13108_v37  ;;  %v11361_v46 = vld [vmem:[#allocation11 + $0xe0] sm:$0xff] }
 0x44c   : > { %v4161_v8 = vadd.f32 %v4160_v58, %v4072_v39  ;;  %v4074_v4 = vpop.f32.mrf.mxu1 }
 0x44d   : > { %v4249_v20 = vpop.f32.mrf.mxu3  ;;  %v3985_v9 = vpop.f32.mrf.mxu0 }
 0x44e   : > { %v4250_v60 = vadd.f32 %v4249_v20, %v4161_v8  ;;  %v4075_v31 = vadd.f32 %v4074_v4, %v3985_v9  ;;  %4113 = vmatmul.bf16.gmra.mxu1 %v14553_v18  ;;  %v7730_v20 = vadd.f32 %v7698_v29, %v7602_v19 }
 0x450   : > { %4024 = vmatmul.bf16.gmra.mxu0 %v14513_v11  ;;  %v13229_v59 = vadd.f32 %v13152_v62, %v4250_v60  ;;  %4202 = vmatmul.bf16.gmra.mxu2 %v14592_v42  ;;  %v7667_v60 = vpop.permute.xlu2 %7666 }
 0x451   : > { %v7701_v10 = vmul.f32 %v11358_v51, %v7667_v60  ;;  %v10276_v51 = vld [vmem:[#allocation6 + $0x5d4] sm:$0xf] }
 0x452   : > { %4291 = vmatmul.bf16.gmra.mxu3 %v14593_v21  ;;  %7851 = vrot.lane.b32.xlu2 %v13229_v59, %s11873_s2  ;;  %v9330_v21 = vld [vmem:[#allocation6 + $0x3b0] sm:$0xf0] }
 0x453   : > { %v4163_v44 = vpop.f32.mrf.mxu2 }
 0x454   : > { %v4164_v38 = vadd.f32 %v4163_v44, %v4075_v31  ;;  %v7663_v23 = vpop.permute.xlu0 %7662  ;;  %v4076_v8 = vpop.f32.mrf.mxu1 }
 0x455   : > { %v4252_v56 = vpop.f32.mrf.mxu3  ;;  %v7699_v39 = vmul.f32 %v11357_v41, %v7663_v23  ;;  %v3987_v53 = vpop.f32.mrf.mxu0 }
 0x456   : > { %v4253_v58 = vadd.f32 %v4252_v56, %v4164_v38  ;;  %v4077_v31 = vadd.f32 %v4076_v8, %v3987_v53  ;;  %v11359_v38 = vld [vmem:[#allocation9 + $0xe8] sm:$0xff]  ;;  %v11360_v56 = vld [vmem:[#allocation9 + $0xe0] sm:$0xff] }
 0x457   : > { %v7731_v9 = vadd.f32 %v7699_v39, %v7603_v30  ;;  %v7605_v29 = vmul.f32 %v11359_v38, %v13125_v27  ;;  %v7604_v19 = vmul.f32 %v11360_v56, %v13118_v28  ;;  %v14596_v27 = vld [vmem:[#allocation69_spill] sm:$0xff]  ;;  %v14597_v28 = vld [vmem:[#allocation70_spill] sm:$0xff] }
 0x458   : > { %v13239_v4 = vadd.f32 %v13152_v62, %v4253_v58 }
 0x459   : > { %v10737_v22 = vpack.c.bf16 %v7731_v9, %v7730_v20  ;;  %v7733_v58 = vadd.f32 %v7701_v10, %v7605_v29  ;;  %v14594_v20 = vld [vmem:[#allocation67_spill] sm:$0xff] }
 0x45a   : > { %7853 = vrot.lane.b32.xlu0 %v13239_v4, %s11873_s2 }
 0x45b   : > { %11063 = vst [vmem:[%s12470_s3 + $0x168] sm:$0xff] %v10737_v22   ;;  %v4165_v37 = vpop.f32.mrf.mxu2  ;;  %v14595_v22 = vld [vmem:[#allocation68_spill] sm:$0xff] }
 0x45c   : > { %v4166_v44 = vadd.f32 %v4165_v37, %v4077_v31  ;;  %v7665_v63 = vpop.permute.xlu1 %7664  ;;  %v4079_v53 = vpop.f32.mrf.mxu1  ;;  %v9618_v37 = vld [vmem:[#allocation6 + $0x5f0] sm:$0xf0] }
 0x45d   : > { %v4254_v23 = vpop.f32.mrf.mxu3  ;;  %v7700_v30 = vmul.f32 %v11361_v46, %v7665_v63  ;;  %v3990_v41 = vpop.f32.mrf.mxu0  ;;  %v9621_v10 = vor.u32 %v10276_v51, %v9618_v37 }
 0x45e   : > { %v4255_v39 = vadd.f32 %v4254_v23, %v4166_v44  ;;  %v4080_v60 = vadd.f32 %v4079_v53, %v3990_v41  ;;  %4118 = vmatmul.bf16.gmra.mxu1 %v14595_v22  ;;  %v10340_v44 = vld [vmem:[#allocation6 + $0x7d4] sm:$0xf] }
 0x45f   : > { %v7732_v8 = vadd.f32 %v7700_v30, %v7604_v19  ;;  %v9874_v23 = vld [vmem:[#allocation6 + $0x7f0] sm:$0xf0]  ;;  %4841 = vmatpush.bf16.msrb.mxu2 %v9621_v10 }
 0x460   : > { %4029 = vmatmul.bf16.gmra.mxu0 %v14594_v20  ;;  %v13248_v9 = vadd.f32 %v13152_v62, %v4255_v39  ;;  %4207 = vmatmul.bf16.gmra.mxu2 %v14596_v27  ;;  %v9877_v38 = vor.u32 %v10340_v44, %v9874_v23  ;;  %v10148_v39 = vld [vmem:[#allocation6 + $0x1d4] sm:$0xf] }
 0x461   : > { %v10742_v31 = vpack.c.bf16 %v7733_v58, %v7732_v8  ;;  %v9106_v53 = vld [vmem:[#allocation6 + $0x1f0] sm:$0xf0] }
 0x462   : > { %4296 = vmatmul.bf16.gmra.mxu3 %v14597_v28  ;;  %7855 = vrot.lane.b32.xlu1 %v13248_v9, %s11873_s2  ;;  %v10212_v58 = vld [vmem:[#allocation6 + $0x3d4] sm:$0xf]  ;;  %v9109_v8 = vor.u32 %v10148_v39, %v9106_v53  ;;  %v11362_v39 = vld [vmem:[#allocation11 + $0xf0] sm:$0xff] }
 0x463   : > { %11064 = vst [vmem:[%s12470_s3 + $0x170] sm:$0xff] %v10742_v31   ;;  %v4168_v63 = vpop.f32.mrf.mxu2  ;;  %4930 = vmatpush.bf16.msrb.mxu3 %v9877_v38  ;;  %v9362_v28 = vld [vmem:[#allocation6 + $0x3f0] sm:$0xf0]  ;;  %v14598_v38 = vld [vmem:[#allocation72_spill] sm:$0xff] }
 0x464   : > { %v4169_v29 = vadd.f32 %v4168_v63, %v4080_v60  ;;  %v4081_v30 = vpop.f32.mrf.mxu1  ;;  %v9365_v31 = vor.u32 %v10212_v58, %v9362_v28  ;;  %4663 = vmatpush.bf16.msrb.mxu0 %v9109_v8  ;;  %v14601_v28 = vld [vmem:[#allocation75_spill] sm:$0xff] }
 0x465   : > { %v4257_v56 = vpop.f32.mrf.mxu3  ;;  %v3992_v19 = vpop.f32.mrf.mxu0 }
 0x466   : > { %v4258_v46 = vadd.f32 %v4257_v56, %v4169_v29  ;;  %v4082_v51 = vadd.f32 %v4081_v30, %v3992_v19  ;;  %4752 = vmatpush.bf16.msrb.mxu1 %v9365_v31  ;;  %v14599_v19 = vld [vmem:[#allocation73_spill] sm:$0xff]  ;;  %v14600_v30 = vld [vmem:[#allocation74_spill] sm:$0xff] }
 0x468   : > { %v13257_v41 = vadd.f32 %v13152_v62, %v4258_v46 }
 0x46a   : > { %7857 = vrot.lane.b32.xlu2 %v13257_v41, %s11873_s2 }
 0x46b   : > { %v4170_v60 = vpop.f32.mrf.mxu2 }
 0x46c   : > { %v4171_v37 = vadd.f32 %v4170_v60, %v4082_v51  ;;  %v4084_v63 = vpop.f32.mrf.mxu1  ;;  %v7669_v56 = vpop.permute.xlu0 %7668  ;;  %v11363_v60 = vld [vmem:[#allocation9 + $0xf0] sm:$0xff] }
 0x46d   : > { %v4259_v44 = vpop.f32.mrf.mxu3  ;;  %v3995_v10 = vpop.f32.mrf.mxu0  ;;  %v7702_v53 = vmul.f32 %v11362_v39, %v7669_v56 }
 0x46e   : > { %v4260_v23 = vadd.f32 %v4259_v44, %v4171_v37  ;;  %v4085_v46 = vadd.f32 %v4084_v63, %v3995_v10  ;;  %4123 = vmatmul.bf16.gmra.mxu1 %v14599_v19  ;;  %v7606_v37 = vmul.f32 %v11363_v60, %v13135_v6  ;;  %v11364_v44 = vld [vmem:[#allocation9 + $0xf8] sm:$0xff] }
 0x46f   : > { %v7607_v10 = vmul.f32 %v11364_v44, %v13144_v52 }
 0x470   : > { %4034 = vmatmul.bf16.gmra.mxu0 %v14598_v38  ;;  %v13263_v29 = vadd.f32 %v13152_v62, %v4260_v23  ;;  %4212 = vmatmul.bf16.gmra.mxu2 %v14600_v30  ;;  %v11365_v23 = vld [vmem:[#allocation11 + $0xf8] sm:$0xff]  ;;  %v7734_v38 = vadd.f32 %v7702_v53, %v7606_v37  ;;  %v10332_v37 = vld [vmem:[#allocation6 + $0x794] sm:$0xf] }
 0x472   : > { %4301 = vmatmul.bf16.gmra.mxu3 %v14601_v28  ;;  %7859 = vrot.lane.b32.xlu0 %v13263_v29, %s11873_s2 }
 0x473   : > { %v4173_v58 = vpop.f32.mrf.mxu2 }
 0x474   : > { %v4174_v8 = vadd.f32 %v4173_v58, %v4085_v46  ;;  %v7671_v31 = vpop.permute.xlu1 %7670  ;;  %v4086_v19 = vpop.f32.mrf.mxu1 }
 0x475   : > { %v4262_v51 = vpop.f32.mrf.mxu3  ;;  %v7703_v63 = vmul.f32 %v11365_v23, %v7671_v31  ;;  %v3997_v30 = vpop.f32.mrf.mxu0  ;;  %v14602_v23 = vld [vmem:[#allocation22_spill] sm:$0xff] }
 0x476   : > { %v4263_v28 = vadd.f32 %v4262_v51, %v4174_v8  ;;  %v4087_v39 = vadd.f32 %v4086_v19, %v3997_v30  ;;  %v7834_v8 = vpop.permute.xlu2 %7833  ;;  %v14603_v51 = vld [vmem:[#allocation23_spill] sm:$0xff] }
 0x477   : > { %v7735_v27 = vadd.f32 %v7703_v63, %v7607_v10  ;;  %v10268_v19 = vld [vmem:[#allocation6 + $0x594] sm:$0xf] }
 0x478   : > { %v13273_v56 = vadd.f32 %v13152_v62, %v4263_v28  ;;  %v9586_v30 = vld [vmem:[#allocation6 + $0x5b0] sm:$0xf0] }
 0x479   : > { %v10747_v46 = vpack.c.bf16 %v7735_v27, %v7734_v38  ;;  %v14604_v27 = vld [vmem:[#allocation24_spill] sm:$0xff]  ;;  %v14605_v38 = vld [vmem:[#allocation25_spill] sm:$0xff]  ;;  %v9589_v10 = vor.u32 %v10268_v19, %v9586_v30  ;;  %v9842_v63 = vld [vmem:[#allocation6 + $0x7b0] sm:$0xf0] }
 0x47a   : > { %7861 = vrot.lane.b32.xlu1 %v13273_v56, %s11873_s2 }
 0x47b   : > { %11065 = vst [vmem:[%s12470_s3 + $0x178] sm:$0xff] %v10747_v46   ;;  %v4175_v6 = vpop.f32.mrf.mxu2  ;;  %v11366_v46 = vld [vmem:[#allocation11] sm:$0xff]  ;;  %4842 = vmatpush.bf16.msrb.mxu2 %v9589_v10  ;;  %v10140_v10 = vld [vmem:[#allocation6 + $0x194] sm:$0xf] }
 0x47c   : > { %v4176_v58 = vadd.f32 %v4175_v6, %v4087_v39  ;;  %v4089_v31 = vpop.f32.mrf.mxu1  ;;  %v7897_v39 = vmul.f32 %v11366_v46, %v7834_v8 }
 0x47d   : > { %v4264_v60 = vpop.f32.mrf.mxu3  ;;  %v4000_v52 = vpop.f32.mrf.mxu0 }
 0x47e   : > { %v4265_v44 = vadd.f32 %v4264_v60, %v4176_v58  ;;  %v4090_v28 = vadd.f32 %v4089_v31, %v4000_v52  ;;  %4404 = vmatmul.bf16.vlgmr.msra.gmra.mxu1 %v14603_v51  ;;  %v9845_v58 = vor.u32 %v10332_v37, %v9842_v63  ;;  %v11367_v31 = vld [vmem:[#allocation9] sm:$0xff]  ;;  %v7840_v37 = vpop.permute.xlu2 %7839  ;;  %v9074_v63 = vld [vmem:[#allocation6 + $0x1b0] sm:$0xf0] }
 0x480   : > { %4315 = vmatmul.bf16.vlgmr.msra.gmra.mxu0 %v14602_v23  ;;  %v13280_v53 = vadd.f32 %v13152_v62, %v4265_v44  ;;  %4493 = vmatmul.bf16.vlgmr.msra.gmra.mxu2 %v14604_v27  ;;  %v7801_v27 = vmul.f32 %v11367_v31, %v13155_v45  ;;  %v11369_v23 = vld [vmem:[#allocation11 + $0x8] sm:$0xff]  ;;  %v9077_v31 = vor.u32 %v10140_v10, %v9074_v63 }
 0x481   : > { %4931 = vmatpush.bf16.msrb.mxu3 %v9845_v58 }
 0x482   : > { %4582 = vmatmul.bf16.vlgmr.msra.gmra.mxu3 %v14605_v38  ;;  %7863 = vrot.lane.b32.xlu2 %v13280_v53, %s11873_s2  ;;  %v11368_v38 = vld [vmem:[#allocation9 + $0x8] sm:$0xff]  ;;  %v7929_v8 = vadd.f32 %v7897_v39, %v7801_v27 }
 0x483   : > { %v4178_v6 = vpop.f32.mrf.mxu2  ;;  %v7802_v51 = vmul.f32 %v11368_v38, %v13161_v61  ;;  %v11370_v38 = vld [vmem:[#allocation11 + $0x18] sm:$0xff]  ;;  %4664 = vmatpush.bf16.msrb.mxu0 %v9077_v31 }
 0x484   : > { %v4179_v60 = vadd.f32 %v4178_v6, %v4090_v28  ;;  %v7836_v44 = vpop.permute.xlu0 %7835  ;;  %v4091_v30 = vpop.f32.mrf.mxu1  ;;  %v10204_v6 = vld [vmem:[#allocation6 + $0x394] sm:$0xf]  ;;  %v7900_v58 = vmul.f32 %v11370_v38, %v7840_v37 }
 0x485   : > { %v4267_v52 = vpop.f32.mrf.mxu3  ;;  %v7898_v22 = vmul.f32 %v11369_v23, %v7836_v44  ;;  %v4002_v20 = vpop.f32.mrf.mxu0  ;;  %v9333_v23 = vor.u32 %v10204_v6, %v9330_v21  ;;  %v11372_v44 = vld [vmem:[#allocation9 + $0x10] sm:$0xff] }
 0x486   : > { %v4268_v19 = vadd.f32 %v4267_v52, %v4179_v60  ;;  %v4092_v61 = vadd.f32 %v4091_v30, %v4002_v20  ;;  %v11371_v60 = vld [vmem:[#allocation9 + $0x18] sm:$0xff]  ;;  %v11373_v20 = vld [vmem:[#allocation11 + $0x10] sm:$0xff] }
 0x487   : > { %v7930_v46 = vadd.f32 %v7898_v22, %v7802_v51  ;;  %4753 = vmatpush.bf16.msrb.mxu1 %v9333_v23  ;;  %v7804_v52 = vmul.f32 %v11371_v60, %v13178_v43 }
 0x488   : > { %v13290_v28 = vadd.f32 %v13152_v62, %v4268_v19  ;;  %v7803_v19 = vmul.f32 %v11372_v44, %v13171_v47 }
 0x489   : > { %v10752_v45 = vpack.c.bf16 %v7930_v46, %v7929_v8  ;;  %v7932_v37 = vadd.f32 %v7900_v58, %v7804_v52 }
 0x48a   : > { %7865 = vrot.lane.b32.xlu0 %v13290_v28, %s11873_s2 }
 0x48b   : > { %11066 = vst [vmem:[%s12470_s3 + $0x180] sm:$0xff] %v10752_v45   ;;  %v4180_v27 = vpop.f32.mrf.mxu2 }
 0x48c   : > { %v4181_v22 = vadd.f32 %v4180_v27, %v4092_v61  ;;  %v7838_v39 = vpop.permute.xlu1 %7837  ;;  %v4094_v46 = vpop.f32.mrf.mxu1 }
 0x48d   : > { %v4269_v51 = vpop.f32.mrf.mxu3  ;;  %v7899_v30 = vmul.f32 %v11373_v20, %v7838_v39  ;;  %v4005_v8 = vpop.f32.mrf.mxu0 }
 0x48e   : > { %v4270_v21 = vadd.f32 %v4269_v51, %v4181_v22  ;;  %v4095_v6 = vadd.f32 %v4094_v46, %v4005_v8  ;;  %4409 = vmatmul.bf16.gmra.mxu1 %v12085_v13  ;;  %v11374_v8 = vld [vmem:[#allocation11 + $0x20] sm:$0xff] }
 0x48f   : > { %v7931_v10 = vadd.f32 %v7899_v30, %v7803_v19 }
 0x490   : > { %4320 = vmatmul.bf16.gmra.mxu0 %v12083_v12  ;;  %v13299_v63 = vadd.f32 %v13152_v62, %v4270_v21  ;;  %4498 = vmatmul.bf16.gmra.mxu2 %v12087_v14 }
 0x491   : > { %v10757_v43 = vpack.c.bf16 %v7932_v37, %v7931_v10  ;;  %v10260_v37 = vld [vmem:[#allocation6 + $0x554] sm:$0xf] }
 0x492   : > { %4587 = vmatmul.bf16.gmra.mxu3 %v12089_v15  ;;  %7867 = vrot.lane.b32.xlu1 %v13299_v63, %s11873_s2  ;;  %v9554_v10 = vld [vmem:[#allocation6 + $0x570] sm:$0xf0] }
 0x493   : > { %11067 = vst [vmem:[%s12470_s3 + $0x188] sm:$0xff] %v10757_v43   ;;  %v4183_v47 = vpop.f32.mrf.mxu2 }
 0x494   : > { %v4184_v45 = vadd.f32 %v4183_v47, %v4095_v6  ;;  %v4096_v38 = vpop.f32.mrf.mxu1  ;;  %v10324_v6 = vld [vmem:[#allocation6 + $0x754] sm:$0xf] }
 0x495   : > { %v4272_v31 = vpop.f32.mrf.mxu3  ;;  %v4007_v61 = vpop.f32.mrf.mxu0 }
 0x496   : > { %v4273_v23 = vadd.f32 %v4272_v31, %v4184_v45  ;;  %v4097_v27 = vadd.f32 %v4096_v38, %v4007_v61  ;;  %v9557_v31 = vor.u32 %v10260_v37, %v9554_v10  ;;  %v9810_v61 = vld [vmem:[#allocation6 + $0x770] sm:$0xf0] }
 0x497   : > { %v10132_v37 = vld [vmem:[#allocation6 + $0x154] sm:$0xf] }
 0x498   : > { %v13308_v58 = vadd.f32 %v13152_v62, %v4273_v23  ;;  %v11375_v23 = vld [vmem:[#allocation9 + $0x20] sm:$0xff]  ;;  %4843 = vmatpush.bf16.msrb.mxu2 %v9557_v31  ;;  %v9042_v10 = vld [vmem:[#allocation6 + $0x170] sm:$0xf0] }
 0x499   : > { %v7805_v38 = vmul.f32 %v11375_v23, %v13188_v48  ;;  %v10196_v48 = vld [vmem:[#allocation6 + $0x354] sm:$0xf] }
 0x49a   : > { %7869 = vrot.lane.b32.xlu2 %v13308_v58, %s11873_s2 }
 0x49b   : > { %v4185_v22 = vpop.f32.mrf.mxu2 }
 0x49c   : > { %v4186_v51 = vadd.f32 %v4185_v22, %v4097_v27  ;;  %v4099_v44 = vpop.f32.mrf.mxu1  ;;  %v7842_v20 = vpop.permute.xlu0 %7841  ;;  %v11376_v27 = vld [vmem:[#allocation9 + $0x28] sm:$0xff] }
 0x49d   : > { %v4274_v39 = vpop.f32.mrf.mxu3  ;;  %v4010_v60 = vpop.f32.mrf.mxu0  ;;  %v7901_v21 = vmul.f32 %v11374_v8, %v7842_v20  ;;  %v7806_v22 = vmul.f32 %v11376_v27, %v13197_v16  ;;  %v9298_v16 = vld [vmem:[#allocation6 + $0x370] sm:$0xf0] }
 0x49e   : > { %v4275_v52 = vadd.f32 %v4274_v39, %v4186_v51  ;;  %v4100_v30 = vadd.f32 %v4099_v44, %v4010_v60  ;;  %4414 = vmatmul.bf16.gmra.mxu1 %v12105_v25  ;;  %v11377_v51 = vld [vmem:[#allocation11 + $0x28] sm:$0xff] }
 0x49f   : > { %v7933_v8 = vadd.f32 %v7901_v21, %v7805_v38  ;;  %v7846_v38 = vpop.permute.xlu2 %7845 }
 0x4a0   : > { %4325 = vmatmul.bf16.gmra.mxu0 %v12103_v24  ;;  %v13314_v19 = vadd.f32 %v13152_v62, %v4275_v52  ;;  %4503 = vmatmul.bf16.gmra.mxu2 %v12107_v26  ;;  %v9813_v52 = vor.u32 %v10324_v6, %v9810_v61  ;;  %v9301_v6 = vor.u32 %v10196_v48, %v9298_v16  ;;  %v11381_v48 = vld [vmem:[#allocation11 + $0x38] sm:$0xff] }
 0x4a2   : > { %4592 = vmatmul.bf16.gmra.mxu3 %v14566_v36  ;;  %7871 = vrot.lane.b32.xlu0 %v13314_v19, %s11873_s2  ;;  %v9045_v36 = vor.u32 %v10132_v37, %v9042_v10  ;;  %v11380_v37 = vld [vmem:[#allocation9 + $0x38] sm:$0xff] }
 0x4a3   : > { %v4188_v46 = vpop.f32.mrf.mxu2  ;;  %4932 = vmatpush.bf16.msrb.mxu3 %v9813_v52  ;;  %4754 = vmatpush.bf16.msrb.mxu1 %v9301_v6  ;;  %v7808_v10 = vmul.f32 %v11380_v37, %v13212_v17 }
 0x4a4   : > { %v4189_v43 = vadd.f32 %v4188_v46, %v4100_v30  ;;  %v7844_v45 = vpop.permute.xlu1 %7843  ;;  %v4101_v20 = vpop.f32.mrf.mxu1  ;;  %4665 = vmatpush.bf16.msrb.mxu0 %v9045_v36  ;;  %v11378_v36 = vld [vmem:[#allocation11 + $0x30] sm:$0xff] }
 0x4a5   : > { %v4277_v47 = vpop.f32.mrf.mxu3  ;;  %v7902_v39 = vmul.f32 %v11377_v51, %v7844_v45  ;;  %v4012_v60 = vpop.f32.mrf.mxu0 }
 0x4a6   : > { %v4278_v44 = vadd.f32 %v4277_v47, %v4189_v43  ;;  %v4102_v27 = vadd.f32 %v4101_v20, %v4012_v60 }
 0x4a7   : > { %v7934_v30 = vadd.f32 %v7902_v39, %v7806_v22  ;;  %v7903_v39 = vmul.f32 %v11378_v36, %v7846_v38 }
 0x4a8   : > { %v13324_v46 = vadd.f32 %v13152_v62, %v4278_v44 }
 0x4a9   : > { %v10762_v23 = vpack.c.bf16 %v7934_v30, %v7933_v8  ;;  %v11379_v8 = vld [vmem:[#allocation9 + $0x30] sm:$0xff] }
 0x4aa   : > { %7873 = vrot.lane.b32.xlu1 %v13324_v46, %s11873_s2  ;;  %v7807_v30 = vmul.f32 %v11379_v8, %v13206_v5  ;;  %v11382_v5 = vld [vmem:[#allocation11 + $0x48] sm:$0xff]  ;;  %v11385_v8 = vld [vmem:[#allocation11 + $0x40] sm:$0xff] }
 0x4ab   : > { %11068 = vst [vmem:[%s12470_s3 + $0x190] sm:$0xff] %v10762_v23   ;;  %v4190_v43 = vpop.f32.mrf.mxu2 }
 0x4ac   : > { %v4191_v21 = vadd.f32 %v4190_v43, %v4102_v27  ;;  %v4104_v61 = vpop.f32.mrf.mxu1  ;;  %v7935_v43 = vadd.f32 %v7903_v39, %v7807_v30 }
 0x4ad   : > { %v4279_v47 = vpop.f32.mrf.mxu3  ;;  %v4015_v45 = vpop.f32.mrf.mxu0 }
 0x4ae   : > { %v4280_v31 = vadd.f32 %v4279_v47, %v4191_v21  ;;  %v4105_v51 = vadd.f32 %v4104_v61, %v4015_v45  ;;  %4419 = vmatmul.bf16.gmra.mxu1 %v12125_v50  ;;  %v7852_v47 = vpop.permute.xlu2 %7851 }
 0x4af   : > { %v7906_v38 = vmul.f32 %v11382_v5, %v7852_v47 }
 0x4b0   : > { %4330 = vmatmul.bf16.gmra.mxu0 %v12123_v49  ;;  %v13331_v22 = vadd.f32 %v13152_v62, %v4280_v31  ;;  %4508 = vmatmul.bf16.gmra.mxu2 %v12127_v54 }
 0x4b2   : > { %4597 = vmatmul.bf16.gmra.mxu3 %v12129_v55  ;;  %7875 = vrot.lane.b32.xlu2 %v13331_v22, %s11873_s2 }
 0x4b3   : > { %v4193_v60 = vpop.f32.mrf.mxu2 }
 0x4b4   : > { %v4194_v52 = vadd.f32 %v4193_v60, %v4105_v51  ;;  %v7848_v20 = vpop.permute.xlu0 %7847  ;;  %v4106_v6 = vpop.f32.mrf.mxu1 }
 0x4b5   : > { %v4282_v44 = vpop.f32.mrf.mxu3  ;;  %v7904_v23 = vmul.f32 %v11381_v48, %v7848_v20  ;;  %v4017_v16 = vpop.f32.mrf.mxu0 }
 0x4b6   : > { %v4283_v27 = vadd.f32 %v4282_v44, %v4194_v52  ;;  %v4107_v61 = vadd.f32 %v4106_v6, %v4017_v16  ;;  %v11383_v52 = vld [vmem:[#allocation9 + $0x48] sm:$0xff]  ;;  %v11384_v44 = vld [vmem:[#allocation9 + $0x40] sm:$0xff] }
 0x4b7   : > { %v7936_v21 = vadd.f32 %v7904_v23, %v7808_v10  ;;  %v7810_v39 = vmul.f32 %v11383_v52, %v13229_v59  ;;  %v7809_v20 = vmul.f32 %v11384_v44, %v13222_v7  ;;  %v10252_v7 = vld [vmem:[#allocation6 + $0x514] sm:$0xf] }
 0x4b8   : > { %v13341_v45 = vadd.f32 %v13152_v62, %v4283_v27  ;;  %v9010_v44 = vld [vmem:[#allocation6 + $0x130] sm:$0xf0] }
 0x4b9   : > { %v10767_v31 = vpack.c.bf16 %v7936_v21, %v7935_v43  ;;  %v7938_v23 = vadd.f32 %v7906_v38, %v7810_v39  ;;  %v9522_v43 = vld [vmem:[#allocation6 + $0x530] sm:$0xf0] }
 0x4ba   : > { %7877 = vrot.lane.b32.xlu0 %v13341_v45, %s11873_s2  ;;  %v10316_v21 = vld [vmem:[#allocation6 + $0x714] sm:$0xf]  ;;  %v9525_v47 = vor.u32 %v10252_v7, %v9522_v43 }
 0x4bb   : > { %11069 = vst [vmem:[%s12470_s3 + $0x198] sm:$0xff] %v10767_v31   ;;  %v4195_v17 = vpop.f32.mrf.mxu2  ;;  %v9778_v31 = vld [vmem:[#allocation6 + $0x730] sm:$0xf0] }
 0x4bc   : > { %v4196_v51 = vadd.f32 %v4195_v17, %v4107_v61  ;;  %v7850_v60 = vpop.permute.xlu1 %7849  ;;  %v4109_v48 = vpop.f32.mrf.mxu1  ;;  %v9781_v5 = vor.u32 %v10316_v21, %v9778_v31  ;;  %4844 = vmatpush.bf16.msrb.mxu2 %v9525_v47  ;;  %v10124_v39 = vld [vmem:[#allocation6 + $0x114] sm:$0xf]  ;;  %v11386_v31 = vld [vmem:[#allocation11 + $0x50] sm:$0xff] }
 0x4bd   : > { %v4284_v36 = vpop.f32.mrf.mxu3  ;;  %v7905_v30 = vmul.f32 %v11385_v8, %v7850_v60  ;;  %v4020_v37 = vpop.f32.mrf.mxu0  ;;  %v9013_v8 = vor.u32 %v10124_v39, %v9010_v44  ;;  %v11388_v39 = vld [vmem:[#allocation9 + $0x58] sm:$0xff] }
 0x4be   : > { %v4285_v10 = vadd.f32 %v4284_v36, %v4196_v51  ;;  %v4110_v6 = vadd.f32 %v4109_v48, %v4020_v37  ;;  %4424 = vmatmul.bf16.gmra.mxu1 %v12145_v1  ;;  %4933 = vmatpush.bf16.msrb.mxu3 %v9781_v5  ;;  %v7812_v44 = vmul.f32 %v11388_v39, %v13248_v9  ;;  %v10244_v39 = vld [vmem:[#allocation6 + $0x4d4] sm:$0xf] }
 0x4bf   : > { %v7937_v16 = vadd.f32 %v7905_v30, %v7809_v20  ;;  %v10188_v20 = vld [vmem:[#allocation6 + $0x314] sm:$0xf]  ;;  %4666 = vmatpush.bf16.msrb.mxu0 %v9013_v8 }
 0x4c0   : > { %4335 = vmatmul.bf16.gmra.mxu0 %v12143_v0  ;;  %v13350_v27 = vadd.f32 %v13152_v62, %v4285_v10  ;;  %4513 = vmatmul.bf16.gmra.mxu2 %v12147_v2  ;;  %v9266_v30 = vld [vmem:[#allocation6 + $0x330] sm:$0xf0] }
 0x4c1   : > { %v10772_v59 = vpack.c.bf16 %v7938_v23, %v7937_v16  ;;  %v9269_v10 = vor.u32 %v10188_v20, %v9266_v30  ;;  %v11389_v20 = vld [vmem:[#allocation11 + $0x58] sm:$0xff] }
 0x4c2   : > { %4602 = vmatmul.bf16.gmra.mxu3 %v12149_v3  ;;  %7879 = vrot.lane.b32.xlu1 %v13350_v27, %s11873_s2 }
 0x4c3   : > { %11070 = vst [vmem:[%s12470_s3 + $0x1a0] sm:$0xff] %v10772_v59   ;;  %v4198_v61 = vpop.f32.mrf.mxu2  ;;  %4755 = vmatpush.bf16.msrb.mxu1 %v9269_v10 }
 0x4c4   : > { %v4199_v38 = vadd.f32 %v4198_v61, %v4110_v6  ;;  %v4111_v60 = vpop.f32.mrf.mxu1 }
 0x4c5   : > { %v4287_v17 = vpop.f32.mrf.mxu3  ;;  %v4022_v51 = vpop.f32.mrf.mxu0 }
 0x4c6   : > { %v4288_v36 = vadd.f32 %v4287_v17, %v4199_v38  ;;  %v4112_v37 = vadd.f32 %v4111_v60, %v4022_v51 }
 0x4c8   : > { %v13359_v52 = vadd.f32 %v13152_v62, %v4288_v36  ;;  %v11387_v36 = vld [vmem:[#allocation9 + $0x50] sm:$0xff] }
 0x4c9   : > { %v7811_v60 = vmul.f32 %v11387_v36, %v13239_v4  ;;  %v14608_v36 = vld [vmem:[#allocation37_spill] sm:$0xff] }
 0x4ca   : > { %7881 = vrot.lane.b32.xlu2 %v13359_v52, %s11873_s2 }
 0x4cb   : > { %v4200_v48 = vpop.f32.mrf.mxu2 }
 0x4cc   : > { %v4201_v23 = vadd.f32 %v4200_v48, %v4112_v37  ;;  %v4114_v7 = vpop.f32.mrf.mxu1  ;;  %v7854_v21 = vpop.permute.xlu0 %7853 }
 0x4cd   : > { %v4289_v16 = vpop.f32.mrf.mxu3  ;;  %v4025_v6 = vpop.f32.mrf.mxu0  ;;  %v7907_v61 = vmul.f32 %v11386_v31, %v7854_v21 }
 0x4ce   : > { %v4290_v59 = vadd.f32 %v4289_v16, %v4201_v23  ;;  %v4115_v47 = vadd.f32 %v4114_v7, %v4025_v6  ;;  %4429 = vmatmul.bf16.gmra.mxu1 %v12165_v33 }
 0x4cf   : > { %v7939_v48 = vadd.f32 %v7907_v61, %v7811_v60  ;;  %v14609_v60 = vld [vmem:[#allocation38_spill] sm:$0xff] }
 0x4d0   : > { %4340 = vmatmul.bf16.gmra.mxu0 %v12163_v32  ;;  %v13365_v43 = vadd.f32 %v13152_v62, %v4290_v59  ;;  %4518 = vmatmul.bf16.gmra.mxu2 %v12167_v34 }
 0x4d2   : > { %4607 = vmatmul.bf16.gmra.mxu3 %v12169_v35  ;;  %7883 = vrot.lane.b32.xlu0 %v13365_v43, %s11873_s2 }
 0x4d3   : > { %v4203_v5 = vpop.f32.mrf.mxu2 }
 0x4d4   : > { %v4204_v38 = vadd.f32 %v4203_v5, %v4115_v47  ;;  %v7856_v51 = vpop.permute.xlu1 %7855  ;;  %v4116_v10 = vpop.f32.mrf.mxu1  ;;  %v14606_v5 = vld [vmem:[#allocation35_spill] sm:$0xff] }
 0x4d5   : > { %v4292_v17 = vpop.f32.mrf.mxu3  ;;  %v7908_v8 = vmul.f32 %v11389_v20, %v7856_v51  ;;  %v4027_v30 = vpop.f32.mrf.mxu0  ;;  %v14607_v51 = vld [vmem:[#allocation36_spill] sm:$0xff]  ;;  %v10308_v20 = vld [vmem:[#allocation6 + $0x6d4] sm:$0xf] }
 0x4d6   : > { %v4293_v37 = vadd.f32 %v4292_v17, %v4204_v38  ;;  %v4117_v59 = vadd.f32 %v4116_v10, %v4027_v30  ;;  %v7858_v38 = vpop.permute.xlu2 %7857  ;;  %v9746_v30 = vld [vmem:[#allocation6 + $0x6f0] sm:$0xf0] }
 0x4d7   : > { %v7940_v23 = vadd.f32 %v7908_v8, %v7812_v44  ;;  %v9490_v44 = vld [vmem:[#allocation6 + $0x4f0] sm:$0xf0] }
 0x4d8   : > { %v13375_v16 = vadd.f32 %v13152_v62, %v4293_v37  ;;  %v9493_v8 = vor.u32 %v10244_v39, %v9490_v44  ;;  %v11390_v37 = vld [vmem:[#allocation11 + $0x60] sm:$0xff] }
 0x4d9   : > { %v10777_v6 = vpack.c.bf16 %v7940_v23, %v7939_v48  ;;  %v7909_v10 = vmul.f32 %v11390_v37, %v7858_v38  ;;  %v9749_v23 = vor.u32 %v10308_v20, %v9746_v30  ;;  %v8978_v30 = vld [vmem:[#allocation6 + $0xf0] sm:$0xf0] }
 0x4da   : > { %7885 = vrot.lane.b32.xlu1 %v13375_v16, %s11873_s2  ;;  %4845 = vmatpush.bf16.msrb.mxu2 %v9493_v8  ;;  %v10116_v8 = vld [vmem:[#allocation6 + $0xd4] sm:$0xf] }
 0x4db   : > { %11071 = vst [vmem:[%s12470_s3 + $0x1a8] sm:$0xff] %v10777_v6   ;;  %v4205_v4 = vpop.f32.mrf.mxu2  ;;  %4934 = vmatpush.bf16.msrb.mxu3 %v9749_v23 }
 0x4dc   : > { %v4206_v7 = vadd.f32 %v4205_v4, %v4117_v59  ;;  %v4119_v31 = vpop.f32.mrf.mxu1 }
 0x4dd   : > { %v4294_v21 = vpop.f32.mrf.mxu3  ;;  %v4030_v9 = vpop.f32.mrf.mxu0 }
 0x4de   : > { %v4295_v47 = vadd.f32 %v4294_v21, %v4206_v7  ;;  %v4120_v17 = vadd.f32 %v4119_v31, %v4030_v9  ;;  %4434 = vmatmul.bf16.gmra.mxu1 %v14607_v51  ;;  %v11391_v7 = vld [vmem:[#allocation9 + $0x60] sm:$0xff]  ;;  %v11392_v9 = vld [vmem:[#allocation9 + $0x68] sm:$0xff]  ;;  %v7864_v20 = vpop.permute.xlu2 %7863 }
 0x4df   : > { %v7813_v21 = vmul.f32 %v11391_v7, %v13257_v41  ;;  %v11393_v31 = vld [vmem:[#allocation11 + $0x68] sm:$0xff]  ;;  %v8981_v7 = vor.u32 %v10116_v8, %v8978_v30 }
 0x4e0   : > { %4345 = vmatmul.bf16.gmra.mxu0 %v14606_v5  ;;  %v13382_v61 = vadd.f32 %v13152_v62, %v4295_v47  ;;  %4523 = vmatmul.bf16.gmra.mxu2 %v14608_v36  ;;  %v7814_v47 = vmul.f32 %v11392_v9, %v13263_v29  ;;  %v9234_v51 = vld [vmem:[#allocation6 + $0x2f0] sm:$0xf0]  ;;  %v11395_v9 = vld [vmem:[#allocation9 + $0x78] sm:$0xff] }
 0x4e1   : > { %v7941_v38 = vadd.f32 %v7909_v10, %v7813_v21  ;;  %4667 = vmatpush.bf16.msrb.mxu0 %v8981_v7 }
 0x4e2   : > { %4612 = vmatmul.bf16.gmra.mxu3 %v14609_v60  ;;  %7887 = vrot.lane.b32.xlu2 %v13382_v61, %s11873_s2 }
 0x4e3   : > { %v4208_v48 = vpop.f32.mrf.mxu2 }
 0x4e4   : > { %v4209_v6 = vadd.f32 %v4208_v48, %v4120_v17  ;;  %v7860_v4 = vpop.permute.xlu0 %7859  ;;  %v4121_v44 = vpop.f32.mrf.mxu1  ;;  %v10180_v48 = vld [vmem:[#allocation6 + $0x2d4] sm:$0xf] }
 0x4e5   : > { %v4297_v59 = vpop.f32.mrf.mxu3  ;;  %v7910_v60 = vmul.f32 %v11393_v31, %v7860_v4  ;;  %v4032_v36 = vpop.f32.mrf.mxu0  ;;  %v9237_v23 = vor.u32 %v10180_v48, %v9234_v51  ;;  %v11396_v31 = vld [vmem:[#allocation9 + $0x70] sm:$0xff] }
 0x4e6   : > { %v4298_v39 = vadd.f32 %v4297_v59, %v4209_v6  ;;  %v4122_v29 = vadd.f32 %v4121_v44, %v4032_v36  ;;  %v11394_v6 = vld [vmem:[#allocation11 + $0x78] sm:$0xff]  ;;  %v11397_v36 = vld [vmem:[#allocation11 + $0x70] sm:$0xff] }
 0x4e7   : > { %v7942_v37 = vadd.f32 %v7910_v60, %v7814_v47  ;;  %v7912_v59 = vmul.f32 %v11394_v6, %v7864_v20  ;;  %4756 = vmatpush.bf16.msrb.mxu1 %v9237_v23  ;;  %v7816_v47 = vmul.f32 %v11395_v9, %v13280_v53  ;;  %v14610_v53 = vld [vmem:[#allocation41_spill] sm:$0xff] }
 0x4e8   : > { %v13392_v17 = vadd.f32 %v13152_v62, %v4298_v39  ;;  %v7815_v39 = vmul.f32 %v11396_v31, %v13273_v56  ;;  %v14611_v56 = vld [vmem:[#allocation42_spill] sm:$0xff] }
 0x4e9   : > { %v10782_v41 = vpack.c.bf16 %v7942_v37, %v7941_v38  ;;  %v7944_v20 = vadd.f32 %v7912_v59, %v7816_v47 }
 0x4ea   : > { %7889 = vrot.lane.b32.xlu0 %v13392_v17, %s11873_s2 }
 0x4eb   : > { %11072 = vst [vmem:[%s12470_s3 + $0x1b0] sm:$0xff] %v10782_v41   ;;  %v4210_v10 = vpop.f32.mrf.mxu2 }
 0x4ec   : > { %v4211_v60 = vadd.f32 %v4210_v10, %v4122_v29  ;;  %v7862_v21 = vpop.permute.xlu1 %7861  ;;  %v4124_v37 = vpop.f32.mrf.mxu1 }
 0x4ed   : > { %v4299_v4 = vpop.f32.mrf.mxu3  ;;  %v7911_v44 = vmul.f32 %v11397_v36, %v7862_v21  ;;  %v4035_v38 = vpop.f32.mrf.mxu0 }
 0x4ee   : > { %v4300_v51 = vadd.f32 %v4299_v4, %v4211_v60  ;;  %v4125_v48 = vadd.f32 %v4124_v37, %v4035_v38  ;;  %4439 = vmatmul.bf16.gmra.mxu1 %v14571_v40 }
 0x4ef   : > { %v7943_v8 = vadd.f32 %v7911_v44, %v7815_v39  ;;  %v14612_v44 = vld [vmem:[#allocation43_spill] sm:$0xff] }
 0x4f0   : > { %4350 = vmatmul.bf16.gmra.mxu0 %v14570_v57  ;;  %v13401_v30 = vadd.f32 %v13152_v62, %v4300_v51  ;;  %4528 = vmatmul.bf16.gmra.mxu2 %v14610_v53  ;;  %v8946_v53 = vld [vmem:[#allocation6 + $0xb0] sm:$0xf0] }
 0x4f1   : > { %v10787_v41 = vpack.c.bf16 %v7944_v20, %v7943_v8  ;;  %v14613_v20 = vld [vmem:[#allocation44_spill] sm:$0xff]  ;;  %v14614_v8 = vld [vmem:[#allocation45_spill] sm:$0xff] }
 0x4f2   : > { %4617 = vmatmul.bf16.gmra.mxu3 %v14611_v56  ;;  %7891 = vrot.lane.b32.xlu1 %v13401_v30, %s11873_s2 }
 0x4f3   : > { %11073 = vst [vmem:[%s12470_s3 + $0x1b8] sm:$0xff] %v10787_v41   ;;  %v4213_v7 = vpop.f32.mrf.mxu2  ;;  %v11398_v41 = vld [vmem:[#allocation11 + $0x80] sm:$0xff] }
 0x4f4   : > { %v4214_v29 = vadd.f32 %v4213_v7, %v4125_v48  ;;  %v4126_v10 = vpop.f32.mrf.mxu1  ;;  %v14615_v48 = vld [vmem:[#allocation46_spill] sm:$0xff] }
 0x4f5   : > { %v4302_v23 = vpop.f32.mrf.mxu3  ;;  %v4037_v6 = vpop.f32.mrf.mxu0 }
 0x4f6   : > { %v4303_v59 = vadd.f32 %v4302_v23, %v4214_v29  ;;  %v4127_v4 = vadd.f32 %v4126_v10, %v4037_v6  ;;  %v10236_v23 = vld [vmem:[#allocation6 + $0x494] sm:$0xf] }
 0x4f7   : > { %v9458_v6 = vld [vmem:[#allocation6 + $0x4b0] sm:$0xf0] }
 0x4f8   : > { %v13410_v60 = vadd.f32 %v13152_v62, %v4303_v59  ;;  %v10300_v59 = vld [vmem:[#allocation6 + $0x694] sm:$0xf] }
 0x4fa   : > { %7893 = vrot.lane.b32.xlu2 %v13410_v60, %s11873_s2 }
 0x4fb   : > { %v4215_v21 = vpop.f32.mrf.mxu2 }
 0x4fc   : > { %v4216_v9 = vadd.f32 %v4215_v21, %v4127_v4  ;;  %v4405_v36 = vpop.f32.mrf.mxu1  ;;  %v7866_v51 = vpop.permute.xlu0 %7865  ;;  %v11399_v4 = vld [vmem:[#allocation8] sm:$0xff] }
 0x4fd   : > { %v4304_v47 = vpop.f32.mrf.mxu3  ;;  %v4316_v31 = vpop.f32.mrf.mxu0  ;;  %v7913_v7 = vmul.f32 %v11398_v41, %v7866_v51  ;;  %v13423_v21 = vperm.slane %v11399_v4, 4 }
 0x4fe   : > { %v4305_v39 = vadd.f32 %v4304_v47, %v4216_v9  ;;  %v4406_v37 = vadd.f32 %v4405_v36, %v4316_v31  ;;  %4444 = vmatmul.bf16.gmra.mxu1 %v14613_v20  ;;  %v9461_v47 = vor.u32 %v10236_v23, %v9458_v6  ;;  %v9714_v31 = vld [vmem:[#allocation6 + $0x6b0] sm:$0xf0] }
 0x4ff   : > { %v11402_v20 = vld [vmem:[#allocation11 + $0x88] sm:$0xff] }
 0x500   : > { %4355 = vmatmul.bf16.gmra.mxu0 %v14612_v44  ;;  %v13416_v38 = vadd.f32 %v13152_v62, %v4305_v39  ;;  %4533 = vmatmul.bf16.gmra.mxu2 %v14614_v8  ;;  %v11400_v39 = vld [vmem:[#allocation9 + $0x80] sm:$0xff]  ;;  %v9717_v44 = vor.u32 %v10300_v59, %v9714_v31  ;;  %v10108_v6 = vld [vmem:[#allocation6 + $0x94] sm:$0xf]  ;;  %v14617_v31 = vld [vmem:[#allocation48_spill] sm:$0xff] }
 0x501   : > { %v7817_v36 = vmul.f32 %v11400_v39, %v13290_v28  ;;  %4846 = vmatpush.bf16.msrb.mxu2 %v9461_v47  ;;  %v10172_v28 = vld [vmem:[#allocation6 + $0x294] sm:$0xf]  ;;  %v8949_v40 = vor.u32 %v10108_v6, %v8946_v53 }
 0x502   : > { %4622 = vmatmul.bf16.gmra.mxu3 %v14615_v48  ;;  %7895 = vrot.lane.b32.xlu0 %v13416_v38, %s11873_s2  ;;  %v11401_v48 = vld [vmem:[#allocation9 + $0x88] sm:$0xff] }
 0x503   : > { %v4494_v29 = vpop.f32.mrf.mxu2  ;;  %v7818_v8 = vmul.f32 %v11401_v48, %v13299_v63  ;;  %4935 = vmatpush.bf16.msrb.mxu3 %v9717_v44  ;;  %v9202_v63 = vld [vmem:[#allocation6 + $0x2b0] sm:$0xf0]  ;;  %4668 = vmatpush.bf16.msrb.mxu0 %v8949_v40  ;;  %v11403_v40 = vld [vmem:[#allocation11 + $0x90] sm:$0xff] }
 0x504   : > { %v4495_v10 = vadd.f32 %v4494_v29, %v4406_v37  ;;  %v7868_v9 = vpop.permute.xlu1 %7867  ;;  %v4407_v37 = vpop.f32.mrf.mxu1  ;;  %v7945_v29 = vadd.f32 %v7913_v7, %v7817_v36  ;;  %v14618_v36 = vld [vmem:[#allocation49_spill] sm:$0xff] }
 0x505   : > { %v4583_v62 = vpop.f32.mrf.mxu3  ;;  %v7914_v51 = vmul.f32 %v11402_v20, %v7868_v9  ;;  %v4318_v41 = vpop.f32.mrf.mxu0  ;;  %v9205_v20 = vor.u32 %v10172_v28, %v9202_v63  ;;  %v11404_v28 = vld [vmem:[#allocation9 + $0x90] sm:$0xff]  ;;  %v11405_v63 = vld [vmem:[#allocation9 + $0x98] sm:$0xff] }
 0x506   : > { %v4584_v56 = vadd.f32 %v4583_v62, %v4495_v10  ;;  %v4408_v48 = vadd.f32 %v4407_v37, %v4318_v41  ;;  %v14616_v62 = vld [vmem:[#allocation47_spill] sm:$0xff]  ;;  %v7870_v9 = vpop.permute.xlu2 %7869 }
 0x507   : > { %v7946_v4 = vadd.f32 %v7914_v51, %v7818_v8  ;;  %4757 = vmatpush.bf16.msrb.mxu1 %v9205_v20  ;;  %v14619_v51 = vld [vmem:[#allocation50_spill] sm:$0xff]  ;;  %v7915_v41 = vmul.f32 %v11403_v40, %v7870_v9  ;;  %v11406_v20 = vld [vmem:[#allocation11 + $0x98] sm:$0xff] }
 0x508   : > { %v13428_v23 = vadd.f32 %v13423_v21, %v4584_v56 }
 0x509   : > { %v10792_v39 = vpack.c.bf16 %v7946_v4, %v7945_v29 }
 0x50a   : > { %7320 = vrot.lane.b32.xlu1 %v13428_v23, %s11873_s2 }
 0x50b   : > { %11074 = vst [vmem:[%s12470_s3 + $0x1c0] sm:$0xff] %v10792_v39   ;;  %v4496_v59 = vpop.f32.mrf.mxu2  ;;  %v7819_v39 = vmul.f32 %v11404_v28, %v13308_v58  ;;  %v11407_v58 = vld [vmem:[#allocation11 + $0xa8] sm:$0xff] }
 0x50c   : > { %v4497_v7 = vadd.f32 %v4496_v59, %v4408_v48  ;;  %v4410_v10 = vpop.f32.mrf.mxu1  ;;  %v7820_v48 = vmul.f32 %v11405_v63, %v13314_v19 }
 0x50d   : > { %v4585_v8 = vpop.f32.mrf.mxu3  ;;  %v4321_v44 = vpop.f32.mrf.mxu0 }
 0x50e   : > { %v4586_v56 = vadd.f32 %v4585_v8, %v4497_v7  ;;  %v4411_v47 = vadd.f32 %v4410_v10, %v4321_v44  ;;  %4449 = vmatmul.bf16.gmra.mxu1 %v14617_v31  ;;  %v9138_v31 = vld [vmem:[#allocation6 + $0x230] sm:$0xf0] }
 0x510   : > { %4360 = vmatmul.bf16.gmra.mxu0 %v14616_v62  ;;  %v13435_v53 = vadd.f32 %v13423_v21, %v4586_v56  ;;  %4538 = vmatmul.bf16.gmra.mxu2 %v14618_v36  ;;  %v7947_v56 = vadd.f32 %v7915_v41, %v7819_v39 }
 0x512   : > { %4627 = vmatmul.bf16.gmra.mxu3 %v14619_v51  ;;  %7322 = vrot.lane.b32.xlu2 %v13435_v53, %s11873_s2  ;;  %v7876_v51 = vpop.permute.xlu2 %7875 }
 0x513   : > { %v4499_v37 = vpop.f32.mrf.mxu2 }
 0x514   : > { %v4500_v29 = vadd.f32 %v4499_v37, %v4411_v47  ;;  %v7872_v6 = vpop.permute.xlu0 %7871  ;;  %v4412_v44 = vpop.f32.mrf.mxu1  ;;  %v7918_v37 = vmul.f32 %v11407_v58, %v7876_v51  ;;  %v14620_v51 = vld [vmem:[#allocation51_spill] sm:$0xff] }
 0x515   : > { %v4588_v4 = vpop.f32.mrf.mxu3  ;;  %v7916_v59 = vmul.f32 %v11406_v20, %v7872_v6  ;;  %v4323_v7 = vpop.f32.mrf.mxu0 }
 0x516   : > { %v4589_v8 = vadd.f32 %v4588_v4, %v4500_v29  ;;  %v4413_v40 = vadd.f32 %v4412_v44, %v4323_v7  ;;  %v11408_v29 = vld [vmem:[#allocation9 + $0xa8] sm:$0xff]  ;;  %v11409_v4 = vld [vmem:[#allocation9 + $0xa0] sm:$0xff] }
 0x517   : > { %v7948_v10 = vadd.f32 %v7916_v59, %v7820_v48  ;;  %v7822_v41 = vmul.f32 %v11408_v29, %v13331_v22  ;;  %v7821_v39 = vmul.f32 %v11409_v4, %v13324_v46  ;;  %v11410_v48 = vld [vmem:[#allocation11 + $0xa0] sm:$0xff]  ;;  %v14622_v22 = vld [vmem:[#allocation53_spill] sm:$0xff] }
 0x518   : > { %v13445_v9 = vadd.f32 %v13423_v21, %v4589_v8  ;;  %v14623_v46 = vld [vmem:[#allocation54_spill] sm:$0xff] }
 0x519   : > { %v10797_v47 = vpack.c.bf16 %v7948_v10, %v7947_v56  ;;  %v7950_v44 = vadd.f32 %v7918_v37, %v7822_v41 }
 0x51a   : > { %7324 = vrot.lane.b32.xlu0 %v13445_v9, %s11873_s2 }
 0x51b   : > { %11075 = vst [vmem:[%s12470_s3 + $0x1c8] sm:$0xff] %v10797_v47   ;;  %v4501_v19 = vpop.f32.mrf.mxu2 }
 0x51c   : > { %v4502_v28 = vadd.f32 %v4501_v19, %v4413_v40  ;;  %v7874_v63 = vpop.permute.xlu1 %7873  ;;  %v4415_v8 = vpop.f32.mrf.mxu1  ;;  %v14621_v40 = vld [vmem:[#allocation52_spill] sm:$0xff]  ;;  %v10228_v19 = vld [vmem:[#allocation6 + $0x454] sm:$0xf] }
 0x51d   : > { %v4590_v6 = vpop.f32.mrf.mxu3  ;;  %v7917_v20 = vmul.f32 %v11410_v48, %v7874_v63  ;;  %v4326_v59 = vpop.f32.mrf.mxu0  ;;  %v9426_v63 = vld [vmem:[#allocation6 + $0x470] sm:$0xf0] }
 0x51e   : > { %v4591_v7 = vadd.f32 %v4590_v6, %v4502_v28  ;;  %v4416_v47 = vadd.f32 %v4415_v8, %v4326_v59  ;;  %4454 = vmatmul.bf16.gmra.mxu1 %v14621_v40  ;;  %v10292_v28 = vld [vmem:[#allocation6 + $0x654] sm:$0xf]  ;;  %v9429_v37 = vor.u32 %v10228_v19, %v9426_v63 }
 0x51f   : > { %v7949_v56 = vadd.f32 %v7917_v20, %v7821_v39  ;;  %v9682_v6 = vld [vmem:[#allocation6 + $0x670] sm:$0xf0] }
 0x520   : > { %4365 = vmatmul.bf16.gmra.mxu0 %v14620_v51  ;;  %v13454_v10 = vadd.f32 %v13423_v21, %v4591_v7  ;;  %4543 = vmatmul.bf16.gmra.mxu2 %v14622_v22  ;;  %v9685_v41 = vor.u32 %v10292_v28, %v9682_v6  ;;  %v10100_v8 = vld [vmem:[#allocation6 + $0x54] sm:$0xf] }
 0x521   : > { %v10802_v58 = vpack.c.bf16 %v7950_v44, %v7949_v56  ;;  %4847 = vmatpush.bf16.msrb.mxu2 %v9429_v37  ;;  %v8914_v44 = vld [vmem:[#allocation6 + $0x70] sm:$0xf0] }
 0x522   : > { %4632 = vmatmul.bf16.gmra.mxu3 %v14623_v46  ;;  %7326 = vrot.lane.b32.xlu1 %v13454_v10, %s11873_s2  ;;  %v10164_v56 = vld [vmem:[#allocation6 + $0x254] sm:$0xf]  ;;  %v8917_v46 = vor.u32 %v10100_v8, %v8914_v44 }
 0x523   : > { %11076 = vst [vmem:[%s12470_s3 + $0x1d0] sm:$0xff] %v10802_v58   ;;  %v4504_v29 = vpop.f32.mrf.mxu2  ;;  %4936 = vmatpush.bf16.msrb.mxu3 %v9685_v41  ;;  %v9170_v22 = vld [vmem:[#allocation6 + $0x270] sm:$0xf0] }
 0x524   : > { %v4505_v4 = vadd.f32 %v4504_v29, %v4416_v47  ;;  %v4417_v59 = vpop.f32.mrf.mxu1  ;;  %v9173_v58 = vor.u32 %v10164_v56, %v9170_v22  ;;  %4669 = vmatpush.bf16.msrb.mxu0 %v8917_v46  ;;  %v14624_v41 = vld [vmem:[#allocation55_spill] sm:$0xff]  ;;  %v14627_v22 = vld [vmem:[#allocation58_spill] sm:$0xff]  ;;  %v11411_v46 = vld [vmem:[#allocation11 + $0xb0] sm:$0xff] }
 0x525   : > { %v4593_v39 = vpop.f32.mrf.mxu3  ;;  %v4328_v48 = vpop.f32.mrf.mxu0 }
 0x526   : > { %v4594_v20 = vadd.f32 %v4593_v39, %v4505_v4  ;;  %v4418_v19 = vadd.f32 %v4417_v59, %v4328_v48  ;;  %4758 = vmatpush.bf16.msrb.mxu1 %v9173_v58  ;;  %v14625_v48 = vld [vmem:[#allocation56_spill] sm:$0xff]  ;;  %v14626_v59 = vld [vmem:[#allocation57_spill] sm:$0xff] }
 0x528   : > { %v13463_v7 = vadd.f32 %v13423_v21, %v4594_v20 }
 0x52a   : > { %7328 = vrot.lane.b32.xlu2 %v13463_v7, %s11873_s2 }
 0x52b   : > { %v4506_v47 = vpop.f32.mrf.mxu2 }
 0x52c   : > { %v4507_v63 = vadd.f32 %v4506_v47, %v4418_v19  ;;  %v4420_v29 = vpop.f32.mrf.mxu1  ;;  %v7878_v39 = vpop.permute.xlu0 %7877  ;;  %v11412_v47 = vld [vmem:[#allocation9 + $0xb0] sm:$0xff] }
 0x52d   : > { %v4595_v28 = vpop.f32.mrf.mxu3  ;;  %v4331_v37 = vpop.f32.mrf.mxu0  ;;  %v7919_v8 = vmul.f32 %v11411_v46, %v7878_v39 }
 0x52e   : > { %v4596_v6 = vadd.f32 %v4595_v28, %v4507_v63  ;;  %v4421_v20 = vadd.f32 %v4420_v29, %v4331_v37  ;;  %4459 = vmatmul.bf16.gmra.mxu1 %v14625_v48  ;;  %v7823_v63 = vmul.f32 %v11412_v47, %v13341_v45  ;;  %v11413_v28 = vld [vmem:[#allocation9 + $0xb8] sm:$0xff] }
 0x52f   : > { %v7824_v37 = vmul.f32 %v11413_v28, %v13350_v27 }
 0x530   : > { %4370 = vmatmul.bf16.gmra.mxu0 %v14624_v41  ;;  %v13469_v4 = vadd.f32 %v13423_v21, %v4596_v6  ;;  %4548 = vmatmul.bf16.gmra.mxu2 %v14626_v59  ;;  %v11414_v6 = vld [vmem:[#allocation11 + $0xb8] sm:$0xff]  ;;  %v7951_v41 = vadd.f32 %v7919_v8, %v7823_v63  ;;  %v10284_v63 = vld [vmem:[#allocation6 + $0x614] sm:$0xf] }
 0x532   : > { %4637 = vmatmul.bf16.gmra.mxu3 %v14627_v22  ;;  %7330 = vrot.lane.b32.xlu0 %v13469_v4, %s11873_s2 }
 0x533   : > { %v4509_v44 = vpop.f32.mrf.mxu2 }
 0x534   : > { %v4510_v56 = vadd.f32 %v4509_v44, %v4421_v20  ;;  %v7880_v58 = vpop.permute.xlu1 %7879  ;;  %v4422_v48 = vpop.f32.mrf.mxu1 }
 0x535   : > { %v4598_v19 = vpop.f32.mrf.mxu3  ;;  %v7920_v29 = vmul.f32 %v11414_v6, %v7880_v58  ;;  %v4333_v59 = vpop.f32.mrf.mxu0  ;;  %v14628_v6 = vld [vmem:[#allocation59_spill] sm:$0xff] }
 0x536   : > { %v4599_v22 = vadd.f32 %v4598_v19, %v4510_v56  ;;  %v4423_v46 = vadd.f32 %v4422_v48, %v4333_v59  ;;  %v7882_v56 = vpop.permute.xlu2 %7881  ;;  %v14629_v19 = vld [vmem:[#allocation60_spill] sm:$0xff]  ;;  %v10220_v48 = vld [vmem:[#allocation6 + $0x414] sm:$0xf] }
 0x537   : > { %v7952_v40 = vadd.f32 %v7920_v29, %v7824_v37  ;;  %v9394_v59 = vld [vmem:[#allocation6 + $0x430] sm:$0xf0] }
 0x538   : > { %v13479_v39 = vadd.f32 %v13423_v21, %v4599_v22  ;;  %v9397_v37 = vor.u32 %v10220_v48, %v9394_v59  ;;  %v9650_v29 = vld [vmem:[#allocation6 + $0x630] sm:$0xf0] }
 0x539   : > { %v10807_v20 = vpack.c.bf16 %v7952_v40, %v7951_v41  ;;  %v14630_v40 = vld [vmem:[#allocation61_spill] sm:$0xff]  ;;  %v14631_v41 = vld [vmem:[#allocation62_spill] sm:$0xff] }
 0x53a   : > { %7332 = vrot.lane.b32.xlu1 %v13479_v39, %s11873_s2  ;;  %4848 = vmatpush.bf16.msrb.mxu2 %v9397_v37  ;;  %v10092_v37 = vld [vmem:[#allocation6 + $0x14] sm:$0xf] }
 0x53b   : > { %11077 = vst [vmem:[%s12470_s3 + $0x1d8] sm:$0xff] %v10807_v20   ;;  %v4511_v45 = vpop.f32.mrf.mxu2  ;;  %v11415_v20 = vld [vmem:[#allocation11 + $0xc0] sm:$0xff] }
 0x53c   : > { %v4512_v44 = vadd.f32 %v4511_v45, %v4423_v46  ;;  %v4425_v58 = vpop.f32.mrf.mxu1  ;;  %v7921_v46 = vmul.f32 %v11415_v20, %v7882_v56 }
 0x53d   : > { %v4600_v47 = vpop.f32.mrf.mxu3  ;;  %v4336_v27 = vpop.f32.mrf.mxu0 }
 0x53e   : > { %v4601_v28 = vadd.f32 %v4600_v47, %v4512_v44  ;;  %v4426_v22 = vadd.f32 %v4425_v58, %v4336_v27  ;;  %4464 = vmatmul.bf16.gmra.mxu1 %v14629_v19  ;;  %v9653_v44 = vor.u32 %v10284_v63, %v9650_v29  ;;  %v11416_v58 = vld [vmem:[#allocation9 + $0xc0] sm:$0xff]  ;;  %v7888_v63 = vpop.permute.xlu2 %7887  ;;  %v8882_v29 = vld [vmem:[#allocation6 + $0x30] sm:$0xf0] }
 0x540   : > { %4375 = vmatmul.bf16.gmra.mxu0 %v14628_v6  ;;  %v13486_v8 = vadd.f32 %v13423_v21, %v4601_v28  ;;  %4553 = vmatmul.bf16.gmra.mxu2 %v14630_v40  ;;  %v7825_v40 = vmul.f32 %v11416_v58, %v13359_v52  ;;  %v11418_v6 = vld [vmem:[#allocation11 + $0xc8] sm:$0xff]  ;;  %v8885_v58 = vor.u32 %v10092_v37, %v8882_v29 }
 0x541   : > { %4937 = vmatpush.bf16.msrb.mxu3 %v9653_v44 }
 0x542   : > { %4642 = vmatmul.bf16.gmra.mxu3 %v14631_v41  ;;  %7334 = vrot.lane.b32.xlu2 %v13486_v8, %s11873_s2  ;;  %v11417_v41 = vld [vmem:[#allocation9 + $0xc8] sm:$0xff]  ;;  %v7953_v56 = vadd.f32 %v7921_v46, %v7825_v40 }
 0x543   : > { %v4514_v45 = vpop.f32.mrf.mxu2  ;;  %v7826_v19 = vmul.f32 %v11417_v41, %v13365_v43  ;;  %v11419_v41 = vld [vmem:[#allocation11 + $0xd8] sm:$0xff]  ;;  %4670 = vmatpush.bf16.msrb.mxu0 %v8885_v58 }
 0x544   : > { %v4515_v47 = vadd.f32 %v4514_v45, %v4426_v22  ;;  %v7884_v28 = vpop.permute.xlu0 %7883  ;;  %v4427_v59 = vpop.f32.mrf.mxu1  ;;  %v10156_v45 = vld [vmem:[#allocation6 + $0x214] sm:$0xf]  ;;  %v7924_v44 = vmul.f32 %v11419_v41, %v7888_v63 }
 0x545   : > { %v4603_v27 = vpop.f32.mrf.mxu3  ;;  %v7922_v51 = vmul.f32 %v11418_v6, %v7884_v28  ;;  %v4338_v36 = vpop.f32.mrf.mxu0  ;;  %v9141_v6 = vor.u32 %v10156_v45, %v9138_v31  ;;  %v11421_v28 = vld [vmem:[#allocation9 + $0xd0] sm:$0xff] }
 0x546   : > { %v4604_v48 = vadd.f32 %v4603_v27, %v4515_v47  ;;  %v4428_v43 = vadd.f32 %v4427_v59, %v4338_v36  ;;  %v11420_v47 = vld [vmem:[#allocation9 + $0xd8] sm:$0xff]  ;;  %v11422_v36 = vld [vmem:[#allocation11 + $0xd0] sm:$0xff] }
 0x547   : > { %v7954_v20 = vadd.f32 %v7922_v51, %v7826_v19  ;;  %4759 = vmatpush.bf16.msrb.mxu1 %v9141_v6  ;;  %v7828_v27 = vmul.f32 %v11420_v47, %v13382_v61 }
 0x548   : > { %v13496_v22 = vadd.f32 %v13423_v21, %v4604_v48  ;;  %v7827_v48 = vmul.f32 %v11421_v28, %v13375_v16  ;;  %v14632_v16 = vld [vmem:[#allocation66_spill] sm:$0xff] }
 0x549   : > { %v10812_v52 = vpack.c.bf16 %v7954_v20, %v7953_v56  ;;  %v7956_v63 = vadd.f32 %v7924_v44, %v7828_v27 }
 0x54a   : > { %7336 = vrot.lane.b32.xlu0 %v13496_v22, %s11873_s2 }
 0x54b   : > { %11078 = vst [vmem:[%s12470_s3 + $0x1e0] sm:$0xff] %v10812_v52   ;;  %v4516_v40 = vpop.f32.mrf.mxu2 }
 0x54c   : > { %v4517_v51 = vadd.f32 %v4516_v40, %v4428_v43  ;;  %v7886_v46 = vpop.permute.xlu1 %7885  ;;  %v4430_v20 = vpop.f32.mrf.mxu1 }
 0x54d   : > { %v4605_v19 = vpop.f32.mrf.mxu3  ;;  %v7923_v59 = vmul.f32 %v11422_v36, %v7886_v46  ;;  %v4341_v56 = vpop.f32.mrf.mxu0  ;;  %v14633_v36 = vld [vmem:[#allocation67_spill] sm:$0xff] }
 0x54e   : > { %v4606_v31 = vadd.f32 %v4605_v19, %v4517_v51  ;;  %v4431_v45 = vadd.f32 %v4430_v20, %v4341_v56  ;;  %4469 = vmatmul.bf16.gmra.mxu1 %v14553_v18  ;;  %v14634_v20 = vld [vmem:[#allocation68_spill] sm:$0xff] }
 0x54f   : > { %v7955_v37 = vadd.f32 %v7923_v59, %v7827_v48 }
 0x550   : > { %4380 = vmatmul.bf16.gmra.mxu0 %v14513_v11  ;;  %v13505_v29 = vadd.f32 %v13423_v21, %v4606_v31  ;;  %4558 = vmatmul.bf16.gmra.mxu2 %v14592_v42 }
 0x551   : > { %v10817_v61 = vpack.c.bf16 %v7956_v63, %v7955_v37  ;;  %v14635_v63 = vld [vmem:[#allocation69_spill] sm:$0xff]  ;;  %v14636_v37 = vld [vmem:[#allocation70_spill] sm:$0xff] }
 0x552   : > { %4647 = vmatmul.bf16.gmra.mxu3 %v14632_v16  ;;  %7338 = vrot.lane.b32.xlu1 %v13505_v29, %s11873_s2 }
 0x553   : > { %11079 = vst [vmem:[%s12470_s3 + $0x1e8] sm:$0xff] %v10817_v61   ;;  %v4519_v52 = vpop.f32.mrf.mxu2 }
 0x554   : > { %v4520_v58 = vadd.f32 %v4519_v52, %v4431_v45  ;;  %v4432_v44 = vpop.f32.mrf.mxu1  ;;  %v11423_v45 = vld [vmem:[#allocation11 + $0xe0] sm:$0xff] }
 0x555   : > { %v4608_v43 = vpop.f32.mrf.mxu3  ;;  %v4343_v6 = vpop.f32.mrf.mxu0 }
 0x556   : > { %v4609_v41 = vadd.f32 %v4608_v43, %v4520_v58  ;;  %v4433_v51 = vadd.f32 %v4432_v44, %v4343_v6  ;;  %v9624_v58 = vld [vmem:[#allocation6 + $0x5d8] sm:$0xf] }
 0x557   : > { %v10281_v43 = vld [vmem:[#allocation6 + $0x5f4] sm:$0xf0] }
 0x558   : > { %v13514_v40 = vadd.f32 %v13423_v21, %v4609_v41  ;;  %v9880_v6 = vld [vmem:[#allocation6 + $0x7d8] sm:$0xf] }
 0x55a   : > { %7340 = vrot.lane.b32.xlu2 %v13514_v40, %s11873_s2 }
 0x55b   : > { %v4521_v19 = vpop.f32.mrf.mxu2 }
 0x55c   : > { %v4522_v46 = vadd.f32 %v4521_v19, %v4433_v51  ;;  %v4435_v48 = vpop.f32.mrf.mxu1  ;;  %v7890_v56 = vpop.permute.xlu0 %7889  ;;  %v9625_v19 = vor.u32 %v10281_v43, %v9624_v58  ;;  %v9112_v58 = vld [vmem:[#allocation6 + $0x1d8] sm:$0xf] }
 0x55d   : > { %v4610_v47 = vpop.f32.mrf.mxu3  ;;  %v4346_v27 = vpop.f32.mrf.mxu0  ;;  %v7925_v61 = vmul.f32 %v11423_v45, %v7890_v56  ;;  %v10153_v43 = vld [vmem:[#allocation6 + $0x1f4] sm:$0xf0] }
 0x55e   : > { %v4611_v28 = vadd.f32 %v4610_v47, %v4522_v46  ;;  %v4436_v31 = vadd.f32 %v4435_v48, %v4346_v27  ;;  %4474 = vmatmul.bf16.gmra.mxu1 %v14634_v20  ;;  %v10345_v46 = vld [vmem:[#allocation6 + $0x7f4] sm:$0xf0]  ;;  %v11424_v47 = vld [vmem:[#allocation9 + $0xe0] sm:$0xff]  ;;  %5197 = vmatpush.bf16.msra.mxu2 %v9625_v19  ;;  %v9113_v42 = vor.u32 %v10153_v43, %v9112_v58  ;;  %v7894_v19 = vpop.permute.xlu2 %7893 }
 0x55f   : > { %v7829_v27 = vmul.f32 %v11424_v47, %v13392_v17  ;;  %v9368_v17 = vld [vmem:[#allocation6 + $0x3d8] sm:$0xf] }
 0x560   : > { %4385 = vmatmul.bf16.gmra.mxu0 %v14633_v36  ;;  %v13520_v59 = vadd.f32 %v13423_v21, %v4611_v28  ;;  %4563 = vmatmul.bf16.gmra.mxu2 %v14635_v63  ;;  %v11425_v28 = vld [vmem:[#allocation9 + $0xe8] sm:$0xff]  ;;  %v9881_v36 = vor.u32 %v10345_v46, %v9880_v6  ;;  %v14638_v46 = vld [vmem:[#allocation73_spill] sm:$0xff] }
 0x561   : > { %v7830_v48 = vmul.f32 %v11425_v28, %v13401_v30  ;;  %v7957_v16 = vadd.f32 %v7925_v61, %v7829_v27  ;;  %v10217_v30 = vld [vmem:[#allocation6 + $0x3f4] sm:$0xf0]  ;;  %5019 = vmatpush.bf16.msra.mxu0 %v9113_v42  ;;  %v14639_v27 = vld [vmem:[#allocation74_spill] sm:$0xff] }
 0x562   : > { %4652 = vmatmul.bf16.gmra.mxu3 %v14636_v37  ;;  %7342 = vrot.lane.b32.xlu0 %v13520_v59, %s11873_s2  ;;  %v11426_v37 = vld [vmem:[#allocation11 + $0xe8] sm:$0xff]  ;;  %v11427_v42 = vld [vmem:[#allocation11 + $0xf0] sm:$0xff] }
 0x563   : > { %v4524_v52 = vpop.f32.mrf.mxu2  ;;  %5286 = vmatpush.bf16.msra.mxu3 %v9881_v36 }
 0x564   : > { %v4525_v41 = vadd.f32 %v4524_v52, %v4436_v31  ;;  %v7892_v51 = vpop.permute.xlu1 %7891  ;;  %v4437_v45 = vpop.f32.mrf.mxu1 }
 0x565   : > { %v4613_v44 = vpop.f32.mrf.mxu3  ;;  %v7926_v63 = vmul.f32 %v11426_v37, %v7892_v51  ;;  %v4348_v20 = vpop.f32.mrf.mxu0  ;;  %v9369_v37 = vor.u32 %v10217_v30, %v9368_v17  ;;  %v14637_v51 = vld [vmem:[#allocation72_spill] sm:$0xff]  ;;  %v11429_v30 = vld [vmem:[#allocation9 + $0xf8] sm:$0xff] }
 0x566   : > { %v4614_v56 = vadd.f32 %v4613_v44, %v4525_v41  ;;  %v4438_v28 = vadd.f32 %v4437_v45, %v4348_v20  ;;  %v11428_v17 = vld [vmem:[#allocation9 + $0xf0] sm:$0xff] }
 0x567   : > { %v7958_v31 = vadd.f32 %v7926_v63, %v7830_v48  ;;  %5108 = vmatpush.bf16.msra.mxu1 %v9369_v37  ;;  %v14640_v48 = vld [vmem:[#allocation75_spill] sm:$0xff]  ;;  %v11430_v37 = vld [vmem:[#allocation11 + $0xf8] sm:$0xff] }
 0x568   : > { %v13530_v52 = vadd.f32 %v13423_v21, %v4614_v56  ;;  %v7927_v56 = vmul.f32 %v11427_v42, %v7894_v19 }
 0x569   : > { %v10822_v47 = vpack.c.bf16 %v7958_v31, %v7957_v16 }
 0x56a   : > { %7344 = vrot.lane.b32.xlu1 %v13530_v52, %s11873_s2 }
 0x56b   : > { %11080 = vst [vmem:[%s12470_s3 + $0x1f0] sm:$0xff] %v10822_v47   ;;  %v4526_v6 = vpop.f32.mrf.mxu2  ;;  %v7831_v47 = vmul.f32 %v11428_v17, %v13410_v60  ;;  %v11431_v60 = vld [vmem:[#allocation11 + $0x8] sm:$0xff] }
 0x56c   : > { %v4527_v61 = vadd.f32 %v4526_v6, %v4438_v28  ;;  %v4440_v44 = vpop.f32.mrf.mxu1  ;;  %v7832_v28 = vmul.f32 %v11429_v30, %v13416_v38  ;;  %v7323_v19 = vpop.permute.xlu2 %7322 }
 0x56d   : > { %v4615_v63 = vpop.f32.mrf.mxu3  ;;  %v4351_v36 = vpop.f32.mrf.mxu0  ;;  %v7385_v17 = vmul.f32 %v11431_v60, %v7323_v19  ;;  %v14641_v19 = vld [vmem:[#allocation22_spill] sm:$0xff]  ;;  %v14642_v60 = vld [vmem:[#allocation23_spill] sm:$0xff] }
 0x56e   : > { %v4616_v41 = vadd.f32 %v4615_v63, %v4527_v61  ;;  %v4441_v20 = vadd.f32 %v4440_v44, %v4351_v36  ;;  %4479 = vmatmul.bf16.gmra.mxu1 %v14638_v46 }
 0x570   : > { %4390 = vmatmul.bf16.gmra.mxu0 %v14637_v51  ;;  %v13537_v16 = vadd.f32 %v13423_v21, %v4616_v41  ;;  %4568 = vmatmul.bf16.gmra.mxu2 %v14639_v27  ;;  %v7959_v41 = vadd.f32 %v7927_v56, %v7831_v47  ;;  %v11433_v47 = vld [vmem:[#allocation9] sm:$0xff] }
 0x572   : > { %4657 = vmatmul.bf16.gmra.mxu3 %v14640_v48  ;;  %7346 = vrot.lane.b32.xlu2 %v13537_v16, %s11873_s2 }
 0x573   : > { %v4529_v45 = vpop.f32.mrf.mxu2 }
 0x574   : > { %v4530_v31 = vadd.f32 %v4529_v45, %v4441_v20  ;;  %v7896_v43 = vpop.permute.xlu0 %7895  ;;  %v4442_v36 = vpop.f32.mrf.mxu1 }
 0x575   : > { %v4618_v58 = vpop.f32.mrf.mxu3  ;;  %v7928_v6 = vmul.f32 %v11430_v37, %v7896_v43  ;;  %v4353_v61 = vpop.f32.mrf.mxu0  ;;  %v11434_v37 = vld [vmem:[#allocation11] sm:$0xff] }
 0x576   : > { %v4619_v63 = vadd.f32 %v4618_v58, %v4530_v31  ;;  %v4443_v45 = vadd.f32 %v4442_v36, %v4353_v61  ;;  %v11432_v58 = vld [vmem:[#allocation9 + $0x8] sm:$0xff] }
 0x577   : > { %v7960_v44 = vadd.f32 %v7928_v6, %v7832_v28  ;;  %v7289_v56 = vmul.f32 %v11432_v58, %v13435_v53  ;;  %v7288_v28 = vmul.f32 %v11433_v47, %v13428_v23  ;;  %v14643_v53 = vld [vmem:[#allocation24_spill] sm:$0xff]  ;;  %v14644_v23 = vld [vmem:[#allocation25_spill] sm:$0xff] }
 0x578   : > { %v13547_v20 = vadd.f32 %v13423_v21, %v4619_v63  ;;  %v10273_v58 = vld [vmem:[#allocation6 + $0x5b4] sm:$0xf0] }
 0x579   : > { %v10827_v42 = vpack.c.bf16 %v7960_v44, %v7959_v41  ;;  %v7417_v41 = vadd.f32 %v7385_v17, %v7289_v56 }
 0x57a   : > { %7348 = vrot.lane.b32.xlu0 %v13547_v20, %s11873_s2 }
 0x57b   : > { %11081 = vst [vmem:[%s12470_s3 + $0x1f8] sm:$0xff] %v10827_v42   ;;  %v4531_v38 = vpop.f32.mrf.mxu2 }
 0x57c   : > { %v4532_v43 = vadd.f32 %v4531_v38, %v4443_v45  ;;  %v7321_v31 = vpop.permute.xlu1 %7320  ;;  %v4445_v36 = vpop.f32.mrf.mxu1 }
 0x57d   : > { %v4620_v30 = vpop.f32.mrf.mxu3  ;;  %v7384_v6 = vmul.f32 %v11434_v37, %v7321_v31  ;;  %v4356_v61 = vpop.f32.mrf.mxu0  ;;  %v9592_v31 = vld [vmem:[#allocation6 + $0x598] sm:$0xf] }
 0x57e   : > { %v4621_v63 = vadd.f32 %v4620_v30, %v4532_v43  ;;  %v4446_v45 = vadd.f32 %v4445_v36, %v4356_v61  ;;  %4760 = vmatmul.bf16.vlgmr.msrb.gmra.mxu1 %v14642_v60  ;;  %v9848_v43 = vld [vmem:[#allocation6 + $0x798] sm:$0xf]  ;;  %v9593_v17 = vor.u32 %v10273_v58, %v9592_v31 }
 0x57f   : > { %v7416_v44 = vadd.f32 %v7384_v6, %v7288_v28  ;;  %v10337_v30 = vld [vmem:[#allocation6 + $0x7b4] sm:$0xf0] }
 0x580   : > { %4671 = vmatmul.bf16.vlgmr.msrb.gmra.mxu0 %v14641_v19  ;;  %v13557_v42 = vadd.f32 %v13423_v21, %v4621_v63  ;;  %4849 = vmatmul.bf16.vlgmr.msrb.gmra.mxu2 %v14643_v53  ;;  %v9849_v47 = vor.u32 %v10337_v30, %v9848_v43  ;;  %v9336_v31 = vld [vmem:[#allocation6 + $0x398] sm:$0xf] }
 0x581   : > { %v10512_v38 = vpack.c.bf16 %v7417_v41, %v7416_v44  ;;  %5198 = vmatpush.bf16.msra.mxu2 %v9593_v17  ;;  %v9080_v41 = vld [vmem:[#allocation6 + $0x198] sm:$0xf] }
 0x582   : > { %4938 = vmatmul.bf16.vlgmr.msrb.gmra.mxu3 %v14644_v23  ;;  %7350 = vrot.lane.b32.xlu1 %v13557_v42, %s11873_s2  ;;  %v10145_v44 = vld [vmem:[#allocation6 + $0x1b4] sm:$0xf0] }
 0x583   : > { %10513 = vst [vmem:[%s13566_s9] sm:$0xff] %v10512_v38   ;;  %v4534_v56 = vpop.f32.mrf.mxu2  ;;  %5287 = vmatpush.bf16.msra.mxu3 %v9849_v47  ;;  %v9081_v58 = vor.u32 %v10145_v44, %v9080_v41  ;;  %v10209_v23 = vld [vmem:[#allocation6 + $0x3b4] sm:$0xf0] }
 0x584   : > { %v4535_v28 = vadd.f32 %v4534_v56, %v4446_v45  ;;  %v4447_v63 = vpop.f32.mrf.mxu1  ;;  %v9337_v38 = vor.u32 %v10209_v23, %v9336_v31  ;;  %v11436_v31 = vld [vmem:[#allocation9 + $0x10] sm:$0xff] }
 0x585   : > { %v4623_v37 = vpop.f32.mrf.mxu3  ;;  %v4358_v6 = vpop.f32.mrf.mxu0  ;;  %5020 = vmatpush.bf16.msra.mxu0 %v9081_v58  ;;  %v7290_v58 = vmul.f32 %v11436_v31, %v13445_v9 }
 0x586   : > { %v4624_v61 = vadd.f32 %v4623_v37, %v4535_v28  ;;  %v4448_v53 = vadd.f32 %v4447_v63, %v4358_v6  ;;  %5109 = vmatpush.bf16.msra.mxu1 %v9337_v38  ;;  %v11437_v38 = vld [vmem:[#allocation9 + $0x18] sm:$0xff] }
 0x588   : > { %v13570_v36 = vadd.f32 %v13423_v21, %v4624_v61 }
 0x58a   : > { %7352 = vrot.lane.b32.xlu2 %v13570_v36, %s11873_s2 }
 0x58b   : > { %v4536_v45 = vpop.f32.mrf.mxu2 }
 0x58c   : > { %v4537_v43 = vadd.f32 %v4536_v45, %v4448_v53  ;;  %v4450_v47 = vpop.f32.mrf.mxu1  ;;  %v7325_v37 = vpop.permute.xlu0 %7324  ;;  %v11435_v53 = vld [vmem:[#allocation11 + $0x10] sm:$0xff]  ;;  %v7291_v45 = vmul.f32 %v11437_v38, %v13454_v10 }
 0x58d   : > { %v4625_v17 = vpop.f32.mrf.mxu3  ;;  %v4361_v30 = vpop.f32.mrf.mxu0  ;;  %v7386_v23 = vmul.f32 %v11435_v53, %v7325_v37 }
 0x58e   : > { %v4626_v56 = vadd.f32 %v4625_v17, %v4537_v43  ;;  %v4451_v61 = vadd.f32 %v4450_v47, %v4361_v30  ;;  %4765 = vmatmul.bf16.gmra.mxu1 %v12085_v13  ;;  %v11438_v43 = vld [vmem:[#allocation11 + $0x18] sm:$0xff] }
 0x590   : > { %4676 = vmatmul.bf16.gmra.mxu0 %v12083_v12  ;;  %v13576_v28 = vadd.f32 %v13423_v21, %v4626_v56  ;;  %4854 = vmatmul.bf16.gmra.mxu2 %v12087_v14 }
 0x592   : > { %4943 = vmatmul.bf16.gmra.mxu3 %v12089_v15  ;;  %7354 = vrot.lane.b32.xlu0 %v13576_v28, %s11873_s2  ;;  %v7418_v15 = vadd.f32 %v7386_v23, %v7290_v58  ;;  %v10265_v58 = vld [vmem:[#allocation6 + $0x574] sm:$0xf0] }
 0x593   : > { %v4539_v6 = vpop.f32.mrf.mxu2 }
 0x594   : > { %v4540_v63 = vadd.f32 %v4539_v6, %v4451_v61  ;;  %v7327_v44 = vpop.permute.xlu1 %7326  ;;  %v4452_v47 = vpop.f32.mrf.mxu1 }
 0x595   : > { %v4628_v41 = vpop.f32.mrf.mxu3  ;;  %v7387_v17 = vmul.f32 %v11438_v43, %v7327_v44  ;;  %v4363_v30 = vpop.f32.mrf.mxu0 }
 0x596   : > { %v4629_v56 = vadd.f32 %v4628_v41, %v4540_v63  ;;  %v4453_v53 = vadd.f32 %v4452_v47, %v4363_v30  ;;  %v7329_v63 = vpop.permute.xlu2 %7328  ;;  %v11439_v30 = vld [vmem:[#allocation11 + $0x20] sm:$0xff] }
 0x597   : > { %v7419_v14 = vadd.f32 %v7387_v17, %v7291_v45  ;;  %v9816_v45 = vld [vmem:[#allocation6 + $0x758] sm:$0xf] }
 0x598   : > { %v13586_v37 = vadd.f32 %v13423_v21, %v4629_v56  ;;  %v10329_v17 = vld [vmem:[#allocation6 + $0x774] sm:$0xf0]  ;;  %v7388_v56 = vmul.f32 %v11439_v30, %v7329_v63 }
 0x599   : > { %v10517_v61 = vpack.c.bf16 %v7419_v14, %v7418_v15  ;;  %v14645_v14 = vld [vmem:[#allocation32_spill] sm:$0xff] }
 0x59a   : > { %7356 = vrot.lane.b32.xlu1 %v13586_v37, %s11873_s2  ;;  %v9560_v15 = vld [vmem:[#allocation6 + $0x558] sm:$0xf] }
 0x59b   : > { %11020 = vst [vmem:[%s13566_s9 + $0x8] sm:$0xff] %v10517_v61   ;;  %v4541_v9 = vpop.f32.mrf.mxu2  ;;  %v9561_v43 = vor.u32 %v10265_v58, %v9560_v15  ;;  %v9817_v61 = vor.u32 %v10329_v17, %v9816_v45  ;;  %v10137_v17 = vld [vmem:[#allocation6 + $0x174] sm:$0xf0] }
 0x59c   : > { %v4542_v6 = vadd.f32 %v4541_v9, %v4453_v53  ;;  %v4455_v44 = vpop.f32.mrf.mxu1 }
 0x59d   : > { %v4630_v31 = vpop.f32.mrf.mxu3  ;;  %v4366_v10 = vpop.f32.mrf.mxu0  ;;  %5199 = vmatpush.bf16.msra.mxu2 %v9561_v43  ;;  %5288 = vmatpush.bf16.msra.mxu3 %v9817_v61  ;;  %v9048_v43 = vld [vmem:[#allocation6 + $0x158] sm:$0xf]  ;;  %v11443_v61 = vld [vmem:[#allocation11 + $0x38] sm:$0xff] }
 0x59e   : > { %v4631_v38 = vadd.f32 %v4630_v31, %v4542_v6  ;;  %v4456_v41 = vadd.f32 %v4455_v44, %v4366_v10  ;;  %4770 = vmatmul.bf16.gmra.mxu1 %v12105_v25  ;;  %v11440_v31 = vld [vmem:[#allocation9 + $0x20] sm:$0xff]  ;;  %v7335_v45 = vpop.permute.xlu2 %7334 }
 0x59f   : > { %v7292_v10 = vmul.f32 %v11440_v31, %v13463_v7  ;;  %v9049_v31 = vor.u32 %v10137_v17, %v9048_v43 }
 0x5a0   : > { %4681 = vmatmul.bf16.gmra.mxu0 %v12103_v24  ;;  %v13593_v23 = vadd.f32 %v13423_v21, %v4631_v38  ;;  %4859 = vmatmul.bf16.gmra.mxu2 %v12107_v26  ;;  %v11441_v38 = vld [vmem:[#allocation9 + $0x28] sm:$0xff]  ;;  %v10201_v24 = vld [vmem:[#allocation6 + $0x374] sm:$0xf0] }
 0x5a1   : > { %v7293_v44 = vmul.f32 %v11441_v38, %v13469_v4  ;;  %v7420_v63 = vadd.f32 %v7388_v56, %v7292_v10  ;;  %5021 = vmatpush.bf16.msra.mxu0 %v9049_v31  ;;  %v11444_v10 = vld [vmem:[#allocation9 + $0x38] sm:$0xff] }
 0x5a2   : > { %4948 = vmatmul.bf16.gmra.mxu3 %v14645_v14  ;;  %7358 = vrot.lane.b32.xlu2 %v13593_v23, %s11873_s2  ;;  %v11442_v14 = vld [vmem:[#allocation11 + $0x28] sm:$0xff]  ;;  %v7295_v38 = vmul.f32 %v11444_v10, %v13486_v8 }
 0x5a3   : > { %v4544_v47 = vpop.f32.mrf.mxu2 }
 0x5a4   : > { %v4545_v53 = vadd.f32 %v4544_v47, %v4456_v41  ;;  %v7331_v6 = vpop.permute.xlu0 %7330  ;;  %v4457_v58 = vpop.f32.mrf.mxu1  ;;  %v9304_v47 = vld [vmem:[#allocation6 + $0x358] sm:$0xf] }
 0x5a5   : > { %v4633_v9 = vpop.f32.mrf.mxu3  ;;  %v7389_v26 = vmul.f32 %v11442_v14, %v7331_v6  ;;  %v4368_v25 = vpop.f32.mrf.mxu0  ;;  %v9305_v14 = vor.u32 %v10201_v24, %v9304_v47 }
 0x5a6   : > { %v4634_v15 = vadd.f32 %v4633_v9, %v4545_v53  ;;  %v4458_v4 = vadd.f32 %v4457_v58, %v4368_v25  ;;  %v7391_v53 = vmul.f32 %v11443_v61, %v7335_v45  ;;  %v11446_v25 = vld [vmem:[#allocation11 + $0x30] sm:$0xff] }
 0x5a7   : > { %v7421_v30 = vadd.f32 %v7389_v26, %v7293_v44  ;;  %5110 = vmatpush.bf16.msra.mxu1 %v9305_v14  ;;  %v11445_v44 = vld [vmem:[#allocation9 + $0x30] sm:$0xff] }
 0x5a8   : > { %v13603_v41 = vadd.f32 %v13423_v21, %v4634_v15  ;;  %v7294_v15 = vmul.f32 %v11445_v44, %v13479_v39  ;;  %v7423_v45 = vadd.f32 %v7391_v53, %v7295_v38 }
 0x5a9   : > { %v10522_v7 = vpack.c.bf16 %v7421_v30, %v7420_v63 }
 0x5aa   : > { %7360 = vrot.lane.b32.xlu0 %v13603_v41, %s11873_s2 }
 0x5ab   : > { %11021 = vst [vmem:[%s13566_s9 + $0x10] sm:$0xff] %v10522_v7   ;;  %v4546_v56 = vpop.f32.mrf.mxu2 }
 0x5ac   : > { %v4547_v26 = vadd.f32 %v4546_v56, %v4458_v4  ;;  %v7333_v6 = vpop.permute.xlu1 %7332  ;;  %v4460_v30 = vpop.f32.mrf.mxu1 }
 0x5ad   : > { %v4635_v9 = vpop.f32.mrf.mxu3  ;;  %v7390_v58 = vmul.f32 %v11446_v25, %v7333_v6  ;;  %v4371_v63 = vpop.f32.mrf.mxu0 }
 0x5ae   : > { %v4636_v24 = vadd.f32 %v4635_v9, %v4547_v26  ;;  %v4461_v47 = vadd.f32 %v4460_v30, %v4371_v63  ;;  %4775 = vmatmul.bf16.gmra.mxu1 %v12125_v50  ;;  %v11447_v63 = vld [vmem:[#allocation11 + $0x40] sm:$0xff] }
 0x5af   : > { %v7422_v43 = vadd.f32 %v7390_v58, %v7294_v15 }
 0x5b0   : > { %4686 = vmatmul.bf16.gmra.mxu0 %v12123_v49  ;;  %v13612_v17 = vadd.f32 %v13423_v21, %v4636_v24  ;;  %4864 = vmatmul.bf16.gmra.mxu2 %v12127_v54 }
 0x5b1   : > { %v10527_v8 = vpack.c.bf16 %v7423_v45, %v7422_v43  ;;  %v9528_v45 = vld [vmem:[#allocation6 + $0x518] sm:$0xf] }
 0x5b2   : > { %4953 = vmatmul.bf16.gmra.mxu3 %v12129_v55  ;;  %7362 = vrot.lane.b32.xlu1 %v13612_v17, %s11873_s2  ;;  %v10257_v43 = vld [vmem:[#allocation6 + $0x534] sm:$0xf0] }
 0x5b3   : > { %11022 = vst [vmem:[%s13566_s9 + $0x18] sm:$0xff] %v10527_v8   ;;  %v4549_v39 = vpop.f32.mrf.mxu2 }
 0x5b4   : > { %v4550_v7 = vadd.f32 %v4549_v39, %v4461_v47  ;;  %v4462_v61 = vpop.f32.mrf.mxu1  ;;  %v9784_v47 = vld [vmem:[#allocation6 + $0x718] sm:$0xf] }
 0x5b5   : > { %v4638_v31 = vpop.f32.mrf.mxu3  ;;  %v4373_v4 = vpop.f32.mrf.mxu0 }
 0x5b6   : > { %v4639_v14 = vadd.f32 %v4638_v31, %v4550_v7  ;;  %v4463_v56 = vadd.f32 %v4462_v61, %v4373_v4  ;;  %v9529_v31 = vor.u32 %v10257_v43, %v9528_v45  ;;  %v10321_v4 = vld [vmem:[#allocation6 + $0x734] sm:$0xf0] }
 0x5b7   : > { %v9016_v45 = vld [vmem:[#allocation6 + $0x118] sm:$0xf] }
 0x5b8   : > { %v13621_v53 = vadd.f32 %v13423_v21, %v4639_v14  ;;  %v11448_v14 = vld [vmem:[#allocation9 + $0x40] sm:$0xff]  ;;  %5200 = vmatpush.bf16.msra.mxu2 %v9529_v31  ;;  %v10129_v43 = vld [vmem:[#allocation6 + $0x134] sm:$0xf0] }
 0x5b9   : > { %v7296_v61 = vmul.f32 %v11448_v14, %v13496_v22  ;;  %v9272_v22 = vld [vmem:[#allocation6 + $0x318] sm:$0xf] }
 0x5ba   : > { %7364 = vrot.lane.b32.xlu2 %v13621_v53, %s11873_s2 }
 0x5bb   : > { %v4551_v26 = vpop.f32.mrf.mxu2 }
 0x5bc   : > { %v4552_v9 = vadd.f32 %v4551_v26, %v4463_v56  ;;  %v4465_v44 = vpop.f32.mrf.mxu1  ;;  %v7337_v25 = vpop.permute.xlu0 %7336  ;;  %v11449_v56 = vld [vmem:[#allocation9 + $0x48] sm:$0xff] }
 0x5bd   : > { %v4640_v6 = vpop.f32.mrf.mxu3  ;;  %v4376_v10 = vpop.f32.mrf.mxu0  ;;  %v7392_v24 = vmul.f32 %v11447_v63, %v7337_v25  ;;  %v7297_v26 = vmul.f32 %v11449_v56, %v13505_v29  ;;  %v10193_v29 = vld [vmem:[#allocation6 + $0x334] sm:$0xf0] }
 0x5be   : > { %v4641_v38 = vadd.f32 %v4640_v6, %v4552_v9  ;;  %v4466_v58 = vadd.f32 %v4465_v44, %v4376_v10  ;;  %4780 = vmatmul.bf16.gmra.mxu1 %v12145_v1  ;;  %v11450_v9 = vld [vmem:[#allocation11 + $0x48] sm:$0xff] }
 0x5bf   : > { %v7424_v63 = vadd.f32 %v7392_v24, %v7296_v61  ;;  %v7341_v61 = vpop.permute.xlu2 %7340 }
 0x5c0   : > { %4691 = vmatmul.bf16.gmra.mxu0 %v12143_v0  ;;  %v13627_v15 = vadd.f32 %v13423_v21, %v4641_v38  ;;  %4869 = vmatmul.bf16.gmra.mxu2 %v12147_v2  ;;  %v9785_v38 = vor.u32 %v10321_v4, %v9784_v47  ;;  %v9273_v47 = vor.u32 %v10193_v29, %v9272_v22  ;;  %v11454_v22 = vld [vmem:[#allocation11 + $0x58] sm:$0xff] }
 0x5c2   : > { %4958 = vmatmul.bf16.gmra.mxu3 %v12149_v3  ;;  %7366 = vrot.lane.b32.xlu0 %v13627_v15, %s11873_s2  ;;  %v9017_v3 = vor.u32 %v10129_v43, %v9016_v45  ;;  %v11453_v45 = vld [vmem:[#allocation9 + $0x58] sm:$0xff] }
 0x5c3   : > { %v4554_v30 = vpop.f32.mrf.mxu2  ;;  %5289 = vmatpush.bf16.msra.mxu3 %v9785_v38  ;;  %5111 = vmatpush.bf16.msra.mxu1 %v9273_v47  ;;  %v7299_v43 = vmul.f32 %v11453_v45, %v13520_v59 }
 0x5c4   : > { %v4555_v8 = vadd.f32 %v4554_v30, %v4466_v58  ;;  %v7339_v7 = vpop.permute.xlu1 %7338  ;;  %v4467_v25 = vpop.f32.mrf.mxu1  ;;  %5022 = vmatpush.bf16.msra.mxu0 %v9017_v3  ;;  %v11451_v3 = vld [vmem:[#allocation11 + $0x50] sm:$0xff] }
 0x5c5   : > { %v4643_v39 = vpop.f32.mrf.mxu3  ;;  %v7393_v6 = vmul.f32 %v11450_v9, %v7339_v7  ;;  %v4378_v10 = vpop.f32.mrf.mxu0 }
 0x5c6   : > { %v4644_v44 = vadd.f32 %v4643_v39, %v4555_v8  ;;  %v4468_v56 = vadd.f32 %v4467_v25, %v4378_v10 }
 0x5c7   : > { %v7425_v58 = vadd.f32 %v7393_v6, %v7297_v26  ;;  %v7394_v6 = vmul.f32 %v11451_v3, %v7341_v61 }
 0x5c8   : > { %v13637_v30 = vadd.f32 %v13423_v21, %v4644_v44 }
 0x5c9   : > { %v10532_v14 = vpack.c.bf16 %v7425_v58, %v7424_v63  ;;  %v11452_v63 = vld [vmem:[#allocation9 + $0x50] sm:$0xff] }
 0x5ca   : > { %7368 = vrot.lane.b32.xlu1 %v13637_v30, %s11873_s2  ;;  %v7298_v58 = vmul.f32 %v11452_v63, %v13514_v40  ;;  %v11455_v40 = vld [vmem:[#allocation11 + $0x68] sm:$0xff]  ;;  %v11458_v63 = vld [vmem:[#allocation11 + $0x60] sm:$0xff] }
 0x5cb   : > { %11023 = vst [vmem:[%s13566_s9 + $0x20] sm:$0xff] %v10532_v14   ;;  %v4556_v8 = vpop.f32.mrf.mxu2 }
 0x5cc   : > { %v4557_v24 = vadd.f32 %v4556_v8, %v4468_v56  ;;  %v4470_v4 = vpop.f32.mrf.mxu1  ;;  %v7426_v8 = vadd.f32 %v7394_v6, %v7298_v58 }
 0x5cd   : > { %v4645_v39 = vpop.f32.mrf.mxu3  ;;  %v4381_v7 = vpop.f32.mrf.mxu0 }
 0x5ce   : > { %v4646_v31 = vadd.f32 %v4645_v39, %v4557_v24  ;;  %v4471_v9 = vadd.f32 %v4470_v4, %v4381_v7  ;;  %4785 = vmatmul.bf16.gmra.mxu1 %v12165_v33  ;;  %v7347_v39 = vpop.permute.xlu2 %7346 }
 0x5cf   : > { %v7397_v61 = vmul.f32 %v11455_v40, %v7347_v39  ;;  %v9496_v39 = vld [vmem:[#allocation6 + $0x4d8] sm:$0xf] }
 0x5d0   : > { %4696 = vmatmul.bf16.gmra.mxu0 %v12163_v32  ;;  %v13644_v26 = vadd.f32 %v13423_v21, %v4646_v31  ;;  %4874 = vmatmul.bf16.gmra.mxu2 %v12167_v34 }
 0x5d2   : > { %4963 = vmatmul.bf16.gmra.mxu3 %v12169_v35  ;;  %7370 = vrot.lane.b32.xlu2 %v13644_v26, %s11873_s2 }
 0x5d3   : > { %v4559_v10 = vpop.f32.mrf.mxu2 }
 0x5d4   : > { %v4560_v38 = vadd.f32 %v4559_v10, %v4471_v9  ;;  %v7343_v25 = vpop.permute.xlu0 %7342  ;;  %v4472_v47 = vpop.f32.mrf.mxu1 }
 0x5d5   : > { %v4648_v44 = vpop.f32.mrf.mxu3  ;;  %v7395_v14 = vmul.f32 %v11454_v22, %v7343_v25  ;;  %v4383_v29 = vpop.f32.mrf.mxu0 }
 0x5d6   : > { %v4649_v56 = vadd.f32 %v4648_v44, %v4560_v38  ;;  %v4473_v4 = vadd.f32 %v4472_v47, %v4383_v29  ;;  %v11456_v38 = vld [vmem:[#allocation9 + $0x68] sm:$0xff]  ;;  %v11457_v44 = vld [vmem:[#allocation9 + $0x60] sm:$0xff] }
 0x5d7   : > { %v7427_v24 = vadd.f32 %v7395_v14, %v7299_v43  ;;  %v7301_v6 = vmul.f32 %v11456_v38, %v13537_v16  ;;  %v7300_v25 = vmul.f32 %v11457_v44, %v13530_v52  ;;  %v14647_v16 = vld [vmem:[#allocation37_spill] sm:$0xff]  ;;  %v14648_v52 = vld [vmem:[#allocation38_spill] sm:$0xff] }
 0x5d8   : > { %v13654_v7 = vadd.f32 %v13423_v21, %v4649_v56 }
 0x5d9   : > { %v10537_v31 = vpack.c.bf16 %v7427_v24, %v7426_v8  ;;  %v7429_v14 = vadd.f32 %v7397_v61, %v7301_v6  ;;  %v14646_v8 = vld [vmem:[#allocation36_spill] sm:$0xff] }
 0x5da   : > { %7372 = vrot.lane.b32.xlu0 %v13654_v7, %s11873_s2  ;;  %v10313_v61 = vld [vmem:[#allocation6 + $0x6f4] sm:$0xf0] }
 0x5db   : > { %11024 = vst [vmem:[%s13566_s9 + $0x28] sm:$0xff] %v10537_v31   ;;  %v4561_v59 = vpop.f32.mrf.mxu2  ;;  %v10249_v31 = vld [vmem:[#allocation6 + $0x4f4] sm:$0xf0] }
 0x5dc   : > { %v4562_v9 = vadd.f32 %v4561_v59, %v4473_v4  ;;  %v7345_v10 = vpop.permute.xlu1 %7344  ;;  %v4475_v22 = vpop.f32.mrf.mxu1  ;;  %v9752_v4 = vld [vmem:[#allocation6 + $0x6d8] sm:$0xf]  ;;  %v9497_v40 = vor.u32 %v10249_v31, %v9496_v39 }
 0x5dd   : > { %v4650_v3 = vpop.f32.mrf.mxu3  ;;  %v7396_v58 = vmul.f32 %v11458_v63, %v7345_v10  ;;  %v4386_v45 = vpop.f32.mrf.mxu0  ;;  %v8984_v63 = vld [vmem:[#allocation6 + $0xd8] sm:$0xf] }
 0x5de   : > { %v4651_v43 = vadd.f32 %v4650_v3, %v4562_v9  ;;  %v4476_v47 = vadd.f32 %v4475_v22, %v4386_v45  ;;  %4790 = vmatmul.bf16.gmra.mxu1 %v14646_v8  ;;  %v9753_v9 = vor.u32 %v10313_v61, %v9752_v4  ;;  %5201 = vmatpush.bf16.msra.mxu2 %v9497_v40  ;;  %v9240_v45 = vld [vmem:[#allocation6 + $0x2d8] sm:$0xf] }
 0x5df   : > { %v7428_v29 = vadd.f32 %v7396_v58, %v7300_v25  ;;  %v10121_v58 = vld [vmem:[#allocation6 + $0xf4] sm:$0xf0] }
 0x5e0   : > { %4701 = vmatmul.bf16.gmra.mxu0 %v14606_v5  ;;  %v13663_v56 = vadd.f32 %v13423_v21, %v4651_v43  ;;  %4879 = vmatmul.bf16.gmra.mxu2 %v14647_v16  ;;  %v8985_v43 = vor.u32 %v10121_v58, %v8984_v63  ;;  %v10185_v22 = vld [vmem:[#allocation6 + $0x2f4] sm:$0xf0] }
 0x5e1   : > { %v10542_v24 = vpack.c.bf16 %v7429_v14, %v7428_v29  ;;  %5290 = vmatpush.bf16.msra.mxu3 %v9753_v9  ;;  %v9241_v29 = vor.u32 %v10185_v22, %v9240_v45  ;;  %v11460_v22 = vld [vmem:[#allocation9 + $0x70] sm:$0xff] }
 0x5e2   : > { %4968 = vmatmul.bf16.gmra.mxu3 %v14648_v52  ;;  %7374 = vrot.lane.b32.xlu1 %v13663_v56, %s11873_s2  ;;  %v10177_v52 = vld [vmem:[#allocation6 + $0x2b4] sm:$0xf0] }
 0x5e3   : > { %11025 = vst [vmem:[%s13566_s9 + $0x30] sm:$0xff] %v10542_v24   ;;  %v4564_v59 = vpop.f32.mrf.mxu2  ;;  %5023 = vmatpush.bf16.msra.mxu0 %v8985_v43  ;;  %5112 = vmatpush.bf16.msra.mxu1 %v9241_v29  ;;  %v11461_v29 = vld [vmem:[#allocation9 + $0x78] sm:$0xff] }
 0x5e4   : > { %v4565_v3 = vadd.f32 %v4564_v59, %v4476_v47  ;;  %v4477_v44 = vpop.f32.mrf.mxu1 }
 0x5e5   : > { %v4653_v10 = vpop.f32.mrf.mxu3  ;;  %v4388_v38 = vpop.f32.mrf.mxu0 }
 0x5e6   : > { %v4654_v6 = vadd.f32 %v4653_v10, %v4565_v3  ;;  %v4478_v14 = vadd.f32 %v4477_v44, %v4388_v38  ;;  %v14649_v3 = vld [vmem:[#allocation40_spill] sm:$0xff]  ;;  %v14650_v10 = vld [vmem:[#allocation41_spill] sm:$0xff]  ;;  %v14651_v38 = vld [vmem:[#allocation42_spill] sm:$0xff] }
 0x5e8   : > { %v13672_v25 = vadd.f32 %v13423_v21, %v4654_v6  ;;  %v11459_v6 = vld [vmem:[#allocation11 + $0x70] sm:$0xff] }
 0x5ea   : > { %7376 = vrot.lane.b32.xlu2 %v13672_v25, %s11873_s2 }
 0x5eb   : > { %v4566_v47 = vpop.f32.mrf.mxu2 }
 0x5ec   : > { %v4567_v24 = vadd.f32 %v4566_v47, %v4478_v14  ;;  %v4480_v40 = vpop.f32.mrf.mxu1  ;;  %v7349_v59 = vpop.permute.xlu0 %7348  ;;  %v7302_v14 = vmul.f32 %v11460_v22, %v13547_v20  ;;  %v7303_v47 = vmul.f32 %v11461_v29, %v13557_v42 }
 0x5ed   : > { %v4655_v39 = vpop.f32.mrf.mxu3  ;;  %v4391_v31 = vpop.f32.mrf.mxu0  ;;  %v7398_v44 = vmul.f32 %v11459_v6, %v7349_v59 }
 0x5ee   : > { %v4656_v4 = vadd.f32 %v4655_v39, %v4567_v24  ;;  %v4481_v9 = vadd.f32 %v4480_v40, %v4391_v31  ;;  %4795 = vmatmul.bf16.gmra.mxu1 %v14649_v3  ;;  %v11462_v24 = vld [vmem:[#allocation11 + $0x78] sm:$0xff]  ;;  %v11467_v3 = vld [vmem:[#allocation11 + $0x88] sm:$0xff] }
 0x5f0   : > { %4706 = vmatmul.bf16.gmra.mxu0 %v14570_v57  ;;  %v13678_v61 = vadd.f32 %v13423_v21, %v4656_v4  ;;  %4884 = vmatmul.bf16.gmra.mxu2 %v14650_v10  ;;  %v9208_v57 = vld [vmem:[#allocation6 + $0x298] sm:$0xf] }
 0x5f2   : > { %4973 = vmatmul.bf16.gmra.mxu3 %v14651_v38  ;;  %7378 = vrot.lane.b32.xlu0 %v13678_v61, %s11873_s2  ;;  %v7430_v38 = vadd.f32 %v7398_v44, %v7302_v14  ;;  %v14653_v14 = vld [vmem:[#allocation44_spill] sm:$0xff] }
 0x5f3   : > { %v4569_v63 = vpop.f32.mrf.mxu2 }
 0x5f4   : > { %v4570_v58 = vadd.f32 %v4569_v63, %v4481_v9  ;;  %v7351_v43 = vpop.permute.xlu1 %7350  ;;  %v4482_v40 = vpop.f32.mrf.mxu1 }
 0x5f5   : > { %v4658_v45 = vpop.f32.mrf.mxu3  ;;  %v7399_v39 = vmul.f32 %v11462_v24, %v7351_v43  ;;  %v4393_v31 = vpop.f32.mrf.mxu0  ;;  %v14652_v24 = vld [vmem:[#allocation43_spill] sm:$0xff] }
 0x5f6   : > { %v4659_v4 = vadd.f32 %v4658_v45, %v4570_v58  ;;  %v4483_v6 = vadd.f32 %v4482_v40, %v4393_v31  ;;  %v7353_v58 = vpop.permute.xlu2 %7352  ;;  %v9720_v31 = vld [vmem:[#allocation6 + $0x698] sm:$0xf] }
 0x5f7   : > { %v7431_v10 = vadd.f32 %v7399_v39, %v7303_v47  ;;  %v9464_v47 = vld [vmem:[#allocation6 + $0x498] sm:$0xf] }
 0x5f8   : > { %v13688_v59 = vadd.f32 %v13423_v21, %v4659_v4  ;;  %v10241_v39 = vld [vmem:[#allocation6 + $0x4b4] sm:$0xf0] }
 0x5f9   : > { %v10547_v9 = vpack.c.bf16 %v7431_v10, %v7430_v38  ;;  %v14654_v10 = vld [vmem:[#allocation45_spill] sm:$0xff]  ;;  %v14655_v38 = vld [vmem:[#allocation46_spill] sm:$0xff]  ;;  %v9465_v4 = vor.u32 %v10241_v39, %v9464_v47  ;;  %v10305_v40 = vld [vmem:[#allocation6 + $0x6b4] sm:$0xf0] }
 0x5fa   : > { %7380 = vrot.lane.b32.xlu1 %v13688_v59, %s11873_s2 }
 0x5fb   : > { %11026 = vst [vmem:[%s13566_s9 + $0x38] sm:$0xff] %v10547_v9   ;;  %v4571_v20 = vpop.f32.mrf.mxu2  ;;  %v11463_v9 = vld [vmem:[#allocation11 + $0x80] sm:$0xff]  ;;  %5202 = vmatpush.bf16.msra.mxu2 %v9465_v4  ;;  %v8952_v4 = vld [vmem:[#allocation6 + $0x98] sm:$0xf] }
 0x5fc   : > { %v4572_v63 = vadd.f32 %v4571_v20, %v4483_v6  ;;  %v4761_v43 = vpop.f32.mrf.mxu1  ;;  %v7400_v6 = vmul.f32 %v11463_v9, %v7353_v58 }
 0x5fd   : > { %v4660_v22 = vpop.f32.mrf.mxu3  ;;  %v4672_v42 = vpop.f32.mrf.mxu0 }
 0x5fe   : > { %v4661_v29 = vadd.f32 %v4660_v22, %v4572_v63  ;;  %v4762_v45 = vadd.f32 %v4761_v43, %v4672_v42  ;;  %4800 = vmatmul.bf16.gmra.mxu1 %v14653_v14  ;;  %v11464_v42 = vld [vmem:[#allocation8] sm:$0xff]  ;;  %v11466_v14 = vld [vmem:[#allocation9 + $0x88] sm:$0xff] }
 0x600   : > { %4711 = vmatmul.bf16.gmra.mxu0 %v14652_v24  ;;  %v13695_v44 = vadd.f32 %v13423_v21, %v4661_v29  ;;  %4889 = vmatmul.bf16.gmra.mxu2 %v14654_v10  ;;  %v9721_v21 = vor.u32 %v10305_v40, %v9720_v31  ;;  %v13702_v29 = vperm.slane %v11464_v42, 5  ;;  %v7305_v24 = vmul.f32 %v11466_v14, %v13576_v28  ;;  %v7359_v40 = vpop.permute.xlu2 %7358  ;;  %v10113_v42 = vld [vmem:[#allocation6 + $0xb4] sm:$0xf0]  ;;  %v11468_v14 = vld [vmem:[#allocation11 + $0x98] sm:$0xff] }
 0x602   : > { %4978 = vmatmul.bf16.gmra.mxu3 %v14655_v38  ;;  %7382 = vrot.lane.b32.xlu2 %v13695_v44, %s11873_s2  ;;  %v11465_v38 = vld [vmem:[#allocation9 + $0x80] sm:$0xff] }
 0x603   : > { %v4850_v20 = vpop.f32.mrf.mxu2  ;;  %v7304_v10 = vmul.f32 %v11465_v38, %v13570_v36  ;;  %5291 = vmatpush.bf16.msra.mxu3 %v9721_v21  ;;  %v8953_v38 = vor.u32 %v10113_v42, %v8952_v4  ;;  %v7403_v21 = vmul.f32 %v11468_v14, %v7359_v40 }
 0x604   : > { %v4851_v63 = vadd.f32 %v4850_v20, %v4762_v45  ;;  %v7355_v43 = vpop.permute.xlu0 %7354  ;;  %v4763_v9 = vpop.f32.mrf.mxu1 }
 0x605   : > { %v4939_v22 = vpop.f32.mrf.mxu3  ;;  %v7401_v47 = vmul.f32 %v11467_v3, %v7355_v43  ;;  %v4674_v39 = vpop.f32.mrf.mxu0  ;;  %v7432_v45 = vadd.f32 %v7400_v6, %v7304_v10  ;;  %v9209_v3 = vor.u32 %v10177_v52, %v9208_v57  ;;  %5024 = vmatpush.bf16.msra.mxu0 %v8953_v38 }
 0x606   : > { %v4940_v58 = vadd.f32 %v4939_v22, %v4851_v63  ;;  %v4764_v28 = vadd.f32 %v4763_v9, %v4674_v39  ;;  %v11469_v22 = vld [vmem:[#allocation9 + $0x98] sm:$0xff]  ;;  %v11471_v39 = vld [vmem:[#allocation11 + $0x90] sm:$0xff] }
 0x607   : > { %v7433_v31 = vadd.f32 %v7401_v47, %v7305_v24  ;;  %5113 = vmatpush.bf16.msra.mxu1 %v9209_v3  ;;  %v7307_v43 = vmul.f32 %v11469_v22, %v13593_v23  ;;  %v11470_v47 = vld [vmem:[#allocation9 + $0x90] sm:$0xff]  ;;  %v14657_v23 = vld [vmem:[#allocation49_spill] sm:$0xff] }
 0x608   : > { %v13707_v20 = vadd.f32 %v13702_v29, %v4940_v58  ;;  %v7306_v58 = vmul.f32 %v11470_v47, %v13586_v37  ;;  %v14658_v37 = vld [vmem:[#allocation50_spill] sm:$0xff] }
 0x609   : > { %v10552_v36 = vpack.c.bf16 %v7433_v31, %v7432_v45  ;;  %v7435_v31 = vadd.f32 %v7403_v21, %v7307_v43 }
 0x60a   : > { %8057 = vrot.lane.b32.xlu1 %v13707_v20, %s11873_s2 }
 0x60b   : > { %11027 = vst [vmem:[%s13566_s9 + $0x40] sm:$0xff] %v10552_v36   ;;  %v4852_v10 = vpop.f32.mrf.mxu2  ;;  %v14656_v36 = vld [vmem:[#allocation48_spill] sm:$0xff] }
 0x60c   : > { %v4853_v24 = vadd.f32 %v4852_v10, %v4764_v28  ;;  %v7357_v63 = vpop.permute.xlu1 %7356  ;;  %v4766_v52 = vpop.f32.mrf.mxu1 }
 0x60d   : > { %v4941_v6 = vpop.f32.mrf.mxu3  ;;  %v7402_v9 = vmul.f32 %v11471_v39, %v7357_v63  ;;  %v4677_v45 = vpop.f32.mrf.mxu0 }
 0x60e   : > { %v4942_v57 = vadd.f32 %v4941_v6, %v4853_v24  ;;  %v4767_v42 = vadd.f32 %v4766_v52, %v4677_v45  ;;  %4805 = vmatmul.bf16.gmra.mxu1 %v14656_v36  ;;  %v14659_v45 = vld [vmem:[#allocation51_spill] sm:$0xff] }
 0x60f   : > { %v7434_v40 = vadd.f32 %v7402_v9, %v7306_v58 }
 0x610   : > { %4716 = vmatmul.bf16.gmra.mxu0 %v14616_v62  ;;  %v13716_v4 = vadd.f32 %v13702_v29, %v4942_v57  ;;  %4894 = vmatmul.bf16.gmra.mxu2 %v14657_v23 }
 0x611   : > { %v10557_v38 = vpack.c.bf16 %v7435_v31, %v7434_v40  ;;  %v14660_v40 = vld [vmem:[#allocation52_spill] sm:$0xff] }
 0x612   : > { %4983 = vmatmul.bf16.gmra.mxu3 %v14658_v37  ;;  %8059 = vrot.lane.b32.xlu2 %v13716_v4, %s11873_s2 }
 0x613   : > { %11028 = vst [vmem:[%s13566_s9 + $0x48] sm:$0xff] %v10557_v38   ;;  %v4855_v28 = vpop.f32.mrf.mxu2  ;;  %v14662_v38 = vld [vmem:[#allocation54_spill] sm:$0xff] }
 0x614   : > { %v4856_v3 = vadd.f32 %v4855_v28, %v4767_v42  ;;  %v4768_v24 = vpop.f32.mrf.mxu1  ;;  %v14661_v42 = vld [vmem:[#allocation53_spill] sm:$0xff]  ;;  %v11472_v28 = vld [vmem:[#allocation11 + $0xa0] sm:$0xff] }
 0x615   : > { %v4944_v14 = vpop.f32.mrf.mxu3  ;;  %v4679_v21 = vpop.f32.mrf.mxu0 }
 0x616   : > { %v4945_v10 = vadd.f32 %v4944_v14, %v4856_v3  ;;  %v4769_v63 = vadd.f32 %v4768_v24, %v4679_v21  ;;  %v9432_v21 = vld [vmem:[#allocation6 + $0x458] sm:$0xf] }
 0x617   : > { %v9688_v24 = vld [vmem:[#allocation6 + $0x658] sm:$0xf] }
 0x618   : > { %v13725_v6 = vadd.f32 %v13702_v29, %v4945_v10  ;;  %v10233_v10 = vld [vmem:[#allocation6 + $0x474] sm:$0xf0] }
 0x61a   : > { %8061 = vrot.lane.b32.xlu0 %v13725_v6, %s11873_s2 }
 0x61b   : > { %v4857_v22 = vpop.f32.mrf.mxu2 }
 0x61c   : > { %v4858_v43 = vadd.f32 %v4857_v22, %v4769_v63  ;;  %v4771_v9 = vpop.f32.mrf.mxu1  ;;  %v7361_v52 = vpop.permute.xlu0 %7360 }
 0x61d   : > { %v4946_v47 = vpop.f32.mrf.mxu3  ;;  %v4682_v58 = vpop.f32.mrf.mxu0  ;;  %v7404_v3 = vmul.f32 %v11472_v28, %v7361_v52 }
 0x61e   : > { %v4947_v39 = vadd.f32 %v4946_v47, %v4858_v43  ;;  %v4772_v31 = vadd.f32 %v4771_v9, %v4682_v58  ;;  %4810 = vmatmul.bf16.gmra.mxu1 %v14660_v40  ;;  %v9433_v47 = vor.u32 %v10233_v10, %v9432_v21  ;;  %v10297_v58 = vld [vmem:[#allocation6 + $0x674] sm:$0xf0]  ;;  %v11475_v40 = vld [vmem:[#allocation11 + $0xa8] sm:$0xff] }
 0x61f   : > { %v9689_v23 = vor.u32 %v10297_v58, %v9688_v24  ;;  %v8920_v21 = vld [vmem:[#allocation6 + $0x58] sm:$0xf]  ;;  %v14665_v58 = vld [vmem:[#allocation57_spill] sm:$0xff] }
 0x620   : > { %4721 = vmatmul.bf16.gmra.mxu0 %v14659_v45  ;;  %v13731_v57 = vadd.f32 %v13702_v29, %v4947_v39  ;;  %4899 = vmatmul.bf16.gmra.mxu2 %v14661_v42  ;;  %v11473_v39 = vld [vmem:[#allocation9 + $0xa0] sm:$0xff]  ;;  %v11474_v42 = vld [vmem:[#allocation9 + $0xa8] sm:$0xff]  ;;  %v10105_v10 = vld [vmem:[#allocation6 + $0x74] sm:$0xf0] }
 0x621   : > { %v7308_v9 = vmul.f32 %v11473_v39, %v13603_v41  ;;  %5203 = vmatpush.bf16.msra.mxu2 %v9433_v47  ;;  %5292 = vmatpush.bf16.msra.mxu3 %v9689_v23  ;;  %v9176_v41 = vld [vmem:[#allocation6 + $0x258] sm:$0xf]  ;;  %v8921_v62 = vor.u32 %v10105_v10, %v8920_v21 }
 0x622   : > { %4988 = vmatmul.bf16.gmra.mxu3 %v14662_v38  ;;  %8063 = vrot.lane.b32.xlu1 %v13731_v57, %s11873_s2  ;;  %v7309_v38 = vmul.f32 %v11474_v42, %v13612_v17  ;;  %v10169_v17 = vld [vmem:[#allocation6 + $0x274] sm:$0xf0] }
 0x623   : > { %v4860_v14 = vpop.f32.mrf.mxu2  ;;  %v7436_v36 = vadd.f32 %v7404_v3, %v7308_v9  ;;  %5025 = vmatpush.bf16.msra.mxu0 %v8921_v62  ;;  %v14664_v47 = vld [vmem:[#allocation56_spill] sm:$0xff]  ;;  %v14666_v9 = vld [vmem:[#allocation58_spill] sm:$0xff] }
 0x624   : > { %v4861_v63 = vadd.f32 %v4860_v14, %v4772_v31  ;;  %v7363_v43 = vpop.permute.xlu1 %7362  ;;  %v4773_v28 = vpop.f32.mrf.mxu1  ;;  %v11476_v62 = vld [vmem:[#allocation11 + $0xb0] sm:$0xff] }
 0x625   : > { %v4949_v22 = vpop.f32.mrf.mxu3  ;;  %v7405_v45 = vmul.f32 %v11475_v40, %v7363_v43  ;;  %v4684_v37 = vpop.f32.mrf.mxu0  ;;  %v9177_v40 = vor.u32 %v10169_v17, %v9176_v41  ;;  %v11477_v41 = vld [vmem:[#allocation9 + $0xb0] sm:$0xff]  ;;  %v11478_v17 = vld [vmem:[#allocation9 + $0xb8] sm:$0xff] }
 0x626   : > { %v4950_v52 = vadd.f32 %v4949_v22, %v4861_v63  ;;  %v4774_v42 = vadd.f32 %v4773_v28, %v4684_v37  ;;  %v14663_v22 = vld [vmem:[#allocation55_spill] sm:$0xff]  ;;  %v7365_v43 = vpop.permute.xlu2 %7364 }
 0x627   : > { %v7437_v31 = vadd.f32 %v7405_v45, %v7309_v38  ;;  %5114 = vmatpush.bf16.msra.mxu1 %v9177_v40  ;;  %v11479_v40 = vld [vmem:[#allocation11 + $0xb8] sm:$0xff] }
 0x628   : > { %v13741_v14 = vadd.f32 %v13702_v29, %v4950_v52  ;;  %v7406_v52 = vmul.f32 %v11476_v62, %v7365_v43 }
 0x629   : > { %v10562_v39 = vpack.c.bf16 %v7437_v31, %v7436_v36 }
 0x62a   : > { %8065 = vrot.lane.b32.xlu2 %v13741_v14, %s11873_s2 }
 0x62b   : > { %11029 = vst [vmem:[%s13566_s9 + $0x50] sm:$0xff] %v10562_v39   ;;  %v4862_v24 = vpop.f32.mrf.mxu2  ;;  %v7310_v39 = vmul.f32 %v11477_v41, %v13621_v53  ;;  %v11480_v53 = vld [vmem:[#allocation11 + $0xc8] sm:$0xff] }
 0x62c   : > { %v4863_v3 = vadd.f32 %v4862_v24, %v4774_v42  ;;  %v4776_v63 = vpop.f32.mrf.mxu1  ;;  %v7311_v42 = vmul.f32 %v11478_v17, %v13627_v15 }
 0x62d   : > { %v4951_v45 = vpop.f32.mrf.mxu3  ;;  %v4687_v23 = vpop.f32.mrf.mxu0 }
 0x62e   : > { %v4952_v38 = vadd.f32 %v4951_v45, %v4863_v3  ;;  %v4777_v37 = vadd.f32 %v4776_v63, %v4687_v23  ;;  %4815 = vmatmul.bf16.gmra.mxu1 %v14664_v47 }
 0x630   : > { %4726 = vmatmul.bf16.gmra.mxu0 %v14663_v22  ;;  %v13748_v36 = vadd.f32 %v13702_v29, %v4952_v38  ;;  %4904 = vmatmul.bf16.gmra.mxu2 %v14665_v58  ;;  %v7438_v38 = vadd.f32 %v7406_v52, %v7310_v39 }
 0x632   : > { %4993 = vmatmul.bf16.gmra.mxu3 %v14666_v9  ;;  %8067 = vrot.lane.b32.xlu0 %v13748_v36, %s11873_s2  ;;  %v7371_v9 = vpop.permute.xlu2 %7370 }
 0x633   : > { %v4865_v28 = vpop.f32.mrf.mxu2 }
 0x634   : > { %v4866_v31 = vadd.f32 %v4865_v28, %v4777_v37  ;;  %v7367_v10 = vpop.permute.xlu0 %7366  ;;  %v4778_v23 = vpop.f32.mrf.mxu1  ;;  %v7409_v28 = vmul.f32 %v11480_v53, %v7371_v9  ;;  %v14667_v9 = vld [vmem:[#allocation59_spill] sm:$0xff] }
 0x635   : > { %v4954_v21 = vpop.f32.mrf.mxu3  ;;  %v7407_v24 = vmul.f32 %v11479_v40, %v7367_v10  ;;  %v4689_v3 = vpop.f32.mrf.mxu0 }
 0x636   : > { %v4955_v45 = vadd.f32 %v4954_v21, %v4866_v31  ;;  %v4779_v62 = vadd.f32 %v4778_v23, %v4689_v3  ;;  %v11481_v31 = vld [vmem:[#allocation9 + $0xc8] sm:$0xff]  ;;  %v11482_v21 = vld [vmem:[#allocation9 + $0xc0] sm:$0xff] }
 0x637   : > { %v7439_v63 = vadd.f32 %v7407_v24, %v7311_v42  ;;  %v7313_v52 = vmul.f32 %v11481_v31, %v13644_v26  ;;  %v7312_v39 = vmul.f32 %v11482_v21, %v13637_v30  ;;  %v11483_v42 = vld [vmem:[#allocation11 + $0xc0] sm:$0xff]  ;;  %v14669_v26 = vld [vmem:[#allocation61_spill] sm:$0xff] }
 0x638   : > { %v13758_v43 = vadd.f32 %v13702_v29, %v4955_v45  ;;  %v14670_v30 = vld [vmem:[#allocation62_spill] sm:$0xff] }
 0x639   : > { %v10567_v37 = vpack.c.bf16 %v7439_v63, %v7438_v38  ;;  %v7441_v23 = vadd.f32 %v7409_v28, %v7313_v52 }
 0x63a   : > { %8069 = vrot.lane.b32.xlu1 %v13758_v43, %s11873_s2 }
 0x63b   : > { %11030 = vst [vmem:[%s13566_s9 + $0x58] sm:$0xff] %v10567_v37   ;;  %v4867_v15 = vpop.f32.mrf.mxu2 }
 0x63c   : > { %v4868_v41 = vadd.f32 %v4867_v15, %v4779_v62  ;;  %v7369_v17 = vpop.permute.xlu1 %7368  ;;  %v4781_v45 = vpop.f32.mrf.mxu1  ;;  %v14668_v62 = vld [vmem:[#allocation60_spill] sm:$0xff] }
 0x63d   : > { %v4956_v10 = vpop.f32.mrf.mxu3  ;;  %v7408_v40 = vmul.f32 %v11483_v42, %v7369_v17  ;;  %v4692_v24 = vpop.f32.mrf.mxu0  ;;  %v9400_v15 = vld [vmem:[#allocation6 + $0x418] sm:$0xf] }
 0x63e   : > { %v4957_v3 = vadd.f32 %v4956_v10, %v4868_v41  ;;  %v4782_v37 = vadd.f32 %v4781_v45, %v4692_v24  ;;  %4820 = vmatmul.bf16.gmra.mxu1 %v14668_v62  ;;  %v10225_v17 = vld [vmem:[#allocation6 + $0x434] sm:$0xf0] }
 0x63f   : > { %v7440_v38 = vadd.f32 %v7408_v40, %v7312_v39  ;;  %v9656_v41 = vld [vmem:[#allocation6 + $0x618] sm:$0xf]  ;;  %v9401_v28 = vor.u32 %v10225_v17, %v9400_v15 }
 0x640   : > { %4731 = vmatmul.bf16.gmra.mxu0 %v14667_v9  ;;  %v13767_v63 = vadd.f32 %v13702_v29, %v4957_v3  ;;  %4909 = vmatmul.bf16.gmra.mxu2 %v14669_v26  ;;  %v10289_v10 = vld [vmem:[#allocation6 + $0x634] sm:$0xf0] }
 0x641   : > { %v10572_v53 = vpack.c.bf16 %v7441_v23, %v7440_v38  ;;  %v9657_v52 = vor.u32 %v10289_v10, %v9656_v41  ;;  %5204 = vmatpush.bf16.msra.mxu2 %v9401_v28  ;;  %v8888_v45 = vld [vmem:[#allocation6 + $0x18] sm:$0xf] }
 0x642   : > { %4998 = vmatmul.bf16.gmra.mxu3 %v14670_v30  ;;  %8071 = vrot.lane.b32.xlu2 %v13767_v63, %s11873_s2  ;;  %v10097_v23 = vld [vmem:[#allocation6 + $0x34] sm:$0xf0] }
 0x643   : > { %11031 = vst [vmem:[%s13566_s9 + $0x60] sm:$0xff] %v10572_v53   ;;  %v4870_v31 = vpop.f32.mrf.mxu2  ;;  %5293 = vmatpush.bf16.msra.mxu3 %v9657_v52  ;;  %v9144_v38 = vld [vmem:[#allocation6 + $0x218] sm:$0xf]  ;;  %v8889_v30 = vor.u32 %v10097_v23, %v8888_v45 }
 0x644   : > { %v4871_v21 = vadd.f32 %v4870_v31, %v4782_v37  ;;  %v4783_v24 = vpop.f32.mrf.mxu1  ;;  %v10161_v26 = vld [vmem:[#allocation6 + $0x234] sm:$0xf0] }
 0x645   : > { %v4959_v39 = vpop.f32.mrf.mxu3  ;;  %v4694_v42 = vpop.f32.mrf.mxu0  ;;  %v9145_v53 = vor.u32 %v10161_v26, %v9144_v38  ;;  %5026 = vmatpush.bf16.msra.mxu0 %v8889_v30  ;;  %v14672_v26 = vld [vmem:[#allocation66_spill] sm:$0xff]  ;;  %v11484_v30 = vld [vmem:[#allocation11 + $0xd0] sm:$0xff] }
 0x646   : > { %v4960_v40 = vadd.f32 %v4959_v39, %v4871_v21  ;;  %v4784_v15 = vadd.f32 %v4783_v24, %v4694_v42  ;;  %v14671_v42 = vld [vmem:[#allocation65_spill] sm:$0xff] }
 0x647   : > { %5115 = vmatpush.bf16.msra.mxu1 %v9145_v53 }
 0x648   : > { %v13776_v3 = vadd.f32 %v13702_v29, %v4960_v40 }
 0x64a   : > { %8073 = vrot.lane.b32.xlu0 %v13776_v3, %s11873_s2 }
 0x64b   : > { %v4872_v37 = vpop.f32.mrf.mxu2 }
 0x64c   : > { %v4873_v17 = vadd.f32 %v4872_v37, %v4784_v15  ;;  %v4786_v31 = vpop.f32.mrf.mxu1  ;;  %v7373_v21 = vpop.permute.xlu0 %7372  ;;  %v11485_v15 = vld [vmem:[#allocation9 + $0xd0] sm:$0xff]  ;;  %v11486_v37 = vld [vmem:[#allocation9 + $0xd8] sm:$0xff] }
 0x64d   : > { %v4961_v41 = vpop.f32.mrf.mxu3  ;;  %v4697_v28 = vpop.f32.mrf.mxu0  ;;  %v7410_v40 = vmul.f32 %v11484_v30, %v7373_v21  ;;  %v7314_v53 = vmul.f32 %v11485_v15, %v13654_v7 }
 0x64e   : > { %v4962_v10 = vadd.f32 %v4961_v41, %v4873_v17  ;;  %v4787_v39 = vadd.f32 %v4786_v31, %v4697_v28  ;;  %4825 = vmatmul.bf16.gmra.mxu1 %v14553_v18  ;;  %v7315_v17 = vmul.f32 %v11486_v37, %v13663_v56  ;;  %v11487_v41 = vld [vmem:[#allocation11 + $0xd8] sm:$0xff] }
 0x650   : > { %4736 = vmatmul.bf16.gmra.mxu0 %v14513_v11  ;;  %v13782_v52 = vadd.f32 %v13702_v29, %v4962_v10  ;;  %4914 = vmatmul.bf16.gmra.mxu2 %v14671_v42  ;;  %v7442_v42 = vadd.f32 %v7410_v40, %v7314_v53  ;;  %v14674_v53 = vld [vmem:[#allocation68_spill] sm:$0xff] }
 0x652   : > { %5003 = vmatmul.bf16.gmra.mxu3 %v14672_v26  ;;  %8075 = vrot.lane.b32.xlu1 %v13782_v52, %s11873_s2 }
 0x653   : > { %v4875_v24 = vpop.f32.mrf.mxu2 }
 0x654   : > { %v4876_v45 = vadd.f32 %v4875_v24, %v4787_v39  ;;  %v7375_v38 = vpop.permute.xlu1 %7374  ;;  %v4788_v26 = vpop.f32.mrf.mxu1 }
 0x655   : > { %v4964_v23 = vpop.f32.mrf.mxu3  ;;  %v7411_v28 = vmul.f32 %v11487_v41, %v7375_v38  ;;  %v4699_v10 = vpop.f32.mrf.mxu0  ;;  %v14673_v41 = vld [vmem:[#allocation67_spill] sm:$0xff] }
 0x656   : > { %v4965_v31 = vadd.f32 %v4964_v23, %v4876_v45  ;;  %v4789_v30 = vadd.f32 %v4788_v26, %v4699_v10  ;;  %v7377_v45 = vpop.permute.xlu2 %7376  ;;  %v11488_v26 = vld [vmem:[#allocation11 + $0xe0] sm:$0xff]  ;;  %v10277_v10 = vld [vmem:[#allocation6 + $0x5dc] sm:$0xf] }
 0x657   : > { %v7443_v18 = vadd.f32 %v7411_v28, %v7315_v17  ;;  %v7412_v17 = vmul.f32 %v11488_v26, %v7377_v45 }
 0x658   : > { %v13792_v21 = vadd.f32 %v13702_v29, %v4965_v31  ;;  %v9626_v31 = vld [vmem:[#allocation6 + $0x5f8] sm:$0xf0] }
 0x659   : > { %v10577_v39 = vpack.c.bf16 %v7443_v18, %v7442_v42  ;;  %v14675_v18 = vld [vmem:[#allocation69_spill] sm:$0xff]  ;;  %v14676_v42 = vld [vmem:[#allocation70_spill] sm:$0xff] }
 0x65a   : > { %8077 = vrot.lane.b32.xlu2 %v13792_v21, %s11873_s2 }
 0x65b   : > { %11032 = vst [vmem:[%s13566_s9 + $0x68] sm:$0xff] %v10577_v39   ;;  %v4877_v7 = vpop.f32.mrf.mxu2  ;;  %v10341_v39 = vld [vmem:[#allocation6 + $0x7dc] sm:$0xf] }
 0x65c   : > { %v4878_v24 = vadd.f32 %v4877_v7, %v4789_v30  ;;  %v4791_v38 = vpop.f32.mrf.mxu1 }
 0x65d   : > { %v4966_v15 = vpop.f32.mrf.mxu3  ;;  %v4702_v56 = vpop.f32.mrf.mxu0 }
 0x65e   : > { %v4967_v37 = vadd.f32 %v4966_v15, %v4878_v24  ;;  %v4792_v23 = vadd.f32 %v4791_v38, %v4702_v56  ;;  %4830 = vmatmul.bf16.gmra.mxu1 %v14674_v53  ;;  %v9629_v15 = vor.u32 %v10277_v10, %v9626_v31  ;;  %v9882_v56 = vld [vmem:[#allocation6 + $0x7f8] sm:$0xf0]  ;;  %v11491_v53 = vld [vmem:[#allocation11 + $0xe8] sm:$0xff] }
 0x65f   : > { %v9885_v62 = vor.u32 %v10341_v39, %v9882_v56  ;;  %v10149_v31 = vld [vmem:[#allocation6 + $0x1dc] sm:$0xf] }
 0x660   : > { %4741 = vmatmul.bf16.gmra.mxu0 %v14673_v41  ;;  %v13799_v40 = vadd.f32 %v13702_v29, %v4967_v37  ;;  %4919 = vmatmul.bf16.gmra.mxu2 %v14675_v18  ;;  %v11489_v37 = vld [vmem:[#allocation9 + $0xe0] sm:$0xff]  ;;  %v11490_v18 = vld [vmem:[#allocation9 + $0xe8] sm:$0xff] }
 0x661   : > { %v7316_v38 = vmul.f32 %v11489_v37, %v13672_v25  ;;  %5553 = vmatpush.bf16.msrb.mxu2 %v9629_v15  ;;  %5642 = vmatpush.bf16.msrb.mxu3 %v9885_v62  ;;  %v9114_v25 = vld [vmem:[#allocation6 + $0x1f8] sm:$0xf0] }
 0x662   : > { %5008 = vmatmul.bf16.gmra.mxu3 %v14676_v42  ;;  %8079 = vrot.lane.b32.xlu0 %v13799_v40, %s11873_s2  ;;  %v7317_v42 = vmul.f32 %v11490_v18, %v13678_v61  ;;  %v10213_v37 = vld [vmem:[#allocation6 + $0x3dc] sm:$0xf]  ;;  %v9117_v61 = vor.u32 %v10149_v31, %v9114_v25 }
 0x663   : > { %v4880_v28 = vpop.f32.mrf.mxu2  ;;  %v7444_v9 = vadd.f32 %v7412_v17, %v7316_v38  ;;  %v9370_v18 = vld [vmem:[#allocation6 + $0x3f8] sm:$0xf0] }
 0x664   : > { %v4881_v30 = vadd.f32 %v4880_v28, %v4792_v23  ;;  %v7379_v24 = vpop.permute.xlu0 %7378  ;;  %v4793_v26 = vpop.f32.mrf.mxu1  ;;  %v9373_v39 = vor.u32 %v10213_v37, %v9370_v18  ;;  %5375 = vmatpush.bf16.msrb.mxu0 %v9117_v61  ;;  %v11494_v38 = vld [vmem:[#allocation9 + $0xf0] sm:$0xff] }
 0x665   : > { %v4969_v7 = vpop.f32.mrf.mxu3  ;;  %v7413_v41 = vmul.f32 %v11491_v53, %v7379_v24  ;;  %v4704_v11 = vpop.f32.mrf.mxu0 }
 0x666   : > { %v4970_v45 = vadd.f32 %v4969_v7, %v4881_v30  ;;  %v7383_v28 = vpop.permute.xlu2 %7382  ;;  %v4794_v53 = vadd.f32 %v4793_v26, %v4704_v11  ;;  %v11492_v30 = vld [vmem:[#allocation11 + $0xf8] sm:$0xff]  ;;  %5464 = vmatpush.bf16.msrb.mxu1 %v9373_v39  ;;  %v7318_v11 = vmul.f32 %v11494_v38, %v13688_v59 }
 0x667   : > { %v7445_v23 = vadd.f32 %v7413_v41, %v7317_v42  ;;  %v7415_v17 = vmul.f32 %v11492_v30, %v7383_v28  ;;  %v11493_v7 = vld [vmem:[#allocation9 + $0xf8] sm:$0xff] }
 0x668   : > { %v13809_v10 = vadd.f32 %v13702_v29, %v4970_v45  ;;  %v7319_v24 = vmul.f32 %v11493_v7, %v13695_v44  ;;  %v11495_v45 = vld [vmem:[#allocation11 + $0xf0] sm:$0xff] }
 0x669   : > { %v10582_v58 = vpack.c.bf16 %v7445_v23, %v7444_v9 }
 0x66a   : > { %8081 = vrot.lane.b32.xlu1 %v13809_v10, %s11873_s2  ;;  %v7447_v28 = vadd.f32 %v7415_v17, %v7319_v24 }
 0x66b   : > { %11033 = vst [vmem:[%s13566_s9 + $0x70] sm:$0xff] %v10582_v58   ;;  %v4882_v41 = vpop.f32.mrf.mxu2 }
 0x66c   : > { %v4883_v62 = vadd.f32 %v4882_v41, %v4794_v53  ;;  %v7381_v15 = vpop.permute.xlu1 %7380  ;;  %v4796_v23 = vpop.f32.mrf.mxu1 }
 0x66d   : > { %v4971_v42 = vpop.f32.mrf.mxu3  ;;  %v4707_v9 = vpop.f32.mrf.mxu0  ;;  %v7414_v26 = vmul.f32 %v11495_v45, %v7381_v15 }
 0x66e   : > { %v4972_v56 = vadd.f32 %v4971_v42, %v4883_v62  ;;  %v4797_v25 = vadd.f32 %v4796_v23, %v4707_v9  ;;  %4835 = vmatmul.bf16.gmra.mxu1 %v14638_v46  ;;  %v8060_v30 = vpop.permute.xlu2 %8059  ;;  %v11496_v62 = vld [vmem:[#allocation11 + $0x8] sm:$0xff] }
 0x66f   : > { %v7446_v31 = vadd.f32 %v7414_v26, %v7318_v11  ;;  %v8122_v42 = vmul.f32 %v11496_v62, %v8060_v30  ;;  %v11498_v11 = vld [vmem:[#allocation9] sm:$0xff]  ;;  %v10333_v30 = vld [vmem:[#allocation6 + $0x79c] sm:$0xf] }
 0x670   : > { %4746 = vmatmul.bf16.gmra.mxu0 %v14637_v51  ;;  %v13818_v58 = vadd.f32 %v13702_v29, %v4972_v56  ;;  %4924 = vmatmul.bf16.gmra.mxu2 %v14639_v27  ;;  %v11497_v56 = vld [vmem:[#allocation9 + $0x8] sm:$0xff]  ;;  %v8025_v45 = vmul.f32 %v11498_v11, %v13707_v20  ;;  %v11499_v26 = vld [vmem:[#allocation11] sm:$0xff]  ;;  %v14678_v20 = vld [vmem:[#allocation25_spill] sm:$0xff] }
 0x671   : > { %v10587_v44 = vpack.c.bf16 %v7447_v28, %v7446_v31  ;;  %v8026_v38 = vmul.f32 %v11497_v56, %v13716_v4  ;;  %v14677_v4 = vld [vmem:[#allocation24_spill] sm:$0xff] }
 0x672   : > { %5013 = vmatmul.bf16.gmra.mxu3 %v14640_v48  ;;  %8083 = vrot.lane.b32.xlu2 %v13818_v58, %s11873_s2  ;;  %v9850_v62 = vld [vmem:[#allocation6 + $0x7b8] sm:$0xf0] }
 0x673   : > { %v4885_v59 = vpop.f32.mrf.mxu2  ;;  %11034 = vst [vmem:[%s13566_s9 + $0x78] sm:$0xff] %v10587_v44   ;;  %v8154_v44 = vadd.f32 %v8122_v42, %v8026_v38 }
 0x674   : > { %v4886_v37 = vadd.f32 %v4885_v59, %v4797_v25  ;;  %v4798_v39 = vpop.f32.mrf.mxu1 }
 0x675   : > { %v4974_v61 = vpop.f32.mrf.mxu3  ;;  %v4709_v18 = vpop.f32.mrf.mxu0 }
 0x676   : > { %v4975_v53 = vadd.f32 %v4974_v61, %v4886_v37  ;;  %v4799_v41 = vadd.f32 %v4798_v39, %v4709_v18  ;;  %v9594_v39 = vld [vmem:[#allocation6 + $0x5b8] sm:$0xf0] }
 0x678   : > { %v13827_v17 = vadd.f32 %v13702_v29, %v4975_v53  ;;  %v10269_v53 = vld [vmem:[#allocation6 + $0x59c] sm:$0xf] }
 0x67a   : > { %8085 = vrot.lane.b32.xlu0 %v13827_v17, %s11873_s2 }
 0x67b   : > { %v4887_v7 = vpop.f32.mrf.mxu2 }
 0x67c   : > { %v4888_v24 = vadd.f32 %v4887_v7, %v4799_v41  ;;  %v8058_v9 = vpop.permute.xlu1 %8057  ;;  %v4801_v25 = vpop.f32.mrf.mxu1  ;;  %v9597_v41 = vor.u32 %v10269_v53, %v9594_v39  ;;  %v9853_v7 = vor.u32 %v10333_v30, %v9850_v62 }
 0x67d   : > { %v4976_v15 = vpop.f32.mrf.mxu3  ;;  %v8121_v23 = vmul.f32 %v11499_v26, %v8058_v9  ;;  %v4712_v28 = vpop.f32.mrf.mxu0  ;;  %v9082_v26 = vld [vmem:[#allocation6 + $0x1b8] sm:$0xf0] }
 0x67e   : > { %v4977_v31 = vadd.f32 %v4976_v15, %v4888_v24  ;;  %v4802_v61 = vadd.f32 %v4801_v25, %v4712_v28  ;;  %5116 = vmatmul.bf16.vlgmr.msra.gmra.mxu1 %v14642_v60  ;;  %5554 = vmatpush.bf16.msrb.mxu2 %v9597_v41 }
 0x67f   : > { %v8153_v59 = vadd.f32 %v8121_v23, %v8025_v45  ;;  %5643 = vmatpush.bf16.msrb.mxu3 %v9853_v7  ;;  %v10141_v45 = vld [vmem:[#allocation6 + $0x19c] sm:$0xf]  ;;  %v14679_v7 = vld [vmem:[#allocation27_spill] sm:$0xff] }
 0x680   : > { %5027 = vmatmul.bf16.vlgmr.msra.gmra.mxu0 %v14641_v19  ;;  %v13835_v37 = vadd.f32 %v13702_v29, %v4977_v31  ;;  %5205 = vmatmul.bf16.vlgmr.msra.gmra.mxu2 %v14677_v4  ;;  %v10205_v23 = vld [vmem:[#allocation6 + $0x39c] sm:$0xf]  ;;  %v9085_v28 = vor.u32 %v10141_v45, %v9082_v26 }
 0x681   : > { %v10832_v18 = vpack.c.bf16 %v8154_v44, %v8153_v59  ;;  %v9338_v31 = vld [vmem:[#allocation6 + $0x3b8] sm:$0xf0] }
 0x682   : > { %5294 = vmatmul.bf16.vlgmr.msra.gmra.mxu3 %v14678_v20  ;;  %8087 = vrot.lane.b32.xlu1 %v13835_v37, %s11873_s2  ;;  %v9341_v44 = vor.u32 %v10205_v23, %v9338_v31  ;;  %v11501_v23 = vld [vmem:[#allocation9 + $0x10] sm:$0xff]  ;;  %v11502_v31 = vld [vmem:[#allocation9 + $0x18] sm:$0xff] }
 0x683   : > { %11082 = vst [vmem:[%s13566_s9 + $0x80] sm:$0xff] %v10832_v18   ;;  %v4890_v42 = vpop.f32.mrf.mxu2  ;;  %5376 = vmatpush.bf16.msrb.mxu0 %v9085_v28  ;;  %v8027_v28 = vmul.f32 %v11501_v23, %v13725_v6 }
 0x684   : > { %v4891_v24 = vadd.f32 %v4890_v42, %v4802_v61  ;;  %v4803_v38 = vpop.f32.mrf.mxu1  ;;  %5465 = vmatpush.bf16.msrb.mxu1 %v9341_v44  ;;  %v11503_v44 = vld [vmem:[#allocation11 + $0x18] sm:$0xff] }
 0x685   : > { %v4979_v15 = vpop.f32.mrf.mxu3  ;;  %v4714_v9 = vpop.f32.mrf.mxu0 }
 0x686   : > { %v4980_v56 = vadd.f32 %v4979_v15, %v4891_v24  ;;  %v4804_v25 = vadd.f32 %v4803_v38, %v4714_v9  ;;  %v14680_v24 = vld [vmem:[#allocation28_spill] sm:$0xff] }
 0x687   : > { %v11500_v15 = vld [vmem:[#allocation11 + $0x10] sm:$0xff] }
 0x688   : > { %v13844_v11 = vadd.f32 %v13702_v29, %v4980_v56 }
 0x68a   : > { %8089 = vrot.lane.b32.xlu2 %v13844_v11, %s11873_s2 }
 0x68b   : > { %v4892_v59 = vpop.f32.mrf.mxu2 }
 0x68c   : > { %v4893_v61 = vadd.f32 %v4892_v59, %v4804_v25  ;;  %v4806_v30 = vpop.f32.mrf.mxu1  ;;  %v8062_v62 = vpop.permute.xlu0 %8061  ;;  %v8028_v25 = vmul.f32 %v11502_v31, %v13731_v57 }
 0x68d   : > { %v4981_v18 = vpop.f32.mrf.mxu3  ;;  %v4717_v53 = vpop.f32.mrf.mxu0  ;;  %v8123_v9 = vmul.f32 %v11500_v15, %v8062_v62 }
 0x68e   : > { %v4982_v39 = vadd.f32 %v4981_v18, %v4893_v61  ;;  %v4807_v42 = vadd.f32 %v4806_v30, %v4717_v53  ;;  %5121 = vmatmul.bf16.gmra.mxu1 %v12085_v13  ;;  %v9306_v13 = vld [vmem:[#allocation6 + $0x378] sm:$0xf0] }
 0x690   : > { %5032 = vmatmul.bf16.gmra.mxu0 %v12083_v12  ;;  %v13850_v41 = vadd.f32 %v13702_v29, %v4982_v39  ;;  %5210 = vmatmul.bf16.gmra.mxu2 %v14679_v7  ;;  %v8155_v39 = vadd.f32 %v8123_v9, %v8027_v28  ;;  %v14682_v28 = vld [vmem:[#allocation30_spill] sm:$0xff] }
 0x692   : > { %5299 = vmatmul.bf16.gmra.mxu3 %v14680_v24  ;;  %8091 = vrot.lane.b32.xlu0 %v13850_v41, %s11873_s2 }
 0x693   : > { %v4895_v56 = vpop.f32.mrf.mxu2 }
 0x694   : > { %v4896_v38 = vadd.f32 %v4895_v56, %v4807_v42  ;;  %v8064_v26 = vpop.permute.xlu1 %8063  ;;  %v4808_v53 = vpop.f32.mrf.mxu1 }
 0x695   : > { %v4984_v45 = vpop.f32.mrf.mxu3  ;;  %v8124_v59 = vmul.f32 %v11503_v44, %v8064_v26  ;;  %v4719_v61 = vpop.f32.mrf.mxu0  ;;  %v14681_v44 = vld [vmem:[#allocation29_spill] sm:$0xff] }
 0x696   : > { %v4985_v18 = vadd.f32 %v4984_v45, %v4896_v38  ;;  %v4809_v15 = vadd.f32 %v4808_v53, %v4719_v61  ;;  %v8066_v38 = vpop.permute.xlu2 %8065  ;;  %v10261_v61 = vld [vmem:[#allocation6 + $0x55c] sm:$0xf] }
 0x697   : > { %v8156_v30 = vadd.f32 %v8124_v59, %v8028_v25  ;;  %v14683_v25 = vld [vmem:[#allocation31_spill] sm:$0xff]  ;;  %v14684_v59 = vld [vmem:[#allocation32_spill] sm:$0xff] }
 0x698   : > { %v13860_v62 = vadd.f32 %v13702_v29, %v4985_v18  ;;  %v9562_v18 = vld [vmem:[#allocation6 + $0x578] sm:$0xf0] }
 0x699   : > { %v10837_v42 = vpack.c.bf16 %v8156_v30, %v8155_v39  ;;  %v10325_v53 = vld [vmem:[#allocation6 + $0x75c] sm:$0xf]  ;;  %v9565_v39 = vor.u32 %v10261_v61, %v9562_v18 }
 0x69a   : > { %8093 = vrot.lane.b32.xlu1 %v13860_v62, %s11873_s2  ;;  %v9818_v30 = vld [vmem:[#allocation6 + $0x778] sm:$0xf0] }
 0x69b   : > { %11083 = vst [vmem:[%s13566_s9 + $0x88] sm:$0xff] %v10837_v42   ;;  %v4897_v6 = vpop.f32.mrf.mxu2  ;;  %v11504_v42 = vld [vmem:[#allocation11 + $0x20] sm:$0xff]  ;;  %5555 = vmatpush.bf16.msrb.mxu2 %v9565_v39  ;;  %v10133_v39 = vld [vmem:[#allocation6 + $0x15c] sm:$0xf] }
 0x69c   : > { %v4898_v56 = vadd.f32 %v4897_v6, %v4809_v15  ;;  %v4811_v26 = vpop.f32.mrf.mxu1  ;;  %v8125_v15 = vmul.f32 %v11504_v42, %v8066_v38 }
 0x69d   : > { %v4986_v23 = vpop.f32.mrf.mxu3  ;;  %v4722_v57 = vpop.f32.mrf.mxu0 }
 0x69e   : > { %v4987_v31 = vadd.f32 %v4986_v23, %v4898_v56  ;;  %v4812_v45 = vadd.f32 %v4811_v26, %v4722_v57  ;;  %5126 = vmatmul.bf16.gmra.mxu1 %v14682_v28  ;;  %v9821_v56 = vor.u32 %v10325_v53, %v9818_v30  ;;  %v11505_v26 = vld [vmem:[#allocation9 + $0x20] sm:$0xff]  ;;  %v8072_v53 = vpop.permute.xlu2 %8071  ;;  %v9050_v30 = vld [vmem:[#allocation6 + $0x178] sm:$0xf0] }
 0x6a0   : > { %5037 = vmatmul.bf16.gmra.mxu0 %v14681_v44  ;;  %v13867_v9 = vadd.f32 %v13702_v29, %v4987_v31  ;;  %5215 = vmatmul.bf16.gmra.mxu2 %v14683_v25  ;;  %v8029_v25 = vmul.f32 %v11505_v26, %v13741_v14  ;;  %v11507_v44 = vld [vmem:[#allocation11 + $0x28] sm:$0xff]  ;;  %v9053_v26 = vor.u32 %v10133_v39, %v9050_v30 }
 0x6a1   : > { %5644 = vmatpush.bf16.msrb.mxu3 %v9821_v56 }
 0x6a2   : > { %5304 = vmatmul.bf16.gmra.mxu3 %v14684_v59  ;;  %8095 = vrot.lane.b32.xlu2 %v13867_v9, %s11873_s2  ;;  %v11506_v59 = vld [vmem:[#allocation9 + $0x28] sm:$0xff]  ;;  %v8157_v38 = vadd.f32 %v8125_v15, %v8029_v25 }
 0x6a3   : > { %v4900_v6 = vpop.f32.mrf.mxu2  ;;  %v8030_v28 = vmul.f32 %v11506_v59, %v13748_v36  ;;  %v11508_v59 = vld [vmem:[#allocation11 + $0x38] sm:$0xff]  ;;  %5377 = vmatpush.bf16.msrb.mxu0 %v9053_v26 }
 0x6a4   : > { %v4901_v23 = vadd.f32 %v4900_v6, %v4812_v45  ;;  %v8068_v31 = vpop.permute.xlu0 %8067  ;;  %v4813_v18 = vpop.f32.mrf.mxu1  ;;  %v10197_v6 = vld [vmem:[#allocation6 + $0x35c] sm:$0xf]  ;;  %v8128_v56 = vmul.f32 %v11508_v59, %v8072_v53 }
 0x6a5   : > { %v4989_v57 = vpop.f32.mrf.mxu3  ;;  %v8126_v24 = vmul.f32 %v11507_v44, %v8068_v31  ;;  %v4724_v7 = vpop.f32.mrf.mxu0  ;;  %v9309_v44 = vor.u32 %v10197_v6, %v9306_v13  ;;  %v11510_v31 = vld [vmem:[#allocation9 + $0x30] sm:$0xff] }
 0x6a6   : > { %v4990_v61 = vadd.f32 %v4989_v57, %v4901_v23  ;;  %v4814_v36 = vadd.f32 %v4813_v18, %v4724_v7  ;;  %v11509_v23 = vld [vmem:[#allocation9 + $0x38] sm:$0xff]  ;;  %v11511_v7 = vld [vmem:[#allocation11 + $0x30] sm:$0xff] }
 0x6a7   : > { %v8158_v42 = vadd.f32 %v8126_v24, %v8030_v28  ;;  %5466 = vmatpush.bf16.msrb.mxu1 %v9309_v44  ;;  %v8032_v57 = vmul.f32 %v11509_v23, %v13767_v63 }
 0x6a8   : > { %v13877_v45 = vadd.f32 %v13702_v29, %v4990_v61  ;;  %v8031_v61 = vmul.f32 %v11510_v31, %v13758_v43 }
 0x6a9   : > { %v10842_v14 = vpack.c.bf16 %v8158_v42, %v8157_v38  ;;  %v8160_v53 = vadd.f32 %v8128_v56, %v8032_v57 }
 0x6aa   : > { %8097 = vrot.lane.b32.xlu0 %v13877_v45, %s11873_s2 }
 0x6ab   : > { %11084 = vst [vmem:[%s13566_s9 + $0x90] sm:$0xff] %v10842_v14   ;;  %v4902_v25 = vpop.f32.mrf.mxu2 }
 0x6ac   : > { %v4903_v24 = vadd.f32 %v4902_v25, %v4814_v36  ;;  %v8070_v15 = vpop.permute.xlu1 %8069  ;;  %v4816_v42 = vpop.f32.mrf.mxu1 }
 0x6ad   : > { %v4991_v28 = vpop.f32.mrf.mxu3  ;;  %v8127_v18 = vmul.f32 %v11511_v7, %v8070_v15  ;;  %v4727_v38 = vpop.f32.mrf.mxu0 }
 0x6ae   : > { %v4992_v13 = vadd.f32 %v4991_v28, %v4903_v24  ;;  %v4817_v6 = vadd.f32 %v4816_v42, %v4727_v38  ;;  %5131 = vmatmul.bf16.gmra.mxu1 %v12125_v50  ;;  %v14685_v38 = vld [vmem:[#allocation34_spill] sm:$0xff] }
 0x6af   : > { %v8159_v39 = vadd.f32 %v8127_v18, %v8031_v61 }
 0x6b0   : > { %5042 = vmatmul.bf16.gmra.mxu0 %v12123_v49  ;;  %v13886_v30 = vadd.f32 %v13702_v29, %v4992_v13  ;;  %5220 = vmatmul.bf16.gmra.mxu2 %v12127_v54  ;;  %v11512_v13 = vld [vmem:[#allocation11 + $0x40] sm:$0xff] }
 0x6b1   : > { %v10847_v63 = vpack.c.bf16 %v8160_v53, %v8159_v39  ;;  %v10253_v39 = vld [vmem:[#allocation6 + $0x51c] sm:$0xf] }
 0x6b2   : > { %5309 = vmatmul.bf16.gmra.mxu3 %v12129_v55  ;;  %8099 = vrot.lane.b32.xlu1 %v13886_v30, %s11873_s2 }
 0x6b3   : > { %11085 = vst [vmem:[%s13566_s9 + $0x98] sm:$0xff] %v10847_v63   ;;  %v4905_v43 = vpop.f32.mrf.mxu2  ;;  %v10317_v63 = vld [vmem:[#allocation6 + $0x71c] sm:$0xf] }
 0x6b4   : > { %v4906_v14 = vadd.f32 %v4905_v43, %v4817_v6  ;;  %v4818_v59 = vpop.f32.mrf.mxu1  ;;  %v9530_v6 = vld [vmem:[#allocation6 + $0x538] sm:$0xf0] }
 0x6b5   : > { %v4994_v26 = vpop.f32.mrf.mxu3  ;;  %v4729_v36 = vpop.f32.mrf.mxu0 }
 0x6b6   : > { %v4995_v44 = vadd.f32 %v4994_v26, %v4906_v14  ;;  %v4819_v25 = vadd.f32 %v4818_v59, %v4729_v36  ;;  %v9533_v36 = vor.u32 %v10253_v39, %v9530_v6  ;;  %v11513_v59 = vld [vmem:[#allocation9 + $0x40] sm:$0xff]  ;;  %v10125_v39 = vld [vmem:[#allocation6 + $0x11c] sm:$0xf] }
 0x6b7   : > { %v9018_v6 = vld [vmem:[#allocation6 + $0x138] sm:$0xf0] }
 0x6b8   : > { %v13895_v56 = vadd.f32 %v13702_v29, %v4995_v44  ;;  %v9786_v44 = vld [vmem:[#allocation6 + $0x738] sm:$0xf0]  ;;  %5556 = vmatpush.bf16.msrb.mxu2 %v9533_v36 }
 0x6ba   : > { %8101 = vrot.lane.b32.xlu2 %v13895_v56, %s11873_s2 }
 0x6bb   : > { %v4907_v24 = vpop.f32.mrf.mxu2 }
 0x6bc   : > { %v4908_v28 = vadd.f32 %v4907_v24, %v4819_v25  ;;  %v4821_v31 = vpop.f32.mrf.mxu1  ;;  %v8074_v7 = vpop.permute.xlu0 %8073  ;;  %v8033_v25 = vmul.f32 %v11513_v59, %v13776_v3  ;;  %v11514_v24 = vld [vmem:[#allocation9 + $0x48] sm:$0xff]  ;;  %v10189_v3 = vld [vmem:[#allocation6 + $0x31c] sm:$0xf] }
 0x6bd   : > { %v4996_v15 = vpop.f32.mrf.mxu3  ;;  %v4732_v23 = vpop.f32.mrf.mxu0  ;;  %v8129_v42 = vmul.f32 %v11512_v13, %v8074_v7 }
 0x6be   : > { %v4997_v57 = vadd.f32 %v4996_v15, %v4908_v28  ;;  %v4822_v18 = vadd.f32 %v4821_v31, %v4732_v23  ;;  %5136 = vmatmul.bf16.gmra.mxu1 %v12145_v1  ;;  %v8034_v28 = vmul.f32 %v11514_v24, %v13782_v52  ;;  %v11515_v15 = vld [vmem:[#allocation11 + $0x48] sm:$0xff]  ;;  %v9789_v31 = vor.u32 %v10317_v63, %v9786_v44  ;;  %v9274_v52 = vld [vmem:[#allocation6 + $0x338] sm:$0xf0] }
 0x6bf   : > { %v9277_v63 = vor.u32 %v10189_v3, %v9274_v52  ;;  %v11519_v3 = vld [vmem:[#allocation11 + $0x58] sm:$0xff] }
 0x6c0   : > { %5047 = vmatmul.bf16.gmra.mxu0 %v12143_v0  ;;  %v13901_v61 = vadd.f32 %v13702_v29, %v4997_v57  ;;  %5225 = vmatmul.bf16.gmra.mxu2 %v12147_v2  ;;  %v9021_v2 = vor.u32 %v10125_v39, %v9018_v6  ;;  %v11518_v39 = vld [vmem:[#allocation9 + $0x58] sm:$0xff] }
 0x6c1   : > { %5645 = vmatpush.bf16.msrb.mxu3 %v9789_v31  ;;  %5467 = vmatpush.bf16.msrb.mxu1 %v9277_v63  ;;  %v8036_v6 = vmul.f32 %v11518_v39, %v13799_v40 }
 0x6c2   : > { %5314 = vmatmul.bf16.gmra.mxu3 %v14685_v38  ;;  %8103 = vrot.lane.b32.xlu0 %v13901_v61, %s11873_s2  ;;  %v8161_v38 = vadd.f32 %v8129_v42, %v8033_v25  ;;  %v8078_v25 = vpop.permute.xlu2 %8077 }
 0x6c3   : > { %v4910_v53 = vpop.f32.mrf.mxu2  ;;  %5378 = vmatpush.bf16.msrb.mxu0 %v9021_v2  ;;  %v11516_v2 = vld [vmem:[#allocation11 + $0x50] sm:$0xff] }
 0x6c4   : > { %v4911_v43 = vadd.f32 %v4910_v53, %v4822_v18  ;;  %v8076_v26 = vpop.permute.xlu1 %8075  ;;  %v4823_v13 = vpop.f32.mrf.mxu1 }
 0x6c5   : > { %v4999_v14 = vpop.f32.mrf.mxu3  ;;  %v8130_v23 = vmul.f32 %v11515_v15, %v8076_v26  ;;  %v4734_v57 = vpop.f32.mrf.mxu0  ;;  %v8131_v15 = vmul.f32 %v11516_v2, %v8078_v25 }
 0x6c6   : > { %v5000_v7 = vadd.f32 %v4999_v14, %v4911_v43  ;;  %v4824_v24 = vadd.f32 %v4823_v13, %v4734_v57  ;;  %v11517_v13 = vld [vmem:[#allocation9 + $0x50] sm:$0xff] }
 0x6c7   : > { %v8162_v18 = vadd.f32 %v8130_v23, %v8034_v28 }
 0x6c8   : > { %v13911_v53 = vadd.f32 %v13702_v29, %v5000_v7 }
 0x6c9   : > { %v10852_v59 = vpack.c.bf16 %v8162_v18, %v8161_v38  ;;  %v8035_v18 = vmul.f32 %v11517_v13, %v13792_v21  ;;  %v11520_v21 = vld [vmem:[#allocation11 + $0x68] sm:$0xff]  ;;  %v11523_v13 = vld [vmem:[#allocation11 + $0x60] sm:$0xff] }
 0x6ca   : > { %8105 = vrot.lane.b32.xlu1 %v13911_v53, %s11873_s2 }
 0x6cb   : > { %11086 = vst [vmem:[%s13566_s9 + $0xa0] sm:$0xff] %v10852_v59   ;;  %v4912_v43 = vpop.f32.mrf.mxu2 }
 0x6cc   : > { %v4913_v42 = vadd.f32 %v4912_v43, %v4824_v24  ;;  %v4826_v44 = vpop.f32.mrf.mxu1  ;;  %v8163_v43 = vadd.f32 %v8131_v15, %v8035_v18 }
 0x6cd   : > { %v5001_v14 = vpop.f32.mrf.mxu3  ;;  %v4737_v26 = vpop.f32.mrf.mxu0 }
 0x6ce   : > { %v5002_v36 = vadd.f32 %v5001_v14, %v4913_v42  ;;  %v4827_v28 = vadd.f32 %v4826_v44, %v4737_v26  ;;  %5141 = vmatmul.bf16.gmra.mxu1 %v12165_v33  ;;  %v8084_v14 = vpop.permute.xlu2 %8083 }
 0x6cf   : > { %v8134_v25 = vmul.f32 %v11520_v21, %v8084_v14  ;;  %v10309_v14 = vld [vmem:[#allocation6 + $0x6dc] sm:$0xf] }
 0x6d0   : > { %5052 = vmatmul.bf16.gmra.mxu0 %v12163_v32  ;;  %v13918_v38 = vadd.f32 %v13702_v29, %v5002_v36  ;;  %5230 = vmatmul.bf16.gmra.mxu2 %v12167_v34 }
 0x6d2   : > { %5319 = vmatmul.bf16.gmra.mxu3 %v12169_v35  ;;  %8107 = vrot.lane.b32.xlu2 %v13918_v38, %s11873_s2 }
 0x6d3   : > { %v4915_v23 = vpop.f32.mrf.mxu2 }
 0x6d4   : > { %v4916_v57 = vadd.f32 %v4915_v23, %v4827_v28  ;;  %v8080_v7 = vpop.permute.xlu0 %8079  ;;  %v4828_v63 = vpop.f32.mrf.mxu1 }
 0x6d5   : > { %v5004_v31 = vpop.f32.mrf.mxu3  ;;  %v8132_v59 = vmul.f32 %v11519_v3, %v8080_v7  ;;  %v4739_v52 = vpop.f32.mrf.mxu0 }
 0x6d6   : > { %v5005_v24 = vadd.f32 %v5004_v31, %v4916_v57  ;;  %v4829_v44 = vadd.f32 %v4828_v63, %v4739_v52  ;;  %v11521_v57 = vld [vmem:[#allocation9 + $0x68] sm:$0xff]  ;;  %v11522_v31 = vld [vmem:[#allocation9 + $0x60] sm:$0xff] }
 0x6d7   : > { %v8164_v42 = vadd.f32 %v8132_v59, %v8036_v6  ;;  %v8038_v15 = vmul.f32 %v11521_v57, %v13818_v58  ;;  %v8037_v7 = vmul.f32 %v11522_v31, %v13809_v10  ;;  %v14686_v10 = vld [vmem:[#allocation38_spill] sm:$0xff]  ;;  %v10117_v31 = vld [vmem:[#allocation6 + $0xdc] sm:$0xf] }
 0x6d8   : > { %v13928_v26 = vadd.f32 %v13702_v29, %v5005_v24 }
 0x6d9   : > { %v10857_v36 = vpack.c.bf16 %v8164_v42, %v8163_v43  ;;  %v8166_v59 = vadd.f32 %v8134_v25, %v8038_v15  ;;  %v10245_v43 = vld [vmem:[#allocation6 + $0x4dc] sm:$0xf] }
 0x6da   : > { %8109 = vrot.lane.b32.xlu0 %v13928_v26, %s11873_s2  ;;  %v9498_v42 = vld [vmem:[#allocation6 + $0x4f8] sm:$0xf0] }
 0x6db   : > { %11087 = vst [vmem:[%s13566_s9 + $0xa8] sm:$0xff] %v10857_v36   ;;  %v4917_v40 = vpop.f32.mrf.mxu2  ;;  %v9501_v36 = vor.u32 %v10245_v43, %v9498_v42 }
 0x6dc   : > { %v4918_v28 = vadd.f32 %v4917_v40, %v4829_v44  ;;  %v8082_v23 = vpop.permute.xlu1 %8081  ;;  %v4831_v3 = vpop.f32.mrf.mxu1  ;;  %v9754_v44 = vld [vmem:[#allocation6 + $0x6f8] sm:$0xf0] }
 0x6dd   : > { %v5006_v2 = vpop.f32.mrf.mxu3  ;;  %v8133_v18 = vmul.f32 %v11523_v13, %v8082_v23  ;;  %v4742_v39 = vpop.f32.mrf.mxu0  ;;  %v9757_v25 = vor.u32 %v10309_v14, %v9754_v44  ;;  %5557 = vmatpush.bf16.msrb.mxu2 %v9501_v36  ;;  %v10181_v13 = vld [vmem:[#allocation6 + $0x2dc] sm:$0xf]  ;;  %v14687_v14 = vld [vmem:[#allocation39_spill] sm:$0xff] }
 0x6de   : > { %v5007_v6 = vadd.f32 %v5006_v2, %v4918_v28  ;;  %v4832_v63 = vadd.f32 %v4831_v3, %v4742_v39  ;;  %5146 = vmatmul.bf16.gmra.mxu1 %v14646_v8  ;;  %v9242_v39 = vld [vmem:[#allocation6 + $0x2f8] sm:$0xf0] }
 0x6df   : > { %v8165_v52 = vadd.f32 %v8133_v18, %v8037_v7  ;;  %5646 = vmatpush.bf16.msrb.mxu3 %v9757_v25  ;;  %v8986_v7 = vld [vmem:[#allocation6 + $0xf8] sm:$0xf0]  ;;  %v9245_v3 = vor.u32 %v10181_v13, %v9242_v39 }
 0x6e0   : > { %5057 = vmatmul.bf16.gmra.mxu0 %v14606_v5  ;;  %v13937_v24 = vadd.f32 %v13702_v29, %v5007_v6  ;;  %5235 = vmatmul.bf16.gmra.mxu2 %v14647_v16  ;;  %v8989_v18 = vor.u32 %v10117_v31, %v8986_v7  ;;  %v14688_v25 = vld [vmem:[#allocation40_spill] sm:$0xff] }
 0x6e1   : > { %v10862_v58 = vpack.c.bf16 %v8166_v59, %v8165_v52  ;;  %5468 = vmatpush.bf16.msrb.mxu1 %v9245_v3  ;;  %v8954_v16 = vld [vmem:[#allocation6 + $0xb8] sm:$0xf0] }
 0x6e2   : > { %5324 = vmatmul.bf16.gmra.mxu3 %v14686_v10  ;;  %8111 = vrot.lane.b32.xlu1 %v13937_v24, %s11873_s2  ;;  %v10109_v10 = vld [vmem:[#allocation6 + $0x9c] sm:$0xf] }
 0x6e3   : > { %11088 = vst [vmem:[%s13566_s9 + $0xb0] sm:$0xff] %v10862_v58   ;;  %v4920_v21 = vpop.f32.mrf.mxu2  ;;  %5379 = vmatpush.bf16.msrb.mxu0 %v8989_v18  ;;  %v11525_v18 = vld [vmem:[#allocation9 + $0x70] sm:$0xff]  ;;  %v8957_v8 = vor.u32 %v10109_v10, %v8954_v16 }
 0x6e4   : > { %v4921_v40 = vadd.f32 %v4920_v21, %v4832_v63  ;;  %v4833_v57 = vpop.f32.mrf.mxu1  ;;  %v8039_v39 = vmul.f32 %v11525_v18, %v13827_v17  ;;  %v11535_v10 = vld [vmem:[#allocation9 + $0x90] sm:$0xff] }
 0x6e5   : > { %v5009_v28 = vpop.f32.mrf.mxu3  ;;  %v4744_v2 = vpop.f32.mrf.mxu0 }
 0x6e6   : > { %v5010_v23 = vadd.f32 %v5009_v28, %v4921_v40  ;;  %v4834_v6 = vadd.f32 %v4833_v57, %v4744_v2  ;;  %v14689_v40 = vld [vmem:[#allocation41_spill] sm:$0xff]  ;;  %v14690_v28 = vld [vmem:[#allocation42_spill] sm:$0xff]  ;;  %v11524_v2 = vld [vmem:[#allocation11 + $0x70] sm:$0xff] }
 0x6e7   : > { %5380 = vmatpush.bf16.msrb.mxu0 %v8957_v8 }
 0x6e8   : > { %v13946_v15 = vadd.f32 %v13702_v29, %v5010_v23 }
 0x6ea   : > { %8113 = vrot.lane.b32.xlu2 %v13946_v15, %s11873_s2 }
 0x6eb   : > { %v4922_v59 = vpop.f32.mrf.mxu2 }
 0x6ec   : > { %v4923_v52 = vadd.f32 %v4922_v59, %v4834_v6  ;;  %v4836_v42 = vpop.f32.mrf.mxu1  ;;  %v8086_v44 = vpop.permute.xlu0 %8085  ;;  %v11526_v6 = vld [vmem:[#allocation9 + $0x78] sm:$0xff] }
 0x6ed   : > { %v5011_v63 = vpop.f32.mrf.mxu3  ;;  %v4747_v58 = vpop.f32.mrf.mxu0  ;;  %v8135_v23 = vmul.f32 %v11524_v2, %v8086_v44  ;;  %v8040_v3 = vmul.f32 %v11526_v6, %v13835_v37  ;;  %v11527_v59 = vld [vmem:[#allocation11 + $0x78] sm:$0xff] }
 0x6ee   : > { %v5012_v43 = vadd.f32 %v5011_v63, %v4923_v52  ;;  %v4837_v21 = vadd.f32 %v4836_v42, %v4747_v58  ;;  %5151 = vmatmul.bf16.gmra.mxu1 %v14688_v25 }
 0x6ef   : > { %v8167_v42 = vadd.f32 %v8135_v23, %v8039_v39  ;;  %v14694_v39 = vld [vmem:[#allocation46_spill] sm:$0xff] }
 0x6f0   : > { %5062 = vmatmul.bf16.gmra.mxu0 %v14687_v14  ;;  %v13952_v36 = vadd.f32 %v13702_v29, %v5012_v43  ;;  %5240 = vmatmul.bf16.gmra.mxu2 %v14689_v40  ;;  %v9722_v40 = vld [vmem:[#allocation6 + $0x6b8] sm:$0xf0] }
 0x6f2   : > { %5329 = vmatmul.bf16.gmra.mxu3 %v14690_v28  ;;  %8115 = vrot.lane.b32.xlu0 %v13952_v36, %s11873_s2 }
 0x6f3   : > { %v4925_v57 = vpop.f32.mrf.mxu2 }
 0x6f4   : > { %v4926_v31 = vadd.f32 %v4925_v57, %v4837_v21  ;;  %v8088_v13 = vpop.permute.xlu1 %8087  ;;  %v4838_v43 = vpop.f32.mrf.mxu1 }
 0x6f5   : > { %v5014_v7 = vpop.f32.mrf.mxu3  ;;  %v8136_v52 = vmul.f32 %v11527_v59, %v8088_v13  ;;  %v4749_v63 = vpop.f32.mrf.mxu0  ;;  %v14691_v59 = vld [vmem:[#allocation43_spill] sm:$0xff] }
 0x6f6   : > { %v5015_v58 = vadd.f32 %v5014_v7, %v4926_v31  ;;  %v4839_v2 = vadd.f32 %v4838_v43, %v4749_v63  ;;  %v8090_v31 = vpop.permute.xlu2 %8089  ;;  %v14692_v7 = vld [vmem:[#allocation44_spill] sm:$0xff] }
 0x6f7   : > { %v8168_v28 = vadd.f32 %v8136_v52, %v8040_v3  ;;  %v11528_v3 = vld [vmem:[#allocation11 + $0x80] sm:$0xff] }
 0x6f8   : > { %v13962_v44 = vadd.f32 %v13702_v29, %v5015_v58  ;;  %v8137_v52 = vmul.f32 %v11528_v3, %v8090_v31 }
 0x6f9   : > { %v10867_v21 = vpack.c.bf16 %v8168_v28, %v8167_v42  ;;  %v14693_v28 = vld [vmem:[#allocation45_spill] sm:$0xff] }
 0x6fa   : > { %8117 = vrot.lane.b32.xlu1 %v13962_v44, %s11873_s2 }
 0x6fb   : > { %11089 = vst [vmem:[%s13566_s9 + $0xb8] sm:$0xff] %v10867_v21   ;;  %v4927_v17 = vpop.f32.mrf.mxu2  ;;  %v10237_v21 = vld [vmem:[#allocation6 + $0x49c] sm:$0xf] }
 0x6fc   : > { %v4928_v57 = vadd.f32 %v4927_v17, %v4839_v2  ;;  %v5117_v13 = vpop.f32.mrf.mxu1  ;;  %v9466_v2 = vld [vmem:[#allocation6 + $0x4b8] sm:$0xf0] }
 0x6fd   : > { %v5016_v18 = vpop.f32.mrf.mxu3  ;;  %v5028_v37 = vpop.f32.mrf.mxu0  ;;  %v10301_v17 = vld [vmem:[#allocation6 + $0x69c] sm:$0xf] }
 0x6fe   : > { %v5017_v6 = vadd.f32 %v5016_v18, %v4928_v57  ;;  %5156 = vmatmul.bf16.gmra.mxu1 %v14692_v7  ;;  %v5118_v58 = vadd.f32 %v5117_v13, %v5028_v37  ;;  %v11530_v18 = vld [vmem:[#allocation9 + $0x88] sm:$0xff]  ;;  %v9725_v31 = vor.u32 %v10301_v17, %v9722_v40  ;;  %v8096_v13 = vpop.permute.xlu2 %8095  ;;  %v11534_v17 = vld [vmem:[#allocation9 + $0x98] sm:$0xff] }
 0x6ff   : > { %v8044_v16 = vmul.f32 %v11534_v17, %v13867_v9  ;;  %v14697_v9 = vld [vmem:[#allocation49_spill] sm:$0xff] }
 0x700   : > { %5067 = vmatmul.bf16.gmra.mxu0 %v14691_v59  ;;  %v13969_v23 = vadd.f32 %v13702_v29, %v5017_v6  ;;  %5245 = vmatmul.bf16.gmra.mxu2 %v14693_v28  ;;  %v11529_v29 = vld [vmem:[#allocation9 + $0x80] sm:$0xff]  ;;  %v8042_v6 = vmul.f32 %v11530_v18, %v13850_v41  ;;  %v11531_v28 = vld [vmem:[#allocation11 + $0x88] sm:$0xff]  ;;  %v9469_v59 = vor.u32 %v10237_v21, %v9466_v2  ;;  %v9210_v41 = vld [vmem:[#allocation6 + $0x2b8] sm:$0xf0] }
 0x701   : > { %v8041_v57 = vmul.f32 %v11529_v29, %v13844_v11  ;;  %5647 = vmatpush.bf16.msrb.mxu3 %v9725_v31  ;;  %v10173_v11 = vld [vmem:[#allocation6 + $0x29c] sm:$0xf] }
 0x702   : > { %5334 = vmatmul.bf16.gmra.mxu3 %v14694_v39  ;;  %8119 = vrot.lane.b32.xlu2 %v13969_v23, %s11873_s2 }
 0x703   : > { %v5206_v63 = vpop.f32.mrf.mxu2  ;;  %v8169_v3 = vadd.f32 %v8137_v52, %v8041_v57  ;;  %5558 = vmatpush.bf16.msrb.mxu2 %v9469_v59  ;;  %v13979_v52 = vld [vmem:[#allocation8] sm:$0xff] }
 0x704   : > { %v8092_v42 = vpop.permute.xlu0 %8091  ;;  %v5119_v25 = vpop.f32.mrf.mxu1  ;;  %v5207_v14 = vadd.f32 %v5206_v63, %v5118_v58  ;;  %v13982_v59 = vperm.slane %v13979_v52, 6 }
 0x705   : > { %v5295_v43 = vpop.f32.mrf.mxu3  ;;  %v8138_v39 = vmul.f32 %v11531_v28, %v8092_v42  ;;  %v5030_v7 = vpop.f32.mrf.mxu0  ;;  %v9213_v28 = vor.u32 %v10173_v11, %v9210_v41  ;;  %v11532_v42 = vld [vmem:[#allocation11 + $0x98] sm:$0xff]  ;;  %v14696_v11 = vld [vmem:[#allocation48_spill] sm:$0xff] }
 0x706   : > { %v5120_v18 = vadd.f32 %v5119_v25, %v5030_v7  ;;  %v8140_v21 = vmul.f32 %v11532_v42, %v8096_v13  ;;  %v5296_v40 = vadd.f32 %v5295_v43, %v5207_v14  ;;  %v8043_v25 = vmul.f32 %v11535_v10, %v13860_v62  ;;  %v11536_v7 = vld [vmem:[#allocation11 + $0x90] sm:$0xff] }
 0x707   : > { %v8170_v37 = vadd.f32 %v8138_v39, %v8042_v6  ;;  %5469 = vmatpush.bf16.msrb.mxu1 %v9213_v28 }
 0x708   : > { %v8172_v6 = vadd.f32 %v8140_v21, %v8044_v16 }
 0x709   : > { %v10872_v29 = vpack.c.bf16 %v8170_v37, %v8169_v3  ;;  %v14695_v3 = vld [vmem:[#allocation47_spill] sm:$0xff]  ;;  %v6526_v37 = vadd.f32 %v13982_v59, %v5296_v40 }
 0x70b   : > { %11090 = vst [vmem:[%s13566_s9 + $0xc0] sm:$0xff] %v10872_v29   ;;  %v5208_v2 = vpop.f32.mrf.mxu2  ;;  %v14698_v29 = vld [vmem:[#allocation50_spill] sm:$0xff] }
 0x70c   : > { %v5209_v39 = vadd.f32 %v5208_v2, %v5120_v18  ;;  %v8094_v58 = vpop.permute.xlu1 %8093  ;;  %v5122_v43 = vpop.f32.mrf.mxu1 }
 0x70d   : > { %v5297_v63 = vpop.f32.mrf.mxu3  ;;  %v8139_v57 = vmul.f32 %v11536_v7, %v8094_v58  ;;  %v5033_v8 = vpop.f32.mrf.mxu0 }
 0x70e   : > { %v5298_v14 = vadd.f32 %v5297_v63, %v5209_v39  ;;  %5161 = vmatmul.bf16.gmra.mxu1 %v14696_v11  ;;  %v5123_v28 = vadd.f32 %v5122_v43, %v5033_v8  ;;  %v14700_v43 = vld [vmem:[#allocation52_spill] sm:$0xff] }
 0x70f   : > { %v8171_v31 = vadd.f32 %v8139_v57, %v8043_v25  ;;  %v14699_v57 = vld [vmem:[#allocation51_spill] sm:$0xff] }
 0x710   : > { %5072 = vmatmul.bf16.gmra.mxu0 %v14695_v3  ;;  %v6534_v13 = vadd.f32 %v13982_v59, %v5298_v14  ;;  %5250 = vmatmul.bf16.gmra.mxu2 %v14697_v9 }
 0x711   : > { %v10877_v62 = vpack.c.bf16 %v8172_v6, %v8171_v31  ;;  %v14701_v31 = vld [vmem:[#allocation53_spill] sm:$0xff] }
 0x712   : > { %5339 = vmatmul.bf16.gmra.mxu3 %v14698_v29  ;;  %v10592_v41 = vpack.c.bf16 %v6534_v13, %v6526_v37  ;;  %v14702_v37 = vld [vmem:[#allocation54_spill] sm:$0xff] }
 0x713   : > { %11091 = vst [vmem:[%s13566_s9 + $0xc8] sm:$0xff] %v10877_v62   ;;  %v5211_v18 = vpop.f32.mrf.mxu2  ;;  %v11537_v62 = vld [vmem:[#allocation11 + $0xa0] sm:$0xff] }
 0x714   : > { %10593 = vst [vmem:[%s13995_s14] sm:$0xff] %v10592_v41   ;;  %v5124_v2 = vpop.f32.mrf.mxu1  ;;  %v5212_v40 = vadd.f32 %v5211_v18, %v5123_v28 }
 0x715   : > { %v5300_v42 = vpop.f32.mrf.mxu3  ;;  %v5035_v21 = vpop.f32.mrf.mxu0 }
 0x716   : > { %v5125_v39 = vadd.f32 %v5124_v2, %v5035_v21  ;;  %v5301_v58 = vadd.f32 %v5300_v42, %v5212_v40  ;;  %v10229_v2 = vld [vmem:[#allocation6 + $0x45c] sm:$0xf] }
 0x717   : > { %v9434_v40 = vld [vmem:[#allocation6 + $0x478] sm:$0xf0] }
 0x718   : > { %v6542_v14 = vadd.f32 %v13982_v59, %v5301_v58  ;;  %v11539_v58 = vld [vmem:[#allocation9 + $0xa8] sm:$0xff] }
 0x71b   : > { %v5213_v63 = vpop.f32.mrf.mxu2 }
 0x71c   : > { %v5214_v17 = vadd.f32 %v5213_v63, %v5125_v39  ;;  %v5127_v7 = vpop.f32.mrf.mxu1  ;;  %v8098_v8 = vpop.permute.xlu0 %8097  ;;  %v11538_v39 = vld [vmem:[#allocation9 + $0xa0] sm:$0xff] }
 0x71d   : > { %v5302_v16 = vpop.f32.mrf.mxu3  ;;  %v5038_v10 = vpop.f32.mrf.mxu0  ;;  %v8141_v41 = vmul.f32 %v11537_v62, %v8098_v8  ;;  %v8045_v63 = vmul.f32 %v11538_v39, %v13877_v45  ;;  %v10165_v45 = vld [vmem:[#allocation6 + $0x25c] sm:$0xf] }
 0x71e   : > { %v5303_v25 = vadd.f32 %v5302_v16, %v5214_v17  ;;  %5166 = vmatmul.bf16.gmra.mxu1 %v14700_v43  ;;  %v5128_v28 = vadd.f32 %v5127_v7, %v5038_v10  ;;  %v8046_v17 = vmul.f32 %v11539_v58, %v13886_v30  ;;  %v11540_v16 = vld [vmem:[#allocation11 + $0xa8] sm:$0xff]  ;;  %v10101_v43 = vld [vmem:[#allocation6 + $0x5c] sm:$0xf] }
 0x71f   : > { %v8173_v10 = vadd.f32 %v8141_v41, %v8045_v63  ;;  %v9178_v30 = vld [vmem:[#allocation6 + $0x278] sm:$0xf0] }
 0x720   : > { %5077 = vmatmul.bf16.gmra.mxu0 %v14699_v57  ;;  %v6550_v6 = vadd.f32 %v13982_v59, %v5303_v25  ;;  %5255 = vmatmul.bf16.gmra.mxu2 %v14701_v31  ;;  %v8922_v57 = vld [vmem:[#allocation6 + $0x78] sm:$0xf0] }
 0x721   : > { %v8925_v29 = vor.u32 %v10101_v43, %v8922_v57  ;;  %v14703_v43 = vld [vmem:[#allocation57_spill] sm:$0xff] }
 0x722   : > { %5344 = vmatmul.bf16.gmra.mxu3 %v14702_v37  ;;  %v10597_v13 = vpack.c.bf16 %v6550_v6, %v6542_v14  ;;  %v9437_v37 = vor.u32 %v10229_v2, %v9434_v40  ;;  %v10293_v14 = vld [vmem:[#allocation6 + $0x65c] sm:$0xf] }
 0x723   : > { %v5216_v18 = vpop.f32.mrf.mxu2  ;;  %v9690_v6 = vld [vmem:[#allocation6 + $0x678] sm:$0xf0]  ;;  %5381 = vmatpush.bf16.msrb.mxu0 %v8925_v29  ;;  %v14704_v29 = vld [vmem:[#allocation58_spill] sm:$0xff] }
 0x724   : > { %11035 = vst [vmem:[%s13995_s14 + $0x8] sm:$0xff] %v10597_v13   ;;  %v8100_v21 = vpop.permute.xlu1 %8099  ;;  %v5129_v8 = vpop.f32.mrf.mxu1  ;;  %v9693_v13 = vor.u32 %v10293_v14, %v9690_v6  ;;  %5559 = vmatpush.bf16.msrb.mxu2 %v9437_v37  ;;  %v5217_v62 = vadd.f32 %v5216_v18, %v5128_v28 }
 0x725   : > { %v5305_v42 = vpop.f32.mrf.mxu3  ;;  %v8142_v25 = vmul.f32 %v11540_v16, %v8100_v21  ;;  %v5040_v31 = vpop.f32.mrf.mxu0  ;;  %v9181_v21 = vor.u32 %v10165_v45, %v9178_v30 }
 0x726   : > { %5648 = vmatpush.bf16.msrb.mxu3 %v9693_v13  ;;  %v5130_v58 = vadd.f32 %v5129_v8, %v5040_v31  ;;  %v5306_v40 = vadd.f32 %v5305_v42, %v5217_v62  ;;  %v8102_v28 = vpop.permute.xlu2 %8101  ;;  %v11541_v42 = vld [vmem:[#allocation11 + $0xb0] sm:$0xff]  ;;  %v11544_v62 = vld [vmem:[#allocation11 + $0xb8] sm:$0xff] }
 0x727   : > { %v8174_v7 = vadd.f32 %v8142_v25, %v8046_v17  ;;  %5470 = vmatpush.bf16.msrb.mxu1 %v9181_v21  ;;  %v8143_v17 = vmul.f32 %v11541_v42, %v8102_v28  ;;  %v11542_v8 = vld [vmem:[#allocation9 + $0xb0] sm:$0xff]  ;;  %v11546_v42 = vld [vmem:[#allocation9 + $0xc8] sm:$0xff] }
 0x728   : > { %v6558_v63 = vadd.f32 %v13982_v59, %v5306_v40  ;;  %v8047_v13 = vmul.f32 %v11542_v8, %v13895_v56 }
 0x729   : > { %v10882_v39 = vpack.c.bf16 %v8174_v7, %v8173_v10  ;;  %v11543_v10 = vld [vmem:[#allocation9 + $0xb8] sm:$0xff] }
 0x72a   : > { %v8048_v7 = vmul.f32 %v11543_v10, %v13901_v61  ;;  %v8050_v61 = vmul.f32 %v11546_v42, %v13918_v38  ;;  %v14707_v38 = vld [vmem:[#allocation61_spill] sm:$0xff] }
 0x72b   : > { %11092 = vst [vmem:[%s13566_s9 + $0xd0] sm:$0xff] %v10882_v39   ;;  %v5218_v2 = vpop.f32.mrf.mxu2 }
 0x72c   : > { %v5219_v16 = vadd.f32 %v5218_v2, %v5130_v58  ;;  %v5132_v18 = vpop.f32.mrf.mxu1  ;;  %v8175_v58 = vadd.f32 %v8143_v17, %v8047_v13  ;;  %v11548_v17 = vld [vmem:[#allocation11 + $0xc0] sm:$0xff] }
 0x72d   : > { %v5307_v9 = vpop.f32.mrf.mxu3  ;;  %v5043_v41 = vpop.f32.mrf.mxu0 }
 0x72e   : > { %v5308_v37 = vadd.f32 %v5307_v9, %v5219_v16  ;;  %5171 = vmatmul.bf16.gmra.mxu1 %v14664_v47  ;;  %v5133_v9 = vadd.f32 %v5132_v18, %v5043_v41  ;;  %v8108_v2 = vpop.permute.xlu2 %8107  ;;  %v11545_v41 = vld [vmem:[#allocation11 + $0xc8] sm:$0xff] }
 0x72f   : > { %v8146_v18 = vmul.f32 %v11545_v41, %v8108_v2  ;;  %v9402_v41 = vld [vmem:[#allocation6 + $0x438] sm:$0xf0] }
 0x730   : > { %5082 = vmatmul.bf16.gmra.mxu0 %v14663_v22  ;;  %v6566_v57 = vadd.f32 %v13982_v59, %v5308_v37  ;;  %5260 = vmatmul.bf16.gmra.mxu2 %v14703_v43 }
 0x732   : > { %5349 = vmatmul.bf16.gmra.mxu3 %v14704_v29  ;;  %v10602_v31 = vpack.c.bf16 %v6566_v57, %v6558_v63 }
 0x733   : > { %v5221_v25 = vpop.f32.mrf.mxu2 }
 0x734   : > { %11036 = vst [vmem:[%s13995_s14 + $0x10] sm:$0xff] %v10602_v31   ;;  %v8104_v6 = vpop.permute.xlu0 %8103  ;;  %v5134_v30 = vpop.f32.mrf.mxu1  ;;  %v5222_v40 = vadd.f32 %v5221_v25, %v5133_v9 }
 0x735   : > { %v5310_v14 = vpop.f32.mrf.mxu3  ;;  %v8144_v45 = vmul.f32 %v11544_v62, %v8104_v6  ;;  %v5045_v39 = vpop.f32.mrf.mxu0  ;;  %v11547_v6 = vld [vmem:[#allocation9 + $0xc0] sm:$0xff] }
 0x736   : > { %v5135_v37 = vadd.f32 %v5134_v30, %v5045_v39  ;;  %v5311_v63 = vadd.f32 %v5310_v14, %v5222_v40  ;;  %v8049_v8 = vmul.f32 %v11547_v6, %v13911_v53  ;;  %v14706_v30 = vld [vmem:[#allocation60_spill] sm:$0xff] }
 0x737   : > { %v8176_v21 = vadd.f32 %v8144_v45, %v8048_v7  ;;  %v8178_v7 = vadd.f32 %v8146_v18, %v8050_v61  ;;  %v14705_v45 = vld [vmem:[#allocation59_spill] sm:$0xff]  ;;  %v10093_v61 = vld [vmem:[#allocation6 + $0x1c] sm:$0xf] }
 0x738   : > { %v6574_v14 = vadd.f32 %v13982_v59, %v5311_v63  ;;  %v10285_v63 = vld [vmem:[#allocation6 + $0x61c] sm:$0xf] }
 0x739   : > { %v10887_v16 = vpack.c.bf16 %v8176_v21, %v8175_v58  ;;  %v14708_v58 = vld [vmem:[#allocation62_spill] sm:$0xff]  ;;  %v8890_v6 = vld [vmem:[#allocation6 + $0x38] sm:$0xf0] }
 0x73b   : > { %11093 = vst [vmem:[%s13566_s9 + $0xd8] sm:$0xff] %v10887_v16   ;;  %v5223_v28 = vpop.f32.mrf.mxu2 }
 0x73c   : > { %v5224_v57 = vadd.f32 %v5223_v28, %v5135_v37  ;;  %v8106_v31 = vpop.permute.xlu1 %8105  ;;  %v5137_v10 = vpop.f32.mrf.mxu1  ;;  %v10221_v37 = vld [vmem:[#allocation6 + $0x41c] sm:$0xf] }
 0x73d   : > { %v5312_v56 = vpop.f32.mrf.mxu3  ;;  %v8145_v13 = vmul.f32 %v11548_v17, %v8106_v31  ;;  %v5048_v25 = vpop.f32.mrf.mxu0  ;;  %v9405_v28 = vor.u32 %v10221_v37, %v9402_v41  ;;  %v8893_v17 = vor.u32 %v10093_v61, %v8890_v6  ;;  %v14709_v37 = vld [vmem:[#allocation63_spill] sm:$0xff] }
 0x73e   : > { %v5313_v9 = vadd.f32 %v5312_v56, %v5224_v57  ;;  %5176 = vmatmul.bf16.gmra.mxu1 %v14706_v30  ;;  %v5138_v40 = vadd.f32 %v5137_v10, %v5048_v25  ;;  %v9658_v57 = vld [vmem:[#allocation6 + $0x638] sm:$0xf0] }
 0x73f   : > { %v8177_v62 = vadd.f32 %v8145_v13, %v8049_v8  ;;  %v9661_v31 = vor.u32 %v10285_v63, %v9658_v57  ;;  %5560 = vmatpush.bf16.msrb.mxu2 %v9405_v28  ;;  %v10157_v8 = vld [vmem:[#allocation6 + $0x21c] sm:$0xf]  ;;  %5382 = vmatpush.bf16.msrb.mxu0 %v8893_v17  ;;  %v14712_v63 = vld [vmem:[#allocation66_spill] sm:$0xff] }
 0x740   : > { %5087 = vmatmul.bf16.gmra.mxu0 %v14705_v45  ;;  %v6582_v39 = vadd.f32 %v13982_v59, %v5313_v9  ;;  %5265 = vmatmul.bf16.gmra.mxu2 %v14707_v38  ;;  %v9146_v13 = vld [vmem:[#allocation6 + $0x238] sm:$0xf0] }
 0x741   : > { %v10892_v53 = vpack.c.bf16 %v8178_v7, %v8177_v62  ;;  %5649 = vmatpush.bf16.msrb.mxu3 %v9661_v31  ;;  %v9149_v7 = vor.u32 %v10157_v8, %v9146_v13  ;;  %v14710_v28 = vld [vmem:[#allocation64_spill] sm:$0xff]  ;;  %v11551_v13 = vld [vmem:[#allocation9 + $0xd8] sm:$0xff] }
 0x742   : > { %5354 = vmatmul.bf16.gmra.mxu3 %v14708_v58  ;;  %v10607_v21 = vpack.c.bf16 %v6582_v39, %v6574_v14  ;;  %v11549_v57 = vld [vmem:[#allocation11 + $0xd0] sm:$0xff] }
 0x743   : > { %11094 = vst [vmem:[%s13566_s9 + $0xe0] sm:$0xff] %v10892_v53   ;;  %v5226_v2 = vpop.f32.mrf.mxu2  ;;  %5471 = vmatpush.bf16.msrb.mxu1 %v9149_v7  ;;  %v11550_v8 = vld [vmem:[#allocation9 + $0xd0] sm:$0xff]  ;;  %v11552_v7 = vld [vmem:[#allocation11 + $0xd8] sm:$0xff] }
 0x744   : > { %11037 = vst [vmem:[%s13995_s14 + $0x18] sm:$0xff] %v10607_v21   ;;  %v5139_v56 = vpop.f32.mrf.mxu1  ;;  %v5227_v42 = vadd.f32 %v5226_v2, %v5138_v40  ;;  %v8051_v17 = vmul.f32 %v11550_v8, %v13928_v26 }
 0x745   : > { %v5315_v16 = vpop.f32.mrf.mxu3  ;;  %v5050_v18 = vpop.f32.mrf.mxu0 }
 0x746   : > { %v5140_v9 = vadd.f32 %v5139_v56, %v5050_v18  ;;  %v5316_v10 = vadd.f32 %v5315_v16, %v5227_v42  ;;  %v14711_v18 = vld [vmem:[#allocation65_spill] sm:$0xff] }
 0x748   : > { %v6590_v2 = vadd.f32 %v13982_v59, %v5316_v10 }
 0x74b   : > { %v5228_v25 = vpop.f32.mrf.mxu2 }
 0x74c   : > { %v5229_v62 = vadd.f32 %v5228_v25, %v5140_v9  ;;  %v5142_v21 = vpop.f32.mrf.mxu1  ;;  %v8110_v41 = vpop.permute.xlu0 %8109  ;;  %v8052_v9 = vmul.f32 %v11551_v13, %v13937_v24  ;;  %v11553_v13 = vld [vmem:[#allocation11 + $0xe0] sm:$0xff] }
 0x74d   : > { %v5317_v14 = vpop.f32.mrf.mxu3  ;;  %v5053_v39 = vpop.f32.mrf.mxu0  ;;  %v8147_v56 = vmul.f32 %v11549_v57, %v8110_v41 }
 0x74e   : > { %v5318_v53 = vadd.f32 %v5317_v14, %v5229_v62  ;;  %5181 = vmatmul.bf16.gmra.mxu1 %v14710_v28  ;;  %v5143_v42 = vadd.f32 %v5142_v21, %v5053_v39  ;;  %v8114_v24 = vpop.permute.xlu2 %8113 }
 0x74f   : > { %v8179_v14 = vadd.f32 %v8147_v56, %v8051_v17  ;;  %v14714_v17 = vld [vmem:[#allocation68_spill] sm:$0xff] }
 0x750   : > { %5092 = vmatmul.bf16.gmra.mxu0 %v14709_v37  ;;  %v6598_v40 = vadd.f32 %v13982_v59, %v5318_v53  ;;  %5270 = vmatmul.bf16.gmra.mxu2 %v14711_v18  ;;  %v14713_v18 = vld [vmem:[#allocation67_spill] sm:$0xff] }
 0x752   : > { %5359 = vmatmul.bf16.gmra.mxu3 %v14712_v63  ;;  %v10612_v16 = vpack.c.bf16 %v6598_v40, %v6590_v2 }
 0x753   : > { %v5231_v31 = vpop.f32.mrf.mxu2 }
 0x754   : > { %11038 = vst [vmem:[%s13995_s14 + $0x20] sm:$0xff] %v10612_v16   ;;  %v8112_v6 = vpop.permute.xlu1 %8111  ;;  %v5144_v62 = vpop.f32.mrf.mxu1  ;;  %v5232_v2 = vadd.f32 %v5231_v31, %v5143_v42  ;;  %v14715_v31 = vld [vmem:[#allocation69_spill] sm:$0xff]  ;;  %v14716_v42 = vld [vmem:[#allocation70_spill] sm:$0xff] }
 0x755   : > { %v5320_v61 = vpop.f32.mrf.mxu3  ;;  %v8148_v25 = vmul.f32 %v11552_v7, %v8112_v6  ;;  %v5055_v10 = vpop.f32.mrf.mxu0 }
 0x756   : > { %v5145_v41 = vadd.f32 %v5144_v62, %v5055_v10  ;;  %v5321_v21 = vadd.f32 %v5320_v61, %v5232_v2  ;;  %v11555_v2 = vld [vmem:[#allocation9 + $0xe8] sm:$0xff] }
 0x757   : > { %v8180_v53 = vadd.f32 %v8148_v25, %v8052_v9  ;;  %v8149_v9 = vmul.f32 %v11553_v13, %v8114_v24 }
 0x758   : > { %v6606_v6 = vadd.f32 %v13982_v59, %v5321_v21 }
 0x759   : > { %v10897_v40 = vpack.c.bf16 %v8180_v53, %v8179_v14  ;;  %v11554_v14 = vld [vmem:[#allocation9 + $0xe0] sm:$0xff] }
 0x75a   : > { %v8053_v53 = vmul.f32 %v11554_v14, %v13946_v15 }
 0x75b   : > { %11095 = vst [vmem:[%s13566_s9 + $0xe8] sm:$0xff] %v10897_v40   ;;  %v5233_v39 = vpop.f32.mrf.mxu2  ;;  %v8054_v40 = vmul.f32 %v11555_v2, %v13952_v36 }
 0x75c   : > { %v5234_v16 = vadd.f32 %v5233_v39, %v5145_v41  ;;  %v5147_v8 = vpop.f32.mrf.mxu1  ;;  %v11556_v41 = vld [vmem:[#allocation11 + $0xe8] sm:$0xff] }
 0x75d   : > { %v5322_v57 = vpop.f32.mrf.mxu3  ;;  %v5058_v63 = vpop.f32.mrf.mxu0 }
 0x75e   : > { %v5323_v26 = vadd.f32 %v5322_v57, %v5234_v16  ;;  %5186 = vmatmul.bf16.gmra.mxu1 %v14714_v17  ;;  %v5148_v25 = vadd.f32 %v5147_v8, %v5058_v63  ;;  %v8181_v57 = vadd.f32 %v8149_v9, %v8053_v53  ;;  %v11557_v63 = vld [vmem:[#allocation11 + $0xf8] sm:$0xff]  ;;  %v11560_v9 = vld [vmem:[#allocation11 + $0xf0] sm:$0xff] }
 0x75f   : > { %v11558_v17 = vld [vmem:[#allocation9 + $0xf8] sm:$0xff] }
 0x760   : > { %5097 = vmatmul.bf16.gmra.mxu0 %v14713_v18  ;;  %v6614_v56 = vadd.f32 %v13982_v59, %v5323_v26  ;;  %5275 = vmatmul.bf16.gmra.mxu2 %v14715_v31  ;;  %v8056_v36 = vmul.f32 %v11558_v17, %v13969_v23 }
 0x762   : > { %5364 = vmatmul.bf16.gmra.mxu3 %v14716_v42  ;;  %v10617_v61 = vpack.c.bf16 %v6614_v56, %v6606_v6  ;;  %v8120_v6 = vpop.permute.xlu2 %8119 }
 0x763   : > { %v5236_v7 = vpop.f32.mrf.mxu2  ;;  %v8152_v8 = vmul.f32 %v11557_v63, %v8120_v6 }
 0x764   : > { %11039 = vst [vmem:[%s13995_s14 + $0x28] sm:$0xff] %v10617_v61   ;;  %v8116_v62 = vpop.permute.xlu0 %8115  ;;  %v5149_v16 = vpop.f32.mrf.mxu1  ;;  %v5237_v24 = vadd.f32 %v5236_v7, %v5148_v25 }
 0x765   : > { %v5325_v10 = vpop.f32.mrf.mxu3  ;;  %v8150_v39 = vmul.f32 %v11556_v41, %v8116_v62  ;;  %v5060_v21 = vpop.f32.mrf.mxu0  ;;  %v11559_v62 = vld [vmem:[#allocation9 + $0xf0] sm:$0xff]  ;;  %v8184_v41 = vadd.f32 %v8152_v8, %v8056_v36 }
 0x766   : > { %v5150_v61 = vadd.f32 %v5149_v16, %v5060_v21  ;;  %v5326_v42 = vadd.f32 %v5325_v10, %v5237_v24  ;;  %v8055_v2 = vmul.f32 %v11559_v62, %v13962_v44 }
 0x767   : > { %v8182_v26 = vadd.f32 %v8150_v39, %v8054_v40 }
 0x768   : > { %v6622_v10 = vadd.f32 %v13982_v59, %v5326_v42 }
 0x769   : > { %v10902_v56 = vpack.c.bf16 %v8182_v26, %v8181_v57 }
 0x76b   : > { %11096 = vst [vmem:[%s13566_s9 + $0xf0] sm:$0xff] %v10902_v56   ;;  %v5238_v13 = vpop.f32.mrf.mxu2 }
 0x76c   : > { %v5239_v31 = vadd.f32 %v5238_v13, %v5150_v61  ;;  %v8118_v14 = vpop.permute.xlu1 %8117  ;;  %v5152_v40 = vpop.f32.mrf.mxu1 }
 0x76d   : > { %v5327_v15 = vpop.f32.mrf.mxu3  ;;  %v8151_v53 = vmul.f32 %v11560_v9, %v8118_v14  ;;  %v5063_v7 = vpop.f32.mrf.mxu0 }
 0x76e   : > { %v5328_v25 = vadd.f32 %v5327_v15, %v5239_v31  ;;  %5191 = vmatmul.bf16.gmra.mxu1 %v14638_v46  ;;  %v5153_v31 = vadd.f32 %v5152_v40, %v5063_v7 }
 0x76f   : > { %v8183_v39 = vadd.f32 %v8151_v53, %v8055_v2 }
 0x770   : > { %5102 = vmatmul.bf16.gmra.mxu0 %v14637_v51  ;;  %v6630_v21 = vadd.f32 %v13982_v59, %v5328_v25  ;;  %5280 = vmatmul.bf16.gmra.mxu2 %v14639_v27 }
 0x771   : > { %v10907_v44 = vpack.c.bf16 %v8184_v41, %v8183_v39 }
 0x772   : > { %5369 = vmatmul.bf16.gmra.mxu3 %v14640_v48  ;;  %v10622_v23 = vpack.c.bf16 %v6630_v21, %v6622_v10 }
 0x773   : > { %11097 = vst [vmem:[%s13566_s9 + $0xf8] sm:$0xff] %v10907_v44   ;;  %v5241_v17 = vpop.f32.mrf.mxu2  ;;  %s11731_s9 = scalar_lea.hbm %s14294_s6, 512 }
 0x774   : > { %11040 = vst [vmem:[%s13995_s14 + $0x30] sm:$0xff] %v10622_v23   ;;  %v5154_v26 = vpop.f32.mrf.mxu1  ;;  %v5242_v6 = vadd.f32 %v5241_v17, %v5153_v31  ;;  %v14717_v17 = vld [vmem:[#allocation26_spill] sm:$0xff]  ;;  %v14718_v31 = vld [vmem:[#allocation27_spill] sm:$0xff]  ;;  %p11733_p12 = scmp.lt.s32.totalorder %s11731_s9, %s11727_s11 }
 0x775   : > { %v5330_v16 = vpop.f32.mrf.mxu3  ;;  %v5065_v57 = vpop.f32.mrf.mxu0 }
 0x776   : > { %v5155_v24 = vadd.f32 %v5154_v26, %v5065_v57  ;;  %v5331_v56 = vadd.f32 %v5330_v16, %v5242_v6  ;;  %v14719_v16 = vld [vmem:[#allocation28_spill] sm:$0xff]  ;;  %p11734_p13 = por %p11733_p12, %p11732_p10 }
 0x778   : > { %v6638_v14 = vadd.f32 %v13982_v59, %v5331_v56  ;;  %p11735_p0 = pnand %p11734_p13, %p11730_p8 }
 0x77b   : > { %v5243_v42 = vpop.f32.mrf.mxu2 }
 0x77c   : > { %v5244_v61 = vadd.f32 %v5243_v42, %v5155_v24  ;;  %v5157_v15 = vpop.f32.mrf.mxu1 }
 0x77d   : > { %v5332_v63 = vpop.f32.mrf.mxu3  ;;  %v5068_v8 = vpop.f32.mrf.mxu0 }
 0x77e   : > { %v5333_v13 = vadd.f32 %v5332_v63, %v5244_v61  ;;  %5472 = vmatmul.bf16.vlgmr.msrb.gmra.mxu1 %v14642_v60  ;;  %v5158_v9 = vadd.f32 %v5157_v15, %v5068_v8 }
 0x780   : > { %5383 = vmatmul.bf16.vlgmr.msrb.gmra.mxu0 %v14641_v19  ;;  %v6646_v36 = vadd.f32 %v13982_v59, %v5333_v13  ;;  %5561 = vmatmul.bf16.vlgmr.msrb.gmra.mxu2 %v14677_v4 }
 0x782   : > { %5650 = vmatmul.bf16.vlgmr.msrb.gmra.mxu3 %v14678_v20  ;;  %v10627_v62 = vpack.c.bf16 %v6646_v36, %v6638_v14 }
 0x783   : > { %v5246_v2 = vpop.f32.mrf.mxu2 }
 0x784   : > { %11041 = vst [vmem:[%s13995_s14 + $0x38] sm:$0xff] %v10627_v62   ;;  %v5159_v25 = vpop.f32.mrf.mxu1  ;;  %v5247_v40 = vadd.f32 %v5246_v2, %v5158_v9  ;;  %v14720_v2 = vld [vmem:[#allocation29_spill] sm:$0xff] }
 0x785   : > { %v5335_v53 = vpop.f32.mrf.mxu3  ;;  %v5070_v7 = vpop.f32.mrf.mxu0 }
 0x786   : > { %v5160_v41 = vadd.f32 %v5159_v25, %v5070_v7  ;;  %v5336_v39 = vadd.f32 %v5335_v53, %v5247_v40  ;;  %v14721_v7 = vld [vmem:[#allocation30_spill] sm:$0xff]  ;;  %v14722_v25 = vld [vmem:[#allocation31_spill] sm:$0xff]  ;;  %v14723_v40 = vld [vmem:[#allocation32_spill] sm:$0xff] }
 0x788   : > { %v6654_v4 = vadd.f32 %v13982_v59, %v5336_v39 }
 0x78b   : > { %v5248_v19 = vpop.f32.mrf.mxu2 }
 0x78c   : > { %v5249_v10 = vadd.f32 %v5248_v19, %v5160_v41  ;;  %v5162_v23 = vpop.f32.mrf.mxu1 }
 0x78d   : > { %v5337_v21 = vpop.f32.mrf.mxu3  ;;  %v5073_v44 = vpop.f32.mrf.mxu0 }
 0x78e   : > { %v5338_v60 = vadd.f32 %v5337_v21, %v5249_v10  ;;  %5477 = vmatmul.bf16.gmra.mxu1 %v14717_v17  ;;  %v5163_v6 = vadd.f32 %v5162_v23, %v5073_v44 }
 0x790   : > { %5388 = vmatmul.bf16.gmra.mxu0 %v12083_v12  ;;  %v6662_v20 = vadd.f32 %v13982_v59, %v5338_v60  ;;  %5566 = vmatmul.bf16.gmra.mxu2 %v14718_v31 }
 0x792   : > { %5655 = vmatmul.bf16.gmra.mxu3 %v14719_v16  ;;  %v10632_v57 = vpack.c.bf16 %v6662_v20, %v6654_v4 }
 0x793   : > { %v5251_v26 = vpop.f32.mrf.mxu2 }
 0x794   : > { %11042 = vst [vmem:[%s13995_s14 + $0x40] sm:$0xff] %v10632_v57   ;;  %v5164_v56 = vpop.f32.mrf.mxu1  ;;  %v5252_v61 = vadd.f32 %v5251_v26, %v5163_v6 }
 0x795   : > { %v5340_v24 = vpop.f32.mrf.mxu3  ;;  %v5075_v42 = vpop.f32.mrf.mxu0 }
 0x796   : > { %v5165_v63 = vadd.f32 %v5164_v56, %v5075_v42  ;;  %v5341_v8 = vadd.f32 %v5340_v24, %v5252_v61 }
 0x798   : > { %v6670_v9 = vadd.f32 %v13982_v59, %v5341_v8 }
 0x79b   : > { %v5253_v12 = vpop.f32.mrf.mxu2 }
 0x79c   : > { %v5254_v13 = vadd.f32 %v5253_v12, %v5165_v63  ;;  %v5167_v62 = vpop.f32.mrf.mxu1 }
 0x79d   : > { %v5342_v15 = vpop.f32.mrf.mxu3  ;;  %v5078_v14 = vpop.f32.mrf.mxu0 }
 0x79e   : > { %v5343_v36 = vadd.f32 %v5342_v15, %v5254_v13  ;;  %5482 = vmatmul.bf16.gmra.mxu1 %v14721_v7  ;;  %v5168_v39 = vadd.f32 %v5167_v62, %v5078_v14  ;;  %v14725_v7 = vld [vmem:[#allocation34_spill] sm:$0xff] }
 0x7a0   : > { %5393 = vmatmul.bf16.gmra.mxu0 %v14720_v2  ;;  %v6678_v53 = vadd.f32 %v13982_v59, %v5343_v36  ;;  %5571 = vmatmul.bf16.gmra.mxu2 %v14722_v25 }
 0x7a2   : > { %5660 = vmatmul.bf16.gmra.mxu3 %v14723_v40  ;;  %v10637_v41 = vpack.c.bf16 %v6678_v53, %v6670_v9  ;;  %v14724_v53 = vld [vmem:[#allocation33_spill] sm:$0xff] }
 0x7a3   : > { %v5256_v19 = vpop.f32.mrf.mxu2 }
 0x7a4   : > { %11043 = vst [vmem:[%s13995_s14 + $0x48] sm:$0xff] %v10637_v41   ;;  %v5169_v44 = vpop.f32.mrf.mxu1  ;;  %v5257_v60 = vadd.f32 %v5256_v19, %v5168_v39 }
 0x7a5   : > { %v5345_v10 = vpop.f32.mrf.mxu3  ;;  %v5080_v21 = vpop.f32.mrf.mxu0 }
 0x7a6   : > { %v5170_v23 = vadd.f32 %v5169_v44, %v5080_v21  ;;  %v5346_v20 = vadd.f32 %v5345_v10, %v5257_v60 }
 0x7a8   : > { %v6686_v6 = vadd.f32 %v13982_v59, %v5346_v20 }
 0x7ab   : > { %v5258_v4 = vpop.f32.mrf.mxu2 }
 0x7ac   : > { %v5259_v17 = vadd.f32 %v5258_v4, %v5170_v23  ;;  %v5172_v26 = vpop.f32.mrf.mxu1 }
 0x7ad   : > { %v5347_v31 = vpop.f32.mrf.mxu3  ;;  %v5083_v16 = vpop.f32.mrf.mxu0 }
 0x7ae   : > { %v5348_v57 = vadd.f32 %v5347_v31, %v5259_v17  ;;  %5487 = vmatmul.bf16.gmra.mxu1 %v12125_v50  ;;  %v5173_v61 = vadd.f32 %v5172_v26, %v5083_v16 }
 0x7b0   : > { %5398 = vmatmul.bf16.gmra.mxu0 %v12123_v49  ;;  %v6694_v24 = vadd.f32 %v13982_v59, %v5348_v57  ;;  %5576 = vmatmul.bf16.gmra.mxu2 %v12127_v54 }
 0x7b2   : > { %5665 = vmatmul.bf16.gmra.mxu3 %v12129_v55  ;;  %v10642_v42 = vpack.c.bf16 %v6694_v24, %v6686_v6 }
 0x7b3   : > { %v5261_v56 = vpop.f32.mrf.mxu2 }
 0x7b4   : > { %11044 = vst [vmem:[%s13995_s14 + $0x50] sm:$0xff] %v10642_v42   ;;  %v5174_v8 = vpop.f32.mrf.mxu1  ;;  %v5262_v13 = vadd.f32 %v5261_v56, %v5173_v61 }
 0x7b5   : > { %v5350_v63 = vpop.f32.mrf.mxu3  ;;  %v5085_v12 = vpop.f32.mrf.mxu0 }
 0x7b6   : > { %v5175_v15 = vadd.f32 %v5174_v8, %v5085_v12  ;;  %v5351_v14 = vadd.f32 %v5350_v63, %v5262_v13 }
 0x7b8   : > { %v6702_v54 = vadd.f32 %v13982_v59, %v5351_v14  ;;  %v14726_v14 = vld [vmem:[#allocation36_spill] sm:$0xff] }
 0x7bb   : > { %v5263_v49 = vpop.f32.mrf.mxu2 }
 0x7bc   : > { %v5264_v36 = vadd.f32 %v5263_v49, %v5175_v15  ;;  %v5177_v9 = vpop.f32.mrf.mxu1 }
 0x7bd   : > { %v5352_v62 = vpop.f32.mrf.mxu3  ;;  %v5088_v2 = vpop.f32.mrf.mxu0 }
 0x7be   : > { %v5353_v50 = vadd.f32 %v5352_v62, %v5264_v36  ;;  %5492 = vmatmul.bf16.gmra.mxu1 %v12145_v1  ;;  %v5178_v41 = vadd.f32 %v5177_v9, %v5088_v2  ;;  %v14727_v36 = vld [vmem:[#allocation37_spill] sm:$0xff]  ;;  %v14728_v62 = vld [vmem:[#allocation38_spill] sm:$0xff] }
 0x7c0   : > { %5403 = vmatmul.bf16.gmra.mxu0 %v12143_v0  ;;  %v6710_v55 = vadd.f32 %v13982_v59, %v5353_v50  ;;  %5581 = vmatmul.bf16.gmra.mxu2 %v14724_v53 }
 0x7c2   : > { %5670 = vmatmul.bf16.gmra.mxu3 %v14725_v7  ;;  %v10647_v25 = vpack.c.bf16 %v6710_v55, %v6702_v54 }
 0x7c3   : > { %v5266_v40 = vpop.f32.mrf.mxu2 }
 0x7c4   : > { %11045 = vst [vmem:[%s13995_s14 + $0x58] sm:$0xff] %v10647_v25   ;;  %v5179_v10 = vpop.f32.mrf.mxu1  ;;  %v5267_v21 = vadd.f32 %v5266_v40, %v5178_v41 }
 0x7c5   : > { %v5355_v19 = vpop.f32.mrf.mxu3  ;;  %v5090_v39 = vpop.f32.mrf.mxu0 }
 0x7c6   : > { %v5180_v44 = vadd.f32 %v5179_v10, %v5090_v39  ;;  %v5356_v60 = vadd.f32 %v5355_v19, %v5267_v21 }
 0x7c8   : > { %v6718_v31 = vadd.f32 %v13982_v59, %v5356_v60 }
 0x7cb   : > { %v5268_v0 = vpop.f32.mrf.mxu2 }
 0x7cc   : > { %v5269_v23 = vadd.f32 %v5268_v0, %v5180_v44  ;;  %v5182_v17 = vpop.f32.mrf.mxu1  ;;  %v14729_v44 = vld [vmem:[#allocation39_spill] sm:$0xff] }
 0x7cd   : > { %v5357_v4 = vpop.f32.mrf.mxu3  ;;  %v5093_v20 = vpop.f32.mrf.mxu0 }
 0x7ce   : > { %v5358_v1 = vadd.f32 %v5357_v4, %v5269_v23  ;;  %5497 = vmatmul.bf16.gmra.mxu1 %v12165_v33  ;;  %v5183_v6 = vadd.f32 %v5182_v17, %v5093_v20  ;;  %v14730_v23 = vld [vmem:[#allocation40_spill] sm:$0xff]  ;;  %v14731_v4 = vld [vmem:[#allocation41_spill] sm:$0xff]  ;;  %v14732_v20 = vld [vmem:[#allocation42_spill] sm:$0xff] }
 0x7d0   : > { %5408 = vmatmul.bf16.gmra.mxu0 %v12163_v32  ;;  %v6726_v16 = vadd.f32 %v13982_v59, %v5358_v1  ;;  %5586 = vmatmul.bf16.gmra.mxu2 %v12167_v34 }
 0x7d2   : > { %5675 = vmatmul.bf16.gmra.mxu3 %v12169_v35  ;;  %v10652_v57 = vpack.c.bf16 %v6726_v16, %v6718_v31 }
 0x7d3   : > { %v5271_v26 = vpop.f32.mrf.mxu2 }
 0x7d4   : > { %11046 = vst [vmem:[%s13995_s14 + $0x60] sm:$0xff] %v10652_v57   ;;  %v5184_v56 = vpop.f32.mrf.mxu1  ;;  %v5272_v61 = vadd.f32 %v5271_v26, %v5183_v6 }
 0x7d5   : > { %v5360_v24 = vpop.f32.mrf.mxu3  ;;  %v5095_v42 = vpop.f32.mrf.mxu0 }
 0x7d6   : > { %v5185_v63 = vadd.f32 %v5184_v56, %v5095_v42  ;;  %v5361_v12 = vadd.f32 %v5360_v24, %v5272_v61 }
 0x7d8   : > { %v6734_v34 = vadd.f32 %v13982_v59, %v5361_v12 }
 0x7db   : > { %v5273_v32 = vpop.f32.mrf.mxu2 }
 0x7dc   : > { %v5274_v8 = vadd.f32 %v5273_v32, %v5185_v63  ;;  %v5187_v49 = vpop.f32.mrf.mxu1 }
 0x7dd   : > { %v5362_v13 = vpop.f32.mrf.mxu3  ;;  %v5098_v15 = vpop.f32.mrf.mxu0 }
 0x7de   : > { %v5363_v33 = vadd.f32 %v5362_v13, %v5274_v8  ;;  %5502 = vmatmul.bf16.gmra.mxu1 %v14726_v14  ;;  %v5188_v9 = vadd.f32 %v5187_v49, %v5098_v15  ;;  %v14733_v13 = vld [vmem:[#allocation43_spill] sm:$0xff]  ;;  %v14734_v49 = vld [vmem:[#allocation44_spill] sm:$0xff] }
 0x7e0   : > { %5413 = vmatmul.bf16.gmra.mxu0 %v14606_v5  ;;  %v6742_v35 = vadd.f32 %v13982_v59, %v5363_v33  ;;  %5591 = vmatmul.bf16.gmra.mxu2 %v14727_v36 }
 0x7e2   : > { %5680 = vmatmul.bf16.gmra.mxu3 %v14728_v62  ;;  %v10657_v2 = vpack.c.bf16 %v6742_v35, %v6734_v34  ;;  %v14735_v34 = vld [vmem:[#allocation45_spill] sm:$0xff]  ;;  %v14736_v35 = vld [vmem:[#allocation46_spill] sm:$0xff] }
 0x7e3   : > { %v5276_v50 = vpop.f32.mrf.mxu2 }
 0x7e4   : > { %11047 = vst [vmem:[%s13995_s14 + $0x68] sm:$0xff] %v10657_v2   ;;  %v5189_v53 = vpop.f32.mrf.mxu1  ;;  %v5277_v7 = vadd.f32 %v5276_v50, %v5188_v9 }
 0x7e5   : > { %v5365_v54 = vpop.f32.mrf.mxu3  ;;  %v5100_v55 = vpop.f32.mrf.mxu0 }
 0x7e6   : > { %v5190_v25 = vadd.f32 %v5189_v53, %v5100_v55  ;;  %v5366_v40 = vadd.f32 %v5365_v54, %v5277_v7 }
 0x7e8   : > { %v6750_v0 = vadd.f32 %v13982_v59, %v5366_v40 }
 0x7eb   : > { %v5278_v5 = vpop.f32.mrf.mxu2 }
 0x7ec   : > { %v5279_v41 = vadd.f32 %v5278_v5, %v5190_v25  ;;  %v5192_v21 = vpop.f32.mrf.mxu1 }
 0x7ed   : > { %v5367_v19 = vpop.f32.mrf.mxu3  ;;  %v5103_v39 = vpop.f32.mrf.mxu0 }
 0x7ee   : > { %v5368_v10 = vadd.f32 %v5367_v19, %v5279_v41  ;;  %5507 = vmatmul.bf16.gmra.mxu1 %v14730_v23  ;;  %v5193_v31 = vadd.f32 %v5192_v21, %v5103_v39  ;;  %v14737_v21 = vld [vmem:[#allocation49_spill] sm:$0xff] }
 0x7f0   : > { %5418 = vmatmul.bf16.gmra.mxu0 %v14729_v44  ;;  %v6758_v60 = vadd.f32 %v13982_v59, %v5368_v10  ;;  %5596 = vmatmul.bf16.gmra.mxu2 %v14731_v4  ;;  %v14738_v44 = vld [vmem:[#allocation50_spill] sm:$0xff] }
 0x7f2   : > { %5685 = vmatmul.bf16.gmra.mxu3 %v14732_v20  ;;  %v10662_v1 = vpack.c.bf16 %v6758_v60, %v6750_v0 }
 0x7f3   : > { %v5281_v17 = vpop.f32.mrf.mxu2 }
 0x7f4   : > { %11048 = vst [vmem:[%s13995_s14 + $0x70] sm:$0xff] %v10662_v1   ;;  %v5194_v26 = vpop.f32.mrf.mxu1  ;;  %v5282_v6 = vadd.f32 %v5281_v17, %v5193_v31 }
 0x7f5   : > { %v5370_v16 = vpop.f32.mrf.mxu3  ;;  %v5105_v57 = vpop.f32.mrf.mxu0 }
 0x7f6   : > { %v5195_v24 = vadd.f32 %v5194_v26, %v5105_v57  ;;  %v5371_v56 = vadd.f32 %v5370_v16, %v5282_v6 }
 0x7f8   : > { %v6766_v15 = vadd.f32 %v13982_v59, %v5371_v56 }
 0x7fb   : > { %v5283_v42 = vpop.f32.mrf.mxu2 }
 0x7fc   : > { %v5284_v61 = vadd.f32 %v5283_v42, %v5195_v24  ;;  %v5473_v8 = vpop.f32.mrf.mxu1  ;;  %v14739_v24 = vld [vmem:[#allocation51_spill] sm:$0xff] }
 0x7fd   : > { %v5372_v63 = vpop.f32.mrf.mxu3  ;;  %v5384_v32 = vpop.f32.mrf.mxu0 }
 0x7fe   : > { %v5373_v12 = vadd.f32 %v5372_v63, %v5284_v61  ;;  %5512 = vmatmul.bf16.gmra.mxu1 %v14734_v49  ;;  %v5474_v62 = vadd.f32 %v5473_v8, %v5384_v32  ;;  %v14740_v61 = vld [vmem:[#allocation52_spill] sm:$0xff]  ;;  %v14741_v63 = vld [vmem:[#allocation53_spill] sm:$0xff]  ;;  %v14742_v32 = vld [vmem:[#allocation54_spill] sm:$0xff] }
 0x800   : > { %5423 = vmatmul.bf16.gmra.mxu0 %v14733_v13  ;;  %v6774_v33 = vadd.f32 %v13982_v59, %v5373_v12  ;;  %5601 = vmatmul.bf16.gmra.mxu2 %v14735_v34  ;;  %v14122_v59 = vperm.slane %v13979_v52, 7 }
 0x802   : > { %5690 = vmatmul.bf16.gmra.mxu3 %v14736_v35  ;;  %v10667_v14 = vpack.c.bf16 %v6774_v33, %v6766_v15 }
 0x803   : > { %v5562_v36 = vpop.f32.mrf.mxu2 }
 0x804   : > { %11049 = vst [vmem:[%s13995_s14 + $0x78] sm:$0xff] %v10667_v14   ;;  %v5475_v9 = vpop.f32.mrf.mxu1  ;;  %v5563_v54 = vadd.f32 %v5562_v36, %v5474_v62 }
 0x805   : > { %v5651_v2 = vpop.f32.mrf.mxu3  ;;  %v5386_v50 = vpop.f32.mrf.mxu0 }
 0x806   : > { %v5476_v55 = vadd.f32 %v5475_v9, %v5386_v50  ;;  %v5652_v7 = vadd.f32 %v5651_v2, %v5563_v54 }
 0x808   : > { %v6527_v39 = vadd.f32 %v14122_v59, %v5652_v7 }
 0x80b   : > { %v5564_v53 = vpop.f32.mrf.mxu2 }
 0x80c   : > { %v5565_v25 = vadd.f32 %v5564_v53, %v5476_v55  ;;  %v5478_v19 = vpop.f32.mrf.mxu1 }
 0x80d   : > { %v5653_v5 = vpop.f32.mrf.mxu3  ;;  %v5389_v40 = vpop.f32.mrf.mxu0 }
 0x80e   : > { %v5654_v41 = vadd.f32 %v5653_v5, %v5565_v25  ;;  %5517 = vmatmul.bf16.gmra.mxu1 %v14696_v11  ;;  %v5479_v60 = vadd.f32 %v5478_v19, %v5389_v40 }
 0x810   : > { %5428 = vmatmul.bf16.gmra.mxu0 %v14695_v3  ;;  %v6535_v10 = vadd.f32 %v14122_v59, %v5654_v41  ;;  %5606 = vmatmul.bf16.gmra.mxu2 %v14737_v21 }
 0x812   : > { %5695 = vmatmul.bf16.gmra.mxu3 %v14738_v44  ;;  %v10912_v0 = vpack.c.bf16 %v6535_v10, %v6527_v39 }
 0x813   : > { %v5567_v52 = vpop.f32.mrf.mxu2 }
 0x814   : > { %11098 = vst [vmem:[%s13995_s14 + $0x80] sm:$0xff] %v10912_v0   ;;  %v5480_v20 = vpop.f32.mrf.mxu1  ;;  %v5568_v1 = vadd.f32 %v5567_v52, %v5479_v60 }
 0x815   : > { %v5656_v23 = vpop.f32.mrf.mxu3  ;;  %v5391_v4 = vpop.f32.mrf.mxu0 }
 0x816   : > { %v5481_v17 = vadd.f32 %v5480_v20, %v5391_v4  ;;  %v5657_v31 = vadd.f32 %v5656_v23, %v5568_v1 }
 0x818   : > { %v6543_v42 = vadd.f32 %v14122_v59, %v5657_v31 }
 0x81b   : > { %v5569_v3 = vpop.f32.mrf.mxu2 }
 0x81c   : > { %v5570_v16 = vadd.f32 %v5569_v3, %v5481_v17  ;;  %v5483_v6 = vpop.f32.mrf.mxu1 }
 0x81d   : > { %v5658_v57 = vpop.f32.mrf.mxu3  ;;  %v5394_v26 = vpop.f32.mrf.mxu0 }
 0x81e   : > { %v5659_v11 = vadd.f32 %v5658_v57, %v5570_v16  ;;  %5522 = vmatmul.bf16.gmra.mxu1 %v14740_v61  ;;  %v5484_v13 = vadd.f32 %v5483_v6, %v5394_v26 }
 0x820   : > { %5433 = vmatmul.bf16.gmra.mxu0 %v14739_v24  ;;  %v6551_v56 = vadd.f32 %v14122_v59, %v5659_v11  ;;  %5611 = vmatmul.bf16.gmra.mxu2 %v14741_v63 }
 0x822   : > { %5700 = vmatmul.bf16.gmra.mxu3 %v14742_v32  ;;  %v10917_v12 = vpack.c.bf16 %v6551_v56, %v6543_v42  ;;  %v14743_v42 = vld [vmem:[#allocation65_spill] sm:$0xff]  ;;  %v14744_v56 = vld [vmem:[#allocation66_spill] sm:$0xff] }
 0x823   : > { %v5572_v8 = vpop.f32.mrf.mxu2 }
 0x824   : > { %11099 = vst [vmem:[%s13995_s14 + $0x88] sm:$0xff] %v10917_v12   ;;  %v5485_v49 = vpop.f32.mrf.mxu1  ;;  %v5573_v34 = vadd.f32 %v5572_v8, %v5484_v13 }
 0x825   : > { %v5661_v15 = vpop.f32.mrf.mxu3  ;;  %v5396_v33 = vpop.f32.mrf.mxu0 }
 0x826   : > { %v5486_v35 = vadd.f32 %v5485_v49, %v5396_v33  ;;  %v5662_v36 = vadd.f32 %v5661_v15, %v5573_v34 }
 0x828   : > { %v6559_v55 = vadd.f32 %v14122_v59, %v5662_v36 }
 0x82b   : > { %v5574_v14 = vpop.f32.mrf.mxu2 }
 0x82c   : > { %v5575_v62 = vadd.f32 %v5574_v14, %v5486_v35  ;;  %v5488_v54 = vpop.f32.mrf.mxu1 }
 0x82d   : > { %v5663_v2 = vpop.f32.mrf.mxu3  ;;  %v5399_v50 = vpop.f32.mrf.mxu0 }
 0x82e   : > { %v5664_v9 = vadd.f32 %v5663_v2, %v5575_v62  ;;  %5527 = vmatmul.bf16.gmra.mxu1 %v14664_v47  ;;  %v5489_v5 = vadd.f32 %v5488_v54, %v5399_v50  ;;  %v14745_v50 = vld [vmem:[#allocation68_spill] sm:$0xff]  ;;  %v14747_v54 = vld [vmem:[#allocation70_spill] sm:$0xff] }
 0x830   : > { %5438 = vmatmul.bf16.gmra.mxu0 %v14663_v22  ;;  %v6567_v53 = vadd.f32 %v14122_v59, %v5664_v9  ;;  %5616 = vmatmul.bf16.gmra.mxu2 %v14703_v43  ;;  %v14746_v9 = vld [vmem:[#allocation69_spill] sm:$0xff] }
 0x832   : > { %5705 = vmatmul.bf16.gmra.mxu3 %v14704_v29  ;;  %v10922_v7 = vpack.c.bf16 %v6567_v53, %v6559_v55 }
 0x833   : > { %v5577_v25 = vpop.f32.mrf.mxu2 }
 0x834   : > { %11100 = vst [vmem:[%s13995_s14 + $0x90] sm:$0xff] %v10922_v7   ;;  %v5490_v19 = vpop.f32.mrf.mxu1  ;;  %v5578_v39 = vadd.f32 %v5577_v25, %v5489_v5 }
 0x835   : > { %v5666_v40 = vpop.f32.mrf.mxu3  ;;  %v5401_v41 = vpop.f32.mrf.mxu0 }
 0x836   : > { %v5491_v10 = vadd.f32 %v5490_v19, %v5401_v41  ;;  %v5667_v21 = vadd.f32 %v5666_v40, %v5578_v39 }
 0x838   : > { %v6575_v43 = vadd.f32 %v14122_v59, %v5667_v21 }
 0x83b   : > { %v5579_v22 = vpop.f32.mrf.mxu2 }
 0x83c   : > { %v5580_v44 = vadd.f32 %v5579_v22, %v5491_v10  ;;  %v5493_v60 = vpop.f32.mrf.mxu1 }
 0x83d   : > { %v5668_v0 = vpop.f32.mrf.mxu3  ;;  %v5404_v52 = vpop.f32.mrf.mxu0 }
 0x83e   : > { %v5669_v47 = vadd.f32 %v5668_v0, %v5580_v44  ;;  %5532 = vmatmul.bf16.gmra.mxu1 %v14706_v30  ;;  %v5494_v20 = vadd.f32 %v5493_v60, %v5404_v52 }
 0x840   : > { %5443 = vmatmul.bf16.gmra.mxu0 %v14705_v45  ;;  %v6583_v29 = vadd.f32 %v14122_v59, %v5669_v47  ;;  %5621 = vmatmul.bf16.gmra.mxu2 %v14707_v38 }
 0x842   : > { %5710 = vmatmul.bf16.gmra.mxu3 %v14708_v58  ;;  %v10927_v23 = vpack.c.bf16 %v6583_v29, %v6575_v43 }
 0x843   : > { %v5582_v4 = vpop.f32.mrf.mxu2 }
 0x844   : > { %11101 = vst [vmem:[%s13995_s14 + $0x98] sm:$0xff] %v10927_v23   ;;  %v5495_v3 = vpop.f32.mrf.mxu1  ;;  %v5583_v31 = vadd.f32 %v5582_v4, %v5494_v20 }
 0x845   : > { %v5671_v1 = vpop.f32.mrf.mxu3  ;;  %v5406_v17 = vpop.f32.mrf.mxu0 }
 0x846   : > { %v5496_v16 = vadd.f32 %v5495_v3, %v5406_v17  ;;  %v5672_v57 = vadd.f32 %v5671_v1, %v5583_v31 }
 0x848   : > { %v6591_v38 = vadd.f32 %v14122_v59, %v5672_v57 }
 0x84b   : > { %v5584_v45 = vpop.f32.mrf.mxu2 }
 0x84c   : > { %v5585_v26 = vadd.f32 %v5584_v45, %v5496_v16  ;;  %v5498_v24 = vpop.f32.mrf.mxu1 }
 0x84d   : > { %v5673_v11 = vpop.f32.mrf.mxu3  ;;  %v5409_v6 = vpop.f32.mrf.mxu0 }
 0x84e   : > { %v5674_v30 = vadd.f32 %v5673_v11, %v5585_v26  ;;  %5537 = vmatmul.bf16.gmra.mxu1 %v14710_v28  ;;  %v5499_v32 = vadd.f32 %v5498_v24, %v5409_v6 }
 0x850   : > { %5448 = vmatmul.bf16.gmra.mxu0 %v14709_v37  ;;  %v6599_v58 = vadd.f32 %v14122_v59, %v5674_v30  ;;  %5626 = vmatmul.bf16.gmra.mxu2 %v14743_v42 }
 0x852   : > { %5715 = vmatmul.bf16.gmra.mxu3 %v14744_v56  ;;  %v10932_v61 = vpack.c.bf16 %v6599_v58, %v6591_v38 }
 0x853   : > { %v5587_v63 = vpop.f32.mrf.mxu2 }
 0x854   : > { %11102 = vst [vmem:[%s13995_s14 + $0xa0] sm:$0xff] %v10932_v61   ;;  %v5500_v13 = vpop.f32.mrf.mxu1  ;;  %v5588_v15 = vadd.f32 %v5587_v63, %v5499_v32 }
 0x855   : > { %v5676_v12 = vpop.f32.mrf.mxu3  ;;  %v5411_v8 = vpop.f32.mrf.mxu0 }
 0x856   : > { %v5501_v33 = vadd.f32 %v5500_v13, %v5411_v8  ;;  %v5677_v49 = vadd.f32 %v5676_v12, %v5588_v15 }
 0x858   : > { %v6607_v62 = vadd.f32 %v14122_v59, %v5677_v49 }
 0x85b   : > { %v5589_v37 = vpop.f32.mrf.mxu2 }
 0x85c   : > { %v5590_v34 = vadd.f32 %v5589_v37, %v5501_v33  ;;  %v5503_v36 = vpop.f32.mrf.mxu1 }
 0x85d   : > { %v5678_v35 = vpop.f32.mrf.mxu3  ;;  %v5414_v14 = vpop.f32.mrf.mxu0 }
 0x85e   : > { %v5679_v28 = vadd.f32 %v5678_v35, %v5590_v34  ;;  %5542 = vmatmul.bf16.gmra.mxu1 %v14745_v50  ;;  %v5504_v7 = vadd.f32 %v5503_v36, %v5414_v14 }
 0x860   : > { %5453 = vmatmul.bf16.gmra.mxu0 %v14713_v18  ;;  %v6615_v2 = vadd.f32 %v14122_v59, %v5679_v28  ;;  %5631 = vmatmul.bf16.gmra.mxu2 %v14746_v9 }
 0x862   : > { %5720 = vmatmul.bf16.gmra.mxu3 %v14747_v54  ;;  %v10937_v55 = vpack.c.bf16 %v6615_v2, %v6607_v62 }
 0x863   : > { %v5592_v53 = vpop.f32.mrf.mxu2 }
 0x864   : > { %11103 = vst [vmem:[%s13995_s14 + $0xa8] sm:$0xff] %v10937_v55   ;;  %v5505_v40 = vpop.f32.mrf.mxu1  ;;  %v5593_v41 = vadd.f32 %v5592_v53, %v5504_v7 }
 0x865   : > { %v5681_v25 = vpop.f32.mrf.mxu3  ;;  %v5416_v5 = vpop.f32.mrf.mxu0 }
 0x866   : > { %v5506_v19 = vadd.f32 %v5505_v40, %v5416_v5  ;;  %v5682_v39 = vadd.f32 %v5681_v25, %v5593_v41 }
 0x868   : > { %v6623_v52 = vadd.f32 %v14122_v59, %v5682_v39 }
 0x86b   : > { %v5594_v18 = vpop.f32.mrf.mxu2 }
 0x86c   : > { %v5595_v10 = vadd.f32 %v5594_v18, %v5506_v19  ;;  %v5508_v0 = vpop.f32.mrf.mxu1 }
 0x86d   : > { %v5683_v22 = vpop.f32.mrf.mxu3  ;;  %v5419_v21 = vpop.f32.mrf.mxu0 }
 0x86e   : > { %v5684_v44 = vadd.f32 %v5683_v22, %v5595_v10  ;;  %5547 = vmatmul.bf16.gmra.mxu1 %v14638_v46  ;;  %v5509_v29 = vadd.f32 %v5508_v0, %v5419_v21 }
 0x870   : > { %5458 = vmatmul.bf16.gmra.mxu0 %v14637_v51  ;;  %v6631_v47 = vadd.f32 %v14122_v59, %v5684_v44  ;;  %5636 = vmatmul.bf16.gmra.mxu2 %v14639_v27 }
 0x872   : > { %5725 = vmatmul.bf16.gmra.mxu3 %v14640_v48  ;;  %v10942_v60 = vpack.c.bf16 %v6631_v47, %v6623_v52 }
 0x873   : > { %v5597_v43 = vpop.f32.mrf.mxu2 }
 0x874   : > { %11104 = vst [vmem:[%s13995_s14 + $0xb0] sm:$0xff] %v10942_v60   ;;  %v5510_v20 = vpop.f32.mrf.mxu1  ;;  %v5598_v51 = vadd.f32 %v5597_v43, %v5509_v29 }
 0x875   : > { %v5686_v23 = vpop.f32.mrf.mxu3  ;;  %v5421_v4 = vpop.f32.mrf.mxu0 }
 0x876   : > { %v5511_v1 = vadd.f32 %v5510_v20, %v5421_v4  ;;  %v5687_v46 = vadd.f32 %v5686_v23, %v5598_v51 }
 0x878   : > { %v6639_v45 = vadd.f32 %v14122_v59, %v5687_v46 }
 0x87b   : > { %v5599_v17 = vpop.f32.mrf.mxu2 }
 0x87c   : > { %v5600_v3 = vadd.f32 %v5599_v17, %v5511_v1  ;;  %v5513_v16 = vpop.f32.mrf.mxu1 }
 0x87d   : > { %v5688_v27 = vpop.f32.mrf.mxu3  ;;  %v5424_v31 = vpop.f32.mrf.mxu0 }
 0x87e   : > { %v5689_v48 = vadd.f32 %v5688_v27, %v5600_v3  ;;  %v5514_v6 = vadd.f32 %v5513_v16, %v5424_v31 }
 0x880   : > { %v6647_v57 = vadd.f32 %v14122_v59, %v5689_v48 }
 0x882   : > { %v10947_v26 = vpack.c.bf16 %v6647_v57, %v6639_v45 }
 0x883   : > { %v5602_v11 = vpop.f32.mrf.mxu2 }
 0x884   : > { %11105 = vst [vmem:[%s13995_s14 + $0xb8] sm:$0xff] %v10947_v26   ;;  %v5515_v38 = vpop.f32.mrf.mxu1 }
 0x885   : > { %v5691_v30 = vpop.f32.mrf.mxu3  ;;  %v5426_v24 = vpop.f32.mrf.mxu0 }
 0x886   : > { %11738 = shalt.err (!%p11735_p0)
}
 0x887   : > { %s11874_s19 = smov 4   ;;  %v5603_v58 = vadd.f32 %v5602_v11, %v5514_v6  ;;  %s8339_s18 = scalar_lea.hbm %s14293_s5, %s10346_s8  ;;  %v5516_v42 = vadd.f32 %v5515_v38, %v5426_v24 }
 0x888   : > { %11133 = dma.vmem_to_hbm [thread:$0]  (%p12014_p7), %s8360_s22, 4096, %s8362_s1, %s14185_s12, %s11873_s2, %s11873_s2, %s11874_s19  }
 0x889   : > { %s8340_s11 = sshll.u32 %s12470_s3, 4  ;;  %s8342_s4 = sshll.u32 %s8339_s18, 4  ;;  %v5692_v61 = vadd.f32 %v5691_v30, %v5603_v58  ;;  %s8341_s11 = int_to_ptr.vmem [resolvable:$true] %s8340_s11  ;;  %s8343_s4 = int_to_ptr.hbm [resolvable:$true] %s8342_s4 }
 0x88a   : > { %s8316_s9 = scalar_lea.sflag [#allocation5], %s12035_s23  ;;  %s11753_s15 = sshra.s32 %s8343_s4, 4  ;;  %s11754_s15 = int_to_ptr.hbm [resolvable:$true] %s11753_s15 }
 0x88b   : > { %v5604_v56 = vpop.f32.mrf.mxu2  ;;  %s11755_s13 = scalar_lea.hbm %s11754_s15, 512  ;;  %s11759_s8 = scalar_lea.hbm %s14293_s5, 1024 }
 0x88c   : > { %v5605_v63 = vadd.f32 %v5604_v56, %v5516_v42  ;;  %p11756_p3 = scmp.ne.s32.totalorder %s11754_s15, %s11755_s13  ;;  %p11760_p2 = scmp.lt.s32.totalorder %s11754_s15, %s14293_s5 }
 0x88d   : > { %v5693_v32 = vpop.f32.mrf.mxu3  ;;  %p11761_p1 = scmp.lt.s32.totalorder %s11759_s8, %s11755_s13 }
 0x88e   : > { %p11757_p5 = pnand %p11756_p3, %p12014_p7 }
 0x88f   : > { %p11762_p4 = por %p11761_p1, %p11760_p2 }
 0x890   : > { %p11758_p9 = pneg %p11757_p5 }
 0x892   : > { %p11763_p8 = pnand %p11762_p4, %p11758_p9 }
 0x894   : > { %11766 = shalt.err (!%p11763_p8)
}
 0x895   : > { %11132 = dma.vmem_to_hbm [thread:$0]  (%p12014_p7), %s8341_s11, 8192, %s8343_s4, %s8316_s9, %s11873_s2, %s11873_s2, %s11874_s19   ;;  %v5429_v12 = vpop.f32.mrf.mxu0  ;;  %v5694_v8 = vadd.f32 %v5693_v32, %v5605_v63  ;;  %v5518_v13 = vpop.f32.mrf.mxu1  ;;  %v6655_v15 = vadd.f32 %v14122_v59, %v5692_v61 }
 0x896   : > { %v5607_v49 = vpop.f32.mrf.mxu2  ;;  %v5519_v34 = vadd.f32 %v5518_v13, %v5429_v12  ;;  %v5696_v35 = vpop.f32.mrf.mxu3  ;;  %s8377_s18 = scalar_lea.hbm %s14295_s7, %s10347_s20  ;;  %s8378_s4 = sshll.u32 %s13995_s14, 4  ;;  %s8379_s4 = int_to_ptr.vmem [resolvable:$true] %s8378_s4 }
 0x897   : > { %v6663_v33 = vadd.f32 %v14122_v59, %v5694_v8  ;;  %s8380_s11 = sshll.u32 %s8377_s18, 4  ;;  %s11787_s13 = scalar_lea.hbm %s14295_s7, 512  ;;  %s8381_s11 = int_to_ptr.hbm [resolvable:$true] %s8380_s11 }
 0x898   : > { %v5608_v36 = vadd.f32 %v5607_v49, %v5519_v34  ;;  %s11781_s9 = sshra.s32 %s8381_s11, 4  ;;  %s11782_s9 = int_to_ptr.hbm [resolvable:$true] %s11781_s9 }
 0x899   : > { %v10952_v37 = vpack.c.bf16 %v6663_v33, %v6655_v15  ;;  %s11783_s27 = scalar_lea.hbm %s11782_s9, 256  ;;  %p11788_p0 = scmp.lt.s32.totalorder %s11782_s9, %s14295_s7 }
 0x89a   : > { %v5697_v50 = vadd.f32 %v5696_v35, %v5608_v36  ;;  %p11784_p10 = scmp.ne.s32.totalorder %s11782_s9, %s11783_s27  ;;  %p11789_p3 = scmp.lt.s32.totalorder %s11787_s13, %s11783_s27 }
 0x89b   : > { %11106 = vst [vmem:[%s13995_s14 + $0xc0] sm:$0xff] %v10952_v37  }
 0x89c   : > { %v6671_v25 = vadd.f32 %v14122_v59, %v5697_v50  ;;  %p11785_p12 = pnand %p11784_p10, %p12014_p7  ;;  %p11790_p5 = por %p11789_p3, %p11788_p0 }
 0x89d   : > { %v5431_v14 = vpop.f32.mrf.mxu0  ;;  %v5520_v28 = vpop.f32.mrf.mxu1 }
 0x89e   : > { %v5521_v62 = vadd.f32 %v5520_v28, %v5431_v14  ;;  %v5609_v2 = vpop.f32.mrf.mxu2  ;;  %v5698_v54 = vpop.f32.mrf.mxu3  ;;  %p11786_p13 = pneg %p11785_p12 }
 0x8a0   : > { %v5610_v9 = vadd.f32 %v5609_v2, %v5521_v62  ;;  %p11791_p9 = pnand %p11790_p5, %p11786_p13 }
 0x8a2   : > { %v5699_v53 = vadd.f32 %v5698_v54, %v5610_v9 }
 0x8a4   : > { %v6679_v5 = vadd.f32 %v14122_v59, %v5699_v53 }
 0x8a5   : > { %v5434_v55 = vpop.f32.mrf.mxu0  ;;  %v5523_v7 = vpop.f32.mrf.mxu1 }
 0x8a6   : > { %v10957_v40 = vpack.c.bf16 %v6679_v5, %v6671_v25  ;;  %v5612_v41 = vpop.f32.mrf.mxu2  ;;  %v5524_v19 = vadd.f32 %v5523_v7, %v5434_v55  ;;  %v5701_v18 = vpop.f32.mrf.mxu3 }
 0x8a8   : > { %11107 = vst [vmem:[%s13995_s14 + $0xc8] sm:$0xff] %v10957_v40   ;;  %v5613_v22 = vadd.f32 %v5612_v41, %v5524_v19 }
 0x8aa   : > { %v5702_v0 = vadd.f32 %v5701_v18, %v5613_v22 }
 0x8ac   : > { %v6687_v23 = vadd.f32 %v14122_v59, %v5702_v0 }
 0x8ad   : > { %v5436_v39 = vpop.f32.mrf.mxu0  ;;  %v5525_v10 = vpop.f32.mrf.mxu1 }
 0x8ae   : > { %v5526_v21 = vadd.f32 %v5525_v10, %v5436_v39  ;;  %v5614_v44 = vpop.f32.mrf.mxu2  ;;  %v5703_v47 = vpop.f32.mrf.mxu3 }
 0x8b0   : > { %v5615_v52 = vadd.f32 %v5614_v44, %v5526_v21 }
 0x8b2   : > { %v5704_v43 = vadd.f32 %v5703_v47, %v5615_v52 }
 0x8b4   : > { %v6695_v4 = vadd.f32 %v14122_v59, %v5704_v43 }
 0x8b5   : > { %v5439_v60 = vpop.f32.mrf.mxu0  ;;  %v5528_v29 = vpop.f32.mrf.mxu1 }
 0x8b6   : > { %v10962_v20 = vpack.c.bf16 %v6695_v4, %v6687_v23  ;;  %v5617_v51 = vpop.f32.mrf.mxu2  ;;  %v5529_v1 = vadd.f32 %v5528_v29, %v5439_v60  ;;  %v5706_v17 = vpop.f32.mrf.mxu3 }
 0x8b8   : > { %11108 = vst [vmem:[%s13995_s14 + $0xd0] sm:$0xff] %v10962_v20   ;;  %v5618_v27 = vadd.f32 %v5617_v51, %v5529_v1 }
 0x8ba   : > { %v5707_v16 = vadd.f32 %v5706_v17, %v5618_v27 }
 0x8bc   : > { %v6703_v30 = vadd.f32 %v14122_v59, %v5707_v16 }
 0x8bd   : > { %v5441_v46 = vpop.f32.mrf.mxu0  ;;  %v5530_v3 = vpop.f32.mrf.mxu1 }
 0x8be   : > { %v5531_v31 = vadd.f32 %v5530_v3, %v5441_v46  ;;  %v5619_v48 = vpop.f32.mrf.mxu2  ;;  %v5708_v57 = vpop.f32.mrf.mxu3 }
 0x8c0   : > { %v5620_v45 = vadd.f32 %v5619_v48, %v5531_v31 }
 0x8c2   : > { %v5709_v11 = vadd.f32 %v5708_v57, %v5620_v45 }
 0x8c4   : > { %v6711_v24 = vadd.f32 %v14122_v59, %v5709_v11 }
 0x8c5   : > { %v5444_v26 = vpop.f32.mrf.mxu0  ;;  %v5533_v6 = vpop.f32.mrf.mxu1 }
 0x8c6   : > { %v10967_v38 = vpack.c.bf16 %v6711_v24, %v6703_v30  ;;  %v5622_v58 = vpop.f32.mrf.mxu2  ;;  %v5534_v42 = vadd.f32 %v5533_v6, %v5444_v26  ;;  %v5711_v56 = vpop.f32.mrf.mxu3 }
 0x8c8   : > { %11109 = vst [vmem:[%s13995_s14 + $0xd8] sm:$0xff] %v10967_v38   ;;  %v5623_v32 = vadd.f32 %v5622_v58, %v5534_v42 }
 0x8ca   : > { %v5712_v13 = vadd.f32 %v5711_v56, %v5623_v32 }
 0x8cc   : > { %v6719_v35 = vadd.f32 %v14122_v59, %v5712_v13 }
 0x8cd   : > { %v5446_v61 = vpop.f32.mrf.mxu0  ;;  %v5535_v63 = vpop.f32.mrf.mxu1 }
 0x8ce   : > { %v5536_v12 = vadd.f32 %v5535_v63, %v5446_v61  ;;  %v5624_v8 = vpop.f32.mrf.mxu2  ;;  %v5713_v33 = vpop.f32.mrf.mxu3 }
 0x8d0   : > { %v5625_v15 = vadd.f32 %v5624_v8, %v5536_v12 }
 0x8d2   : > { %v5714_v49 = vadd.f32 %v5713_v33, %v5625_v15 }
 0x8d4   : > { %v6727_v14 = vadd.f32 %v14122_v59, %v5714_v49 }
 0x8d5   : > { %v5449_v37 = vpop.f32.mrf.mxu0  ;;  %v5538_v34 = vpop.f32.mrf.mxu1 }
 0x8d6   : > { %v10972_v28 = vpack.c.bf16 %v6727_v14, %v6719_v35  ;;  %v5627_v36 = vpop.f32.mrf.mxu2  ;;  %v5539_v62 = vadd.f32 %v5538_v34, %v5449_v37  ;;  %v5716_v2 = vpop.f32.mrf.mxu3 }
 0x8d8   : > { %11110 = vst [vmem:[%s13995_s14 + $0xe0] sm:$0xff] %v10972_v28   ;;  %v5628_v54 = vadd.f32 %v5627_v36, %v5539_v62 }
 0x8da   : > { %v5717_v7 = vadd.f32 %v5716_v2, %v5628_v54 }
 0x8dc   : > { %v6735_v18 = vadd.f32 %v14122_v59, %v5717_v7 }
 0x8dd   : > { %v5451_v50 = vpop.f32.mrf.mxu0  ;;  %v5540_v9 = vpop.f32.mrf.mxu1 }
 0x8de   : > { %v5541_v55 = vadd.f32 %v5540_v9, %v5451_v50  ;;  %v5629_v53 = vpop.f32.mrf.mxu2  ;;  %v5718_v5 = vpop.f32.mrf.mxu3 }
 0x8e0   : > { %v5630_v25 = vadd.f32 %v5629_v53, %v5541_v55 }
 0x8e2   : > { %v5719_v41 = vadd.f32 %v5718_v5, %v5630_v25 }
 0x8e4   : > { %v6743_v39 = vadd.f32 %v14122_v59, %v5719_v41 }
 0x8e5   : > { %v5454_v40 = vpop.f32.mrf.mxu0  ;;  %v5543_v19 = vpop.f32.mrf.mxu1 }
 0x8e6   : > { %v10977_v10 = vpack.c.bf16 %v6743_v39, %v6735_v18  ;;  %v5632_v22 = vpop.f32.mrf.mxu2  ;;  %v5544_v21 = vadd.f32 %v5543_v19, %v5454_v40  ;;  %v5721_v44 = vpop.f32.mrf.mxu3 }
 0x8e8   : > { %11111 = vst [vmem:[%s13995_s14 + $0xe8] sm:$0xff] %v10977_v10   ;;  %v5633_v47 = vadd.f32 %v5632_v22, %v5544_v21 }
 0x8ea   : > { %v5722_v29 = vadd.f32 %v5721_v44, %v5633_v47 }
 0x8ec   : > { %v6751_v17 = vadd.f32 %v14122_v59, %v5722_v29 }
 0x8ed   : > { %v5456_v0 = vpop.f32.mrf.mxu0  ;;  %v5545_v52 = vpop.f32.mrf.mxu1 }
 0x8ee   : > { %v5546_v60 = vadd.f32 %v5545_v52, %v5456_v0  ;;  %v5634_v43 = vpop.f32.mrf.mxu2  ;;  %v5723_v4 = vpop.f32.mrf.mxu3 }
 0x8f0   : > { %v5635_v23 = vadd.f32 %v5634_v43, %v5546_v60 }
 0x8f2   : > { %v5724_v51 = vadd.f32 %v5723_v4, %v5635_v23 }
 0x8f4   : > { %v6759_v46 = vadd.f32 %v14122_v59, %v5724_v51 }
 0x8f5   : > { %v5459_v20 = vpop.f32.mrf.mxu0  ;;  %v5548_v1 = vpop.f32.mrf.mxu1 }
 0x8f6   : > { %v10982_v3 = vpack.c.bf16 %v6759_v46, %v6751_v17  ;;  %v5637_v27 = vpop.f32.mrf.mxu2  ;;  %v5549_v31 = vadd.f32 %v5548_v1, %v5459_v20  ;;  %v5726_v48 = vpop.f32.mrf.mxu3 }
 0x8f8   : > { %11112 = vst [vmem:[%s13995_s14 + $0xf0] sm:$0xff] %v10982_v3   ;;  %v5638_v57 = vadd.f32 %v5637_v27, %v5549_v31 }
 0x8fa   : > { %v5727_v6 = vadd.f32 %v5726_v48, %v5638_v57 }
 0x8fc   : > { %v6767_v58 = vadd.f32 %v14122_v59, %v5727_v6 }
 0x8fd   : > { %v5461_v16 = vpop.f32.mrf.mxu0  ;;  %v5550_v45 = vpop.f32.mrf.mxu1 }
 0x8fe   : > { %v5551_v26 = vadd.f32 %v5550_v45, %v5461_v16  ;;  %v5639_v11 = vpop.f32.mrf.mxu2  ;;  %v5728_v24 = vpop.f32.mrf.mxu3 }
 0x900   : > { %v5640_v30 = vadd.f32 %v5639_v11, %v5551_v26 }
 0x902   : > { %v5729_v38 = vadd.f32 %v5728_v24, %v5640_v30 }
 0x904   : > { %v6775_v42 = vadd.f32 %v14122_v59, %v5729_v38 }
 0x906   : > { %v10987_v56 = vpack.c.bf16 %v6775_v42, %v6767_v58 }
 0x908   : > { %11113 = vst [vmem:[%s13995_s14 + $0xf8] sm:$0xff] %v10987_v56  }
 0x909   : > { %11794 = shalt.err (!%p11791_p9)
}
 0x90a   : > { %11134 = dma.vmem_to_hbm [thread:$0]  (%p12014_p7), %s8379_s4, 4096, %s8381_s11, %s14185_s12, %s11873_s2, %s11873_s2, %s11874_s19  }
 0x90b PF: > { %s8395_s14 = sand.u32 1, %s11841_s24   ;;  %p11156_p2 = pnand %p8593_p11, %p11962_p6 }
 0x90c   : > { %s8396_s8 = scalar_lea.sflag [#allocation5], %s8395_s14 }
 0x90d   : > { %p11157_p1 = pneg %p11156_p2 }
 0x90f   : > { %11832 = dma.done.wait (%p11157_p1), %s8396_s8, 8192  }
 0x910   : > { %11834 = vsyncadd (%p11157_p1), %s8396_s8, 4294959104  ;;  %s14748_s3 = sadd.s32 4294967294, %s11861_s29  }
 0x911   : > { %s8405_s17 = sand.u32 1, %s14748_s3  }
 0x912   : > { %s8406_s21 = scalar_lea.sflag [#allocation14], %s8405_s17 }
 0x913   : > { %11836 = dma.done.wait (%p11157_p1), %s8406_s21, 8192  }
 0x914   : > { %11838 = vsyncadd (%p11157_p1), %s8406_s21, 4294959104  ;;  %s29_s29 = sadd.s32 1, %s11861_s29   ;;  %s14749_s10 = sld [smem:[#allocation21_spill]] }
 0x915   : > { %p26_p7 = scmp.ge.s32.totalorder %s29_s29, 4   ;;  %s14750_s24 = smov %s11845_s25 }
 0x916   : > { %s14751_s25 = smov %s11849_s26  ;;  %s14752_s26 = smov %s12023_s16 }
 0x917   : > { %s14753_s27 = smov %s11857_s28  ;;  %28 = sbr.rel (!%p26_p7) target bundleno = 15 (0xf), region = 147 }
 0x91a   : > { %s14754_s28 = smov %s14749_s10 }
 0x91c   :  { %8422 = vsyncpa [#allocation4], 1 }
 0x91d   :  { %8424 = vsyncpa [#allocation4 + $0x1], 1 }
 0x91e   :  { %8425 = vsyncpa [#allocation7], 1 }
 0x91f   :  { %8426 = vsyncpa [#allocation10], 1 }
 0x920   :  { %8427 = vsyncpa [#allocation5], 1 }
 0x921   :  { %8429 = vsyncpa [#allocation5 + $0x1], 1 }
 0x922   :  { %8430 = vsyncpa [#allocation14], 1 }
 0x923   :  { %8432 = vsyncpa [#allocation14 + $0x1], 1 }

</bundles_post_ra>
